<compile_context>
chip_gen: v6e
topology: v6e:2x2x1
jax: 0.10.0
libtpu: 0.0.40
codegen_flags: <defaults>
</compile_context>

<pallas_src>
import functools

import jax
import jax.numpy as jnp
from jax.experimental import pallas as pl
from jax.experimental.pallas import tpu as pltpu


def _layer_norm(x, w, b, eps=1e-5):
    mu = jnp.mean(x, axis=-1, keepdims=True)
    var = jnp.mean((x - mu) ** 2, axis=-1, keepdims=True)
    return (x - mu) * jax.lax.rsqrt(var + eps) * w + b


def encoder_kernel(src_ref, pos_ref,
                   wqkv_ref, bqk_ref, bv_ref, wo_ref, bo_ref,
                   ln1w_ref, ln1b_ref, w1_ref, b1_ref, w2_ref, b2_ref,
                   ln2w_ref, ln2b_ref,
                   out_ref, *, nhead, num_layers, compute_dtype, exp_dtype):
    """Bt batch elements per grid step; all encoder layers fused in-kernel."""
    f32 = jnp.float32
    cdt = compute_dtype

    Bt, S, D = src_ref.shape
    M = Bt * S
    H = nhead
    dh = D // H

    x0 = src_ref[...].reshape(M, D).astype(f32)
    pos = pos_ref[...].reshape(M, D).astype(cdt)

    # Weights arrive pre-transposed (x @ W form), q|k|v fused, 1/sqrt(dh)
    # folded into the q columns, matmul weights already in the MXU dtype.
    wqkv = wqkv_ref[...]                    # (D, 3D)
    bqk = bqk_ref[...].astype(f32)          # (1, 2D)   (q part pre-scaled)
    bv = bv_ref[...].astype(f32)            # (1, D)
    wo = wo_ref[...]                        # (D, D)
    bo = bo_ref[...].astype(f32)
    ln1w = ln1w_ref[...].astype(f32)
    ln1b = ln1b_ref[...].astype(f32)
    w1 = w1_ref[...]                        # (D, F)
    b1 = b1_ref[...].astype(f32)
    w2 = w2_ref[...]                        # (F, D)
    b2 = b2_ref[...].astype(f32)
    ln2w = ln2w_ref[...].astype(f32)
    ln2b = ln2b_ref[...].astype(f32)

    # Layer-invariant (weights shared across layers): pos @ [Wq*s | Wk] + bias.
    pos_qk = jnp.dot(pos, wqkv[:, :2 * D], preferred_element_type=f32) + bqk

    def split_heads(x2d):
        # (M, D) -> (Bt*H, S, dh): one reshape+transpose relayout per tensor.
        x4 = jnp.transpose(x2d.reshape(Bt, S, H, dh), (0, 2, 1, 3))
        return x4.reshape(Bt * H, S, dh).astype(cdt)

    def merge_heads(o3d):
        # (Bt*H, S, dh) -> (M, D)
        o4 = jnp.transpose(o3d.reshape(Bt, H, S, dh), (0, 2, 1, 3))
        return o4.reshape(M, D)

    def one_layer(x):
        # Fused q|k|v projection: one (M, D) x (D, 3D) MXU pass per layer.
        qkv = jnp.dot(x.astype(cdt), wqkv, preferred_element_type=f32)
        q = split_heads(qkv[:, :D] + pos_qk[:, :D])            # (Bt*H, S, dh)
        k = split_heads(qkv[:, D:2 * D] + pos_qk[:, D:])
        v = split_heads(qkv[:, 2 * D:] + bv)

        s = jnp.einsum('bqd,bkd->bqk', q, k,
                       preferred_element_type=f32)             # (Bt*H, S, S)
        s = s - jnp.max(s, axis=-1, keepdims=True)
        p = jnp.exp(s.astype(exp_dtype))                       # bf16 on v6e/v7x
        denom = jnp.sum(p, axis=-1, keepdims=True, dtype=f32)  # row-sum in f32
        o = jnp.einsum('bqk,bkd->bqd', p.astype(cdt), v,
                       preferred_element_type=f32)             # (Bt*H, S, dh)
        o = o * pl.reciprocal(denom, approx=True)              # normalize post-PV

        attn = jnp.dot(merge_heads(o).astype(cdt), wo,
                       preferred_element_type=f32) + bo

        x1 = _layer_norm(x + attn, ln1w, ln1b)

        h1 = jnp.dot(x1.astype(cdt), w1, preferred_element_type=f32) + b1
        h1 = jnp.maximum(h1, 0.0)
        ff = jnp.dot(h1.astype(cdt), w2, preferred_element_type=f32) + b2

        return _layer_norm(x1 + ff, ln2w, ln2b)

    # deepcopy semantics: every layer uses the same (cloned) parameter set.
    y = jax.lax.fori_loop(0, num_layers, lambda _, c: one_layer(c), x0)
    out_ref[...] = y.reshape(Bt, S, D).astype(out_ref.dtype)


def _pick_batch_tile(B, S, row_target=128, row_cap=1024):
    """Pack several batch elements per grid step so projection/FFN matmuls see
    M = Bt*S rows (better MXU fill for small S), but keep >=2 grid steps when
    B allows so both v7x TensorCores get work."""
    best = 1
    for cand in range(1, B + 1):
        if B % cand:
            continue
        if cand * S > row_cap:
            break
        if B >= 2 and B // cand < 2:
            continue
        best = cand
        if cand * S >= row_target:
            break
    return best


def _pick_exp_dtype():
    # bf16 exp runs ~2x faster on v6e/v7x's EUP; v5e and older have no bf16
    # EUP, keep f32 there (review: do NOT use bf16 elementwise on v5e).
    try:
        kind = jax.devices()[0].device_kind.lower()
    except Exception:
        kind = ""
    if any(t in kind for t in ("v2", "v3", "v4", "v5")):
        return jnp.float32
    return jnp.bfloat16


def _pick_vmem_limit(default_bytes=48 * 1024 * 1024):
    # ~3/4 of physical VMEM: 96 MiB on 128-MiB chips (v5e/v6e), 48 MiB on
    # 64-MiB-per-TC v7x; leaves headroom for Mosaic scratch / double buffers.
    try:
        cap = int(getattr(pltpu.get_tpu_info(), "vmem_capacity_bytes", 0))
    except Exception:
        cap = 0
    if cap >= 128 * 1024 * 1024:
        return 96 * 1024 * 1024
    if cap > 0:
        return cap * 3 // 4
    return default_bytes


def transformer_encoder(src, pos, params, *, num_layers, nhead,
                        compute_dtype=jnp.bfloat16):
    B, S, D = src.shape
    F = params["w1"].shape[0]
    assert D % nhead == 0
    dh = D // nhead
    scale = 1.0 / float(dh) ** 0.5

    # One-time host/XLA-side relayout: transpose to x @ W form, fuse q|k|v,
    # fold the attention scale into Wq/bq, cast matmul weights to the MXU
    # compute dtype.  Biases / LayerNorm params stay f32.
    wqkv = jnp.concatenate([params["wq"].T * scale,
                            params["wk"].T,
                            params["wv"].T], axis=1).astype(compute_dtype)   # (D, 3D)
    bqk = jnp.concatenate([params["bq"] * scale, params["bk"]], axis=1)      # (1, 2D)
    woT = params["wo"].T.astype(compute_dtype)                               # (D, D)
    w1T = params["w1"].T.astype(compute_dtype)                               # (D, F)
    w2T = params["w2"].T.astype(compute_dtype)                               # (F, D)

    Bt = _pick_batch_tile(B, S)
    assert B % Bt == 0

    kernel = functools.partial(encoder_kernel, nhead=nhead,
                               num_layers=num_layers,
                               compute_dtype=compute_dtype,
                               exp_dtype=_pick_exp_dtype())

    tok = pl.BlockSpec((Bt, S, D), lambda b: (b, 0, 0))
    vmem_limit = _pick_vmem_limit()

    operands = (src, pos, wqkv, bqk, params["bv"], woT, params["bo"],
                params["ln1w"], params["ln1b"], w1T, params["b1"],
                w2T, params["b2"], params["ln2w"], params["ln2b"])

    def build(weight_mode):
        def wspec(shape):
            # Grid-invariant (weight) operand: constant index map; optionally
            # single-buffered to halve resident weight VMEM.
            if weight_mode is None:
                return pl.BlockSpec(shape, lambda b: (0, 0))
            return pl.BlockSpec(shape, lambda b: (0, 0),
                                pipeline_mode=weight_mode)

        in_specs = [
            tok, tok,
            wspec((D, 3 * D)), wspec((1, 2 * D)), wspec((1, D)),  # fused q|k|v
            wspec((D, D)), wspec((1, D)),                         # output proj
            wspec((1, D)), wspec((1, D)),                         # LayerNorm 1
            wspec((D, F)), wspec((1, F)),                         # FFN linear1
            wspec((F, D)), wspec((1, D)),                         # FFN linear2
            wspec((1, D)), wspec((1, D)),                         # LayerNorm 2
        ]
        return pl.pallas_call(
            kernel,
            out_shape=jax.ShapeDtypeStruct((B, S, D), src.dtype),
            grid=(B // Bt,),
            in_specs=in_specs,
            out_specs=tok,
            compiler_params=pltpu.CompilerParams(
                dimension_semantics=("parallel",),
                vmem_limit_bytes=vmem_limit),
        )

    try:
        # Weights never change across grid steps -> request single buffering.
        return build(pl.Buffered(1))(*operands)
    except Exception:
        # Fallback for Pallas versions that reject buffer_count=1.
        return build(None)(*operands)


def init_params(key, d_model, dim_feedforward):
    ks = jax.random.split(key, 8)
    scale = 0.05
    f32 = jnp.float32
    return {
        "wq": jax.random.normal(ks[0], (d_model, d_model), f32) * scale,
        "bq": jnp.zeros((1, d_model), f32),
        "wk": jax.random.normal(ks[1], (d_model, d_model), f32) * scale,
        "bk": jnp.zeros((1, d_model), f32),
        "wv": jax.random.normal(ks[2], (d_model, d_model), f32) * scale,
        "bv": jnp.zeros((1, d_model), f32),
        "wo": jax.random.normal(ks[3], (d_model, d_model), f32) * scale,
        "bo": jnp.zeros((1, d_model), f32),
        "ln1w": jnp.ones((1, d_model), f32),
        "ln1b": jnp.zeros((1, d_model), f32),
        "w1": jax.random.normal(ks[4], (dim_feedforward, d_model), f32) * scale,
        "b1": jnp.zeros((1, dim_feedforward), f32),
        "w2": jax.random.normal(ks[5], (d_model, dim_feedforward), f32) * scale,
        "b2": jnp.zeros((1, d_model), f32),
        "ln2w": jnp.ones((1, d_model), f32),
        "ln2b": jnp.zeros((1, d_model), f32),
    }


def _reference(src, pos, p, *, num_layers, nhead):
    """Pure-JAX f32 reference with identical semantics (PyTorch nn.Linear: x@W.T+b)."""
    def ln(x, w, b, eps=1e-5):
        mu = x.mean(-1, keepdims=True)
        var = ((x - mu) ** 2).mean(-1, keepdims=True)
        return (x - mu) * jax.lax.rsqrt(var + eps) * w + b

    B, S, D = src.shape
    dh = D // nhead
    x = src
    for _ in range(num_layers):
        qk_in = x + pos
        q = qk_in @ p["wq"].T + p["bq"]
        k = qk_in @ p["wk"].T + p["bk"]
        v = x @ p["wv"].T + p["bv"]
        q = q.reshape(B, S, nhead, dh).transpose(0, 2, 1, 3)
        k = k.reshape(B, S, nhead, dh).transpose(0, 2, 1, 3)
        v = v.reshape(B, S, nhead, dh).transpose(0, 2, 1, 3)
        s = jnp.einsum('bhqd,bhkd->bhqk', q, k) / (dh ** 0.5)
        a = jax.nn.softmax(s, axis=-1)
        o = jnp.einsum('bhqk,bhkd->bhqd', a, v).transpose(0, 2, 1, 3).reshape(B, S, D)
        attn = o @ p["wo"].T + p["bo"]
        x1 = ln(x + attn, p["ln1w"], p["ln1b"])
        h1 = jax.nn.relu(x1 @ p["w1"].T + p["b1"])
        ff = h1 @ p["w2"].T + p["b2"]
        x = ln(x1 + ff, p["ln2w"], p["ln2b"])
    return x


if __name__ == "__main__":
    B, S, D = 4, 16, 128       # lane-dense d_model (production DETR uses 256)
    NHEAD, FF, NUM_LAYERS = 4, 256, 2

    key = jax.random.PRNGKey(0)
    k_src, k_pos, k_par = jax.random.split(key, 3)
    src = jax.random.normal(k_src, (B, S, D), jnp.float32)
    pos = jax.random.normal(k_pos, (B, S, D), jnp.float32)
    params = init_params(k_par, D, FF)

    out = transformer_encoder(src, pos, params, num_layers=NUM_LAYERS, nhead=NHEAD)
    out = jax.block_until_ready(out)
    assert out.shape == (B, S, D)

    ref = _reference(src, pos, params, num_layers=NUM_LAYERS, nhead=NHEAD)
    err = float(jnp.max(jnp.abs(out - ref)))
    # bf16 MXU inputs + bf16 exp (on v6e/v7x) + approx reciprocal vs f32 ref.
    assert err < 1.5e-1, f"max abs err too large: {err}"
    print("KERNEL_OK")
</pallas_src>

<mosaic_0001>
module attributes {stable_mosaic.version = 11 : i64} {
  func.func @encoder_kernel(%arg0: i32, %arg1: memref<2x16x128xf32, #tpu.memory_space<vmem>>, %arg2: memref<2x16x128xf32, #tpu.memory_space<vmem>>, %arg3: memref<128x384xbf16, #tpu.memory_space<vmem>>, %arg4: memref<1x256xf32, #tpu.memory_space<vmem>>, %arg5: memref<1x128xf32, #tpu.memory_space<vmem>>, %arg6: memref<128x128xbf16, #tpu.memory_space<vmem>>, %arg7: memref<1x128xf32, #tpu.memory_space<vmem>>, %arg8: memref<1x128xf32, #tpu.memory_space<vmem>>, %arg9: memref<1x128xf32, #tpu.memory_space<vmem>>, %arg10: memref<128x256xbf16, #tpu.memory_space<vmem>>, %arg11: memref<1x256xf32, #tpu.memory_space<vmem>>, %arg12: memref<256x128xbf16, #tpu.memory_space<vmem>>, %arg13: memref<1x128xf32, #tpu.memory_space<vmem>>, %arg14: memref<1x128xf32, #tpu.memory_space<vmem>>, %arg15: memref<1x128xf32, #tpu.memory_space<vmem>>, %arg16: memref<2x16x128xf32, #tpu.memory_space<vmem>>) attributes {dimension_semantics = [#tpu.dimension_semantics<parallel>], iteration_bounds = array<i64: 2>, scalar_prefetch = 0 : i64, scratch_operands = 0 : i64, tpu.core_type = #tpu.core_type<tc>, window_params = [{transform_indices = @transform_0, window_bounds = array<i64: 2, 16, 128>}, {transform_indices = @transform_1, window_bounds = array<i64: 2, 16, 128>}, {pipeline_mode = #tpu.pipeline_mode<synchronous>, transform_indices = @transform_2, window_bounds = array<i64: 128, 384>}, {pipeline_mode = #tpu.pipeline_mode<synchronous>, transform_indices = @transform_3, window_bounds = array<i64: 1, 256>}, {pipeline_mode = #tpu.pipeline_mode<synchronous>, transform_indices = @transform_4, window_bounds = array<i64: 1, 128>}, {pipeline_mode = #tpu.pipeline_mode<synchronous>, transform_indices = @transform_5, window_bounds = array<i64: 128, 128>}, {pipeline_mode = #tpu.pipeline_mode<synchronous>, transform_indices = @transform_6, window_bounds = array<i64: 1, 128>}, {pipeline_mode = #tpu.pipeline_mode<synchronous>, transform_indices = @transform_7, window_bounds = array<i64: 1, 128>}, {pipeline_mode = #tpu.pipeline_mode<synchronous>, transform_indices = @transform_8, window_bounds = array<i64: 1, 128>}, {pipeline_mode = #tpu.pipeline_mode<synchronous>, transform_indices = @transform_9, window_bounds = array<i64: 128, 256>}, {pipeline_mode = #tpu.pipeline_mode<synchronous>, transform_indices = @transform_10, window_bounds = array<i64: 1, 256>}, {pipeline_mode = #tpu.pipeline_mode<synchronous>, transform_indices = @transform_11, window_bounds = array<i64: 256, 128>}, {pipeline_mode = #tpu.pipeline_mode<synchronous>, transform_indices = @transform_12, window_bounds = array<i64: 1, 128>}, {pipeline_mode = #tpu.pipeline_mode<synchronous>, transform_indices = @transform_13, window_bounds = array<i64: 1, 128>}, {pipeline_mode = #tpu.pipeline_mode<synchronous>, transform_indices = @transform_14, window_bounds = array<i64: 1, 128>}, {transform_indices = @transform_15, window_bounds = array<i64: 2, 16, 128>}]} {
    %c0 = arith.constant 0 : index
    %c0_0 = arith.constant 0 : index
    %c0_1 = arith.constant 0 : index
    %0 = vector.load %arg1[%c0, %c0_0, %c0_1] : memref<2x16x128xf32, #tpu.memory_space<vmem>>, vector<2x16x128xf32>
    %1 = vector.shape_cast %0 : vector<2x16x128xf32> to vector<32x128xf32>
    %c0_2 = arith.constant 0 : index
    %c0_3 = arith.constant 0 : index
    %c0_4 = arith.constant 0 : index
    %2 = vector.load %arg2[%c0_2, %c0_3, %c0_4] : memref<2x16x128xf32, #tpu.memory_space<vmem>>, vector<2x16x128xf32>
    %3 = vector.shape_cast %2 : vector<2x16x128xf32> to vector<32x128xf32>
    %4 = arith.truncf %3 : vector<32x128xf32> to vector<32x128xbf16>
    %c0_5 = arith.constant 0 : index
    %c0_6 = arith.constant 0 : index
    %5 = vector.load %arg3[%c0_5, %c0_6] : memref<128x384xbf16, #tpu.memory_space<vmem>>, vector<128x384xbf16>
    %c0_7 = arith.constant 0 : index
    %c0_8 = arith.constant 0 : index
    %6 = vector.load %arg4[%c0_7, %c0_8] : memref<1x256xf32, #tpu.memory_space<vmem>>, vector<1x256xf32>
    %c0_9 = arith.constant 0 : index
    %c0_10 = arith.constant 0 : index
    %7 = vector.load %arg5[%c0_9, %c0_10] : memref<1x128xf32, #tpu.memory_space<vmem>>, vector<1x128xf32>
    %c0_11 = arith.constant 0 : index
    %c0_12 = arith.constant 0 : index
    %8 = vector.load %arg6[%c0_11, %c0_12] : memref<128x128xbf16, #tpu.memory_space<vmem>>, vector<128x128xbf16>
    %c0_13 = arith.constant 0 : index
    %c0_14 = arith.constant 0 : index
    %9 = vector.load %arg7[%c0_13, %c0_14] : memref<1x128xf32, #tpu.memory_space<vmem>>, vector<1x128xf32>
    %c0_15 = arith.constant 0 : index
    %c0_16 = arith.constant 0 : index
    %10 = vector.load %arg8[%c0_15, %c0_16] : memref<1x128xf32, #tpu.memory_space<vmem>>, vector<1x128xf32>
    %c0_17 = arith.constant 0 : index
    %c0_18 = arith.constant 0 : index
    %11 = vector.load %arg9[%c0_17, %c0_18] : memref<1x128xf32, #tpu.memory_space<vmem>>, vector<1x128xf32>
    %c0_19 = arith.constant 0 : index
    %c0_20 = arith.constant 0 : index
    %12 = vector.load %arg10[%c0_19, %c0_20] : memref<128x256xbf16, #tpu.memory_space<vmem>>, vector<128x256xbf16>
    %c0_21 = arith.constant 0 : index
    %c0_22 = arith.constant 0 : index
    %13 = vector.load %arg11[%c0_21, %c0_22] : memref<1x256xf32, #tpu.memory_space<vmem>>, vector<1x256xf32>
    %c0_23 = arith.constant 0 : index
    %c0_24 = arith.constant 0 : index
    %14 = vector.load %arg12[%c0_23, %c0_24] : memref<256x128xbf16, #tpu.memory_space<vmem>>, vector<256x128xbf16>
    %c0_25 = arith.constant 0 : index
    %c0_26 = arith.constant 0 : index
    %15 = vector.load %arg13[%c0_25, %c0_26] : memref<1x128xf32, #tpu.memory_space<vmem>>, vector<1x128xf32>
    %c0_27 = arith.constant 0 : index
    %c0_28 = arith.constant 0 : index
    %16 = vector.load %arg14[%c0_27, %c0_28] : memref<1x128xf32, #tpu.memory_space<vmem>>, vector<1x128xf32>
    %c0_29 = arith.constant 0 : index
    %c0_30 = arith.constant 0 : index
    %17 = vector.load %arg15[%c0_29, %c0_30] : memref<1x128xf32, #tpu.memory_space<vmem>>, vector<1x128xf32>
    %18 = vector.extract_strided_slice %5 {offsets = [0, 0], sizes = [128, 256], strides = [1, 1]} : vector<128x384xbf16> to vector<128x256xbf16>
    %cst = arith.constant dense<0.000000e+00> : vector<32x256xf32>
    %19 = tpu.matmul %4, %18, %cst {dimension_numbers = #tpu.dot_dimension_numbers<[1], [0], [0], [1], [0, 0, 1, 1], [], []>} : vector<32x128xbf16>, vector<128x256xbf16>, vector<32x256xf32> -> vector<32x256xf32>
    %20 = vector.broadcast %6 : vector<1x256xf32> to vector<32x256xf32>
    %21 = arith.addf %19, %20 : vector<32x256xf32>
    %c0_i32 = arith.constant 0 : i32
    %c2_i32 = arith.constant 2 : i32
    %22 = arith.addi %c0_i32, %c2_i32 : i32
    %c1_i32 = arith.constant 1 : i32
    %23 = scf.for %arg17 = %c0_i32 to %22 step %c1_i32 iter_args(%arg18 = %1) -> (vector<32x128xf32>)  : i32 {
      %26 = arith.truncf %arg18 : vector<32x128xf32> to vector<32x128xbf16>
      %cst_34 = arith.constant dense<0.000000e+00> : vector<32x384xf32>
      %27 = tpu.matmul %26, %5, %cst_34 {dimension_numbers = #tpu.dot_dimension_numbers<[1], [0], [0], [1], [0, 0, 1, 1], [], []>} : vector<32x128xbf16>, vector<128x384xbf16>, vector<32x384xf32> -> vector<32x384xf32>
      %28 = vector.extract_strided_slice %27 {offsets = [0, 0], sizes = [32, 128], strides = [1, 1]} : vector<32x384xf32> to vector<32x128xf32>
      %29 = vector.extract_strided_slice %21 {offsets = [0, 0], sizes = [32, 128], strides = [1, 1]} : vector<32x256xf32> to vector<32x128xf32>
      %30 = arith.addf %28, %29 : vector<32x128xf32>
      %31 = vector.shape_cast %30 : vector<32x128xf32> to vector<2x16x4x32xf32>
      %32 = tpu.transpose %31, [0, 2, 1, 3] : vector<2x16x4x32xf32> -> vector<2x4x16x32xf32>
      %33 = vector.shape_cast %32 : vector<2x4x16x32xf32> to vector<8x16x32xf32>
      %34 = arith.truncf %33 : vector<8x16x32xf32> to vector<8x16x32xbf16>
      %35 = vector.extract_strided_slice %27 {offsets = [0, 128], sizes = [32, 128], strides = [1, 1]} : vector<32x384xf32> to vector<32x128xf32>
      %36 = vector.extract_strided_slice %21 {offsets = [0, 128], sizes = [32, 128], strides = [1, 1]} : vector<32x256xf32> to vector<32x128xf32>
      %37 = arith.addf %35, %36 : vector<32x128xf32>
      %38 = vector.shape_cast %37 : vector<32x128xf32> to vector<2x16x4x32xf32>
      %39 = tpu.transpose %38, [0, 2, 1, 3] : vector<2x16x4x32xf32> -> vector<2x4x16x32xf32>
      %40 = vector.shape_cast %39 : vector<2x4x16x32xf32> to vector<8x16x32xf32>
      %41 = arith.truncf %40 : vector<8x16x32xf32> to vector<8x16x32xbf16>
      %42 = vector.extract_strided_slice %27 {offsets = [0, 256], sizes = [32, 128], strides = [1, 1]} : vector<32x384xf32> to vector<32x128xf32>
      %43 = vector.broadcast %7 : vector<1x128xf32> to vector<32x128xf32>
      %44 = arith.addf %42, %43 : vector<32x128xf32>
      %45 = vector.shape_cast %44 : vector<32x128xf32> to vector<2x16x4x32xf32>
      %46 = tpu.transpose %45, [0, 2, 1, 3] : vector<2x16x4x32xf32> -> vector<2x4x16x32xf32>
      %47 = vector.shape_cast %46 : vector<2x4x16x32xf32> to vector<8x16x32xf32>
      %48 = arith.truncf %47 : vector<8x16x32xf32> to vector<8x16x32xbf16>
      "tpu.trace_start"() <{level = 10 : i32, message = "bqd,bkd->bqk"}> : () -> ()
      %cst_35 = arith.constant dense<0.000000e+00> : vector<8x16x16xf32>
      %49 = tpu.matmul %34, %41, %cst_35 {dimension_numbers = #tpu.dot_dimension_numbers<[2], [2], [1], [1], [0, 0, 0, 1, 1, 1], [0], [0]>} : vector<8x16x32xbf16>, vector<8x16x32xbf16>, vector<8x16x16xf32> -> vector<8x16x16xf32>
      "tpu.trace_stop"() : () -> ()
      %cst_36 = arith.constant dense<0xFF800000> : vector<8x16xf32>
      %50 = vector.multi_reduction <maximumf>, %49, %cst_36 [2] : vector<8x16x16xf32> to vector<8x16xf32>
      %51 = vector.shape_cast %50 : vector<8x16xf32> to vector<8x16x1xf32>
      %52 = vector.broadcast %51 : vector<8x16x1xf32> to vector<8x16x16xf32>
      %53 = arith.subf %49, %52 : vector<8x16x16xf32>
      %54 = arith.truncf %53 : vector<8x16x16xf32> to vector<8x16x16xbf16>
      %55 = math.exp %54 : vector<8x16x16xbf16>
      %56 = arith.extf %55 : vector<8x16x16xbf16> to vector<8x16x16xf32>
      %cst_37 = arith.constant dense<0.000000e+00> : vector<8x16xf32>
      %57 = vector.multi_reduction <add>, %56, %cst_37 [2] : vector<8x16x16xf32> to vector<8x16xf32>
      %58 = vector.shape_cast %57 : vector<8x16xf32> to vector<8x16x1xf32>
      "tpu.trace_start"() <{level = 10 : i32, message = "bqk,bkd->bqd"}> : () -> ()
      %cst_38 = arith.constant dense<0.000000e+00> : vector<8x16x32xf32>
      %59 = tpu.matmul %55, %48, %cst_38 {dimension_numbers = #tpu.dot_dimension_numbers<[2], [1], [1], [2], [0, 0, 0, 1, 1, 2], [0], [0]>} : vector<8x16x16xbf16>, vector<8x16x32xbf16>, vector<8x16x32xf32> -> vector<8x16x32xf32>
      "tpu.trace_stop"() : () -> ()
      %60 = tpu.reciprocal %58 {approx = true} : vector<8x16x1xf32> -> vector<8x16x1xf32>
      %61 = vector.broadcast %60 : vector<8x16x1xf32> to vector<8x16x32xf32>
      %62 = arith.mulf %59, %61 : vector<8x16x32xf32>
      %63 = vector.shape_cast %62 : vector<8x16x32xf32> to vector<2x4x16x32xf32>
      %64 = tpu.transpose %63, [0, 2, 1, 3] : vector<2x4x16x32xf32> -> vector<2x16x4x32xf32>
      %65 = vector.shape_cast %64 : vector<2x16x4x32xf32> to vector<32x128xf32>
      %66 = arith.truncf %65 : vector<32x128xf32> to vector<32x128xbf16>
      %cst_39 = arith.constant dense<0.000000e+00> : vector<32x128xf32>
      %67 = tpu.matmul %66, %8, %cst_39 {dimension_numbers = #tpu.dot_dimension_numbers<[1], [0], [0], [1], [0, 0, 1, 1], [], []>} : vector<32x128xbf16>, vector<128x128xbf16>, vector<32x128xf32> -> vector<32x128xf32>
      %68 = vector.broadcast %9 : vector<1x128xf32> to vector<32x128xf32>
      %69 = arith.addf %67, %68 : vector<32x128xf32>
      %70 = arith.addf %arg18, %69 : vector<32x128xf32>
      %cst_40 = arith.constant dense<0.000000e+00> : vector<32xf32>
      %71 = vector.multi_reduction <add>, %70, %cst_40 [1] : vector<32x128xf32> to vector<32xf32>
      %72 = vector.shape_cast %71 : vector<32xf32> to vector<32x1xf32>
      %cst_41 = arith.constant 1.280000e+02 : f32
      %73 = vector.broadcast %cst_41 : f32 to vector<32x1xf32>
      %74 = arith.divf %72, %73 : vector<32x1xf32>
      %75 = vector.broadcast %74 : vector<32x1xf32> to vector<32x128xf32>
      %76 = arith.subf %70, %75 : vector<32x128xf32>
      %77 = arith.mulf %76, %76 : vector<32x128xf32>
      %cst_42 = arith.constant dense<0.000000e+00> : vector<32xf32>
      %78 = vector.multi_reduction <add>, %77, %cst_42 [1] : vector<32x128xf32> to vector<32xf32>
      %79 = vector.shape_cast %78 : vector<32xf32> to vector<32x1xf32>
      %cst_43 = arith.constant 1.280000e+02 : f32
      %80 = vector.broadcast %cst_43 : f32 to vector<32x1xf32>
      %81 = arith.divf %79, %80 : vector<32x1xf32>
      %82 = vector.broadcast %74 : vector<32x1xf32> to vector<32x128xf32>
      %83 = arith.subf %70, %82 : vector<32x128xf32>
      %cst_44 = arith.constant 9.99999974E-6 : f32
      %84 = vector.broadcast %cst_44 : f32 to vector<32x1xf32>
      %85 = arith.addf %81, %84 : vector<32x1xf32>
      %86 = math.rsqrt %85 : vector<32x1xf32>
      %87 = vector.broadcast %86 : vector<32x1xf32> to vector<32x128xf32>
      %88 = arith.mulf %83, %87 : vector<32x128xf32>
      %89 = vector.broadcast %10 : vector<1x128xf32> to vector<32x128xf32>
      %90 = arith.mulf %88, %89 : vector<32x128xf32>
      %91 = vector.broadcast %11 : vector<1x128xf32> to vector<32x128xf32>
      %92 = arith.addf %90, %91 : vector<32x128xf32>
      %93 = arith.truncf %92 : vector<32x128xf32> to vector<32x128xbf16>
      %cst_45 = arith.constant dense<0.000000e+00> : vector<32x256xf32>
      %94 = tpu.matmul %93, %12, %cst_45 {dimension_numbers = #tpu.dot_dimension_numbers<[1], [0], [0], [1], [0, 0, 1, 1], [], []>} : vector<32x128xbf16>, vector<128x256xbf16>, vector<32x256xf32> -> vector<32x256xf32>
      %95 = vector.broadcast %13 : vector<1x256xf32> to vector<32x256xf32>
      %96 = arith.addf %94, %95 : vector<32x256xf32>
      %cst_46 = arith.constant 0.000000e+00 : f32
      %97 = vector.broadcast %cst_46 : f32 to vector<32x256xf32>
      %98 = arith.maximumf %96, %97 : vector<32x256xf32>
      %99 = arith.truncf %98 : vector<32x256xf32> to vector<32x256xbf16>
      %cst_47 = arith.constant dense<0.000000e+00> : vector<32x128xf32>
      %100 = tpu.matmul %99, %14, %cst_47 {dimension_numbers = #tpu.dot_dimension_numbers<[1], [0], [0], [1], [0, 0, 1, 1], [], []>} : vector<32x256xbf16>, vector<256x128xbf16>, vector<32x128xf32> -> vector<32x128xf32>
      %101 = vector.broadcast %15 : vector<1x128xf32> to vector<32x128xf32>
      %102 = arith.addf %100, %101 : vector<32x128xf32>
      %103 = arith.addf %92, %102 : vector<32x128xf32>
      %cst_48 = arith.constant dense<0.000000e+00> : vector<32xf32>
      %104 = vector.multi_reduction <add>, %103, %cst_48 [1] : vector<32x128xf32> to vector<32xf32>
      %105 = vector.shape_cast %104 : vector<32xf32> to vector<32x1xf32>
      %cst_49 = arith.constant 1.280000e+02 : f32
      %106 = vector.broadcast %cst_49 : f32 to vector<32x1xf32>
      %107 = arith.divf %105, %106 : vector<32x1xf32>
      %108 = vector.broadcast %107 : vector<32x1xf32> to vector<32x128xf32>
      %109 = arith.subf %103, %108 : vector<32x128xf32>
      %110 = arith.mulf %109, %109 : vector<32x128xf32>
      %cst_50 = arith.constant dense<0.000000e+00> : vector<32xf32>
      %111 = vector.multi_reduction <add>, %110, %cst_50 [1] : vector<32x128xf32> to vector<32xf32>
      %112 = vector.shape_cast %111 : vector<32xf32> to vector<32x1xf32>
      %cst_51 = arith.constant 1.280000e+02 : f32
      %113 = vector.broadcast %cst_51 : f32 to vector<32x1xf32>
      %114 = arith.divf %112, %113 : vector<32x1xf32>
      %115 = vector.broadcast %107 : vector<32x1xf32> to vector<32x128xf32>
      %116 = arith.subf %103, %115 : vector<32x128xf32>
      %cst_52 = arith.constant 9.99999974E-6 : f32
      %117 = vector.broadcast %cst_52 : f32 to vector<32x1xf32>
      %118 = arith.addf %114, %117 : vector<32x1xf32>
      %119 = math.rsqrt %118 : vector<32x1xf32>
      %120 = vector.broadcast %119 : vector<32x1xf32> to vector<32x128xf32>
      %121 = arith.mulf %116, %120 : vector<32x128xf32>
      %122 = vector.broadcast %16 : vector<1x128xf32> to vector<32x128xf32>
      %123 = arith.mulf %121, %122 : vector<32x128xf32>
      %124 = vector.broadcast %17 : vector<1x128xf32> to vector<32x128xf32>
      %125 = arith.addf %123, %124 : vector<32x128xf32>
      scf.yield %125 : vector<32x128xf32>
    }
    %24 = vector.shape_cast %23 : vector<32x128xf32> to vector<2x16x128xf32>
    %c0_31 = arith.constant 0 : index
    %c0_32 = arith.constant 0 : index
    %c0_33 = arith.constant 0 : index
    %25 = vector.load %arg16[%c0_31, %c0_32, %c0_33] : memref<2x16x128xf32, #tpu.memory_space<vmem>>, vector<2x16x128xf32>
    tpu.vector_store %arg16[%c0_31, %c0_32, %c0_33], %24 {strides = array<i32>} : memref<2x16x128xf32, #tpu.memory_space<vmem>>, vector<2x16x128xf32>,
    return
  }
  func.func @transform_0(%arg0: i32) -> (i32, i32, i32) {
    %c0_i32 = arith.constant 0 : i32
    %c0_i32_0 = arith.constant 0 : i32
    %c0_i32_1 = arith.constant 0 : i32
    return %arg0, %c0_i32, %c0_i32_0 : i32, i32, i32
  }
  func.func @transform_1(%arg0: i32) -> (i32, i32, i32) {
    %c0_i32 = arith.constant 0 : i32
    %c0_i32_0 = arith.constant 0 : i32
    %c0_i32_1 = arith.constant 0 : i32
    return %arg0, %c0_i32, %c0_i32_0 : i32, i32, i32
  }
  func.func @transform_2(%arg0: i32) -> (i32, i32) {
    %c0_i32 = arith.constant 0 : i32
    %c0_i32_0 = arith.constant 0 : i32
    %c0_i32_1 = arith.constant 0 : i32
    return %c0_i32, %c0_i32_0 : i32, i32
  }
  func.func @transform_3(%arg0: i32) -> (i32, i32) {
    %c0_i32 = arith.constant 0 : i32
    %c0_i32_0 = arith.constant 0 : i32
    %c0_i32_1 = arith.constant 0 : i32
    return %c0_i32, %c0_i32_0 : i32, i32
  }
  func.func @transform_4(%arg0: i32) -> (i32, i32) {
    %c0_i32 = arith.constant 0 : i32
    %c0_i32_0 = arith.constant 0 : i32
    %c0_i32_1 = arith.constant 0 : i32
    return %c0_i32, %c0_i32_0 : i32, i32
  }
  func.func @transform_5(%arg0: i32) -> (i32, i32) {
    %c0_i32 = arith.constant 0 : i32
    %c0_i32_0 = arith.constant 0 : i32
    %c0_i32_1 = arith.constant 0 : i32
    return %c0_i32, %c0_i32_0 : i32, i32
  }
  func.func @transform_6(%arg0: i32) -> (i32, i32) {
    %c0_i32 = arith.constant 0 : i32
    %c0_i32_0 = arith.constant 0 : i32
    %c0_i32_1 = arith.constant 0 : i32
    return %c0_i32, %c0_i32_0 : i32, i32
  }
  func.func @transform_7(%arg0: i32) -> (i32, i32) {
    %c0_i32 = arith.constant 0 : i32
    %c0_i32_0 = arith.constant 0 : i32
    %c0_i32_1 = arith.constant 0 : i32
    return %c0_i32, %c0_i32_0 : i32, i32
  }
  func.func @transform_8(%arg0: i32) -> (i32, i32) {
    %c0_i32 = arith.constant 0 : i32
    %c0_i32_0 = arith.constant 0 : i32
    %c0_i32_1 = arith.constant 0 : i32
    return %c0_i32, %c0_i32_0 : i32, i32
  }
  func.func @transform_9(%arg0: i32) -> (i32, i32) {
    %c0_i32 = arith.constant 0 : i32
    %c0_i32_0 = arith.constant 0 : i32
    %c0_i32_1 = arith.constant 0 : i32
    return %c0_i32, %c0_i32_0 : i32, i32
  }
  func.func @transform_10(%arg0: i32) -> (i32, i32) {
    %c0_i32 = arith.constant 0 : i32
    %c0_i32_0 = arith.constant 0 : i32
    %c0_i32_1 = arith.constant 0 : i32
    return %c0_i32, %c0_i32_0 : i32, i32
  }
  func.func @transform_11(%arg0: i32) -> (i32, i32) {
    %c0_i32 = arith.constant 0 : i32
    %c0_i32_0 = arith.constant 0 : i32
    %c0_i32_1 = arith.constant 0 : i32
    return %c0_i32, %c0_i32_0 : i32, i32
  }
  func.func @transform_12(%arg0: i32) -> (i32, i32) {
    %c0_i32 = arith.constant 0 : i32
    %c0_i32_0 = arith.constant 0 : i32
    %c0_i32_1 = arith.constant 0 : i32
    return %c0_i32, %c0_i32_0 : i32, i32
  }
  func.func @transform_13(%arg0: i32) -> (i32, i32) {
    %c0_i32 = arith.constant 0 : i32
    %c0_i32_0 = arith.constant 0 : i32
    %c0_i32_1 = arith.constant 0 : i32
    return %c0_i32, %c0_i32_0 : i32, i32
  }
  func.func @transform_14(%arg0: i32) -> (i32, i32) {
    %c0_i32 = arith.constant 0 : i32
    %c0_i32_0 = arith.constant 0 : i32
    %c0_i32_1 = arith.constant 0 : i32
    return %c0_i32, %c0_i32_0 : i32, i32
  }
  func.func @transform_15(%arg0: i32) -> (i32, i32, i32) {
    %c0_i32 = arith.constant 0 : i32
    %c0_i32_0 = arith.constant 0 : i32
    %c0_i32_1 = arith.constant 0 : i32
    return %arg0, %c0_i32, %c0_i32_0 : i32, i32, i32
  }
}

module attributes {stable_mosaic.version = 11 : i64} {
  func.func @encoder_kernel(%arg0: i32, %arg1: memref<2x16x128xf32, #tpu.memory_space<vmem>>, %arg2: memref<2x16x128xf32, #tpu.memory_space<vmem>>, %arg3: memref<128x384xbf16, #tpu.memory_space<vmem>>, %arg4: memref<1x256xf32, #tpu.memory_space<vmem>>, %arg5: memref<1x128xf32, #tpu.memory_space<vmem>>, %arg6: memref<128x128xbf16, #tpu.memory_space<vmem>>, %arg7: memref<1x128xf32, #tpu.memory_space<vmem>>, %arg8: memref<1x128xf32, #tpu.memory_space<vmem>>, %arg9: memref<1x128xf32, #tpu.memory_space<vmem>>, %arg10: memref<128x256xbf16, #tpu.memory_space<vmem>>, %arg11: memref<1x256xf32, #tpu.memory_space<vmem>>, %arg12: memref<256x128xbf16, #tpu.memory_space<vmem>>, %arg13: memref<1x128xf32, #tpu.memory_space<vmem>>, %arg14: memref<1x128xf32, #tpu.memory_space<vmem>>, %arg15: memref<1x128xf32, #tpu.memory_space<vmem>>, %arg16: memref<2x16x128xf32, #tpu.memory_space<vmem>>) attributes {dimension_semantics = [#tpu.dimension_semantics<parallel>], iteration_bounds = array<i64: 2>, scalar_prefetch = 0 : i64, scratch_operands = 0 : i64, tpu.core_type = #tpu.core_type<tc>, window_params = [{transform_indices = @transform_0, window_bounds = array<i64: 2, 16, 128>}, {transform_indices = @transform_1, window_bounds = array<i64: 2, 16, 128>}, {pipeline_mode = #tpu.pipeline_mode<synchronous>, transform_indices = @transform_2, window_bounds = array<i64: 128, 384>}, {pipeline_mode = #tpu.pipeline_mode<synchronous>, transform_indices = @transform_3, window_bounds = array<i64: 1, 256>}, {pipeline_mode = #tpu.pipeline_mode<synchronous>, transform_indices = @transform_4, window_bounds = array<i64: 1, 128>}, {pipeline_mode = #tpu.pipeline_mode<synchronous>, transform_indices = @transform_5, window_bounds = array<i64: 128, 128>}, {pipeline_mode = #tpu.pipeline_mode<synchronous>, transform_indices = @transform_6, window_bounds = array<i64: 1, 128>}, {pipeline_mode = #tpu.pipeline_mode<synchronous>, transform_indices = @transform_7, window_bounds = array<i64: 1, 128>}, {pipeline_mode = #tpu.pipeline_mode<synchronous>, transform_indices = @transform_8, window_bounds = array<i64: 1, 128>}, {pipeline_mode = #tpu.pipeline_mode<synchronous>, transform_indices = @transform_9, window_bounds = array<i64: 128, 256>}, {pipeline_mode = #tpu.pipeline_mode<synchronous>, transform_indices = @transform_10, window_bounds = array<i64: 1, 256>}, {pipeline_mode = #tpu.pipeline_mode<synchronous>, transform_indices = @transform_11, window_bounds = array<i64: 256, 128>}, {pipeline_mode = #tpu.pipeline_mode<synchronous>, transform_indices = @transform_12, window_bounds = array<i64: 1, 128>}, {pipeline_mode = #tpu.pipeline_mode<synchronous>, transform_indices = @transform_13, window_bounds = array<i64: 1, 128>}, {pipeline_mode = #tpu.pipeline_mode<synchronous>, transform_indices = @transform_14, window_bounds = array<i64: 1, 128>}, {transform_indices = @transform_15, window_bounds = array<i64: 2, 16, 128>}]} {
    %c0 = arith.constant 0 : index
    %c0_0 = arith.constant 0 : index
    %c0_1 = arith.constant 0 : index
    %0 = vector.load %arg1[%c0, %c0_0, %c0_1] : memref<2x16x128xf32, #tpu.memory_space<vmem>>, vector<2x16x128xf32>
    %1 = vector.shape_cast %0 : vector<2x16x128xf32> to vector<32x128xf32>
    %c0_2 = arith.constant 0 : index
    %c0_3 = arith.constant 0 : index
    %c0_4 = arith.constant 0 : index
    %2 = vector.load %arg2[%c0_2, %c0_3, %c0_4] : memref<2x16x128xf32, #tpu.memory_space<vmem>>, vector<2x16x128xf32>
    %3 = vector.shape_cast %2 : vector<2x16x128xf32> to vector<32x128xf32>
    %4 = arith.truncf %3 : vector<32x128xf32> to vector<32x128xbf16>
    %c0_5 = arith.constant 0 : index
    %c0_6 = arith.constant 0 : index
    %5 = vector.load %arg3[%c0_5, %c0_6] : memref<128x384xbf16, #tpu.memory_space<vmem>>, vector<128x384xbf16>
    %c0_7 = arith.constant 0 : index
    %c0_8 = arith.constant 0 : index
    %6 = vector.load %arg4[%c0_7, %c0_8] : memref<1x256xf32, #tpu.memory_space<vmem>>, vector<1x256xf32>
    %c0_9 = arith.constant 0 : index
    %c0_10 = arith.constant 0 : index
    %7 = vector.load %arg5[%c0_9, %c0_10] : memref<1x128xf32, #tpu.memory_space<vmem>>, vector<1x128xf32>
    %c0_11 = arith.constant 0 : index
    %c0_12 = arith.constant 0 : index
    %8 = vector.load %arg6[%c0_11, %c0_12] : memref<128x128xbf16, #tpu.memory_space<vmem>>, vector<128x128xbf16>
    %c0_13 = arith.constant 0 : index
    %c0_14 = arith.constant 0 : index
    %9 = vector.load %arg7[%c0_13, %c0_14] : memref<1x128xf32, #tpu.memory_space<vmem>>, vector<1x128xf32>
    %c0_15 = arith.constant 0 : index
    %c0_16 = arith.constant 0 : index
    %10 = vector.load %arg8[%c0_15, %c0_16] : memref<1x128xf32, #tpu.memory_space<vmem>>, vector<1x128xf32>
    %c0_17 = arith.constant 0 : index
    %c0_18 = arith.constant 0 : index
    %11 = vector.load %arg9[%c0_17, %c0_18] : memref<1x128xf32, #tpu.memory_space<vmem>>, vector<1x128xf32>
    %c0_19 = arith.constant 0 : index
    %c0_20 = arith.constant 0 : index
    %12 = vector.load %arg10[%c0_19, %c0_20] : memref<128x256xbf16, #tpu.memory_space<vmem>>, vector<128x256xbf16>
    %c0_21 = arith.constant 0 : index
    %c0_22 = arith.constant 0 : index
    %13 = vector.load %arg11[%c0_21, %c0_22] : memref<1x256xf32, #tpu.memory_space<vmem>>, vector<1x256xf32>
    %c0_23 = arith.constant 0 : index
    %c0_24 = arith.constant 0 : index
    %14 = vector.load %arg12[%c0_23, %c0_24] : memref<256x128xbf16, #tpu.memory_space<vmem>>, vector<256x128xbf16>
    %c0_25 = arith.constant 0 : index
    %c0_26 = arith.constant 0 : index
    %15 = vector.load %arg13[%c0_25, %c0_26] : memref<1x128xf32, #tpu.memory_space<vmem>>, vector<1x128xf32>
    %c0_27 = arith.constant 0 : index
    %c0_28 = arith.constant 0 : index
    %16 = vector.load %arg14[%c0_27, %c0_28] : memref<1x128xf32, #tpu.memory_space<vmem>>, vector<1x128xf32>
    %c0_29 = arith.constant 0 : index
    %c0_30 = arith.constant 0 : index
    %17 = vector.load %arg15[%c0_29, %c0_30] : memref<1x128xf32, #tpu.memory_space<vmem>>, vector<1x128xf32>
    %18 = vector.extract_strided_slice %5 {offsets = [0, 0], sizes = [128, 256], strides = [1, 1]} : vector<128x384xbf16> to vector<128x256xbf16>
    %cst = arith.constant dense<0.000000e+00> : vector<32x256xf32>
    %19 = tpu.matmul %4, %18, %cst {dimension_numbers = #tpu.dot_dimension_numbers<[1], [0], [0], [1], [0, 0, 1, 1], [], []>} : vector<32x128xbf16>, vector<128x256xbf16>, vector<32x256xf32> -> vector<32x256xf32>
    %20 = vector.broadcast %6 : vector<1x256xf32> to vector<32x256xf32>
    %21 = arith.addf %19, %20 : vector<32x256xf32>
    %c0_i32 = arith.constant 0 : i32
    %c2_i32 = arith.constant 2 : i32
    %22 = arith.addi %c0_i32, %c2_i32 : i32
    %c1_i32 = arith.constant 1 : i32
    %23 = scf.for %arg17 = %c0_i32 to %22 step %c1_i32 iter_args(%arg18 = %1) -> (vector<32x128xf32>)  : i32 {
      %26 = arith.truncf %arg18 : vector<32x128xf32> to vector<32x128xbf16>
      %cst_34 = arith.constant dense<0.000000e+00> : vector<32x384xf32>
      %27 = tpu.matmul %26, %5, %cst_34 {dimension_numbers = #tpu.dot_dimension_numbers<[1], [0], [0], [1], [0, 0, 1, 1], [], []>} : vector<32x128xbf16>, vector<128x384xbf16>, vector<32x384xf32> -> vector<32x384xf32>
      %28 = vector.extract_strided_slice %27 {offsets = [0, 0], sizes = [32, 128], strides = [1, 1]} : vector<32x384xf32> to vector<32x128xf32>
      %29 = vector.extract_strided_slice %21 {offsets = [0, 0], sizes = [32, 128], strides = [1, 1]} : vector<32x256xf32> to vector<32x128xf32>
      %30 = arith.addf %28, %29 : vector<32x128xf32>
      %31 = vector.shape_cast %30 : vector<32x128xf32> to vector<2x16x4x32xf32>
      %32 = tpu.transpose %31, [0, 2, 1, 3] : vector<2x16x4x32xf32> -> vector<2x4x16x32xf32>
      %33 = vector.shape_cast %32 : vector<2x4x16x32xf32> to vector<8x16x32xf32>
      %34 = arith.truncf %33 : vector<8x16x32xf32> to vector<8x16x32xbf16>
      %35 = vector.extract_strided_slice %27 {offsets = [0, 128], sizes = [32, 128], strides = [1, 1]} : vector<32x384xf32> to vector<32x128xf32>
      %36 = vector.extract_strided_slice %21 {offsets = [0, 128], sizes = [32, 128], strides = [1, 1]} : vector<32x256xf32> to vector<32x128xf32>
      %37 = arith.addf %35, %36 : vector<32x128xf32>
      %38 = vector.shape_cast %37 : vector<32x128xf32> to vector<2x16x4x32xf32>
      %39 = tpu.transpose %38, [0, 2, 1, 3] : vector<2x16x4x32xf32> -> vector<2x4x16x32xf32>
      %40 = vector.shape_cast %39 : vector<2x4x16x32xf32> to vector<8x16x32xf32>
      %41 = arith.truncf %40 : vector<8x16x32xf32> to vector<8x16x32xbf16>
      %42 = vector.extract_strided_slice %27 {offsets = [0, 256], sizes = [32, 128], strides = [1, 1]} : vector<32x384xf32> to vector<32x128xf32>
      %43 = vector.broadcast %7 : vector<1x128xf32> to vector<32x128xf32>
      %44 = arith.addf %42, %43 : vector<32x128xf32>
      %45 = vector.shape_cast %44 : vector<32x128xf32> to vector<2x16x4x32xf32>
      %46 = tpu.transpose %45, [0, 2, 1, 3] : vector<2x16x4x32xf32> -> vector<2x4x16x32xf32>
      %47 = vector.shape_cast %46 : vector<2x4x16x32xf32> to vector<8x16x32xf32>
      %48 = arith.truncf %47 : vector<8x16x32xf32> to vector<8x16x32xbf16>
      "tpu.trace_start"() <{level = 10 : i32, message = "bqd,bkd->bqk"}> : () -> ()
      %cst_35 = arith.constant dense<0.000000e+00> : vector<8x16x16xf32>
      %49 = tpu.matmul %34, %41, %cst_35 {dimension_numbers = #tpu.dot_dimension_numbers<[2], [2], [1], [1], [0, 0, 0, 1, 1, 1], [0], [0]>} : vector<8x16x32xbf16>, vector<8x16x32xbf16>, vector<8x16x16xf32> -> vector<8x16x16xf32>
      "tpu.trace_stop"() : () -> ()
      %cst_36 = arith.constant dense<0xFF800000> : vector<8x16xf32>
      %50 = vector.multi_reduction <maximumf>, %49, %cst_36 [2] : vector<8x16x16xf32> to vector<8x16xf32>
      %51 = vector.shape_cast %50 : vector<8x16xf32> to vector<8x16x1xf32>
      %52 = vector.broadcast %51 : vector<8x16x1xf32> to vector<8x16x16xf32>
      %53 = arith.subf %49, %52 : vector<8x16x16xf32>
      %54 = arith.truncf %53 : vector<8x16x16xf32> to vector<8x16x16xbf16>
      %55 = math.exp %54 : vector<8x16x16xbf16>
      %56 = arith.extf %55 : vector<8x16x16xbf16> to vector<8x16x16xf32>
      %cst_37 = arith.constant dense<0.000000e+00> : vector<8x16xf32>
      %57 = vector.multi_reduction <add>, %56, %cst_37 [2] : vector<8x16x16xf32> to vector<8x16xf32>
      %58 = vector.shape_cast %57 : vector<8x16xf32> to vector<8x16x1xf32>
      "tpu.trace_start"() <{level = 10 : i32, message = "bqk,bkd->bqd"}> : () -> ()
      %cst_38 = arith.constant dense<0.000000e+00> : vector<8x16x32xf32>
      %59 = tpu.matmul %55, %48, %cst_38 {dimension_numbers = #tpu.dot_dimension_numbers<[2], [1], [1], [2], [0, 0, 0, 1, 1, 2], [0], [0]>} : vector<8x16x16xbf16>, vector<8x16x32xbf16>, vector<8x16x32xf32> -> vector<8x16x32xf32>
      "tpu.trace_stop"() : () -> ()
      %60 = tpu.reciprocal %58 {approx = true} : vector<8x16x1xf32> -> vector<8x16x1xf32>
      %61 = vector.broadcast %60 : vector<8x16x1xf32> to vector<8x16x32xf32>
      %62 = arith.mulf %59, %61 : vector<8x16x32xf32>
      %63 = vector.shape_cast %62 : vector<8x16x32xf32> to vector<2x4x16x32xf32>
      %64 = tpu.transpose %63, [0, 2, 1, 3] : vector<2x4x16x32xf32> -> vector<2x16x4x32xf32>
      %65 = vector.shape_cast %64 : vector<2x16x4x32xf32> to vector<32x128xf32>
      %66 = arith.truncf %65 : vector<32x128xf32> to vector<32x128xbf16>
      %cst_39 = arith.constant dense<0.000000e+00> : vector<32x128xf32>
      %67 = tpu.matmul %66, %8, %cst_39 {dimension_numbers = #tpu.dot_dimension_numbers<[1], [0], [0], [1], [0, 0, 1, 1], [], []>} : vector<32x128xbf16>, vector<128x128xbf16>, vector<32x128xf32> -> vector<32x128xf32>
      %68 = vector.broadcast %9 : vector<1x128xf32> to vector<32x128xf32>
      %69 = arith.addf %67, %68 : vector<32x128xf32>
      %70 = arith.addf %arg18, %69 : vector<32x128xf32>
      %cst_40 = arith.constant dense<0.000000e+00> : vector<32xf32>
      %71 = vector.multi_reduction <add>, %70, %cst_40 [1] : vector<32x128xf32> to vector<32xf32>
      %72 = vector.shape_cast %71 : vector<32xf32> to vector<32x1xf32>
      %cst_41 = arith.constant 1.280000e+02 : f32
      %73 = vector.broadcast %cst_41 : f32 to vector<32x1xf32>
      %74 = arith.divf %72, %73 : vector<32x1xf32>
      %75 = vector.broadcast %74 : vector<32x1xf32> to vector<32x128xf32>
      %76 = arith.subf %70, %75 : vector<32x128xf32>
      %77 = arith.mulf %76, %76 : vector<32x128xf32>
      %cst_42 = arith.constant dense<0.000000e+00> : vector<32xf32>
      %78 = vector.multi_reduction <add>, %77, %cst_42 [1] : vector<32x128xf32> to vector<32xf32>
      %79 = vector.shape_cast %78 : vector<32xf32> to vector<32x1xf32>
      %cst_43 = arith.constant 1.280000e+02 : f32
      %80 = vector.broadcast %cst_43 : f32 to vector<32x1xf32>
      %81 = arith.divf %79, %80 : vector<32x1xf32>
      %82 = vector.broadcast %74 : vector<32x1xf32> to vector<32x128xf32>
      %83 = arith.subf %70, %82 : vector<32x128xf32>
      %cst_44 = arith.constant 9.99999974E-6 : f32
      %84 = vector.broadcast %cst_44 : f32 to vector<32x1xf32>
      %85 = arith.addf %81, %84 : vector<32x1xf32>
      %86 = math.rsqrt %85 : vector<32x1xf32>
      %87 = vector.broadcast %86 : vector<32x1xf32> to vector<32x128xf32>
      %88 = arith.mulf %83, %87 : vector<32x128xf32>
      %89 = vector.broadcast %10 : vector<1x128xf32> to vector<32x128xf32>
      %90 = arith.mulf %88, %89 : vector<32x128xf32>
      %91 = vector.broadcast %11 : vector<1x128xf32> to vector<32x128xf32>
      %92 = arith.addf %90, %91 : vector<32x128xf32>
      %93 = arith.truncf %92 : vector<32x128xf32> to vector<32x128xbf16>
      %cst_45 = arith.constant dense<0.000000e+00> : vector<32x256xf32>
      %94 = tpu.matmul %93, %12, %cst_45 {dimension_numbers = #tpu.dot_dimension_numbers<[1], [0], [0], [1], [0, 0, 1, 1], [], []>} : vector<32x128xbf16>, vector<128x256xbf16>, vector<32x256xf32> -> vector<32x256xf32>
      %95 = vector.broadcast %13 : vector<1x256xf32> to vector<32x256xf32>
      %96 = arith.addf %94, %95 : vector<32x256xf32>
      %cst_46 = arith.constant 0.000000e+00 : f32
      %97 = vector.broadcast %cst_46 : f32 to vector<32x256xf32>
      %98 = arith.maximumf %96, %97 : vector<32x256xf32>
      %99 = arith.truncf %98 : vector<32x256xf32> to vector<32x256xbf16>
      %cst_47 = arith.constant dense<0.000000e+00> : vector<32x128xf32>
      %100 = tpu.matmul %99, %14, %cst_47 {dimension_numbers = #tpu.dot_dimension_numbers<[1], [0], [0], [1], [0, 0, 1, 1], [], []>} : vector<32x256xbf16>, vector<256x128xbf16>, vector<32x128xf32> -> vector<32x128xf32>
      %101 = vector.broadcast %15 : vector<1x128xf32> to vector<32x128xf32>
      %102 = arith.addf %100, %101 : vector<32x128xf32>
      %103 = arith.addf %92, %102 : vector<32x128xf32>
      %cst_48 = arith.constant dense<0.000000e+00> : vector<32xf32>
      %104 = vector.multi_reduction <add>, %103, %cst_48 [1] : vector<32x128xf32> to vector<32xf32>
      %105 = vector.shape_cast %104 : vector<32xf32> to vector<32x1xf32>
      %cst_49 = arith.constant 1.280000e+02 : f32
      %106 = vector.broadcast %cst_49 : f32 to vector<32x1xf32>
      %107 = arith.divf %105, %106 : vector<32x1xf32>
      %108 = vector.broadcast %107 : vector<32x1xf32> to vector<32x128xf32>
      %109 = arith.subf %103, %108 : vector<32x128xf32>
      %110 = arith.mulf %109, %109 : vector<32x128xf32>
      %cst_50 = arith.constant dense<0.000000e+00> : vector<32xf32>
      %111 = vector.multi_reduction <add>, %110, %cst_50 [1] : vector<32x128xf32> to vector<32xf32>
      %112 = vector.shape_cast %111 : vector<32xf32> to vector<32x1xf32>
      %cst_51 = arith.constant 1.280000e+02 : f32
      %113 = vector.broadcast %cst_51 : f32 to vector<32x1xf32>
      %114 = arith.divf %112, %113 : vector<32x1xf32>
      %115 = vector.broadcast %107 : vector<32x1xf32> to vector<32x128xf32>
      %116 = arith.subf %103, %115 : vector<32x128xf32>
      %cst_52 = arith.constant 9.99999974E-6 : f32
      %117 = vector.broadcast %cst_52 : f32 to vector<32x1xf32>
      %118 = arith.addf %114, %117 : vector<32x1xf32>
      %119 = math.rsqrt %118 : vector<32x1xf32>
      %120 = vector.broadcast %119 : vector<32x1xf32> to vector<32x128xf32>
      %121 = arith.mulf %116, %120 : vector<32x128xf32>
      %122 = vector.broadcast %16 : vector<1x128xf32> to vector<32x128xf32>
      %123 = arith.mulf %121, %122 : vector<32x128xf32>
      %124 = vector.broadcast %17 : vector<1x128xf32> to vector<32x128xf32>
      %125 = arith.addf %123, %124 : vector<32x128xf32>
      scf.yield %125 : vector<32x128xf32>
    }
    %24 = vector.shape_cast %23 : vector<32x128xf32> to vector<2x16x128xf32>
    %c0_31 = arith.constant 0 : index
    %c0_32 = arith.constant 0 : index
    %c0_33 = arith.constant 0 : index
    %25 = vector.load %arg16[%c0_31, %c0_32, %c0_33] : memref<2x16x128xf32, #tpu.memory_space<vmem>>, vector<2x16x128xf32>
    tpu.vector_store %arg16[%c0_31, %c0_32, %c0_33], %24 {strides = array<i32>} : memref<2x16x128xf32, #tpu.memory_space<vmem>>, vector<2x16x128xf32>,
    return
  }
  func.func @transform_0(%arg0: i32) -> (i32, i32, i32) {
    %c0_i32 = arith.constant 0 : i32
    %c0_i32_0 = arith.constant 0 : i32
    %c0_i32_1 = arith.constant 0 : i32
    return %arg0, %c0_i32, %c0_i32_0 : i32, i32, i32
  }
  func.func @transform_1(%arg0: i32) -> (i32, i32, i32) {
    %c0_i32 = arith.constant 0 : i32
    %c0_i32_0 = arith.constant 0 : i32
    %c0_i32_1 = arith.constant 0 : i32
    return %arg0, %c0_i32, %c0_i32_0 : i32, i32, i32
  }
  func.func @transform_2(%arg0: i32) -> (i32, i32) {
    %c0_i32 = arith.constant 0 : i32
    %c0_i32_0 = arith.constant 0 : i32
    %c0_i32_1 = arith.constant 0 : i32
    return %c0_i32, %c0_i32_0 : i32, i32
  }
  func.func @transform_3(%arg0: i32) -> (i32, i32) {
    %c0_i32 = arith.constant 0 : i32
    %c0_i32_0 = arith.constant 0 : i32
    %c0_i32_1 = arith.constant 0 : i32
    return %c0_i32, %c0_i32_0 : i32, i32
  }
  func.func @transform_4(%arg0: i32) -> (i32, i32) {
    %c0_i32 = arith.constant 0 : i32
    %c0_i32_0 = arith.constant 0 : i32
    %c0_i32_1 = arith.constant 0 : i32
    return %c0_i32, %c0_i32_0 : i32, i32
  }
  func.func @transform_5(%arg0: i32) -> (i32, i32) {
    %c0_i32 = arith.constant 0 : i32
    %c0_i32_0 = arith.constant 0 : i32
    %c0_i32_1 = arith.constant 0 : i32
    return %c0_i32, %c0_i32_0 : i32, i32
  }
  func.func @transform_6(%arg0: i32) -> (i32, i32) {
    %c0_i32 = arith.constant 0 : i32
    %c0_i32_0 = arith.constant 0 : i32
    %c0_i32_1 = arith.constant 0 : i32
    return %c0_i32, %c0_i32_0 : i32, i32
  }
  func.func @transform_7(%arg0: i32) -> (i32, i32) {
    %c0_i32 = arith.constant 0 : i32
    %c0_i32_0 = arith.constant 0 : i32
    %c0_i32_1 = arith.constant 0 : i32
    return %c0_i32, %c0_i32_0 : i32, i32
  }
  func.func @transform_8(%arg0: i32) -> (i32, i32) {
    %c0_i32 = arith.constant 0 : i32
    %c0_i32_0 = arith.constant 0 : i32
    %c0_i32_1 = arith.constant 0 : i32
    return %c0_i32, %c0_i32_0 : i32, i32
  }
  func.func @transform_9(%arg0: i32) -> (i32, i32) {
    %c0_i32 = arith.constant 0 : i32
    %c0_i32_0 = arith.constant 0 : i32
    %c0_i32_1 = arith.constant 0 : i32
    return %c0_i32, %c0_i32_0 : i32, i32
  }
  func.func @transform_10(%arg0: i32) -> (i32, i32) {
    %c0_i32 = arith.constant 0 : i32
    %c0_i32_0 = arith.constant 0 : i32
    %c0_i32_1 = arith.constant 0 : i32
    return %c0_i32, %c0_i32_0 : i32, i32
  }
  func.func @transform_11(%arg0: i32) -> (i32, i32) {
    %c0_i32 = arith.constant 0 : i32
    %c0_i32_0 = arith.constant 0 : i32
    %c0_i32_1 = arith.constant 0 : i32
    return %c0_i32, %c0_i32_0 : i32, i32
  }
  func.func @transform_12(%arg0: i32) -> (i32, i32) {
    %c0_i32 = arith.constant 0 : i32
    %c0_i32_0 = arith.constant 0 : i32
    %c0_i32_1 = arith.constant 0 : i32
    return %c0_i32, %c0_i32_0 : i32, i32
  }
  func.func @transform_13(%arg0: i32) -> (i32, i32) {
    %c0_i32 = arith.constant 0 : i32
    %c0_i32_0 = arith.constant 0 : i32
    %c0_i32_1 = arith.constant 0 : i32
    return %c0_i32, %c0_i32_0 : i32, i32
  }
  func.func @transform_14(%arg0: i32) -> (i32, i32) {
    %c0_i32 = arith.constant 0 : i32
    %c0_i32_0 = arith.constant 0 : i32
    %c0_i32_1 = arith.constant 0 : i32
    return %c0_i32, %c0_i32_0 : i32, i32
  }
  func.func @transform_15(%arg0: i32) -> (i32, i32, i32) {
    %c0_i32 = arith.constant 0 : i32
    %c0_i32_0 = arith.constant 0 : i32
    %c0_i32_1 = arith.constant 0 : i32
    return %arg0, %c0_i32, %c0_i32_0 : i32, i32, i32
  }
}

</mosaic_0001>

<bundles_post_ra>
// kernel: tpu_custom_call.1
= control target key start
LH: loop header
LB: loop body
LE: loop exit
PB: predicated region body
PF: predicated region fallthrough
CT: control target
= control target key end

     0   :  { %s7803_s0 = inlined_call_operand.hbm [shape: f32[4,16,128], index: 0, kind: input, shape index: {}]   ;;  %s7804_s1 = inlined_call_operand.hbm [shape: f32[4,16,128], index: 1, kind: input, shape index: {}]   ;;  %s7805_s2 = inlined_call_operand.hbm [shape: bf16[128,384], index: 2, kind: input, shape index: {}]   ;;  %s7806_s3 = inlined_call_operand.vmem [shape: f32[1,256], index: 3, kind: input, shape index: {}]   ;;  %s7807_s4 = inlined_call_operand.vmem [shape: f32[1,128], index: 4, kind: input, shape index: {}]   ;;  %s7808_s5 = inlined_call_operand.hbm [shape: bf16[128,128], index: 5, kind: input, shape index: {}]   ;;  %s7809_s6 = inlined_call_operand.vmem [shape: f32[1,128], index: 6, kind: input, shape index: {}]   ;;  %s7810_s7 = inlined_call_operand.vmem [shape: f32[1,128], index: 7, kind: input, shape index: {}]   ;;  %s7811_s8 = inlined_call_operand.vmem [shape: f32[1,128], index: 8, kind: input, shape index: {}]   ;;  %s7812_s9 = inlined_call_operand.hbm [shape: bf16[128,256], index: 9, kind: input, shape index: {}]   ;;  %s7813_s10 = inlined_call_operand.vmem [shape: f32[1,256], index: 10, kind: input, shape index: {}]   ;;  %s7814_s11 = inlined_call_operand.hbm [shape: bf16[256,128], index: 11, kind: input, shape index: {}]   ;;  %s7815_s12 = inlined_call_operand.vmem [shape: f32[1,128], index: 12, kind: input, shape index: {}]   ;;  %s7816_s13 = inlined_call_operand.vmem [shape: f32[1,128], index: 13, kind: input, shape index: {}]   ;;  %s7817_s14 = inlined_call_operand.vmem [shape: f32[1,128], index: 14, kind: input, shape index: {}]   ;;  %s7818_s15 = inlined_call_operand.hbm [shape: f32[4,16,128], index: 15, kind: output, shape index: {}]  }
   0x1   :  { %7888 = sst [smem:[#allocation135_spill]] %s7803_s0 }
   0x2   :  { %7889 = sst [smem:[#allocation136_spill]] %s7805_s2 }
   0x3   :  { %7890 = sst [smem:[#allocation137_spill]] %s7808_s5 }
   0x4   :  { %7891 = sst [smem:[#allocation138_spill]] %s7812_s9 }
   0x5   :  { %7892 = sst [smem:[#allocation139_spill]] %s7814_s11 }
   0x6   :  { %7893 = sst [smem:[#allocation140_spill]] %s7818_s15 }
   0x7   :  { %20 = vsyncpa [#allocation3], 0 }
   0x8   :  { %22 = vsyncpa [#allocation3 + $0x1], 0 }
   0x9   :  { %23 = vsyncpa [#allocation6], 0 }
   0xa   :  { %25 = vsyncpa [#allocation6 + $0x1], 0 }
   0xb   :  { %26 = vsyncpa [#allocation9], 0 }
   0xc   :  { %27 = vsyncpa [#allocation12], 0 }
   0xd   :  { %28 = vsyncpa [#allocation4], 0 }
   0xe   :  { %30 = vsyncpa [#allocation4 + $0x1], 0  ;;  %s6120_s18 = smov 0   ;;  %s6122_s19 = smov 0  }
   0xf   :  { %s6124_s20 = smov 0   ;;  %s6126_s21 = smov 0  }
  0x10 LB: > { %7894 = sst [smem:[#allocation20_spill]] %s5982_s18  ;;  %s6141_s22 = sadd.s32 4294967295, %s5994_s21   ;;  %s5994_s21 = sphi %s6126_s21, %s8161_s21   ;;  %s5990_s20 = sphi %s6124_s20, %s8163_s20   ;;  %s5986_s19 = sphi %s6122_s19, %s8165_s19   ;;  %s5982_s18 = sphi %s6120_s18, %s8164_s18  }
  0x11   : > { %7895 = sst [smem:[#allocation21_spill]] %s5990_s20  ;;  %s5081_s23 = sadd.s32 4294967294, %s5994_s21  }
  0x12   : > { %p56_p0 = scmp.ne.s32.totalorder %s5986_s19, %s5982_s18  ;;  %p7821_p1 = scmp.eq.s32.totalorder %s6141_s22, 0 }
  0x13   : > { %p385_p3 = scmp.eq.s32.totalorder %s5081_s23, 1  ;;  %p5082_p5 = scmp.ge.s32.totalorder %s5994_s21, 1 }
  0x14   : > { %p6150_p4 = por %p7821_p1, %p56_p0  ;;  %p392_p7 = scmp.lt.s32.totalorder %s5994_s21, 3 }
  0x15   : > { %p6155_p6 = por %p385_p3, %p56_p0  ;;  %s6016_s27 = smov [#allocation7]  }
  0x16   : > { %s7896_s24 = scalar_select %p6150_p4, 1, 0 }
  0x17   : > { %s7897_s25 = scalar_select %p6155_p6, 1, 0 }
  0x18   : > { %p6160_p8 = pnand %p5082_p5, %p392_p7  ;;  %s404_s28 = sshll.u32 %s6016_s27, 4  ;;  %s405_s28 = int_to_ptr.vmem [resolvable:$true] %s404_s28 }
  0x19   : > { %7898 = sst [smem:[#allocation22_spill]] %s7897_s25  ;;  %s6017_s30 = smov [#allocation8]  }
  0x1a   : > { %p5489_p9 = pneg %p6160_p8  ;;  %s423_s16 = sshll.u32 %s6017_s30, 4  ;;  %s424_s16 = int_to_ptr.vmem [resolvable:$true] %s423_s16 }
  0x1b   : > { %s5745_s17 = scalar_lea.vmem %s405_s28, 3072  ;;  %p5753_p5 = scmp.lt.s32.totalorder %s405_s28, %s405_s28 }
  0x1c   : > { %p6169_p11 = pnand %p5489_p9, %p7821_p1  ;;  %p5746_p13 = scmp.ne.s32.totalorder %s405_s28, %s5745_s17 }
  0x1d   : > { %p5754_p7 = scmp.lt.s32.totalorder %s5745_s17, %s5745_s17 }
  0x1e   : > { %p5736_p12 = pneg %p6169_p11 }
  0x1f   : > { %p5755_p10 = por %p5754_p7, %p5753_p5 }
  0x20   : > { %p5748_p0 = pnand %p5746_p13, %p5736_p12 }
  0x22   : > { %p5749_p3 = pneg %p5748_p0 }
  0x24   : > { %p5756_p9 = pnand %p5755_p10, %p5749_p3 }
  0x26   : > { %5759 = shalt.err (!%p5756_p9)
}
  0x27   : > { %s6018_s23 = smov 192   ;;  %s6019_s27 = smov 12  }
  0x28   : > { %s7901_s2 = sld [smem:[#allocation136_spill]]  ;;  %s5771_s18 = scalar_lea.vmem %s424_s16, 1024 }
  0x29   : > { %p5772_p1 = scmp.ne.s32.totalorder %s424_s16, %s5771_s18  ;;  %p5779_p2 = scmp.lt.s32.totalorder %s424_s16, %s424_s16 }
  0x2a   : > { %p5780_p6 = scmp.lt.s32.totalorder %s5771_s18, %s5771_s18 }
  0x2b   : > { %p5774_p13 = pnand %p5772_p1, %p5736_p12 }
  0x2c   : > { %p5781_p5 = por %p5780_p6, %p5779_p2 }
  0x2d   : > { %p5775_p0 = pneg %p5774_p13 }
  0x2e   : > { %5492 = dma.hbm_to_vmem [thread:$0]  (!%p6169_p11), %s7901_s2, 3072, %s405_s28, [#allocation6], %s6018_s23, %s6018_s23, %s6019_s27  }
  0x2f   : > { %p5782_p10 = pnand %p5781_p5, %p5775_p0 }
  0x31   : > { %5785 = shalt.err (!%p5782_p10)
}
  0x32   : > { %s7823_s17 = smov 64   ;;  %s6021_s15 = smov 4  }
  0x33   : > { %s7902_s5 = sld [smem:[#allocation137_spill]]  ;;  %s6022_s23 = smov [#allocation10]  }
  0x34   : > { %s445_s27 = sshll.u32 %s6022_s23, 4  ;;  %s446_s27 = int_to_ptr.vmem [resolvable:$true] %s445_s27 }
  0x35   : > { %s5797_s30 = scalar_lea.vmem %s446_s27, 2048  ;;  %p5805_p3 = scmp.lt.s32.totalorder %s446_s27, %s446_s27 }
  0x36   : > { %p5798_p1 = scmp.ne.s32.totalorder %s446_s27, %s5797_s30  ;;  %p5806_p7 = scmp.lt.s32.totalorder %s5797_s30, %s5797_s30 }
  0x38   : > { %p5800_p2 = pnand %p5798_p1, %p5736_p12  ;;  %p5807_p9 = por %p5806_p7, %p5805_p3 }
  0x39   : > { %5495 = dma.hbm_to_vmem [thread:$0]  (!%p6169_p11), %s7902_s5, 1024, %s424_s16, [#allocation9], %s7823_s17, %s7823_s17, %s6021_s15  }
  0x3a   : > { %p5801_p6 = pneg %p5800_p2 }
  0x3c   : > { %p5808_p13 = pnand %p5807_p9, %p5801_p6 }
  0x3e   : > { %5811 = shalt.err (!%p5808_p13)
}
  0x3f   : > { %s7824_s18 = smov 128   ;;  %s7826_s2 = smov 8  }
  0x40   : > { %s7903_s9 = sld [smem:[#allocation138_spill]]  ;;  %s6025_s28 = smov [#allocation11]  }
  0x41   : > { %s461_s23 = sshll.u32 %s6025_s28, 4  ;;  %s462_s23 = int_to_ptr.vmem [resolvable:$true] %s461_s23 }
  0x42   : > { %s5823_s17 = scalar_lea.vmem %s462_s23, 2048  ;;  %p5831_p1 = scmp.lt.s32.totalorder %s462_s23, %s462_s23 }
  0x43   : > { %p5824_p0 = scmp.ne.s32.totalorder %s462_s23, %s5823_s17  ;;  %p5832_p2 = scmp.lt.s32.totalorder %s5823_s17, %s5823_s17 }
  0x45   : > { %p5826_p5 = pnand %p5824_p0, %p5736_p12  ;;  %p5833_p6 = por %p5832_p2, %p5831_p1 }
  0x46   : > { %5498 = dma.hbm_to_vmem [thread:$0]  (!%p6169_p11), %s7903_s9, 2048, %s446_s27, [#allocation9], %s7824_s18, %s7824_s18, %s7826_s2  }
  0x47   : > { %p5827_p10 = pneg %p5826_p5 }
  0x49   : > { %p5834_p3 = pnand %p5833_p6, %p5827_p10 }
  0x4b   : > { %5837 = shalt.err (!%p5834_p3)
}
  0x4c   : > { %s7904_s30 = smov 64   ;;  %s7905_s11 = sld [smem:[#allocation139_spill]] }
  0x4d   : > { %s6217_s17 = sadd.s32 1, %s5994_s21   ;;  %s43_s29 = sadd.s32 1, %s5990_s20 }
  0x4e   : > { %7906 = sst [smem:[#allocation23_spill]] %s6217_s17  ;;  %s40_s25 = ssub.s32 %s5994_s21, %s6217_s17 }
  0x4f   : > { %p50_p12 = scmp.ne.s32.totalorder %s5990_s20, %s5986_s19  ;;  %p41_p7 = scmp.eq.s32.totalorder %s40_s25, 0 }
  0x50   : > { %p51_p9 = scmp.eq.s32.totalorder %s5994_s21, 0  ;;  %p7907_p13 = scmp.eq.s32.totalorder %s6141_s22, 1 }
  0x51   : > { %p5517_p5 = scmp.lt.s32.totalorder %s5994_s21, 2  ;;  %s484_s16 = sand.u32 1, %s5990_s20  }
  0x52   : > { %5501 = dma.hbm_to_vmem [thread:$0]  (!%p6169_p11), %s7905_s11, 2048, %s462_s23, [#allocation12], %s7904_s30, %s7904_s30, %s6021_s15  }
  0x53   : > { %p6227_p0 = por %p7907_p13, %p50_p12  ;;  %p52_p10 = por %p51_p9, %p50_p12 }
  0x54   : > { %s6233_s27 = scalar_select %p41_p7, %s5990_s20, %s43_s29  }
  0x55   : > { %s7908_s28 = scalar_select %p6227_p0, 1, 0 }
  0x56   : > { %7910 = sst [smem:[#allocation25_spill]] %s6233_s27  ;;  %s5088_s18 = sshll.u32 %s484_s16, 5 }
  0x57   : > { %7909 = sst [smem:[#allocation24_spill]] %s7908_s28  ;;  %s5230_s15 = sshll.u32 %s5994_s21, 9 }
  0x58   : > { %s7911_s0 = sld [smem:[#allocation135_spill]]  ;;  %s488_s25 = scalar_lea.vmem [#allocation2], %s5088_s18 }
  0x59   : > { %s496_s5 = sshll.u32 %s488_s25, 4  ;;  %p6244_p11 = pnand %p5517_p5, %p52_p10  ;;  %s6242_s5 = int_to_ptr.vmem [resolvable:$true] %s496_s5 }
  0x5a   : > { %s6251_s27 = scalar_lea.hbm %s7804_s1, %s5230_s15  ;;  %s510_s23 = scalar_lea.vmem [#allocation5], %s5088_s18 }
  0x5b   : > { %s6253_s30 = sshll.u32 %s510_s23, 4  ;;  %s6255_s20 = scalar_lea.sflag [#allocation3], %s484_s16  ;;  %s6286_s30 = int_to_ptr.vmem [resolvable:$true] %s6253_s30 }
  0x5c   : > { %p5840_p2 = pneg %p6244_p11 }
  0x5e   : > { %s6240_s2 = scalar_lea.hbm %s7911_s0, %s5230_s15  ;;  %s5843_s11 = scalar_lea.hbm %s7911_s0, 1024 }
  0x5f   : > { %s5838_s17 = scalar_lea.hbm %s6240_s2, 512  ;;  %p5844_p12 = scmp.lt.s32.totalorder %s6240_s2, %s7911_s0 }
  0x60   : > { %p5839_p1 = scmp.ne.s32.totalorder %s6240_s2, %s5838_s17  ;;  %p5845_p7 = scmp.lt.s32.totalorder %s5843_s11, %s5838_s17 }
  0x62   : > { %p5841_p6 = pnand %p5840_p2, %p5839_p1  ;;  %p5846_p9 = por %p5845_p7, %p5844_p12 }
  0x64   : > { %p5842_p3 = pneg %p5841_p6 }
  0x66   : > { %p5847_p13 = pnand %p5846_p9, %p5842_p3 }
  0x68   : > { %5850 = shalt.err (!%p5847_p13)
}
  0x69   : > { %s5851_s18 = scalar_lea.vmem %s6242_s5, 512  ;;  %s6026_s28 = smov [#allocation2]  }
  0x6a   : > { %p5852_p5 = scmp.ne.s32.totalorder %s6242_s5, %s5851_s18  ;;  %s5856_s16 = sshll.u32 %s6026_s28, 4  ;;  %s5857_s16 = int_to_ptr.vmem [resolvable:$false] %s5856_s16 }
  0x6b   : > { %s5858_s23 = scalar_lea.vmem %s5857_s16, 1024  ;;  %p5859_p6 = scmp.lt.s32.totalorder %s6242_s5, %s5857_s16 }
  0x6c   : > { %p5854_p10 = pnand %p5852_p5, %p5840_p2  ;;  %p5860_p0 = scmp.lt.s32.totalorder %s5858_s23, %s5851_s18 }
  0x6e   : > { %p5855_p1 = pneg %p5854_p10  ;;  %p5861_p4 = por %p5860_p0, %p5859_p6 }
  0x70   : > { %p5862_p12 = pnand %p5861_p4, %p5855_p1 }
  0x72   : > { %5865 = shalt.err (!%p5862_p12)
}
  0x73   : > { %s7913_s17 = smov 8   ;;  %s7914_s25 = smov 128  }
  0x74   : > { %5505 = dma.hbm_to_vmem [thread:$0]  (!%p6244_p11), %s6240_s2, 512, %s6242_s5, %s6255_s20, %s7914_s25, %s7914_s25, %s7913_s17  }
  0x75   : > { %s506_s11 = sand.u32 1, %s5994_s21   ;;  %s5866_s15 = scalar_lea.hbm %s6251_s27, 512 }
  0x76   : > { %s507_s29 = scalar_lea.sflag [#allocation6], %s506_s11  ;;  %p5867_p4 = scmp.ne.s32.totalorder %s6251_s27, %s5866_s15 }
  0x77   : > { %s5871_s16 = scalar_lea.hbm %s7804_s1, 1024  ;;  %p5872_p7 = scmp.lt.s32.totalorder %s6251_s27, %s7804_s1 }
  0x78   : > { %p5869_p0 = pnand %p5867_p4, %p5840_p2  ;;  %p5873_p9 = scmp.lt.s32.totalorder %s5871_s16, %s5866_s15 }
  0x7a   : > { %p5870_p3 = pneg %p5869_p0  ;;  %p5874_p13 = por %p5873_p9, %p5872_p7 }
  0x7c   : > { %p5875_p5 = pnand %p5874_p13, %p5870_p3 }
  0x7e   : > { %5878 = shalt.err (!%p5875_p5)
}
  0x7f   : > { %s5879_s2 = scalar_lea.vmem %s6286_s30, 512  ;;  %s6027_s5 = smov [#allocation5]  }
  0x80   : > { %p5880_p10 = scmp.ne.s32.totalorder %s6286_s30, %s5879_s2  ;;  %s5884_s20 = sshll.u32 %s6027_s5, 4  ;;  %s5885_s20 = int_to_ptr.vmem [resolvable:$false] %s5884_s20 }
  0x81   : > { %s5886_s11 = scalar_lea.vmem %s5885_s20, 1024  ;;  %p5887_p12 = scmp.lt.s32.totalorder %s6286_s30, %s5885_s20 }
  0x82   : > { %p5882_p1 = pnand %p5880_p10, %p5840_p2  ;;  %p5888_p4 = scmp.lt.s32.totalorder %s5886_s11, %s5879_s2 }
  0x84   : > { %p5883_p6 = pneg %p5882_p1  ;;  %p5889_p0 = por %p5888_p4, %p5887_p12 }
  0x86   : > { %p5890_p7 = pnand %p5889_p0, %p5883_p6 }
  0x88   : > { %5893 = shalt.err (!%p5890_p7)
}
  0x89   : > { %5508 = dma.hbm_to_vmem [thread:$0]  (!%p6244_p11), %s6251_s27, 512, %s6286_s30, %s507_s29, %s7914_s25, %s7914_s25, %s7913_s17  }
  0x8a   : > { %530 = sbr.rel (%p6160_p8) target bundleno = 2860 (0xb2c), region = 80 }
  0x8f   : > { %s6317_s0 = sand.u32 1, %s5986_s19   ;;  %p7915_p2 = scmp.ne.s32.totalorder %s7896_s24, 0 }
  0x90   : > { %s6320_s15 = sshll.u32 %s6317_s0, 5  ;;  %s533_s18 = scalar_lea.sflag [#allocation3], %s6317_s0 }
  0x91   : > { %s536_s9 = scalar_lea.vmem [#allocation2], %s6320_s15 }
  0x92   : > { %5957 = dma.done.wait (%p7915_p2), %s533_s18, 512  }
  0x93   : > { %5959 = vsyncadd (%p7915_p2), %s533_s18, 4294966784  ;;  %s541_s26 = sand.u32 1, %s6141_s22   ;;  %s6330_s30 = scalar_lea.vmem [#allocation5], %s6320_s15 }
  0x94   : > { %s542_s27 = scalar_lea.sflag [#allocation6], %s541_s26 }
  0x95   : > { %5961 = dma.done.wait (%p7915_p2), %s542_s27, 512  }
  0x96   : > { %5963 = vsyncadd (%p7915_p2), %s542_s27, 4294966784  ;;  %p7916_p8 = scmp.eq.s32.totalorder %s6141_s22, 0 }
  0x98   : > { %5965 = dma.done.wait (%p7916_p8), [#allocation6], 3072   ;;  %p7917_p11 = pmov %p7916_p8 }
  0x99   : > { %p7918_p3 = pmov %p7916_p8 }
  0x9a   : > { %5967 = vsyncadd (%p7917_p11), [#allocation6], 4294964224 }
  0x9b   : > { %5969 = dma.done.wait (%p7918_p3), [#allocation9], 3072   ;;  %p7919_p9 = pmov %p7918_p3 }
  0x9c   : > { %p7920_p13 = pmov %p7918_p3 }
  0x9d   : > { %5971 = vsyncadd (%p7919_p9), [#allocation9], 4294964224 }
  0x9e   : > { %5973 = dma.done.wait (%p7920_p13), [#allocation12], 2048   ;;  %p7921_p5 = pmov %p7918_p3 }
  0x9f   : > { %v6028_v0 = vmov 0   ;;  %v6348_v1 = vld [vmem:[%s536_s9] sm:$0xff]   ;;  %v6350_v2 = vld [vmem:[%s536_s9 + $0x8] sm:$0xff]   ;;  %v6352_v3 = vld [vmem:[%s536_s9 + $0x10] sm:$0xff]   ;;  %s6666_s29 = smov 0  }
  0xa0   : > { %5975 = vsyncadd (%p7921_p5), [#allocation12], 4294965248  ;;  %855 = vmatprep.mubr.bf16.mxu0 %v6028_v0  ;;  %865 = vmatprep.mubr.bf16.mxu1 %v6028_v0  ;;  %v6354_v4 = vld [vmem:[%s536_s9 + $0x18] sm:$0xff]   ;;  %v6356_v5 = vld [vmem:[#allocation7 + $0x8] sm:$0xf] }
  0xa1   : > { %7922 = vst [vmem:[#allocation26_spill] sm:$0xff] %v6356_v5  ;;  %v6358_v6 = vld [vmem:[#allocation7 + $0x14] sm:$0xf]  ;;  %v6360_v7 = vld [vmem:[#allocation7 + $0x20] sm:$0xf]  ;;  %v6442_v42 = vld [vmem:[#allocation10 + $0x8] sm:$0xff] }
  0xa2   : > { %7923 = vst [vmem:[#allocation27_spill] sm:$0xff] %v6358_v6  ;;  %7924 = vst [vmem:[#allocation28_spill] sm:$0xff] %v6360_v7  ;;  %v6362_v8 = vld [vmem:[#allocation7 + $0x2c] sm:$0xf]  ;;  %v6364_v9 = vld [vmem:[#allocation7 + $0x38] sm:$0xf] }
  0xa3   : > { %7925 = vst [vmem:[#allocation29_spill] sm:$0xff] %v6362_v8  ;;  %7926 = vst [vmem:[#allocation30_spill] sm:$0xff] %v6364_v9  ;;  %v6366_v10 = vld [vmem:[#allocation7 + $0x44] sm:$0xf]  ;;  %v6368_v11 = vld [vmem:[#allocation7 + $0x50] sm:$0xf] }
  0xa4   : > { %7927 = vst [vmem:[#allocation31_spill] sm:$0xff] %v6366_v10  ;;  %7928 = vst [vmem:[#allocation32_spill] sm:$0xff] %v6368_v11  ;;  %v6370_v12 = vld [vmem:[#allocation7 + $0x5c] sm:$0xf]  ;;  %v6372_v13 = vld [vmem:[#allocation7 + $0x68] sm:$0xf] }
  0xa5   : > { %7929 = vst [vmem:[#allocation33_spill] sm:$0xff] %v6370_v12  ;;  %7930 = vst [vmem:[#allocation34_spill] sm:$0xff] %v6372_v13  ;;  %v6374_v14 = vld [vmem:[#allocation7 + $0x74] sm:$0xf]  ;;  %v6376_v15 = vld [vmem:[#allocation7 + $0x80] sm:$0xf] }
  0xa6   : > { %7931 = vst [vmem:[#allocation35_spill] sm:$0xff] %v6374_v14  ;;  %7932 = vst [vmem:[#allocation36_spill] sm:$0xff] %v6376_v15  ;;  %v6378_v16 = vld [vmem:[#allocation7 + $0x8c] sm:$0xf]  ;;  %v6380_v17 = vld [vmem:[#allocation7 + $0x98] sm:$0xf] }
  0xa7   : > { %7933 = vst [vmem:[#allocation37_spill] sm:$0xff] %v6378_v16  ;;  %7934 = vst [vmem:[#allocation38_spill] sm:$0xff] %v6380_v17  ;;  %v6382_v18 = vld [vmem:[#allocation7 + $0xa4] sm:$0xf]  ;;  %v6384_v19 = vld [vmem:[#allocation7 + $0xb0] sm:$0xf] }
  0xa8   : > { %7935 = vst [vmem:[#allocation39_spill] sm:$0xff] %v6382_v18  ;;  %7936 = vst [vmem:[#allocation40_spill] sm:$0xff] %v6384_v19  ;;  %v6386_v20 = vld [vmem:[#allocation7 + $0xbc] sm:$0xf]  ;;  %v6391_v21 = vld [vmem:[%s7807_s4] ss:$0 sm:$0xff] }
  0xa9   : > { %7937 = vst [vmem:[#allocation41_spill] sm:$0xff] %v6386_v20  ;;  %7938 = vst [vmem:[#allocation42_spill] sm:$0xff] %v6391_v21  ;;  %v6393_v22 = vld [vmem:[#allocation8] sm:$0xf]  ;;  %v6395_v23 = vld [vmem:[#allocation8 + $0x4] sm:$0xf] }
  0xaa   : > { %7939 = vst [vmem:[#allocation43_spill] sm:$0xff] %v6393_v22  ;;  %7940 = vst [vmem:[#allocation44_spill] sm:$0xff] %v6395_v23  ;;  %v6397_v24 = vld [vmem:[#allocation8 + $0x8] sm:$0xf]  ;;  %v6399_v25 = vld [vmem:[#allocation8 + $0xc] sm:$0xf] }
  0xab   : > { %7941 = vst [vmem:[#allocation45_spill] sm:$0xff] %v6397_v24  ;;  %7942 = vst [vmem:[#allocation46_spill] sm:$0xff] %v6399_v25  ;;  %v6401_v26 = vld [vmem:[#allocation8 + $0x10] sm:$0xf]  ;;  %v6403_v27 = vld [vmem:[#allocation8 + $0x14] sm:$0xf] }
  0xac   : > { %7943 = vst [vmem:[#allocation47_spill] sm:$0xff] %v6401_v26  ;;  %7944 = vst [vmem:[#allocation48_spill] sm:$0xff] %v6403_v27  ;;  %v6405_v28 = vld [vmem:[#allocation8 + $0x18] sm:$0xf]  ;;  %v6407_v29 = vld [vmem:[#allocation8 + $0x1c] sm:$0xf] }
  0xad   : > { %7945 = vst [vmem:[#allocation49_spill] sm:$0xff] %v6405_v28  ;;  %7946 = vst [vmem:[#allocation50_spill] sm:$0xff] %v6407_v29  ;;  %v6409_v30 = vld [vmem:[#allocation8 + $0x20] sm:$0xf]  ;;  %v6411_v31 = vld [vmem:[#allocation8 + $0x24] sm:$0xf] }
  0xae   : > { %v6413_v32 = vld [vmem:[#allocation8 + $0x28] sm:$0xf]  ;;  %v6415_v33 = vld [vmem:[#allocation8 + $0x2c] sm:$0xf]  ;;  %v6417_v34 = vld [vmem:[#allocation8 + $0x30] sm:$0xf] }
  0xaf   : > { %v6419_v35 = vld [vmem:[#allocation8 + $0x34] sm:$0xf]  ;;  %v6421_v36 = vld [vmem:[#allocation8 + $0x38] sm:$0xf]  ;;  %v6423_v37 = vld [vmem:[#allocation8 + $0x3c] sm:$0xf] }
  0xb0   : > { %v6428_v38 = vld [vmem:[%s7809_s6] ss:$0 sm:$0xff]  ;;  %7951 = vst [vmem:[#allocation55_spill] sm:$0xff] %v6442_v42  ;;  %v6444_v43 = vld [vmem:[#allocation10 + $0x10] sm:$0xff]  ;;  %v6446_v44 = vld [vmem:[#allocation10 + $0x18] sm:$0xff] }
  0xb1   : > { %7947 = vst [vmem:[#allocation51_spill] sm:$0xff] %v6428_v38  ;;  %v6433_v39 = vld [vmem:[%s7810_s7] ss:$0 sm:$0xff]  ;;  %7952 = vst [vmem:[#allocation56_spill] sm:$0xff] %v6444_v43  ;;  %v6450_v46 = vld [vmem:[#allocation10 + $0x28] sm:$0xff] }
  0xb2   : > { %7948 = vst [vmem:[#allocation52_spill] sm:$0xff] %v6433_v39  ;;  %v6438_v40 = vld [vmem:[%s7811_s8] ss:$0 sm:$0xff]  ;;  %7953 = vst [vmem:[#allocation57_spill] sm:$0xff] %v6446_v44  ;;  %v6452_v47 = vld [vmem:[#allocation10 + $0x30] sm:$0xff] }
  0xb3   : > { %7949 = vst [vmem:[#allocation53_spill] sm:$0xff] %v6438_v40  ;;  %v6440_v41 = vld [vmem:[#allocation10] sm:$0xff]  ;;  %7955 = vst [vmem:[#allocation59_spill] sm:$0xff] %v6450_v46  ;;  %v6454_v48 = vld [vmem:[#allocation10 + $0x38] sm:$0xff] }
  0xb4   : > { %7950 = vst [vmem:[#allocation54_spill] sm:$0xff] %v6440_v41  ;;  %v6448_v45 = vld [vmem:[#allocation10 + $0x20] sm:$0xff]  ;;  %7956 = vst [vmem:[#allocation60_spill] sm:$0xff] %v6452_v47  ;;  %v6458_v50 = vld [vmem:[#allocation10 + $0x48] sm:$0xff] }
  0xb5   : > { %7954 = vst [vmem:[#allocation58_spill] sm:$0xff] %v6448_v45  ;;  %7957 = vst [vmem:[#allocation61_spill] sm:$0xff] %v6454_v48  ;;  %v6456_v49 = vld [vmem:[#allocation10 + $0x40] sm:$0xff]  ;;  %v6460_v51 = vld [vmem:[#allocation10 + $0x50] sm:$0xff] }
  0xb6   : > { %7958 = vst [vmem:[#allocation62_spill] sm:$0xff] %v6456_v49  ;;  %7959 = vst [vmem:[#allocation63_spill] sm:$0xff] %v6458_v50  ;;  %v6462_v52 = vld [vmem:[#allocation10 + $0x58] sm:$0xff]  ;;  %v6464_v53 = vld [vmem:[#allocation10 + $0x60] sm:$0xff] }
  0xb7   : > { %7960 = vst [vmem:[#allocation64_spill] sm:$0xff] %v6460_v51  ;;  %7961 = vst [vmem:[#allocation65_spill] sm:$0xff] %v6462_v52  ;;  %v6466_v54 = vld [vmem:[#allocation10 + $0x68] sm:$0xff]  ;;  %v6468_v55 = vld [vmem:[#allocation10 + $0x70] sm:$0xff] }
  0xb8   : > { %7962 = vst [vmem:[#allocation66_spill] sm:$0xff] %v6464_v53  ;;  %7963 = vst [vmem:[#allocation67_spill] sm:$0xff] %v6466_v54  ;;  %v6470_v56 = vld [vmem:[#allocation10 + $0x78] sm:$0xff]  ;;  %v6475_v57 = vld [vmem:[%s7813_s10] sm:$0x3]  ;;  %v733_v53 = vlaneseq }
  0xb9   : > { %7964 = vst [vmem:[#allocation68_spill] sm:$0xff] %v6468_v55  ;;  %7965 = vst [vmem:[#allocation69_spill] sm:$0xff] %v6470_v56  ;;  %v6477_v58 = vld [vmem:[#allocation11] sm:$0xf]  ;;  %v6479_v59 = vld [vmem:[#allocation11 + $0x4] sm:$0xf] }
  0xba   : > { %7966 = vst [vmem:[#allocation70_spill] sm:$0xff] %v6475_v57  ;;  %7967 = vst [vmem:[#allocation71_spill] sm:$0xff] %v6477_v58  ;;  %v6481_v60 = vld [vmem:[#allocation11 + $0x8] sm:$0xf]  ;;  %v6483_v61 = vld [vmem:[#allocation11 + $0xc] sm:$0xf] }
  0xbb   : > { %7968 = vst [vmem:[#allocation72_spill] sm:$0xff] %v6479_v59  ;;  %7969 = vst [vmem:[#allocation73_spill] sm:$0xff] %v6481_v60  ;;  %v6485_v62 = vld [vmem:[#allocation11 + $0x10] sm:$0xf]  ;;  %v6487_v63 = vld [vmem:[#allocation11 + $0x14] sm:$0xf] }
  0xbc   : > { %7970 = vst [vmem:[#allocation74_spill] sm:$0xff] %v6483_v61  ;;  %7971 = vst [vmem:[#allocation75_spill] sm:$0xff] %v6485_v62  ;;  %v6489_v0 = vld [vmem:[#allocation11 + $0x18] sm:$0xf]  ;;  %v6491_v40 = vld [vmem:[#allocation11 + $0x1c] sm:$0xf] }
  0xbd   : > { %7972 = vst [vmem:[#allocation76_spill] sm:$0xff] %v6487_v63  ;;  %7973 = vst [vmem:[#allocation77_spill] sm:$0xff] %v6489_v0  ;;  %v6493_v39 = vld [vmem:[#allocation11 + $0x20] sm:$0xf]  ;;  %v6495_v41 = vld [vmem:[#allocation11 + $0x24] sm:$0xf] }
  0xbe   : > { %7974 = vst [vmem:[#allocation78_spill] sm:$0xff] %v6491_v40  ;;  %7975 = vst [vmem:[#allocation79_spill] sm:$0xff] %v6493_v39  ;;  %v6497_v57 = vld [vmem:[#allocation11 + $0x28] sm:$0xf]  ;;  %v6499_v58 = vld [vmem:[#allocation11 + $0x2c] sm:$0xf] }
  0xbf   : > { %7976 = vst [vmem:[#allocation80_spill] sm:$0xff] %v6495_v41  ;;  %7977 = vst [vmem:[#allocation81_spill] sm:$0xff] %v6497_v57  ;;  %v6501_v59 = vld [vmem:[#allocation11 + $0x30] sm:$0xf]  ;;  %v6503_v60 = vld [vmem:[#allocation11 + $0x34] sm:$0xf] }
  0xc0   : > { %7978 = vst [vmem:[#allocation82_spill] sm:$0xff] %v6499_v58  ;;  %7979 = vst [vmem:[#allocation83_spill] sm:$0xff] %v6501_v59  ;;  %v6505_v61 = vld [vmem:[#allocation11 + $0x38] sm:$0xf]  ;;  %v6507_v62 = vld [vmem:[#allocation11 + $0x3c] sm:$0xf] }
  0xc1   : > { %7980 = vst [vmem:[#allocation84_spill] sm:$0xff] %v6503_v60  ;;  %7981 = vst [vmem:[#allocation85_spill] sm:$0xff] %v6505_v61  ;;  %v6509_v63 = vld [vmem:[#allocation11 + $0x40] sm:$0xf]  ;;  %v6511_v0 = vld [vmem:[#allocation11 + $0x44] sm:$0xf] }
  0xc2   : > { %7982 = vst [vmem:[#allocation86_spill] sm:$0xff] %v6507_v62  ;;  %7983 = vst [vmem:[#allocation87_spill] sm:$0xff] %v6509_v63  ;;  %v6513_v40 = vld [vmem:[#allocation11 + $0x48] sm:$0xf]  ;;  %v6515_v39 = vld [vmem:[#allocation11 + $0x4c] sm:$0xf] }
  0xc3   : > { %7984 = vst [vmem:[#allocation88_spill] sm:$0xff] %v6511_v0  ;;  %7985 = vst [vmem:[#allocation89_spill] sm:$0xff] %v6513_v40  ;;  %v6517_v41 = vld [vmem:[#allocation11 + $0x50] sm:$0xf]  ;;  %v6519_v57 = vld [vmem:[#allocation11 + $0x54] sm:$0xf] }
  0xc4   : > { %7986 = vst [vmem:[#allocation90_spill] sm:$0xff] %v6515_v39  ;;  %7987 = vst [vmem:[#allocation91_spill] sm:$0xff] %v6517_v41  ;;  %v6521_v58 = vld [vmem:[#allocation11 + $0x58] sm:$0xf]  ;;  %v6523_v59 = vld [vmem:[#allocation11 + $0x5c] sm:$0xf] }
  0xc5   : > { %7988 = vst [vmem:[#allocation92_spill] sm:$0xff] %v6519_v57  ;;  %7989 = vst [vmem:[#allocation93_spill] sm:$0xff] %v6521_v58  ;;  %v6525_v60 = vld [vmem:[#allocation11 + $0x60] sm:$0xf]  ;;  %v6527_v61 = vld [vmem:[#allocation11 + $0x64] sm:$0xf] }
  0xc6   : > { %7990 = vst [vmem:[#allocation94_spill] sm:$0xff] %v6523_v59  ;;  %7991 = vst [vmem:[#allocation95_spill] sm:$0xff] %v6525_v60  ;;  %v6529_v62 = vld [vmem:[#allocation11 + $0x68] sm:$0xf]  ;;  %v6531_v63 = vld [vmem:[#allocation11 + $0x6c] sm:$0xf] }
  0xc7   : > { %7992 = vst [vmem:[#allocation96_spill] sm:$0xff] %v6527_v61  ;;  %7993 = vst [vmem:[#allocation97_spill] sm:$0xff] %v6529_v62  ;;  %v6533_v0 = vld [vmem:[#allocation11 + $0x70] sm:$0xf]  ;;  %v6535_v40 = vld [vmem:[#allocation11 + $0x74] sm:$0xf] }
  0xc8   : > { %7994 = vst [vmem:[#allocation98_spill] sm:$0xff] %v6531_v63  ;;  %7995 = vst [vmem:[#allocation99_spill] sm:$0xff] %v6533_v0  ;;  %v6537_v39 = vld [vmem:[#allocation11 + $0x78] sm:$0xf]  ;;  %v6539_v41 = vld [vmem:[#allocation11 + $0x7c] sm:$0xf] }
  0xc9   : > { %7996 = vst [vmem:[#allocation100_spill] sm:$0xff] %v6535_v40  ;;  %7997 = vst [vmem:[#allocation101_spill] sm:$0xff] %v6537_v39  ;;  %v6544_v57 = vld [vmem:[%s7815_s12] ss:$0 sm:$0xff]  ;;  %v6556_v60 = vld [vmem:[#allocation7 + $0xac] ss:$12 sps:$4 sm:$0xff]  }
  0xca   : > { %7998 = vst [vmem:[#allocation102_spill] sm:$0xff] %v6539_v41  ;;  %7999 = vst [vmem:[#allocation103_spill] sm:$0xff] %v6544_v57  ;;  %v6549_v58 = vld [vmem:[%s7816_s13] ss:$0 sm:$0xff]  ;;  %v6558_v61 = vld [vmem:[#allocation7 + $0xa8] ss:$12 sps:$4 sm:$0xff]   ;;  %823 = vmatprep.subr.bf16.mxu0 %v6556_v60  ;;  %5451 = vmatprep.subr.bf16.mxu1 %v6556_v60 }
  0xcb   : > { %8000 = vst [vmem:[#allocation104_spill] sm:$0xff] %v6549_v58  ;;  %v6554_v59 = vld [vmem:[%s7817_s14] ss:$0 sm:$0xff]  ;;  %8002 = vst [vmem:[#allocation106_spill] sm:$0xff] %v6556_v60  ;;  %824 = vmatpush1.bf16.msra.mxu0 %v6558_v61  ;;  %5459 = vmatpush1.bf16.msra.mxu1 %v6558_v61  ;;  %v6566_v58 = vld [vmem:[#allocation7 + $0x90] ss:$12 sps:$4 sm:$0xff]  }
  0xcc   : > { %8001 = vst [vmem:[#allocation105_spill] sm:$0xff] %v6554_v59  ;;  %8003 = vst [vmem:[#allocation107_spill] sm:$0xff] %v6558_v61  ;;  %v6560_v62 = vld [vmem:[#allocation7 + $0x94] ss:$12 sps:$4 sm:$0xff]   ;;  %v6570_v59 = vld [vmem:[#allocation7 + $0x7c] ss:$12 sps:$4 sm:$0xff]  }
  0xcd   : > { %8004 = vst [vmem:[#allocation108_spill] sm:$0xff] %v6560_v62  ;;  %8005 = vst [vmem:[#allocation109_spill] sm:$0xff] %v6566_v58  ;;  %825 = vmatprep.subr.bf16.mxu0 %v6560_v62  ;;  %5452 = vmatprep.subr.bf16.mxu1 %v6560_v62  ;;  %v6574_v57 = vld [vmem:[#allocation7 + $0x78] ss:$12 sps:$4 sm:$0xff]   ;;  %v6582_v0 = vld [vmem:[#allocation7 + $0x60] ss:$12 sps:$4 sm:$0xff]  }
  0xce   : > { %8006 = vst [vmem:[#allocation110_spill] sm:$0xff] %v6570_v59  ;;  %8007 = vst [vmem:[#allocation111_spill] sm:$0xff] %v6574_v57  ;;  %v6578_v63 = vld [vmem:[#allocation7 + $0x64] ss:$12 sps:$4 sm:$0xff]   ;;  %v6586_v40 = vld [vmem:[#allocation7 + $0x4c] ss:$12 sps:$4 sm:$0xff]  }
  0xcf   : > { %826 = vmatpush1.bf16.msra.mxu0 %v6566_v58  ;;  %5460 = vmatpush1.bf16.msra.mxu1 %v6566_v58  ;;  %8008 = vst [vmem:[#allocation112_spill] sm:$0xff] %v6578_v63  ;;  %8009 = vst [vmem:[#allocation113_spill] sm:$0xff] %v6582_v0  ;;  %v6590_v39 = vld [vmem:[#allocation7 + $0x48] ss:$12 sps:$4 sm:$0xff]   ;;  %v6598_v42 = vld [vmem:[#allocation7 + $0x30] ss:$12 sps:$4 sm:$0xff]  }
  0xd0   : > { %827 = vmatprep.subr.bf16.mxu0 %v6570_v59  ;;  %5453 = vmatprep.subr.bf16.mxu1 %v6570_v59  ;;  %8010 = vst [vmem:[#allocation114_spill] sm:$0xff] %v6586_v40  ;;  %8011 = vst [vmem:[#allocation115_spill] sm:$0xff] %v6590_v39  ;;  %v6594_v41 = vld [vmem:[#allocation7 + $0x34] ss:$12 sps:$4 sm:$0xff]   ;;  %v6602_v43 = vld [vmem:[#allocation7 + $0x1c] ss:$12 sps:$4 sm:$0xff]  }
  0xd1   : > { %8012 = vst [vmem:[#allocation116_spill] sm:$0xff] %v6594_v41  ;;  %8013 = vst [vmem:[#allocation117_spill] sm:$0xff] %v6598_v42  ;;  %v6606_v44 = vld [vmem:[#allocation7 + $0x18] ss:$12 sps:$4 sm:$0xff]   ;;  %v6612_v46 = vld [vmem:[#allocation7] ss:$12 sps:$4 sm:$0xff]  }
  0xd2   : > { %8014 = vst [vmem:[#allocation118_spill] sm:$0xff] %v6602_v43  ;;  %8015 = vst [vmem:[#allocation119_spill] sm:$0xff] %v6606_v44  ;;  %v6610_v45 = vld [vmem:[#allocation7 + $0x4] ss:$12 sps:$4 sm:$0xff]   ;;  %v622_v48 = vld [vmem:[%s6330_s30 + $0x8] sm:$0xff]  ;;  %v6624_v54 = vshrl.u32 %v733_v53, 7 }
  0xd3   : > { %828 = vmatpush1.bf16.msra.mxu0 %v6574_v57  ;;  %5461 = vmatpush1.bf16.msra.mxu1 %v6574_v57  ;;  %8016 = vst [vmem:[#allocation120_spill] sm:$0xff] %v6610_v45  ;;  %8017 = vst [vmem:[#allocation121_spill] sm:$0xff] %v6612_v46  ;;  %v621_v47 = vld [vmem:[%s6330_s30] sm:$0xff]  ;;  %v623_v49 = vld [vmem:[%s6330_s30 + $0x10] sm:$0xff] }
  0xd4   : > { %829 = vmatprep.subr.bf16.mxu0 %v6578_v63  ;;  %5454 = vmatprep.subr.bf16.mxu1 %v6578_v63  ;;  %v624_v50 = vld [vmem:[%s6330_s30 + $0x18] sm:$0xff]  ;;  %v625_v51 = vpack.c.bf16 %v622_v48, %v621_v47  ;;  %8018 = vst [vmem:[#allocation122_spill] sm:$0xff] %v6624_v54  ;;  %v7858_v55 = vsub.s32 0, %v6624_v54  ;;  %v659_v56 = vld [vmem:[%s7806_s3] sm:$0x3]  ;;  %v7859_v38 = vsub.s32 1, %v6624_v54 }
  0xd5   : > { %v626_v52 = vpack.c.bf16 %v624_v50, %v623_v49  ;;  %s6652_s30 = scalar_lea.vmem [#allocation13], %s6320_s15 }
  0xd6   : > { %v736_v47 = vrot.slane %v659_v56, %v7858_v55  ;;  %v740_v48 = vrot.slane %v659_v56, %v7859_v38 }
  0xd7   : > { %830 = vmatpush1.bf16.msra.mxu0 %v6582_v0  ;;  %5462 = vmatpush1.bf16.msra.mxu1 %v6582_v0 }
  0xd8   : > { %831 = vmatprep.subr.bf16.mxu0 %v6586_v40  ;;  %5455 = vmatprep.subr.bf16.mxu1 %v6586_v40 }
  0xdb   : > { %832 = vmatpush1.bf16.msra.mxu0 %v6590_v39  ;;  %5463 = vmatpush1.bf16.msra.mxu1 %v6590_v39 }
  0xdc   : > { %833 = vmatprep.subr.bf16.mxu0 %v6594_v41  ;;  %5456 = vmatprep.subr.bf16.mxu1 %v6594_v41 }
  0xdf   : > { %834 = vmatpush1.bf16.msra.mxu0 %v6598_v42  ;;  %5464 = vmatpush1.bf16.msra.mxu1 %v6598_v42 }
  0xe0   : > { %835 = vmatprep.subr.bf16.mxu0 %v6602_v43  ;;  %5457 = vmatprep.subr.bf16.mxu1 %v6602_v43 }
  0xe3   : > { %836 = vmatpush1.bf16.msra.mxu0 %v6606_v44  ;;  %5465 = vmatpush1.bf16.msra.mxu1 %v6606_v44 }
  0xe4   : > { %837 = vmatprep.subr.bf16.mxu0 %v6610_v45  ;;  %5458 = vmatprep.subr.bf16.mxu1 %v6610_v45 }
  0xe7   : > { %838 = vmatpush1.bf16.msra.mxu0 %v6612_v46  ;;  %5466 = vmatpush1.bf16.msra.mxu1 %v6612_v46 }
  0xea   : > { %856 = vmatmul.mubr.bf16.vlgmr.msra.gmra.mxu0 %v625_v51  ;;  %866 = vmatmul.mubr.bf16.vlgmr.msra.gmra.mxu1 %v626_v52 }
 0x1aa   : > { %v857_v49 = vpop.f32.mrf.mxu0  ;;  %v867_v50 = vpop.f32.mrf.mxu1 }
 0x1ab   : > { %v6635_v51 = vadd.f32 %v857_v49, %v736_v47  ;;  %v6637_v52 = vadd.f32 %v867_v50, %v736_v47 }
 0x1ac   : > { %v859_v53 = vpop.f32.mrf.mxu0  ;;  %v869_v22 = vpop.f32.mrf.mxu1 }
 0x1ad   : > { %8019 = vst [vmem:[#allocation123_spill] sm:$0xff] %v6635_v51  ;;  %8020 = vst [vmem:[#allocation124_spill] sm:$0xff] %v6637_v52  ;;  %v6639_v23 = vadd.f32 %v859_v53, %v740_v48  ;;  %v6641_v24 = vadd.f32 %v869_v22, %v740_v48 }
 0x1ae   : > { %v861_v25 = vpop.f32.mrf.mxu0  ;;  %v871_v26 = vpop.f32.mrf.mxu1 }
 0x1af   : > { %8021 = vst [vmem:[#allocation125_spill] sm:$0xff] %v6639_v23  ;;  %8022 = vst [vmem:[#allocation126_spill] sm:$0xff] %v6641_v24  ;;  %v6643_v27 = vadd.f32 %v861_v25, %v736_v47  ;;  %v6645_v55 = vadd.f32 %v871_v26, %v736_v47 }
 0x1b0   : > { %v863_v56 = vpop.f32.mrf.mxu0  ;;  %v873_v38 = vpop.f32.mrf.mxu1 }
 0x1b1   : > { %8023 = vst [vmem:[#allocation127_spill] sm:$0xff] %v6643_v27  ;;  %8024 = vst [vmem:[#allocation128_spill] sm:$0xff] %v6645_v55  ;;  %v6647_v28 = vadd.f32 %v863_v56, %v740_v48  ;;  %v6649_v49 = vadd.f32 %v873_v38, %v740_v48 }
 0x1b3   : > { %8025 = vst [vmem:[#allocation129_spill] sm:$0xff] %v6647_v28  ;;  %8026 = vst [vmem:[#allocation130_spill] sm:$0xff] %v6649_v49 }
 0x1b4 LB: >> { %v8027_v54 = vld [vmem:[#allocation122_spill] sm:$0xff]  ;;  %8029 = vst [vmem:[#allocation131_spill] sm:$0xff] %v5998_v4  ;;  %8030 = vst [vmem:[#allocation132_spill] sm:$0xff] %v6002_v3  ;;  %v8034_v61 = vld [vmem:[#allocation107_spill] sm:$0xff]  ;;  %v7860_v22 = vmov 0   ;;  %v886_v25 = vpack.c.bf16 %v6006_v2, %v6010_v1  ;;  %s6030_s15 = smov 96   ;;  %v6002_v3 = vphi %v6352_v3, %v8151_v3   ;;  %v5998_v4 = vphi %v6354_v4, %v8150_v4   ;;  %s6014_s29 = sphi %s6666_s29, %s881_s29   ;;  %v6010_v1 = vphi %v6348_v1, %v8153_v1   ;;  %v6006_v2 = vphi %v6350_v2, %v8152_v2  }
 0x1b5   : >> { %v8028_v21 = vld [vmem:[#allocation42_spill] sm:$0xff]  ;;  %8031 = vst [vmem:[#allocation133_spill] sm:$0xff] %v6006_v2  ;;  %8032 = vst [vmem:[#allocation134_spill] sm:$0xff] %v6010_v1  ;;  %968 = vmatprep.mubr.bf16.mxu0 %v7860_v22  ;;  %v8035_v62 = vld [vmem:[#allocation108_spill] sm:$0xff]  ;;  %s6031_s28 = smov 64   ;;  %s6032_s16 = smov 32  }
 0x1b6   : >> { %v8033_v60 = vld [vmem:[#allocation106_spill] sm:$0xff]  ;;  %v8036_v20 = vld [vmem:[#allocation41_spill] sm:$0xff]  ;;  %v8037_v19 = vld [vmem:[#allocation40_spill] sm:$0xff]  ;;  %5331 = vmatprep.mubr.bf16.mxu1 %v886_v25  ;;  %vm6034_vm0 = vmmov 0   ;;  %vm2832_vm1 = vcmask 261120   ;;  %vm3209_vm2 = vcmask 130048  }
 0x1b7   : >> { %936 = vmatprep.subr.bf16.mxu0 %v8033_v60  ;;  %v5127_v26 = vcombine.low %v8037_v19, %v8036_v20  ;;  %v8038_v18 = vld [vmem:[#allocation39_spill] sm:$0xff]  ;;  %v8039_v17 = vld [vmem:[#allocation38_spill] sm:$0xff]  ;;  %v8040_v58 = vld [vmem:[#allocation109_spill] sm:$0xff]  ;;  %vm4350_vm3 = vcmask 523264   ;;  %vm4355_vm4 = vcmask 785408   ;;  %s881_s29 = sadd.s32 1, %s6014_s29  }
 0x1b8   : >> { %937 = vmatpush1.bf16.msra.mxu0 %v8034_v61  ;;  %v5126_v38 = vcombine.low %v8039_v17, %v8038_v18  ;;  %v8041_v59 = vld [vmem:[#allocation110_spill] sm:$0xff]  ;;  %v8042_v16 = vld [vmem:[#allocation37_spill] sm:$0xff]  ;;  %v8043_v15 = vld [vmem:[#allocation36_spill] sm:$0xff]  ;;  %p878_p10 = scmp.ge.s32.totalorder %s881_s29, 2  }
 0x1b9   : >> { %938 = vmatprep.subr.bf16.mxu0 %v8035_v62  ;;  %5315 = vmatprep.subr.bf16.mxu1 %v5127_v26  ;;  %v5125_v47 = vcombine.low %v8043_v15, %v8042_v16  ;;  %v8044_v57 = vld [vmem:[#allocation111_spill] sm:$0xff]  ;;  %v8045_v63 = vld [vmem:[#allocation112_spill] sm:$0xff]  ;;  %v8047_v13 = vld [vmem:[#allocation34_spill] sm:$0xff]  ;;  %s8154_s23 = sld [smem:[#allocation24_spill]] (%p878_p10)  ;;  %s5234_s2 = sshll.u32 (%p878_p10), %s6141_s22, 9 }
 0x1ba   : >> { %5316 = vmatpush3.bf16.msra.mxu1 %v5127_v26  ;;  %v8046_v14 = vld [vmem:[#allocation35_spill] sm:$0xff]  ;;  %v8048_v0 = vld [vmem:[#allocation113_spill] sm:$0xff]  ;;  %v8049_v40 = vld [vmem:[#allocation114_spill] sm:$0xff]  ;;  %s8155_s11 = sld [smem:[#allocation140_spill]] (%p878_p10)  ;;  %s4930_s9 = sshll.u32 (%p878_p10), %s6652_s30, 4  ;;  %s7760_s9 = int_to_ptr.vmem [resolvable:$true] %s4930_s9 }
 0x1bb   : >> { %5317 = vmatprep.subr.bf16.mxu1 %v5126_v38  ;;  %v5124_v48 = vcombine.low %v8047_v13, %v8046_v14  ;;  %v8050_v12 = vld [vmem:[#allocation33_spill] sm:$0xff]  ;;  %v8051_v11 = vld [vmem:[#allocation32_spill] sm:$0xff]  ;;  %v8052_v39 = vld [vmem:[#allocation115_spill] sm:$0xff]  ;;  %s4916_s26 = scalar_lea.sflag (%p878_p10), [#allocation4], %s6317_s0  ;;  %s5894_s27 = scalar_lea.vmem (%p878_p10), %s7760_s9, 512 }
 0x1bc   : >> { %939 = vmatpush1.bf16.msra.mxu0 %v8040_v58  ;;  %v5123_v50 = vcombine.low %v8051_v11, %v8050_v12  ;;  %v8053_v41 = vld [vmem:[#allocation116_spill] sm:$0xff]  ;;  %v8054_v10 = vld [vmem:[#allocation31_spill] sm:$0xff]  ;;  %v8055_v9 = vld [vmem:[#allocation30_spill] sm:$0xff]  ;;  %v6036_v12 = vmov 1934713408   ;;  %p5895_p1 = scmp.ne.s32.totalorder (%p878_p10), %s7760_s9, %s5894_s27  ;;  %s6037_s24 = smov (%p878_p10), [#allocation13]  }
 0x1bd   : >> { %940 = vmatprep.subr.bf16.mxu0 %v8041_v59  ;;  %v5122_v53 = vcombine.low %v8055_v9, %v8054_v10  ;;  %v8056_v42 = vld [vmem:[#allocation117_spill] sm:$0xff]  ;;  %v8057_v43 = vld [vmem:[#allocation118_spill] sm:$0xff]  ;;  %v8059_v7 = vld [vmem:[#allocation28_spill] sm:$0xff]  ;;  %s5898_s17 = sshll.u32 (%p878_p10), %s6037_s24, 4  ;;  %s5899_s17 = int_to_ptr.vmem [resolvable:$false] %s5898_s17 }
 0x1be   : >> { %5318 = vmatpush3.bf16.msra.mxu1 %v5126_v38  ;;  %v8058_v8 = vld [vmem:[#allocation29_spill] sm:$0xff]  ;;  %v8060_v44 = vld [vmem:[#allocation119_spill] sm:$0xff]  ;;  %v8061_v45 = vld [vmem:[#allocation120_spill] sm:$0xff]  ;;  %v887_v38 = vpack.c.bf16 %v5998_v4, %v6002_v3  ;;  %s5900_s22 = scalar_lea.vmem (%p878_p10), %s5899_s17, 1024  ;;  %p5901_p0 = scmp.lt.s32.totalorder (%p878_p10), %s7760_s9, %s5899_s17 }
 0x1bf   : >> { %5319 = vmatprep.subr.bf16.mxu1 %v5125_v47  ;;  %v5121_v56 = vcombine.low %v8059_v7, %v8058_v8  ;;  %v8062_v6 = vld [vmem:[#allocation27_spill] sm:$0xff]  ;;  %v8063_v5 = vld [vmem:[#allocation26_spill] sm:$0xff]  ;;  %v8064_v46 = vld [vmem:[#allocation121_spill] sm:$0xff]  ;;  %p8156_p6 = scmp.ne.s32.totalorder (%p878_p10), %s8154_s23, 0  ;;  %p5902_p7 = scmp.lt.s32.totalorder (%p878_p10), %s5900_s22, %s5894_s27 }
 0x1c0   : >> { %941 = vmatpush1.bf16.msra.mxu0 %v8044_v57  ;;  %v5120_v26 = vcombine.low %v8063_v5, %v8062_v6  ;;  %v8065_v51 = vld [vmem:[#allocation123_spill] sm:$0xff]  ;;  %v8066_v23 = vld [vmem:[#allocation125_spill] sm:$0xff]  ;;  %v8069_v52 = vld [vmem:[#allocation124_spill] sm:$0xff]  ;;  %v7863_v6 = vmov 0.0   ;;  %s7757_s18 = scalar_lea.hbm (%p878_p10), %s8155_s11, %s5234_s2 }
 0x1c1   : >> { %942 = vmatprep.subr.bf16.mxu0 %v8045_v63  ;;  %v8067_v27 = vld [vmem:[#allocation127_spill] sm:$0xff]  ;;  %v8068_v28 = vld [vmem:[#allocation129_spill] sm:$0xff]  ;;  %v8070_v55 = vld [vmem:[#allocation128_spill] sm:$0xff]  ;;  %p5896_p12 = pnand (%p878_p10), %p5895_p1, %p8156_p6  ;;  %p5903_p2 = por (%p878_p10), %p5902_p7, %p5901_p0 }
 0x1c2   : >> { %5320 = vmatpush3.bf16.msra.mxu1 %v5125_v47  ;;  %v8071_v24 = vld [vmem:[#allocation126_spill] sm:$0xff] }
 0x1c3   : >> { %5321 = vmatprep.subr.bf16.mxu1 %v5124_v48  ;;  %v8072_v49 = vld [vmem:[#allocation130_spill] sm:$0xff]  ;;  %p5897_p4 = pneg (%p878_p10), %p5896_p12 }
 0x1c4   : >> { %943 = vmatpush1.bf16.msra.mxu0 %v8048_v0 }
 0x1c5   : >> { %944 = vmatprep.subr.bf16.mxu0 %v8049_v40  ;;  %p5904_p8 = pnand (%p878_p10), %p5903_p2, %p5897_p4 }
 0x1c6   : >> { %5322 = vmatpush3.bf16.msra.mxu1 %v5124_v48 }
 0x1c7   : >> { %5323 = vmatprep.subr.bf16.mxu1 %v5123_v50 }
 0x1c8   : >> { %945 = vmatpush1.bf16.msra.mxu0 %v8052_v39 }
 0x1c9   : >> { %946 = vmatprep.subr.bf16.mxu0 %v8053_v41 }
 0x1ca   : >> { %5324 = vmatpush3.bf16.msra.mxu1 %v5123_v50 }
 0x1cb   : >> { %5325 = vmatprep.subr.bf16.mxu1 %v5122_v53 }
 0x1cc   : >> { %947 = vmatpush1.bf16.msra.mxu0 %v8056_v42 }
 0x1cd   : >> { %948 = vmatprep.subr.bf16.mxu0 %v8057_v43 }
 0x1ce   : >> { %5326 = vmatpush3.bf16.msra.mxu1 %v5122_v53 }
 0x1cf   : >> { %5327 = vmatprep.subr.bf16.mxu1 %v5121_v56 }
 0x1d0   : >> { %949 = vmatpush1.bf16.msra.mxu0 %v8060_v44 }
 0x1d1   : >> { %950 = vmatprep.subr.bf16.mxu0 %v8061_v45 }
 0x1d2   : >> { %5328 = vmatpush3.bf16.msra.mxu1 %v5121_v56 }
 0x1d3   : >> { %5329 = vmatprep.subr.bf16.mxu1 %v5120_v26 }
 0x1d4   : >> { %951 = vmatpush1.bf16.msra.mxu0 %v8064_v46 }
 0x1d5   : >> { %5335 = vmatprep.subr.bf16.mxu0 %v7863_v6 }
 0x1d6   : >> { %5330 = vmatpush3.bf16.msra.mxu1 %v5120_v26 }
 0x1d7   : >> { %969 = vmatmul.mubr.bf16.vlgmr.msra.gmra.mxu0 %v886_v25  ;;  %5347 = vmatprep.subr.bf16.mxu1 %v7863_v6 }
 0x1d8   : >> { %978 = vmatprep.mubr.bf16.mxu0 %v7860_v22 }
 0x1d9   : >> { %5332 = vmatmul.mubr.bf16.vlgmr.msra.gmra.mxu1 %v887_v38 }
 0x1da   : >> { %5349 = vmatprep.mubr.msk.bf16.mxu1 %vm6034_vm0, %v7863_v6 }
 0x1df   : >> { %979 = vmatmul.mubr.bf16.gmra.mxu0 %v887_v38 }
 0x1e0   : >> { %5337 = vmatprep.mubr.msk.bf16.mxu0 %vm6034_vm0, %v7863_v6 }
 0x297   : >> { %v970_v47 = vpop.f32.mrf.mxu0 }
 0x298   : >> { %v6722_v48 = vadd.f32 %v970_v47, %v8065_v51 }
 0x299   : >> { %v972_v50 = vpop.f32.mrf.mxu0 }
 0x29a   : >> { %v6725_v53 = vadd.f32 %v972_v50, %v8066_v23  ;;  %1046 = vrot.lane.b32.xlu0 %v6722_v48, %s6030_s15 }
 0x29b   : >> { %v974_v25 = vpop.f32.mrf.mxu0 }
 0x29c   : >> { %1654 = vrot.lane.b32.xlu1 %v6725_v53, %s6031_s28  ;;  %v6732_v56 = vadd.f32 %v974_v25, %v8067_v27 }
 0x29d   : >> { %v976_v26 = vpop.f32.mrf.mxu0 }
 0x29e   : >> { %1642 = vrot.lane.b32.xlu0 %v6725_v53, %s6030_s15  ;;  %v6739_v38 = vadd.f32 %v976_v26, %v8068_v28 }
 0x29f   : >> { %v980_v47 = vpop.f32.mrf.mxu0 }
 0x2a0   : >> { %1048 = vrot.lane.b32.xlu1 %v6732_v56, %s6030_s15  ;;  %v6756_v26 = vadd.f32 %v980_v47, %v8069_v52 }
 0x2a1   : >> { %v982_v50 = vpop.f32.mrf.mxu0 }
 0x2a2   : >> { %1666 = vrot.lane.b32.xlu0 %v6725_v53, %s6032_s16  ;;  %v6766_v5 = vadd.f32 %v982_v50, %v8071_v24 }
 0x2a3   : >> { %v984_v25 = vpop.f32.mrf.mxu0 }
 0x2a4   : >> { %1656 = vrot.lane.b32.xlu1 %v6739_v38, %s6031_s28  ;;  %v6761_v22 = vadd.f32 %v984_v25, %v8070_v55 }
 0x2a5   : >> { %v986_v0 = vpop.f32.mrf.mxu0 }
 0x2a6   : >> { %1644 = vrot.lane.b32.xlu0 %v6739_v38, %s6030_s15  ;;  %v6773_v47 = vadd.f32 %v986_v0, %v8072_v49  ;;  %v5333_v0 = vpop.f32.mrf.mxu1 }
 0x2a8   : >> { %1668 = vrot.lane.b32.xlu1 %v6739_v38, %s6032_s16  ;;  %v1023_v50 = vpop.f32.mrf.mxu1 }
 0x2a9   : >> { %v6800_v25 = vadd.f32 %v8028_v21, %v1023_v50  ;;  %v6814_v50 = vadd.f32 %v5333_v0, %v8028_v21 }
 0x2aa   : >> { %1058 = vrot.lane.b32.xlu0 %v6722_v48, %s6031_s28  ;;  %v5334_v7 = vpop.f32.mrf.mxu1 }
 0x2ab   : >> { %v6821_v6 = vadd.f32 %v5334_v7, %v8028_v21  ;;  %v1117_v7 = vunpack.c.l.s4 %v6036_v12 }
 0x2ac   : >> { %1060 = vrot.lane.b32.xlu1 %v6732_v56, %s6031_s28  ;;  %v1026_v8 = vpop.f32.mrf.mxu1 }
 0x2ad   : >> { %v6807_v9 = vadd.f32 %v8028_v21, %v1026_v8  ;;  %v6035_v8 = vmov 1983009808   ;;  %v1118_v16 = vunpack.c.0.s8 %v1117_v7 }
 0x2ae   : >> { %1070 = vrot.lane.b32.xlu0 %v6722_v48, %s6032_s16  ;;  %v1085_v0 = vunpack.c.l.s4 %v6035_v8 }
 0x2af   : >> { %v6841_v23 = vsub.s32 %v1118_v16, %v8027_v54 }
 0x2b0   : >> { %1072 = vrot.lane.b32.xlu1 %v6732_v56, %s6032_s16  ;;  %v1086_v13 = vunpack.c.0.s8 %v1085_v0 }
 0x2b2   : >> { %1050 = vrot.lane.b32.xlu0 %v6756_v26, %s6030_s15  ;;  %v6836_v17 = vsub.s32 %v1086_v13, %v8027_v54 }
 0x2b4   : >> { %1052 = vrot.lane.b32.xlu1 %v6761_v22, %s6030_s15 }
 0x2b6   : >> { %1646 = vrot.lane.b32.xlu0 %v6766_v5, %s6030_s15 }
 0x2b8   : >> { %1648 = vrot.lane.b32.xlu1 %v6773_v47, %s6030_s15 }
 0x2ba   : >> { %1658 = vrot.lane.b32.xlu0 %v6766_v5, %s6031_s28 }
 0x2bc   : >> { %1660 = vrot.lane.b32.xlu1 %v6773_v47, %s6031_s28 }
 0x2be   : >> { %1670 = vrot.lane.b32.xlu0 %v6766_v5, %s6032_s16 }
 0x2c0   : >> { %1672 = vrot.lane.b32.xlu1 %v6773_v47, %s6032_s16 }
 0x2c2   : >> { %1062 = vrot.lane.b32.xlu0 %v6756_v26, %s6031_s28 }
 0x2c4   : >> { %1064 = vrot.lane.b32.xlu1 %v6761_v22, %s6031_s28 }
 0x2c6   : >> { %1074 = vrot.lane.b32.xlu0 %v6756_v26, %s6032_s16 }
 0x2c8   : >> { %1076 = vrot.lane.b32.xlu1 %v6761_v22, %s6032_s16 }
 0x2ca   : >> { %2246 = vrot.lane.b32.xlu0 %v6807_v9, %s6030_s15 }
 0x2cc   : >> { %2244 = vrot.lane.b32.xlu1 %v6800_v25, %s6030_s15 }
 0x2ce   : >> { %2268 = vrot.lane.b32.xlu0 %v6800_v25, %s6032_s16 }
 0x2d0   : >> { %2256 = vrot.lane.b32.xlu1 %v6800_v25, %s6031_s28 }
 0x2d2   : >> { %2250 = vrot.lane.b32.xlu0 %v6821_v6, %s6030_s15 }
 0x2d4   : >> { %2258 = vrot.lane.b32.xlu1 %v6807_v9, %s6031_s28 }
 0x2d8   : >> { %2270 = vrot.lane.b32.xlu1 %v6807_v9, %s6032_s16 }
 0x2dc   : >> { %2248 = vrot.lane.b32.xlu1 %v6814_v50, %s6030_s15 }
 0x2e0   : >> { %2260 = vrot.lane.b32.xlu1 %v6814_v50, %s6031_s28 }
 0x2e4   : >> { %2262 = vrot.lane.b32.xlu1 %v6821_v6, %s6031_s28 }
 0x30c   : >> { %v6831_v10 = vpop.permute.xlu0 %1046 }
 0x30e   : >> { %v1655_v11 = vpop.permute.xlu1 %1654 }
 0x30f   : >> { %v1678_v18 = vcombine.low %v6725_v53, %v1655_v11  ;;  %v1679_v19 = vcombine.high %v6725_v53, %v1655_v11 }
 0x310   : >> { %v1643_v14 = vpop.permute.xlu0 %1642 }
 0x311   : >> { %v1686_v12 = vrot.slane %v1678_v18, %v6836_v17  ;;  %v1693_v0 = vrot.slane %v1679_v19, %v6836_v17 }
 0x312   : >> { %v6833_v15 = vpop.permute.xlu1 %1048 }
 0x314   : >> { %v1667_v20 = vpop.permute.xlu0 %1666 }
 0x315   : >> { %v1694_v21 = vcombine.low %v1643_v14, %v1667_v20  ;;  %v1695_v8 = vcombine.high %v1643_v14, %v1667_v20 }
 0x316   : >> { %v1657_v24 = vpop.permute.xlu1 %1656 }
 0x317   : >> { %v1702_v7 = vrot.slane %v1694_v21, %v6836_v17  ;;  %v1709_v13 = vrot.slane %v1695_v8, %v6836_v17  ;;  %v1746_v53 = vcombine.low %v6739_v38, %v1657_v24  ;;  %v1747_v14 = vcombine.high %v6739_v38, %v1657_v24 }
 0x318   : >> { %v1645_v27 = vpop.permute.xlu0 %1644 }
 0x319   : >> { %v1710_v28 = vcombine.low %v1686_v12, %v1702_v7  ;;  %v1711_v39 = vcombine.high %v1686_v12, %v1702_v7  ;;  %v1726_v40 = vcombine.low %v1693_v0, %v1709_v13  ;;  %v1727_v11 = vcombine.high %v1693_v0, %v1709_v13 }
 0x31a   : >> { %v1669_v16 = vpop.permute.xlu1 %1668  ;;  %v1754_v0 = vrot.slane %v1746_v53, %v6836_v17  ;;  %v1761_v7 = vrot.slane %v1747_v14, %v6836_v17 }
 0x31b   : >> { %v1718_v20 = vrot.slane %v1710_v28, %v6841_v23  ;;  %v1725_v18 = vrot.slane %v1711_v39, %v6841_v23  ;;  %v1734_v19 = vrot.slane %v1726_v40, %v6841_v23  ;;  %v1741_v21 = vrot.slane %v1727_v11, %v6841_v23 }
 0x31c   : >> { %v1762_v41 = vcombine.low %v1645_v27, %v1669_v16  ;;  %v1763_v8 = vcombine.high %v1645_v27, %v1669_v16  ;;  %v1059_v42 = vpop.permute.xlu0 %1058 }
 0x31d   : >> { %v1950_v43 = vcombine.low %v1718_v20, %v1725_v18  ;;  %v5136_v12 = vcombine.high %v1718_v20, %v1725_v18  ;;  %v1966_v13 = vcombine.low %v1734_v19, %v1741_v21  ;;  %v5137_v39 = vcombine.high %v1734_v19, %v1741_v21 }
 0x31e   : >> { %v1770_v24 = vrot.slane %v1762_v41, %v6836_v17  ;;  %v1777_v38 = vrot.slane %v1763_v8, %v6836_v17  ;;  %v1061_v28 = vpop.permute.xlu1 %1060  ;;  %v1082_v40 = vcombine.low %v6722_v48, %v1059_v42  ;;  %v1083_v11 = vcombine.high %v6722_v48, %v1059_v42 }
 0x31f   : >> { %v6860_v53 = vrot.slane %v1950_v43, %v6836_v17  ;;  %v6863_v14 = vrot.slane %v5136_v12, %v6836_v17  ;;  %v1150_v19 = vcombine.low %v6732_v56, %v1061_v28  ;;  %v1151_v42 = vcombine.high %v6732_v56, %v1061_v28 }
 0x320   : >> { %v1778_v44 = vcombine.low %v1754_v0, %v1770_v24  ;;  %v1779_v27 = vcombine.high %v1754_v0, %v1770_v24  ;;  %v1794_v16 = vcombine.low %v1761_v7, %v1777_v38  ;;  %v1795_v45 = vcombine.high %v1761_v7, %v1777_v38  ;;  %v1071_v20 = vpop.permute.xlu0 %1070 }
 0x321   : >> { %v6874_v21 = vrot.slane %v1966_v13, %v6836_v17  ;;  %v6877_v43 = vrot.slane %v5137_v39, %v6836_v17  ;;  %v1098_v8 = vcombine.low %v6831_v10, %v1071_v20  ;;  %v1099_v12 = vcombine.high %v6831_v10, %v1071_v20 }
 0x322   : >> { %v6866_v41 = vrot.slane %v1778_v44, %v6841_v23  ;;  %v6869_v18 = vrot.slane %v1779_v27, %v6841_v23  ;;  %v1073_v48 = vpop.permute.xlu1 %1072  ;;  %v1802_v44 = vrot.slane %v1794_v16, %v6841_v23  ;;  %v1809_v0 = vrot.slane %v1795_v45, %v6841_v23 }
 0x323   : >> { %v1090_v7 = vrot.slane %v1082_v40, %v6836_v17  ;;  %v1097_v24 = vrot.slane %v1083_v11, %v6836_v17  ;;  %v1106_v38 = vrot.slane %v1098_v8, %v6836_v17  ;;  %v1113_v28 = vrot.slane %v1099_v12, %v6836_v17 }
 0x324   : >> { %v6885_v56 = vpop.permute.xlu0 %1050  ;;  %v1166_v13 = vcombine.low %v6833_v15, %v1073_v48  ;;  %v1167_v39 = vcombine.high %v6833_v15, %v1073_v48  ;;  %v2018_v10 = vcombine.low %v6866_v41, %v6869_v18  ;;  %v5138_v45 = vcombine.high %v6866_v41, %v6869_v18 }
 0x325   : >> { %v1158_v40 = vrot.slane %v1150_v19, %v6836_v17  ;;  %v1165_v11 = vrot.slane %v1151_v42, %v6836_v17  ;;  %v1114_v16 = vcombine.low %v1090_v7, %v1106_v38  ;;  %v1115_v20 = vcombine.high %v1090_v7, %v1106_v38 }
 0x326   : >> { %v6897_v27 = vpop.permute.xlu1 %1052  ;;  %v1130_v8 = vcombine.low %v1097_v24, %v1113_v28  ;;  %v1131_v12 = vcombine.high %v1097_v24, %v1113_v28  ;;  %v2034_v46 = vcombine.low %v1802_v44, %v1809_v0  ;;  %v5139_v49 = vcombine.high %v1802_v44, %v1809_v0 }
 0x327   : >> { %v1174_v15 = vrot.slane %v1166_v13, %v6836_v17  ;;  %v1181_v48 = vrot.slane %v1167_v39, %v6836_v17  ;;  %v1122_v51 = vrot.slane %v1114_v16, %v6841_v23  ;;  %v1129_v41 = vrot.slane %v1115_v20, %v6841_v23 }
 0x328   : >> { %v1138_v18 = vrot.slane %v1130_v8, %v6841_v23  ;;  %v1145_v19 = vrot.slane %v1131_v12, %v6841_v23  ;;  %v6905_v38 = vpop.permute.xlu0 %1646 }
 0x329   : >> { %v1182_v42 = vcombine.low %v1158_v40, %v1174_v15  ;;  %v1183_v52 = vcombine.high %v1158_v40, %v1174_v15  ;;  %v1198_v55 = vcombine.low %v1165_v11, %v1181_v48  ;;  %v1199_v7 = vcombine.high %v1165_v11, %v1181_v48 }
 0x32a   : >> { %v6907_v24 = vpop.permute.xlu1 %1648  ;;  %v1354_v44 = vcombine.low %v1122_v51, %v1129_v41  ;;  %v5128_v0 = vcombine.high %v1122_v51, %v1129_v41  ;;  %v1370_v28 = vcombine.low %v1138_v18, %v1145_v19  ;;  %v5129_v13 = vcombine.high %v1138_v18, %v1145_v19 }
 0x32b   : >> { %v1190_v39 = vrot.slane %v1182_v42, %v6841_v23  ;;  %v1197_v16 = vrot.slane %v1183_v52, %v6841_v23  ;;  %v1206_v20 = vrot.slane %v1198_v55, %v6841_v23  ;;  %v1213_v8 = vrot.slane %v1199_v7, %v6841_v23 }
 0x32c   : >> { %v1361_v40 = vrot.slane %v1354_v44, %v6836_v17  ;;  %v1369_v11 = vrot.slane %v5128_v0, %v6836_v17  ;;  %v6916_v12 = vrot.slane %v1370_v28, %v6836_v17  ;;  %v6919_v15 = vrot.slane %v5129_v13, %v6836_v17  ;;  %v1659_v13 = vpop.permute.xlu0 %1658 }
 0x32d   : >> { %v1422_v51 = vcombine.low %v1190_v39, %v1197_v16  ;;  %v5130_v48 = vcombine.high %v1190_v39, %v1197_v16  ;;  %v1438_v41 = vcombine.low %v1206_v20, %v1213_v8  ;;  %v5131_v18 = vcombine.high %v1206_v20, %v1213_v8 }
 0x32e   : >> { %v2025_v52 = vrot.slane %v2018_v10, %v6836_v17  ;;  %v1386_v19 = vcombine.low %v1361_v40, %v1369_v11  ;;  %v1387_v55 = vcombine.high %v1361_v40, %v1369_v11  ;;  %v1402_v42 = vcombine.low %v6916_v12, %v6919_v15  ;;  %v1661_v39 = vpop.permute.xlu1 %1660 }
 0x32f   : >> { %v6925_v7 = vrot.slane %v1422_v51, %v6836_v17  ;;  %v6928_v44 = vrot.slane %v5130_v48, %v6836_v17  ;;  %v6931_v0 = vrot.slane %v1438_v41, %v6836_v17  ;;  %v6934_v28 = vrot.slane %v5131_v18, %v6836_v17 }
 0x330   : >> { %v2033_v10 = vrot.slane %v5138_v45, %v6836_v17  ;;  %v2041_v16 = vrot.slane %v2034_v46, %v6836_v17  ;;  %v2049_v20 = vrot.slane %v5139_v49, %v6836_v17  ;;  %v1982_v8 = vcombine.low %v6860_v53, %v6863_v14  ;;  %v1671_v58 = vpop.permute.xlu0 %1670 }
 0x331   : >> { %v1454_v11 = vcombine.low %v6925_v7, %v6928_v44  ;;  %v1470_v51 = vcombine.low %v6931_v0, %v6934_v28  ;;  %v1998_v48 = vcombine.low %v6874_v21, %v6877_v43  ;;  %v6950_v45 = vrot.slane %v1386_v19, %v6841_v23 }
 0x332   : >> { %v1814_v46 = vcombine.low %v6766_v5, %v1659_v13  ;;  %v1815_v49 = vcombine.high %v6766_v5, %v1659_v13  ;;  %v1882_v41 = vcombine.low %v6773_v47, %v1661_v39  ;;  %v6956_v18 = vrot.slane %v1387_v55, %v6841_v23 }
 0x333   : >> { %v6959_v40 = vrot.slane %v1402_v42, %v6841_v23  ;;  %v6966_v19 = vrot.slane %v1454_v11, %v6841_v23  ;;  %v6969_v5 = vrot.slane %v1470_v51, %v6841_v23  ;;  %v1883_v55 = vcombine.high %v6773_v47, %v1661_v39  ;;  %v1673_v47 = vpop.permute.xlu1 %1672 }
 0x334   : >> { %v1822_v13 = vrot.slane %v1814_v46, %v6836_v17  ;;  %v1829_v42 = vrot.slane %v1815_v49, %v6836_v17  ;;  %v1890_v59 = vrot.slane %v1882_v41, %v6836_v17  ;;  %v6976_v57 = vrot.slane %v1982_v8, %v6841_v23  ;;  %v1063_v29 = vpop.permute.xlu0 %1062 }
 0x335   : >> { %v2050_v60 = vcombine.low %v2025_v52, %v2033_v10  ;;  %v6979_v61 = vrot.slane %v1998_v48, %v6841_v23  ;;  %v2066_v11 = vcombine.low %v2041_v16, %v2049_v20  ;;  %v1983_v51 = vcombine.high %v6860_v53, %v6863_v14 }
 0x336   : >> { %v1999_v46 = vcombine.high %v6874_v21, %v6877_v43  ;;  %v1897_v39 = vrot.slane %v1883_v55, %v6836_v17  ;;  %v2051_v8 = vcombine.high %v2025_v52, %v2033_v10  ;;  %v2067_v41 = vcombine.high %v2041_v16, %v2049_v20 }
 0x337   : >> { %v6987_v49 = vrot.slane %v2050_v60, %v6841_v23  ;;  %v6990_v62 = vrot.slane %v2066_v11, %v6841_v23  ;;  %v6993_v48 = vrot.slane %v1983_v51, %v6841_v23  ;;  %v1830_v53 = vcombine.low %v6905_v38, %v1671_v58 }
 0x338   : >> { %v6996_v63 = vrot.slane %v1999_v46, %v6841_v23  ;;  %v7000_v14 = vrot.slane %v2051_v8, %v6841_v23  ;;  %v7003_v21 = vrot.slane %v2067_v41, %v6841_v23  ;;  %v1831_v60 = vcombine.high %v6905_v38, %v1671_v58 }
 0x339   : >> { %v1898_v43 = vcombine.low %v6907_v24, %v1673_v47  ;;  %v2014_v52 = vcombine.low %v6976_v57, %v6979_v61  ;;  %v2082_v10 = vcombine.low %v6987_v49, %v6990_v62  ;;  %v1838_v16 = vrot.slane %v1830_v53, %v6836_v17 }
 0x33a   : >> { %v1899_v20 = vcombine.high %v6907_v24, %v1673_v47  ;;  %v2016_v55 = vcombine.low %v6993_v48, %v6996_v63  ;;  %v2084_v11 = vcombine.low %v7000_v14, %v7003_v21  ;;  %v1845_v58 = vrot.slane %v1831_v60, %v6836_v17 }
 0x33b   : >> { %v1906_v38 = vrot.slane %v1898_v43, %v6836_v17  ;;  %v2222_v51 = vpack.c.bf16 %v2082_v10, %v2014_v52  ;;  %v1846_v46 = vcombine.low %v1822_v13, %v1838_v16  ;;  %v1847_v8 = vcombine.high %v1822_v13, %v1838_v16 }
 0x33c   : >> { %v1913_v41 = vrot.slane %v1899_v20, %v6836_v17  ;;  %v2224_v54 = vpack.c.bf16 %v2084_v11, %v2016_v55  ;;  %v1862_v4 = vcombine.low %v1829_v42, %v1845_v58  ;;  %v1863_v53 = vcombine.high %v1829_v42, %v1845_v58  ;;  %v1065_v20 = vpop.permute.xlu1 %1064 }
 0x33d   : >> { %v1914_v3 = vcombine.low %v1890_v59, %v1906_v38  ;;  %v2837_v24 = vsel %vm2832_vm1, %v2222_v51, 0  ;;  %v1854_v47 = vrot.slane %v1846_v46, %v6841_v23  ;;  %v1861_v2 = vrot.slane %v1847_v8, %v6841_v23 }
 0x33e   : >> { %v1915_v1 = vcombine.high %v1890_v59, %v1906_v38  ;;  %5336 = vmatpush3.bf16.xpose.msra.mxu0 %v2837_v24  ;;  %v2931_v60 = vsel %vm2832_vm1, %v2224_v54, 0  ;;  %v7025_v43 = vrot.slane %v1862_v4, %v6841_v23  ;;  %v7028_v13 = vrot.slane %v1863_v53, %v6841_v23 }
 0x33f   : >> { %v7031_v42 = vrot.slane %v1914_v3, %v6841_v23  ;;  %5348 = vmatpush3.bf16.xpose.msra.mxu1 %v2931_v60  ;;  %v2086_v52 = vcombine.low %v1854_v47, %v1861_v2  ;;  %v5140_v10 = vcombine.high %v1854_v47, %v1861_v2  ;;  %v1930_v59 = vcombine.low %v1897_v39, %v1913_v41  ;;  %v1075_v47 = vpop.permute.xlu0 %1074 }
 0x340   : >> { %v7034_v16 = vrot.slane %v1915_v1, %v6841_v23  ;;  %v2102_v54 = vcombine.low %v7025_v43, %v7028_v13  ;;  %v1931_v55 = vcombine.high %v1897_v39, %v1913_v41  ;;  %v1218_v4 = vcombine.low %v6756_v26, %v1063_v29 }
 0x341   : >> { %v1219_v11 = vcombine.high %v6756_v26, %v1063_v29  ;;  %v8073_v58 = vmov 0.0   ;;  %v8074_v3 = vcombine.high %v6916_v12, %v6919_v15  ;;  %v8075_v1 = vcombine.high %v6925_v7, %v6928_v44 }
 0x342   : >> { %5341 = vmatprep.subr.bf16.mxu0 %v8073_v58  ;;  %v8076_v39 = vcombine.high %v6931_v0, %v6934_v28  ;;  %v1486_v29 = vcombine.low %v6966_v19, %v6969_v5  ;;  %5359 = vmatprep.subr.bf16.mxu1 %v8073_v58  ;;  %v1418_v26 = vcombine.low %v6950_v45, %v6959_v40 }
 0x343   : >> { %v7045_v2 = vrot.slane %v8074_v3, %v6841_v23  ;;  %v7051_v38 = vrot.slane %v8075_v1, %v6841_v23  ;;  %v5141_v12 = vcombine.high %v7025_v43, %v7028_v13  ;;  %v7067_v15 = vrot.slane %v1930_v59, %v6841_v23 }
 0x344   : >> { %v7057_v51 = vrot.slane %v8076_v39, %v6841_v23  ;;  %v7070_v7 = vrot.slane %v1931_v55, %v6841_v23  ;;  %v7073_v44 = vrot.slane %v2086_v52, %v6836_v17  ;;  %v7076_v0 = vrot.slane %v5140_v10, %v6836_v17  ;;  %v1077_v55 = vpop.permute.xlu1 %1076 }
 0x345   : >> { %v2154_v28 = vcombine.low %v7031_v42, %v7034_v16  ;;  %v1286_v46 = vcombine.low %v6761_v22, %v1065_v20  ;;  %v7082_v8 = vrot.slane %v2102_v54, %v6836_v17  ;;  %v5142_v41 = vcombine.high %v7031_v42, %v7034_v16 }
 0x346   : >> { %v1226_v53 = vrot.slane %v1218_v4, %v6836_v17  ;;  %v1233_v24 = vrot.slane %v1219_v11, %v6836_v17  ;;  %v1287_v60 = vcombine.high %v6761_v22, %v1065_v20  ;;  %v1626_v52 = vpack.c.bf16 %v1486_v29, %v1418_v26 }
 0x347   : >> { %v1420_v10 = vcombine.low %v6956_v18, %v7045_v2  ;;  %v1488_v59 = vcombine.low %v7051_v38, %v7057_v51  ;;  %v2170_v54 = vcombine.low %v7067_v15, %v7070_v7  ;;  %v5143_v3 = vcombine.high %v7067_v15, %v7070_v7 }
 0x348   : >> { %v1294_v4 = vrot.slane %v1286_v46, %v6836_v17  ;;  %v2015_v11 = vcombine.high %v6976_v57, %v6979_v61  ;;  %5338 = vmatmul.mubr.msk.bf16.vlgmr.msra.gmra.mxu0 %vm2832_vm1, %v1626_v52  ;;  %v2083_v20 = vcombine.high %v6987_v49, %v6990_v62  ;;  %v1234_v1 = vcombine.low %v6885_v56, %v1075_v47 }
 0x349   : >> { %v1628_v22 = vpack.c.bf16 %v1488_v59, %v1420_v10  ;;  %v1235_v39 = vcombine.high %v6885_v56, %v1075_v47  ;;  %v1302_v29 = vcombine.low %v6897_v27, %v1077_v55  ;;  %v1303_v26 = vcombine.high %v6897_v27, %v1077_v55  ;;  %5343 = vmatprep.mubr.msk.bf16.mxu0 %vm6034_vm0, %v8073_v58 }
 0x34a   : >> { %v1419_v57 = vcombine.high %v6950_v45, %v6959_v40  ;;  %v1487_v61 = vcombine.high %v6966_v19, %v6969_v5  ;;  %v1301_v46 = vrot.slane %v1287_v60, %v6836_v17  ;;  %v2223_v62 = vpack.c.bf16 %v2083_v20, %v2015_v11 }
 0x34b   : >> { %5350 = vmatmul.mubr.msk.bf16.vlgmr.msra.gmra.mxu1 %vm2832_vm1, %v1628_v22  ;;  %v1242_v56 = vrot.slane %v1234_v1, %v6836_v17  ;;  %v1249_v49 = vrot.slane %v1235_v39, %v6836_v17  ;;  %v1310_v27 = vrot.slane %v1302_v29, %v6836_v17  ;;  %v1317_v47 = vrot.slane %v1303_v26, %v6836_v17 }
 0x34c   : >> { %v1627_v52 = vpack.c.bf16 %v1487_v61, %v1419_v57  ;;  %v2017_v40 = vcombine.high %v6993_v48, %v6996_v63  ;;  %5361 = vmatprep.mubr.msk.bf16.mxu1 %vm6034_vm0, %v8073_v58  ;;  %v2884_v45 = vsel %vm2832_vm1, %v2223_v62, 0  ;;  %v2085_v57 = vcombine.high %v7000_v14, %v7003_v21 }
 0x34d   : >> { %v1250_v19 = vcombine.low %v1226_v53, %v1242_v56  ;;  %v1251_v5 = vcombine.high %v1226_v53, %v1242_v56  ;;  %v1266_v60 = vcombine.low %v1233_v24, %v1249_v49  ;;  %5342 = vmatpush3.bf16.xpose.msra.mxu0 %v2884_v45  ;;  %v1267_v10 = vcombine.high %v1233_v24, %v1249_v49 }
 0x34e   : >> { %v1318_v59 = vcombine.low %v1294_v4, %v1310_v27  ;;  %v1319_v55 = vcombine.high %v1294_v4, %v1310_v27  ;;  %v1334_v11 = vcombine.low %v1301_v46, %v1317_v47  ;;  %v1335_v63 = vcombine.high %v1301_v46, %v1317_v47  ;;  %5353 = vmatprep.subr.bf16.mxu0 %v8073_v58 }
 0x34f   : >> { %v1258_v22 = vrot.slane %v1250_v19, %v6841_v23  ;;  %v1265_v20 = vrot.slane %v1251_v5, %v6841_v23  ;;  %v1274_v1 = vrot.slane %v1266_v60, %v6841_v23  ;;  %v1281_v48 = vrot.slane %v1267_v10, %v6841_v23 }
 0x350   : >> { %v1326_v39 = vrot.slane %v1318_v59, %v6841_v23  ;;  %v1333_v53 = vrot.slane %v1319_v55, %v6841_v23  ;;  %v1342_v24 = vrot.slane %v1334_v11, %v6841_v23  ;;  %v1349_v26 = vrot.slane %v1335_v63, %v6841_v23  ;;  %v7169_v63 = vpop.permute.xlu1 %2244 }
 0x351   : >> { %v1490_v29 = vcombine.low %v1258_v22, %v1265_v20  ;;  %v5132_v4 = vcombine.high %v1258_v22, %v1265_v20  ;;  %v1506_v61 = vcombine.low %v1274_v1, %v1281_v48  ;;  %v5133_v62 = vcombine.high %v1274_v1, %v1281_v48 }
 0x352   : >> { %v1558_v46 = vcombine.low %v1326_v39, %v1333_v53  ;;  %v5134_v56 = vcombine.high %v1326_v39, %v1333_v53  ;;  %v1574_v47 = vcombine.low %v1342_v24, %v1349_v26  ;;  %v5135_v45 = vcombine.high %v1342_v24, %v1349_v26 }
 0x353   : >> { %v1497_v49 = vrot.slane %v1490_v29, %v6836_v17  ;;  %v1505_v27 = vrot.slane %v5132_v4, %v6836_v17  ;;  %v1513_v19 = vrot.slane %v1506_v61, %v6836_v17  ;;  %v1521_v5 = vrot.slane %v5133_v62, %v6836_v17 }
 0x354   : >> { %v1565_v60 = vrot.slane %v1558_v46, %v6836_v17  ;;  %v1573_v10 = vrot.slane %v5134_v56, %v6836_v17  ;;  %v2117_v14 = vrot.slane %v5141_v12, %v6836_v17  ;;  %v1581_v21 = vrot.slane %v1574_v47, %v6836_v17  ;;  %5344 = vmatmul.mubr.msk.bf16.vlgmr.msra.gmra.mxu0 %vm2832_vm1, %v1627_v52  ;;  %v2257_v56 = vpop.permute.xlu1 %2256 }
 0x355   : >> { %v1589_v59 = vrot.slane %v5135_v45, %v6836_v17  ;;  %v2225_v55 = vpack.c.bf16 %v2085_v57, %v2017_v40  ;;  %v2161_v11 = vrot.slane %v2154_v28, %v6836_v17  ;;  %v2169_v22 = vrot.slane %v5142_v41, %v6836_v17  ;;  %5355 = vmatprep.mubr.msk.bf16.mxu0 %vm6034_vm0, %v8073_v58 }
 0x356   : >> { %v2177_v43 = vrot.slane %v2170_v54, %v6836_v17  ;;  %v1590_v13 = vcombine.low %v1565_v60, %v1573_v10  ;;  %v2185_v12 = vrot.slane %v5143_v3, %v6836_v17  ;;  %v1522_v28 = vcombine.low %v1497_v49, %v1505_v27 }
 0x357   : >> { %v1523_v52 = vcombine.high %v1497_v49, %v1505_v27  ;;  %v1606_v40 = vcombine.low %v1581_v21, %v1589_v59  ;;  %v1538_v20 = vcombine.low %v1513_v19, %v1521_v5  ;;  %v1539_v42 = vcombine.high %v1513_v19, %v1521_v5 }
 0x358   : >> { %v1591_v16 = vcombine.high %v1565_v60, %v1573_v10  ;;  %v1598_v41 = vrot.slane %v1590_v13, %v6841_v23  ;;  %v2978_v54 = vsel %vm2832_vm1, %v2225_v55, 0  ;;  %v1489_v48 = vcombine.high %v7051_v38, %v7057_v51 }
 0x359   : >> { %v1614_v1 = vrot.slane %v1606_v40, %v6841_v23  ;;  %5354 = vmatpush3.bf16.xpose.msra.mxu0 %v2978_v54  ;;  %v2118_v15 = vcombine.low %v7073_v44, %v7076_v0  ;;  %v2134_v7 = vcombine.low %v7082_v8, %v2117_v14  ;;  %v2186_v3 = vcombine.low %v2161_v11, %v2169_v22 }
 0x35a   : >> { %v1530_v39 = vrot.slane %v1522_v28, %v6841_v23  ;;  %v7178_v53 = vrot.slane %v1523_v52, %v6841_v23  ;;  %v1607_v24 = vcombine.high %v1581_v21, %v1589_v59  ;;  %5365 = vmatprep.subr.bf16.mxu0 %v8073_v58  ;;  %v2202_v29 = vcombine.low %v2177_v43, %v2185_v12 }
 0x35b   : >> { %v1421_v4 = vcombine.high %v6956_v18, %v7045_v2  ;;  %v2126_v38 = vrot.slane %v2118_v15, %v6841_v23  ;;  %v2142_v51 = vrot.slane %v2134_v7, %v6841_v23  ;;  %v2194_v26 = vrot.slane %v2186_v3, %v6841_v23 }
 0x35c   : >> { %v1546_v57 = vrot.slane %v1538_v20, %v6841_v23  ;;  %v2210_v61 = vrot.slane %v2202_v29, %v6841_v23  ;;  %v1622_v62 = vcombine.low %v1598_v41, %v1614_v1  ;;  %v2119_v46 = vcombine.high %v7073_v44, %v7076_v0 }
 0x35d   : >> { %v1629_v49 = vpack.c.bf16 %v1489_v48, %v1421_v4  ;;  %v2150_v27 = vcombine.low %v2126_v38, %v2142_v51  ;;  %v2135_v47 = vcombine.high %v7082_v8, %v2117_v14  ;;  %v2187_v18 = vcombine.high %v2161_v11, %v2169_v22  ;;  %v2259_v14 = vpop.permute.xlu1 %2258  ;;  %v2247_v11 = vpop.permute.xlu0 %2246 }
 0x35e   : >> { %v2218_v2 = vcombine.low %v2194_v26, %v2210_v61  ;;  %v2151_v45 = vcombine.high %v2126_v38, %v2142_v51  ;;  %v2219_v19 = vcombine.high %v2194_v26, %v2210_v61  ;;  %v2133_v5 = vrot.slane %v2119_v46, %v6841_v23 }
 0x35f   : >> { %v7193_v60 = vrot.slane %v1539_v42, %v6841_v23  ;;  %v2149_v10 = vrot.slane %v2135_v47, %v6841_v23  ;;  %v2201_v21 = vrot.slane %v2187_v18, %v6841_v23  ;;  %v2203_v59 = vcombine.high %v2177_v43, %v2185_v12 }
 0x360   : >> { %5356 = vmatmul.mubr.msk.bf16.vlgmr.msra.gmra.mxu0 %vm2832_vm1, %v1629_v49  ;;  %v2226_v44 = vpack.c.bf16 %v2218_v2, %v2150_v27  ;;  %v2227_v0 = vpack.c.bf16 %v2219_v19, %v2151_v45  ;;  %v1554_v55 = vcombine.low %v1530_v39, %v1546_v57  ;;  %v1623_v8 = vcombine.high %v1598_v41, %v1614_v1 }
 0x361   : >> { %v7199_v22 = vrot.slane %v1591_v16, %v6841_v23  ;;  %v7202_v13 = vrot.slane %v1607_v24, %v6841_v23  ;;  %5367 = vmatprep.mubr.msk.bf16.mxu0 %vm6034_vm0, %v8073_v58  ;;  %v1555_v28 = vcombine.high %v1530_v39, %v1546_v57  ;;  %v2217_v43 = vrot.slane %v2203_v59, %v6841_v23  ;;  %v2271_v15 = vpop.permute.xlu1 %2270  ;;  %v2269_v7 = vpop.permute.xlu0 %2268 }
 0x362   : >> { %v3025_v12 = vsel %vm2832_vm1, %v2226_v44, 0  ;;  %v3072_v52 = vsel %vm2832_vm1, %v2227_v0, 0  ;;  %v1630_v40 = vpack.c.bf16 %v1622_v62, %v1554_v55  ;;  %v2152_v20 = vcombine.low %v2133_v5, %v2149_v10 }
 0x363   : >> { %5360 = vmatpush3.bf16.xpose.msra.mxu1 %v3025_v12  ;;  %5366 = vmatpush3.bf16.xpose.msra.mxu0 %v3072_v52  ;;  %v2220_v42 = vcombine.low %v2201_v21, %v2217_v43  ;;  %v2221_v16 = vcombine.high %v2201_v21, %v2217_v43  ;;  %v2280_v41 = vcombine.low %v6800_v25, %v2257_v56 }
 0x364   : >> { %v1631_v1 = vpack.c.bf16 %v1623_v8, %v1555_v28  ;;  %5371 = vmatprep.subr.bf16.mxu1 %v8073_v58  ;;  %5377 = vmatprep.subr.bf16.mxu0 %v8073_v58  ;;  %v2153_v54 = vcombine.high %v2133_v5, %v2149_v10  ;;  %v2348_v48 = vcombine.low %v6807_v9, %v2259_v14 }
 0x365   : >> { %v2228_v3 = vpack.c.bf16 %v2220_v42, %v2152_v20  ;;  %v2281_v39 = vcombine.high %v6800_v25, %v2257_v56  ;;  %v2349_v24 = vcombine.high %v6807_v9, %v2259_v14  ;;  %v2364_v29 = vcombine.low %v2247_v11, %v2271_v15 }
 0x366   : >> { %v2229_v4 = vpack.c.bf16 %v2221_v16, %v2153_v54  ;;  %v2356_v38 = vrot.slane %v2348_v48, %v6836_v17  ;;  %v2365_v51 = vcombine.high %v2247_v11, %v2271_v15  ;;  %v2296_v26 = vcombine.low %v7169_v63, %v2269_v7 }
 0x367   : >> { %v1624_v57 = vcombine.low %v7199_v22, %v7202_v13  ;;  %v2288_v61 = vrot.slane %v2280_v41, %v6836_v17  ;;  %v2363_v62 = vrot.slane %v2349_v24, %v6836_v17  ;;  %v2372_v46 = vrot.slane %v2364_v29, %v6836_v17 }
 0x368   : >> { %v1625_v25 = vcombine.high %v7199_v22, %v7202_v13  ;;  %v2379_v9 = vrot.slane %v2365_v51, %v6836_v17  ;;  %v2297_v56 = vcombine.high %v7169_v63, %v2269_v7  ;;  %v2304_v49 = vrot.slane %v2296_v26, %v6836_v17 }
 0x369   : >> { %v3119_v27 = vsel %vm2832_vm1, %v2228_v3, 0  ;;  %v2295_v47 = vrot.slane %v2281_v39, %v6836_v17  ;;  %v2380_v18 = vcombine.low %v2356_v38, %v2372_v46  ;;  %v2381_v2 = vcombine.high %v2356_v38, %v2372_v46 }
 0x36a   : >> { %5362 = vmatmul.mubr.msk.bf16.vlgmr.msra.gmra.mxu1 %vm2832_vm1, %v1630_v40  ;;  %5368 = vmatmul.mubr.msk.bf16.vlgmr.msra.gmra.mxu0 %vm2832_vm1, %v1631_v1  ;;  %v3166_v45 = vsel %vm2832_vm1, %v2229_v4, 0  ;;  %v2396_v19 = vcombine.low %v2363_v62, %v2379_v9  ;;  %v2397_v5 = vcombine.high %v2363_v62, %v2379_v9  ;;  %v2311_v10 = vrot.slane %v2297_v56, %v6836_v17 }
 0x36b   : >> { %5372 = vmatpush3.bf16.xpose.msra.mxu1 %v3119_v27  ;;  %5378 = vmatpush3.bf16.xpose.msra.mxu0 %v3166_v45  ;;  %v2388_v63 = vrot.slane %v2380_v18, %v6841_v23  ;;  %v2395_v21 = vrot.slane %v2381_v2, %v6841_v23  ;;  %v2312_v59 = vcombine.low %v2288_v61, %v2304_v49 }
 0x36c   : >> { %5373 = vmatprep.mubr.msk.bf16.mxu1 %vm6034_vm0, %v8073_v58  ;;  %5379 = vmatprep.mubr.msk.bf16.mxu0 %vm6034_vm0, %v8073_v58  ;;  %v2404_v44 = vrot.slane %v2396_v19, %v6841_v23  ;;  %v2411_v0 = vrot.slane %v2397_v5, %v6841_v23  ;;  %v2313_v55 = vcombine.high %v2288_v61, %v2304_v49 }
 0x36d   : >> { %v1556_v8 = vcombine.low %v7178_v53, %v7193_v60  ;;  %v1557_v14 = vcombine.high %v7178_v53, %v7193_v60  ;;  %v2620_v11 = vcombine.low %v2388_v63, %v2395_v21  ;;  %v5147_v22 = vcombine.high %v2388_v63, %v2395_v21  ;;  %5383 = vmatprep.subr.bf16.mxu1 %v8073_v58 }
 0x36e   : >> { %v2636_v13 = vcombine.low %v2404_v44, %v2411_v0  ;;  %v5148_v28 = vcombine.high %v2404_v44, %v2411_v0  ;;  %v2320_v43 = vrot.slane %v2312_v59, %v6841_v23  ;;  %v2327_v12 = vrot.slane %v2313_v55, %v6841_v23  ;;  %5389 = vmatprep.subr.bf16.mxu0 %v8073_v58 }
 0x36f   : >> { %v1632_v52 = vpack.c.bf16 %v1624_v57, %v1556_v8  ;;  %v1633_v40 = vpack.c.bf16 %v1625_v25, %v1557_v14  ;;  %v2627_v20 = vrot.slane %v2620_v11, %v6836_v17  ;;  %v2635_v42 = vrot.slane %v5147_v22, %v6836_v17 }
 0x370   : >> { %v2643_v53 = vrot.slane %v2636_v13, %v6836_v17  ;;  %v2651_v60 = vrot.slane %v5148_v28, %v6836_v17  ;;  %v2328_v16 = vcombine.low %v2295_v47, %v2311_v10  ;;  %v2329_v41 = vcombine.high %v2295_v47, %v2311_v10 }
 0x371   : >> { %v2552_v1 = vcombine.low %v2320_v43, %v2327_v12  ;;  %v5145_v54 = vcombine.high %v2320_v43, %v2327_v12  ;;  %v2652_v7 = vcombine.low %v2627_v20, %v2635_v42  ;;  %v2653_v19 = vcombine.high %v2627_v20, %v2635_v42 }
 0x372   : >> { %5374 = vmatmul.mubr.msk.bf16.vlgmr.msra.gmra.mxu1 %vm2832_vm1, %v1632_v52  ;;  %5380 = vmatmul.mubr.msk.bf16.vlgmr.msra.gmra.mxu0 %vm2832_vm1, %v1633_v40  ;;  %v2336_v48 = vrot.slane %v2328_v16, %v6841_v23  ;;  %v2343_v15 = vrot.slane %v2329_v41, %v6841_v23  ;;  %v2668_v4 = vcombine.low %v2643_v53, %v2651_v60 }
 0x373   : >> { %v2559_v3 = vrot.slane %v2552_v1, %v6836_v17  ;;  %v2567_v39 = vrot.slane %v5145_v54, %v6836_v17  ;;  %5385 = vmatprep.mubr.msk.bf16.mxu1 %vm6034_vm0, %v8073_v58  ;;  %5391 = vmatprep.mubr.msk.bf16.mxu0 %vm6034_vm0, %v8073_v58  ;;  %v2660_v57 = vrot.slane %v2652_v7, %v6841_v23 }
 0x374   : >> { %v2568_v24 = vcombine.low %v2336_v48, %v2343_v15  ;;  %v5146_v29 = vcombine.high %v2336_v48, %v2343_v15  ;;  %v2676_v61 = vrot.slane %v2668_v4, %v6841_v23  ;;  %v2669_v5 = vcombine.high %v2643_v53, %v2651_v60 }
 0x375   : >> { %v2584_v38 = vcombine.low %v2559_v3, %v2567_v39  ;;  %v2585_v2 = vcombine.high %v2559_v3, %v2567_v39  ;;  %v2667_v21 = vrot.slane %v2653_v19, %v6841_v23 }
 0x376   : >> { %v2575_v51 = vrot.slane %v2568_v24, %v6836_v17  ;;  %v2583_v26 = vrot.slane %v5146_v29, %v6836_v17  ;;  %v2684_v9 = vcombine.low %v2660_v57, %v2676_v61  ;;  %v2685_v56 = vcombine.high %v2660_v57, %v2676_v61 }
 0x377   : >> { %v2592_v62 = vrot.slane %v2584_v38, %v6841_v23  ;;  %v2599_v10 = vrot.slane %v2585_v2, %v6841_v23  ;;  %v2683_v59 = vrot.slane %v2669_v5, %v6841_v23 }
 0x378   : >> { %v2600_v46 = vcombine.low %v2575_v51, %v2583_v26  ;;  %v2601_v45 = vcombine.high %v2575_v51, %v2583_v26 }
 0x379   : >> { %v2686_v55 = vcombine.low %v2667_v21, %v2683_v59  ;;  %v2687_v8 = vcombine.high %v2667_v21, %v2683_v59 }
 0x37a   : >> { %v2608_v25 = vrot.slane %v2600_v46, %v6841_v23  ;;  %v2615_v63 = vrot.slane %v2601_v45, %v6841_v23 }
 0x37c   : >> { %v2616_v49 = vcombine.low %v2592_v62, %v2608_v25  ;;  %v2617_v27 = vcombine.high %v2592_v62, %v2608_v25  ;;  %v2618_v44 = vcombine.low %v2599_v10, %v2615_v63  ;;  %v2619_v0 = vcombine.high %v2599_v10, %v2615_v63 }
 0x37e   : >> { %v2824_v47 = vpack.c.bf16 %v2684_v9, %v2616_v49  ;;  %v2825_v18 = vpack.c.bf16 %v2685_v56, %v2617_v27  ;;  %v7275_v14 = vpack.c.bf16 %v2686_v55, %v2618_v44  ;;  %v7277_v11 = vpack.c.bf16 %v2687_v8, %v2619_v0  ;;  %v7347_v8 = vpop.permute.xlu1 %2248 }
 0x380   : >> { %5384 = vmatpush3.bf16.msra.mxu1 %v2824_v47  ;;  %5390 = vmatpush3.bf16.msra.mxu0 %v2825_v18 }
 0x381   : >> { %5395 = vmatprep.subr.bf16.mxu1 %v8073_v58  ;;  %5401 = vmatprep.subr.bf16.mxu0 %v8073_v58 }
 0x408   : >> { %v7279_v22 = vpop.f32.mrf.mxu0 }
 0x409   : >> { %v3210_v13 = vsel %vm3209_vm2, %v7279_v22, -inf }
 0x40a   : >> { %3211 = vmax.xlane.f32.xlu0 %v3210_v13  ;;  %v5339_v43 = vpop.f32.mrf.mxu0  ;;  %v7349_v13 = vpop.permute.xlu1 %2260 }
 0x40b   : >> { %v7283_v28 = vpop.f32.mrf.mxu1  ;;  %v7351_v43 = vpop.permute.xlu0 %2250 }
 0x40c   : >> { %v3222_v12 = vsel %vm3209_vm2, %v7283_v28, -inf  ;;  %v7287_v40 = vpop.f32.mrf.mxu0 }
 0x40d   : >> { %v5351_v52 = vpop.f32.mrf.mxu1  ;;  %3223 = vmax.xlane.f32.xlu1 %v3222_v12  ;;  %v3213_v20 = vsel %vm3209_vm2, %v7287_v40, -inf }
 0x40e   : >> { %v5340_v53 = vpop.f32.mrf.mxu0  ;;  %v7353_v12 = vpop.permute.xlu1 %2262 }
 0x40f   : >> { %v7291_v42 = vpop.f32.mrf.mxu1 }
 0x410   : >> { %v3225_v60 = vsel %vm3209_vm2, %v7291_v42, -inf }
 0x411   : >> { %v5352_v16 = vpop.f32.mrf.mxu1  ;;  %3226 = vmax.xlane.f32.xlu0 %v3225_v60  ;;  %3214 = vmax.xlane.f32.xlu1 %v3213_v20 }
 0x414   : >> { %v7295_v41 = vpop.f32.mrf.mxu0 }
 0x415   : >> { %v3216_v1 = vsel %vm3209_vm2, %v7295_v41, -inf }
 0x416   : >> { %3217 = vmax.xlane.f32.xlu0 %v3216_v1  ;;  %v5345_v54 = vpop.f32.mrf.mxu0 }
 0x418   : >> { %v7299_v48 = vpop.f32.mrf.mxu0 }
 0x419   : >> { %v3219_v62 = vsel %vm3209_vm2, %v7299_v48, -inf }
 0x41a   : >> { %v5346_v15 = vpop.f32.mrf.mxu0 }
 0x420   : >> { %v7301_v7 = vpop.f32.mrf.mxu0 }
 0x421   : >> { %v3228_v47 = vsel %vm3209_vm2, %v7301_v7, -inf }
 0x422   : >> { %v5357_v3 = vpop.f32.mrf.mxu0 }
 0x424   : >> { %v7303_v39 = vpop.f32.mrf.mxu0 }
 0x425   : >> { %v3231_v27 = vsel %vm3209_vm2, %v7303_v39, -inf }
 0x426   : >> { %v5358_v24 = vpop.f32.mrf.mxu0 }
 0x42a   : >> { %v7305_v29 = vpop.f32.mrf.mxu1  ;;  %v7307_v4 = vpop.f32.mrf.mxu0 }
 0x42b   : >> { %v3234_v38 = vsel %vm3209_vm2, %v7305_v29, -inf  ;;  %v3240_v44 = vsel %vm3209_vm2, %v7307_v4, -inf }
 0x42c   : >> { %v5369_v51 = vpop.f32.mrf.mxu0  ;;  %3235 = vmax.xlane.f32.xlu0 %v3234_v38  ;;  %v5363_v26 = vpop.f32.mrf.mxu1 }
 0x42e   : >> { %v7311_v57 = vpop.f32.mrf.mxu1  ;;  %v7313_v61 = vpop.f32.mrf.mxu0 }
 0x42f   : >> { %v3237_v46 = vsel %vm3209_vm2, %v7311_v57, -inf  ;;  %v3243_v0 = vsel %vm3209_vm2, %v7313_v61, -inf }
 0x430   : >> { %v5370_v25 = vpop.f32.mrf.mxu0  ;;  %3220 = vmax.xlane.f32.xlu0 %v3219_v62  ;;  %3238 = vmax.xlane.f32.xlu1 %v3237_v46  ;;  %v5364_v9 = vpop.f32.mrf.mxu1 }
 0x432   : >> { %v7319_v56 = vpop.f32.mrf.mxu1  ;;  %v7321_v49 = vpop.f32.mrf.mxu0 }
 0x433   : >> { %v3246_v5 = vsel %vm3209_vm2, %v7319_v56, -inf  ;;  %v3252_v59 = vsel %vm3209_vm2, %v7321_v49, -inf }
 0x434   : >> { %v5381_v18 = vpop.f32.mrf.mxu0  ;;  %3232 = vmax.xlane.f32.xlu0 %v3231_v27  ;;  %3229 = vmax.xlane.f32.xlu1 %v3228_v47  ;;  %v5375_v2 = vpop.f32.mrf.mxu1 }
 0x436   : >> { %v7327_v45 = vpop.f32.mrf.mxu1  ;;  %v7329_v19 = vpop.f32.mrf.mxu0 }
 0x437   : >> { %v3249_v10 = vsel %vm3209_vm2, %v7327_v45, -inf  ;;  %v3255_v55 = vsel %vm3209_vm2, %v7329_v19, -inf }
 0x438   : >> { %v5382_v63 = vpop.f32.mrf.mxu0  ;;  %3247 = vmax.xlane.f32.xlu1 %v3246_v5  ;;  %3250 = vmax.xlane.f32.xlu0 %v3249_v10  ;;  %v5376_v21 = vpop.f32.mrf.mxu1 }
 0x43c   : >> { %3253 = vmax.xlane.f32.xlu1 %v3252_v59  ;;  %3241 = vmax.xlane.f32.xlu0 %v3240_v44 }
 0x440   : >> { %3244 = vmax.xlane.f32.xlu0 %v3243_v0 }
 0x444   : >> { %3256 = vmax.xlane.f32.xlu0 %v3255_v55 }
 0x44d   : >> { %2274 = vrot.lane.b32.xlu1 %v6821_v6, %s6032_s16 }
 0x45a   : >> { %2272 = vrot.lane.b32.xlu0 %v6814_v50, %s6032_s16 }
 0x493   : >> { %v3212_v52 = vpop.xlane.xlu0 %3211 }
 0x494   : >> { %v3258_v16 = vsub.f32 %v7279_v22, %v3212_v52 }
 0x496   : >> { %v3224_v20 = vpop.xlane.xlu1 %3223 }
 0x497   : >> { %v3262_v1 = vsub.f32 %v7283_v28, %v3224_v20 }
 0x49a   : >> { %v3227_v53 = vpop.xlane.xlu0 %3226  ;;  %v3215_v60 = vpop.xlane.xlu1 %3214 }
 0x49b   : >> { %v3263_v54 = vsub.f32 %v7291_v42, %v3227_v53  ;;  %v3259_v15 = vsub.f32 %v7287_v40, %v3215_v60 }
 0x49d   : >> { %v3276_v3 = vpack.c.bf16 %v3263_v54, %v3262_v1  ;;  %v3274_v24 = vpack.c.bf16 %v3259_v15, %v3258_v16 }
 0x49f   : >> { %v3289_v38 = vmul.bf16 1069105081, %v3276_v3  ;;  %v3283_v51 = vmul.bf16 1069105081, %v3274_v24  ;;  %v3218_v9 = vpop.xlane.xlu0 %3217 }
 0x4a0   : >> { %v3260_v5 = vsub.f32 %v7295_v41, %v3218_v9 }
 0x4a1   : >> { %5670 = vpow.bf16 %v3289_v38  ;;  %v2416_v38 = vcombine.low %v6814_v50, %v7349_v13 }
 0x4a2   : >> { %5672 = vpow.bf16 %v3283_v51 }
 0x4af   : >> { %v5671_v26 = vpop.eup %5670 }
 0x4b0   : >> { %v5673_v62 = vpop.eup %5672  ;;  %v3310_v40 = vunpack.c.l.bf16 %v5671_v26  ;;  %v3311_v42 = vunpack.c.h.bf16 %v5671_v26 }
 0x4b1   : >> { %5386 = vmatmul.mubr.msk.bf16.vlgmr.msra.gmra.mxu1 %vm3209_vm2, %v5673_v62  ;;  %v3307_v46 = vunpack.c.h.bf16 %v5673_v62  ;;  %v3306_v25 = vunpack.c.l.bf16 %v5673_v62 }
 0x4b2   : >> { %5396 = vmatpush3.bf16.msra.mxu1 %v7275_v14  ;;  %5397 = vmatprep.mubr.msk.bf16.mxu1 %vm6034_vm0, %v8073_v58  ;;  %v3334_v47 = vsel %vm3209_vm2, %v3310_v40, 0.0  ;;  %v3337_v18 = vsel %vm3209_vm2, %v3311_v42, 0.0 }
 0x4b3   : >> { %v3325_v22 = vsel %vm3209_vm2, %v3307_v46, 0.0  ;;  %v3322_v28 = vsel %vm3209_vm2, %v3306_v25, 0.0  ;;  %5407 = vmatprep.subr.bf16.mxu1 %v8073_v58 }
 0x4b4   : >> { %3326 = vadd.xlane.f32.xlu1 %v3325_v22  ;;  %3323 = vadd.xlane.f32.xlu0 %v3322_v28  ;;  %v2417_v28 = vcombine.high %v6814_v50, %v7349_v13 }
 0x4b5   : >> { %v3236_v27 = vpop.xlane.xlu0 %3235 }
 0x4b6   : >> { %v3266_v10 = vsub.f32 %v7305_v29, %v3236_v27 }
 0x4b8   : >> { %3335 = vadd.xlane.f32.xlu1 %v3334_v47  ;;  %3338 = vadd.xlane.f32.xlu0 %v3337_v18 }
 0x4b9   : >> { %5398 = vmatmul.mubr.msk.bf16.vlgmr.msra.gmra.mxu1 %vm3209_vm2, %v5671_v26  ;;  %v3221_v14 = vpop.xlane.xlu0 %3220  ;;  %v3239_v2 = vpop.xlane.xlu1 %3238 }
 0x4ba   : >> { %5409 = vmatprep.mubr.msk.bf16.mxu1 %vm6034_vm0, %v8073_v58  ;;  %v3261_v63 = vsub.f32 %v7299_v48, %v3221_v14  ;;  %v3267_v21 = vsub.f32 %v7311_v57, %v3239_v2 }
 0x4bc   : >> { %v3275_v59 = vpack.c.bf16 %v3261_v63, %v3260_v5  ;;  %v3278_v44 = vpack.c.bf16 %v3267_v21, %v3266_v10 }
 0x4bd   : >> { %v3233_v0 = vpop.xlane.xlu0 %3232  ;;  %v3230_v55 = vpop.xlane.xlu1 %3229 }
 0x4be   : >> { %v3286_v52 = vmul.bf16 1069105081, %v3275_v59  ;;  %v3295_v20 = vmul.bf16 1069105081, %v3278_v44  ;;  %v3265_v53 = vsub.f32 %v7303_v39, %v3233_v0  ;;  %v3264_v60 = vsub.f32 %v7301_v7, %v3230_v55 }
 0x4bf   : >> { %v2484_v39 = vcombine.low %v6821_v6, %v7353_v12  ;;  %v2485_v7 = vcombine.high %v6821_v6, %v7353_v12 }
 0x4c0   : >> { %5674 = vpow.bf16 %v3286_v52  ;;  %v3277_v16 = vpack.c.bf16 %v3265_v53, %v3264_v60 }
 0x4c1   : >> { %5676 = vpow.bf16 %v3295_v20  ;;  %v3251_v41 = vpop.xlane.xlu0 %3250  ;;  %v3248_v1 = vpop.xlane.xlu1 %3247  ;;  %v2492_v25 = vrot.slane %v2484_v39, %v6836_v17  ;;  %v2499_v9 = vrot.slane %v2485_v7, %v6836_v17 }
 0x4c2   : >> { %v3292_v29 = vmul.bf16 1069105081, %v3277_v16  ;;  %v3271_v48 = vsub.f32 %v7327_v45, %v3251_v41  ;;  %v3270_v57 = vsub.f32 %v7319_v56, %v3248_v1 }
 0x4c4   : >> { %v3280_v54 = vpack.c.bf16 %v3271_v48, %v3270_v57  ;;  %5678 = vpow.bf16 %v3292_v29  ;;  %v2431_v29 = vrot.slane %v2417_v28, %v6836_v17 }
 0x4c5   : >> { %v3242_v15 = vpop.xlane.xlu0 %3241  ;;  %v3254_v3 = vpop.xlane.xlu1 %3253 }
 0x4c6   : >> { %v3301_v24 = vmul.bf16 1069105081, %v3280_v54  ;;  %v3268_v45 = vsub.f32 %v7307_v4, %v3242_v15  ;;  %v2424_v4 = vrot.slane %v2416_v38, %v6836_v17 }
 0x4c8   : >> { %5680 = vpow.bf16 %v3301_v24 }
 0x4c9   : >> { %v3245_v51 = vpop.xlane.xlu0 %3244  ;;  %v2275_v26 = vpop.permute.xlu1 %2274 }
 0x4ca   : >> { %v3269_v56 = vsub.f32 %v7313_v61, %v3245_v51  ;;  %v2500_v62 = vcombine.low %v7351_v43, %v2275_v26  ;;  %v2501_v46 = vcombine.high %v7351_v43, %v2275_v26  ;;  %v3272_v61 = vsub.f32 %v7321_v49, %v3254_v3 }
 0x4cc   : >> { %v3279_v22 = vpack.c.bf16 %v3269_v56, %v3268_v45  ;;  %v2508_v6 = vrot.slane %v2500_v62, %v6836_v17  ;;  %v2515_v12 = vrot.slane %v2501_v46, %v6836_v17 }
 0x4cd   : >> { %v3257_v40 = vpop.xlane.xlu0 %3256 }
 0x4ce   : >> { %v5675_v42 = vpop.eup %5674  ;;  %v3298_v27 = vmul.bf16 1069105081, %v3279_v22  ;;  %v2516_v43 = vcombine.low %v2492_v25, %v2508_v6  ;;  %v2517_v47 = vcombine.high %v2492_v25, %v2508_v6  ;;  %v2532_v18 = vcombine.low %v2499_v9, %v2515_v12 }
 0x4cf   : >> { %v7397_v14 = vpop.eup %5676  ;;  %v2533_v2 = vcombine.high %v2499_v9, %v2515_v12  ;;  %v3273_v5 = vsub.f32 %v7329_v19, %v3257_v40  ;;  %5392 = vmatmul.mubr.msk.bf16.vlgmr.msra.gmra.mxu0 %vm3209_vm2, %v5675_v42  ;;  %v3308_v10 = vunpack.c.l.bf16 %v5675_v42  ;;  %v3309_v63 = vunpack.c.h.bf16 %v5675_v42 }
 0x4d0   : >> { %5682 = vpow.bf16 %v3298_v27  ;;  %v2524_v50 = vrot.slane %v2516_v43, %v6841_v23  ;;  %v2531_v49 = vrot.slane %v2517_v47, %v6841_v23  ;;  %v2540_v13 = vrot.slane %v2532_v18, %v6841_v23  ;;  %5402 = vmatpush3.bf16.msra.mxu0 %v7277_v11  ;;  %5403 = vmatprep.mubr.msk.bf16.mxu0 %vm6034_vm0, %v8073_v58 }
 0x4d1   : >> { %v2547_v21 = vrot.slane %v2533_v2, %v6841_v23  ;;  %v3281_v59 = vpack.c.bf16 %v3273_v5, %v3272_v61  ;;  %v2273_v19 = vpop.permute.xlu0 %2272  ;;  %v3328_v44 = vsel %vm3209_vm2, %v3308_v10, 0.0  ;;  %v3314_v0 = vunpack.c.l.bf16 %v7397_v14  ;;  %5413 = vmatprep.subr.bf16.mxu0 %v8073_v58 }
 0x4d2   : >> { %v2756_v55 = vcombine.low %v2524_v50, %v2531_v49  ;;  %v5151_v52 = vcombine.high %v2524_v50, %v2531_v49  ;;  %v2432_v20 = vcombine.low %v7347_v8, %v2273_v19  ;;  %v2433_v53 = vcombine.high %v7347_v8, %v2273_v19  ;;  %3329 = vadd.xlane.f32.xlu0 %v3328_v44  ;;  %v5679_v1 = vpop.eup %5678 }
 0x4d3   : >> { %v2772_v11 = vcombine.low %v2540_v13, %v2547_v21  ;;  %v5152_v60 = vcombine.high %v2540_v13, %v2547_v21  ;;  %v3304_v16 = vmul.bf16 1069105081, %v3281_v59  ;;  %v3346_v41 = vsel %vm3209_vm2, %v3314_v0, 0.0 }
 0x4d4   : >> { %v2763_v48 = vrot.slane %v2756_v55, %v6836_v17  ;;  %v2440_v57 = vrot.slane %v2432_v20, %v6836_v17  ;;  %v2447_v54 = vrot.slane %v2433_v53, %v6836_v17  ;;  %3347 = vadd.xlane.f32.xlu1 %v3346_v41  ;;  %v2771_v15 = vrot.slane %v5151_v52, %v6836_v17 }
 0x4d5   : >> { %v7420_v8 = vrot.slane %v2772_v11, %v6836_v17  ;;  %5684 = vpow.bf16 %v3304_v16  ;;  %v3331_v3 = vsel %vm3209_vm2, %v3309_v63, 0.0  ;;  %v2787_v26 = vrot.slane %v5152_v60, %v6836_v17 }
 0x4d6   : >> { %v7423_v24 = vpop.eup %5680  ;;  %v2448_v39 = vcombine.low %v2424_v4, %v2440_v57  ;;  %v2449_v7 = vcombine.high %v2424_v4, %v2440_v57  ;;  %v2464_v38 = vcombine.low %v2431_v29, %v2447_v54  ;;  %v2465_v51 = vcombine.high %v2431_v29, %v2447_v54  ;;  %3332 = vadd.xlane.f32.xlu0 %v3331_v3 }
 0x4d7   : >> { %v3312_v45 = vunpack.c.l.bf16 %v5679_v1  ;;  %5404 = vmatmul.mubr.msk.bf16.vlgmr.msra.gmra.mxu0 %vm3209_vm2, %v5679_v1  ;;  %v3315_v56 = vunpack.c.h.bf16 %v7397_v14  ;;  %v3318_v62 = vunpack.c.l.bf16 %v7423_v24  ;;  %v3313_v28 = vunpack.c.h.bf16 %v5679_v1 }
 0x4d8   : >> { %v2456_v46 = vrot.slane %v2448_v39, %v6841_v23  ;;  %v2463_v25 = vrot.slane %v2449_v7, %v6841_v23  ;;  %v2472_v9 = vrot.slane %v2464_v38, %v6841_v23  ;;  %v2479_v22 = vrot.slane %v2465_v51, %v6841_v23  ;;  %5415 = vmatprep.mubr.msk.bf16.mxu0 %vm6034_vm0, %v8073_v58 }
 0x4d9   : >> { %v3340_v6 = vsel %vm3209_vm2, %v3312_v45, 0.0  ;;  %v3349_v12 = vsel %vm3209_vm2, %v3315_v56, 0.0  ;;  %v3358_v27 = vsel %vm3209_vm2, %v3318_v62, 0.0  ;;  %v3319_v43 = vunpack.c.h.bf16 %v7423_v24 }
 0x4da   : >> { %v2688_v4 = vcombine.low %v2456_v46, %v2463_v25  ;;  %v5149_v61 = vcombine.high %v2456_v46, %v2463_v25  ;;  %v2704_v40 = vcombine.low %v2472_v9, %v2479_v22  ;;  %v5150_v42 = vcombine.high %v2472_v9, %v2479_v22  ;;  %3341 = vadd.xlane.f32.xlu1 %v3340_v6 }
 0x4db   : >> { %3350 = vadd.xlane.f32.xlu0 %v3349_v12  ;;  %v2788_v47 = vcombine.low %v2763_v48, %v2771_v15  ;;  %v2804_v18 = vcombine.low %v7420_v8, %v2787_v26  ;;  %v3343_v50 = vsel %vm3209_vm2, %v3313_v28, 0.0  ;;  %v2789_v21 = vcombine.high %v2763_v48, %v2771_v15 }
 0x4dc   : >> { %v2695_v2 = vrot.slane %v2688_v4, %v6836_v17  ;;  %v2703_v5 = vrot.slane %v5149_v61, %v6836_v17  ;;  %v2711_v10 = vrot.slane %v2704_v40, %v6836_v17  ;;  %v2719_v63 = vrot.slane %v5150_v42, %v6836_v17 }
 0x4dd   : >> { %v2796_v49 = vrot.slane %v2788_v47, %v6841_v23  ;;  %v2812_v13 = vrot.slane %v2804_v18, %v6841_v23  ;;  %v3361_v52 = vsel %vm3209_vm2, %v3319_v43, 0.0  ;;  %v2803_v29 = vrot.slane %v2789_v21, %v6841_v23 }
 0x4de   : >> { %v5683_v59 = vpop.eup %5682  ;;  %3359 = vadd.xlane.f32.xlu1 %v3358_v27  ;;  %v2720_v19 = vcombine.low %v2695_v2, %v2703_v5  ;;  %v2736_v44 = vcombine.low %v2711_v10, %v2719_v63  ;;  %v2721_v0 = vcombine.high %v2695_v2, %v2703_v5  ;;  %v2737_v55 = vcombine.high %v2711_v10, %v2719_v63 }
 0x4df   : >> { %3344 = vadd.xlane.f32.xlu0 %v3343_v50  ;;  %v3316_v20 = vunpack.c.l.bf16 %v5683_v59  ;;  %v3317_v1 = vunpack.c.h.bf16 %v5683_v59  ;;  %v2805_v48 = vcombine.high %v7420_v8, %v2787_v26  ;;  %v2820_v54 = vcombine.low %v2796_v49, %v2812_v13 }
 0x4e0   : >> { %v2728_v53 = vrot.slane %v2720_v19, %v6841_v23  ;;  %v2744_v11 = vrot.slane %v2736_v44, %v6841_v23  ;;  %v2735_v60 = vrot.slane %v2721_v0, %v6841_v23  ;;  %v2751_v16 = vrot.slane %v2737_v55, %v6841_v23 }
 0x4e1   : >> { %v3352_v41 = vsel %vm3209_vm2, %v3316_v20, 0.0  ;;  %v2821_v3 = vcombine.high %v2796_v49, %v2812_v13  ;;  %v2819_v38 = vrot.slane %v2805_v48, %v6841_v23  ;;  %v3355_v46 = vsel %vm3209_vm2, %v3317_v1, 0.0 }
 0x4e2   : >> { %3353 = vadd.xlane.f32.xlu1 %v3352_v41  ;;  %v2752_v57 = vcombine.low %v2728_v53, %v2744_v11  ;;  %v2753_v15 = vcombine.high %v2728_v53, %v2744_v11  ;;  %v2754_v7 = vcombine.low %v2735_v60, %v2751_v16  ;;  %v2755_v62 = vcombine.high %v2735_v60, %v2751_v16 }
 0x4e3   : >> { %v5685_v39 = vpop.eup %5684  ;;  %3362 = vadd.xlane.f32.xlu0 %v3361_v52  ;;  %v2822_v26 = vcombine.low %v2803_v29, %v2819_v38  ;;  %v2823_v9 = vcombine.high %v2803_v29, %v2819_v38  ;;  %v8077_v28 = vmov 0  }
 0x4e4   : >> { %v3320_v51 = vunpack.c.l.bf16 %v5685_v39  ;;  %v2828_v45 = vpack.c.bf16 %v2820_v54, %v2752_v57  ;;  %v2829_v56 = vpack.c.bf16 %v2821_v3, %v2753_v15  ;;  %v3321_v8 = vunpack.c.h.bf16 %v5685_v39 }
 0x4e5   : >> { %v2830_v22 = vpack.c.bf16 %v2822_v26, %v2754_v7  ;;  %v2831_v6 = vpack.c.bf16 %v2823_v9, %v2755_v62 }
 0x4e6   : >> { %v3364_v25 = vsel %vm3209_vm2, %v3320_v51, 0.0  ;;  %5408 = vmatpush3.bf16.msra.mxu1 %v2828_v45  ;;  %5414 = vmatpush3.bf16.msra.mxu0 %v2829_v56  ;;  %v3367_v12 = vsel %vm3209_vm2, %v3321_v8, 0.0 }
 0x4e7   : >> { %3356 = vadd.xlane.f32.xlu0 %v3355_v46  ;;  %3365 = vadd.xlane.f32.xlu1 %v3364_v25 }
 0x4e8   : >> { %5419 = vmatprep.subr.bf16.mxu1 %v8073_v58  ;;  %5425 = vmatprep.subr.bf16.mxu0 %v8073_v58 }
 0x4e9   : >> { %5410 = vmatmul.mubr.msk.bf16.vlgmr.msra.gmra.mxu1 %vm3209_vm2, %v7397_v14  ;;  %5416 = vmatmul.mubr.msk.bf16.vlgmr.msra.gmra.mxu0 %vm3209_vm2, %v5683_v59 }
 0x4ea   : >> { %5420 = vmatpush3.bf16.msra.mxu1 %v2830_v22  ;;  %5426 = vmatpush3.bf16.msra.mxu0 %v2831_v6 }
 0x4eb   : >> { %3368 = vadd.xlane.f32.xlu0 %v3367_v12  ;;  %5421 = vmatprep.mubr.msk.bf16.mxu1 %vm6034_vm0, %v8073_v58 }
 0x4ec   : >> { %5427 = vmatprep.mubr.msk.bf16.mxu0 %vm6034_vm0, %v8073_v58 }
 0x4f1   : >> { %5422 = vmatmul.mubr.msk.bf16.vlgmr.msra.gmra.mxu1 %vm3209_vm2, %v7423_v24  ;;  %5428 = vmatmul.mubr.msk.bf16.vlgmr.msra.gmra.mxu0 %vm3209_vm2, %v5685_v39 }
 0x4f2   : >> { %4659 = vmatprep.mubr.bf16.mxu0 %v8077_v28 }
 0x53d   : >> { %v3324_v14 = vpop.xlane.xlu0 %3323  ;;  %v3327_v27 = vpop.xlane.xlu1 %3326 }
 0x541   : >> { %v3339_v40 = vpop.xlane.xlu0 %3338  ;;  %v3336_v5 = vpop.xlane.xlu1 %3335 }
 0x542   : >> { %5686 = vrcp.f32 %v3336_v5 }
 0x543   : >> { %5688 = vrcp.f32 %v3324_v14 }
 0x54f   : >> { %v5687_v19 = vpop.eup %5686 }
 0x550   : >> { %v5689_v52 = vpop.eup %5688 }
 0x55b   : >> { %v3330_v47 = vpop.xlane.xlu0 %3329 }
 0x55c   : >> { %5690 = vrcp.f32 %v3330_v47 }
 0x55d   : >> { %v3348_v50 = vpop.xlane.xlu1 %3347 }
 0x55f   : >> { %v3333_v58 = vpop.xlane.xlu0 %3332 }
 0x563   : >> { %v3342_v49 = vpop.xlane.xlu1 %3341 }
 0x564   : >> { %v3351_v24 = vpop.xlane.xlu0 %3350  ;;  %5692 = vrcp.f32 %v3342_v49 }
 0x565   : >> { %5694 = vrcp.f32 %v3339_v40 }
 0x566   : >> { %5696 = vrcp.f32 %v3327_v27 }
 0x567   : >> { %v3360_v44 = vpop.xlane.xlu1 %3359 }
 0x568   : >> { %v3345_v13 = vpop.xlane.xlu0 %3344 }
 0x569   : >> { %5698 = vrcp.f32 %v3345_v13  ;;  %v5691_v11 = vpop.eup %5690 }
 0x56a   : >> { %5700 = vrcp.f32 %v3333_v58 }
 0x56b   : >> { %v3354_v60 = vpop.xlane.xlu1 %3353  ;;  %5702 = vrcp.f32 %v3348_v50 }
 0x56c   : >> { %5704 = vrcp.f32 %v3351_v24  ;;  %v3363_v15 = vpop.xlane.xlu0 %3362 }
 0x56d   : >> { %5706 = vrcp.f32 %v3360_v44 }
 0x56e   : >> { %5708 = vrcp.f32 %v3354_v60 }
 0x56f   : >> { %5710 = vrcp.f32 %v3363_v15 }
 0x570   : >> { %v3366_v8 = vpop.xlane.xlu1 %3365  ;;  %v3357_v47 = vpop.xlane.xlu0 %3356 }
 0x571   : >> { %v3407_v4 = vpop.f32.mrf.mxu1  ;;  %v5693_v16 = vpop.eup %5692  ;;  %5712 = vrcp.f32 %v3366_v8 }
 0x572   : >> { %v3738_v20 = vmul.f32 %v5689_v52, %v3407_v4  ;;  %v5695_v29 = vpop.eup %5694  ;;  %5714 = vrcp.f32 %v3357_v47 }
 0x573   : >> { %v5387_v61 = vpop.f32.mrf.mxu1  ;;  %v5697_v7 = vpop.eup %5696 }
 0x575   : >> { %v3410_v42 = vpop.f32.mrf.mxu1 }
 0x576   : >> { %v5699_v45 = vpop.eup %5698  ;;  %v3739_v56 = vmul.f32 %v5697_v7, %v3410_v42 }
 0x577   : >> { %v5388_v43 = vpop.f32.mrf.mxu1  ;;  %v5701_v25 = vpop.eup %5700 }
 0x579   : >> { %v3495_v18 = vpop.f32.mrf.mxu1 }
 0x57a   : >> { %v3742_v0 = vmul.f32 %v5687_v19, %v3495_v18 }
 0x57b   : >> { %v5399_v2 = vpop.f32.mrf.mxu1 }
 0x57c   : >> { %v3754_v41 = vcombine.low %v3738_v20, %v3742_v0  ;;  %v3755_v48 = vcombine.high %v3738_v20, %v3742_v0 }
 0x57d   : >> { %v3498_v10 = vpop.f32.mrf.mxu1 }
 0x57e   : >> { %v3743_v3 = vmul.f32 %v5695_v29, %v3498_v10  ;;  %v3762_v62 = vrot.slane %v3754_v41, %v6836_v17  ;;  %v3769_v26 = vrot.slane %v3755_v48, %v6836_v17  ;;  %v5703_v41 = vpop.eup %5702 }
 0x57f   : >> { %v5400_v63 = vpop.f32.mrf.mxu1  ;;  %v7492_v15 = vpop.eup %5704 }
 0x580   : >> { %v3822_v12 = vcombine.low %v3739_v56, %v3743_v3  ;;  %v3823_v14 = vcombine.high %v3739_v56, %v3743_v3  ;;  %v5707_v7 = vpop.eup %5706 }
 0x582   : >> { %v3830_v50 = vrot.slane %v3822_v12, %v6836_v17  ;;  %v3837_v24 = vrot.slane %v3823_v14, %v6836_v17 }
 0x58f   : >> { %v3451_v21 = vpop.f32.mrf.mxu0 }
 0x590   : >> { %v3740_v57 = vmul.f32 %v5691_v11, %v3451_v21 }
 0x591   : >> { %v5393_v59 = vpop.f32.mrf.mxu0 }
 0x593   : >> { %v3454_v55 = vpop.f32.mrf.mxu0 }
 0x594   : >> { %v3741_v4 = vmul.f32 %v5701_v25, %v3454_v55 }
 0x595   : >> { %v5394_v53 = vpop.f32.mrf.mxu0 }
 0x597   : >> { %v3539_v1 = vpop.f32.mrf.mxu0 }
 0x598   : >> { %v3744_v54 = vmul.f32 %v5693_v16, %v3539_v1  ;;  %v3369_v1 = vpop.xlane.xlu0 %3368 }
 0x599   : >> { %v5405_v39 = vpop.f32.mrf.mxu0  ;;  %5716 = vrcp.f32 %v3369_v1 }
 0x59a   : >> { %v3770_v38 = vcombine.low %v3740_v57, %v3744_v54  ;;  %v3771_v51 = vcombine.high %v3740_v57, %v3744_v54 }
 0x59b   : >> { %v3542_v46 = vpop.f32.mrf.mxu0 }
 0x59c   : >> { %v3778_v9 = vrot.slane %v3770_v38, %v6836_v17  ;;  %v3785_v22 = vrot.slane %v3771_v51, %v6836_v17  ;;  %v3745_v6 = vmul.f32 %v5699_v45, %v3542_v46 }
 0x59d   : >> { %v5406_v61 = vpop.f32.mrf.mxu0 }
 0x59e   : >> { %v3786_v40 = vcombine.low %v3762_v62, %v3778_v9  ;;  %v3787_v27 = vcombine.high %v3762_v62, %v3778_v9  ;;  %v3802_v42 = vcombine.low %v3769_v26, %v3785_v22  ;;  %v3803_v43 = vcombine.high %v3769_v26, %v3785_v22  ;;  %v5709_v62 = vpop.eup %5708 }
 0x59f   : >> { %v3838_v18 = vcombine.low %v3741_v4, %v3745_v6  ;;  %v3839_v2 = vcombine.high %v3741_v4, %v3745_v6  ;;  %v5711_v14 = vpop.eup %5710 }
 0x5a0   : >> { %v3794_v5 = vrot.slane %v3786_v40, %v6841_v23  ;;  %v3801_v10 = vrot.slane %v3787_v27, %v6841_v23  ;;  %v3810_v58 = vrot.slane %v3802_v42, %v6841_v23  ;;  %v3817_v63 = vrot.slane %v3803_v43, %v6841_v23 }
 0x5a1   : >> { %v3846_v49 = vrot.slane %v3838_v18, %v6836_v17  ;;  %v3853_v13 = vrot.slane %v3839_v2, %v6836_v17  ;;  %v5713_v2 = vpop.eup %5712 }
 0x5a2   : >> { %v4026_v21 = vcombine.low %v3794_v5, %v3801_v10  ;;  %v5169_v59 = vcombine.high %v3794_v5, %v3801_v10  ;;  %v4042_v19 = vcombine.low %v3810_v58, %v3817_v63  ;;  %v5170_v44 = vcombine.high %v3810_v58, %v3817_v63 }
 0x5a3   : >> { %v3854_v0 = vcombine.low %v3830_v50, %v3846_v49  ;;  %v3855_v55 = vcombine.high %v3830_v50, %v3846_v49  ;;  %v3870_v52 = vcombine.low %v3837_v24, %v3853_v13  ;;  %v3871_v20 = vcombine.high %v3837_v24, %v3853_v13 }
 0x5a4   : >> { %v4033_v53 = vrot.slane %v4026_v21, %v6836_v17  ;;  %v4041_v11 = vrot.slane %v5169_v59, %v6836_v17  ;;  %v4049_v60 = vrot.slane %v4042_v19, %v6836_v17  ;;  %v4057_v16 = vrot.slane %v5170_v44, %v6836_v17 }
 0x5a5   : >> { %v3862_v29 = vrot.slane %v3854_v0, %v6841_v23  ;;  %v3869_v48 = vrot.slane %v3855_v55, %v6841_v23  ;;  %v3878_v57 = vrot.slane %v3870_v52, %v6841_v23  ;;  %v3885_v54 = vrot.slane %v3871_v20, %v6841_v23 }
 0x5a6   : >> { %v4058_v3 = vcombine.low %v4033_v53, %v4041_v11  ;;  %v4074_v39 = vcombine.low %v4049_v60, %v4057_v16  ;;  %v4059_v61 = vcombine.high %v4033_v53, %v4041_v11  ;;  %v4075_v47 = vcombine.high %v4049_v60, %v4057_v16 }
 0x5a7   : >> { %v4094_v38 = vcombine.low %v3862_v29, %v3869_v48  ;;  %v5171_v51 = vcombine.high %v3862_v29, %v3869_v48  ;;  %v4110_v45 = vcombine.low %v3878_v57, %v3885_v54  ;;  %v5172_v56 = vcombine.high %v3878_v57, %v3885_v54 }
 0x5a8   : >> { %v7495_v46 = vrot.slane %v4058_v3, %v6841_v23  ;;  %v7498_v25 = vrot.slane %v4074_v39, %v6841_v23  ;;  %v5185_v10 = vcombine.low %v6421_v36, %v6423_v37  ;;  %v5184_v13 = vcombine.low %v6417_v34, %v6419_v35  ;;  %v5715_v3 = vpop.eup %5714 }
 0x5a9   : >> { %v3583_v8 = vpop.f32.mrf.mxu1  ;;  %v3627_v26 = vpop.f32.mrf.mxu0  ;;  %v4101_v9 = vrot.slane %v4094_v38, %v6836_v17  ;;  %v4109_v22 = vrot.slane %v5171_v51, %v6836_v17  ;;  %v4117_v6 = vrot.slane %v4110_v45, %v6836_v17  ;;  %v4125_v12 = vrot.slane %v5172_v56, %v6836_v17 }
 0x5aa   : >> { %v4090_v4 = vcombine.low %v7495_v46, %v7498_v25  ;;  %v7520_v21 = vrot.slane %v4059_v61, %v6841_v23  ;;  %5431 = vmatprep.subr.bf16.mxu1 %v5185_v10  ;;  %v4091_v0 = vcombine.high %v7495_v46, %v7498_v25  ;;  %v7532_v20 = vrot.slane %v4075_v47, %v6841_v23  ;;  %v8078_v61 = vld [vmem:[#allocation50_spill] sm:$0xff] }
 0x5ab   : >> { %v5411_v40 = vpop.f32.mrf.mxu1  ;;  %v5417_v27 = vpop.f32.mrf.mxu0  ;;  %v4126_v42 = vcombine.low %v4101_v9, %v4109_v22  ;;  %v4142_v43 = vcombine.low %v4117_v6, %v4125_v12  ;;  %v4127_v18 = vcombine.high %v4101_v9, %v4109_v22  ;;  %v4143_v5 = vcombine.high %v4117_v6, %v4125_v12  ;;  %5432 = vmatpush3.bf16.msra.mxu1 %v5185_v10 }
 0x5ac   : >> { %5433 = vmatprep.subr.bf16.mxu1 %v5184_v13  ;;  %v5183_v53 = vcombine.low %v6413_v32, %v6415_v33  ;;  %v3746_v29 = vmul.f32 %v5703_v41, %v3583_v8  ;;  %v3748_v48 = vmul.f32 %v5709_v62, %v3627_v26  ;;  %v4092_v51 = vcombine.low %v7520_v21, %v7532_v20  ;;  %v5717_v41 = vpop.eup %5716  ;;  %v8079_v40 = vld [vmem:[#allocation49_spill] sm:$0xff] }
 0x5ad   : >> { %v3586_v58 = vpop.f32.mrf.mxu1  ;;  %v3630_v63 = vpop.f32.mrf.mxu0  ;;  %v7509_v50 = vrot.slane %v4126_v42, %v6841_v23  ;;  %v7512_v24 = vrot.slane %v4142_v43, %v6841_v23  ;;  %v7515_v49 = vrot.slane %v4127_v18, %v6841_v23  ;;  %v7523_v59 = vrot.slane %v4143_v5, %v6841_v23 }
 0x5ae   : >> { %v5182_v45 = vcombine.low %v6409_v30, %v6411_v31  ;;  %v3749_v62 = vmul.f32 %v5715_v3, %v3630_v63  ;;  %v5181_v27 = vcombine.low %v8079_v40, %v8078_v61  ;;  %v8081_v63 = vld [vmem:[#allocation47_spill] sm:$0xff] }
 0x5af   : >> { %v5412_v19 = vpop.f32.mrf.mxu1  ;;  %v5418_v44 = vpop.f32.mrf.mxu0  ;;  %v4158_v55 = vcombine.low %v7509_v50, %v7512_v24  ;;  %v4159_v52 = vcombine.high %v7509_v50, %v7512_v24  ;;  %v4160_v1 = vcombine.low %v7515_v49, %v7523_v59  ;;  %5434 = vmatpush3.bf16.msra.mxu1 %v5184_v13 }
 0x5b0   : >> { %5435 = vmatprep.subr.bf16.mxu1 %v5183_v53 }
 0x5b1   : >> { %v3671_v11 = vpop.f32.mrf.mxu1  ;;  %v3715_v60 = vpop.f32.mrf.mxu0  ;;  %v5640_v16 = vpack.i.bf16 %v4159_v52, %v4091_v0  ;;  %v5645_v12 = vpack.i.bf16 %v4160_v1, %v4092_v51 }
 0x5b2   : >> { %v3750_v57 = vmul.f32 %v5707_v7, %v3671_v11  ;;  %v3752_v54 = vmul.f32 %v5713_v2, %v3715_v60  ;;  %v3747_v7 = vmul.f32 %v7492_v15, %v3586_v58  ;;  %v8080_v58 = vld [vmem:[#allocation48_spill] sm:$0xff] }
 0x5b3   : >> { %5641 = vrot.lane.b32.xlu1 %v5640_v16, %s6032_s16  ;;  %v5423_v39 = vpop.f32.mrf.mxu1  ;;  %v5429_v38 = vpop.f32.mrf.mxu0  ;;  %5436 = vmatpush3.bf16.msra.mxu1 %v5183_v53  ;;  %v5180_v13 = vcombine.low %v8081_v63, %v8080_v58 }
 0x5b4   : >> { %v3890_v56 = vcombine.low %v3746_v29, %v3750_v57  ;;  %v3891_v9 = vcombine.high %v3746_v29, %v3750_v57  ;;  %v3906_v22 = vcombine.low %v3748_v48, %v3752_v54  ;;  %v3907_v6 = vcombine.high %v3748_v48, %v3752_v54  ;;  %5437 = vmatprep.subr.bf16.mxu1 %v5182_v45 }
 0x5b5   : >> { %v3674_v8 = vpop.f32.mrf.mxu1  ;;  %v3718_v26 = vpop.f32.mrf.mxu0 }
 0x5b6   : >> { %v3898_v42 = vrot.slane %v3890_v56, %v6836_v17  ;;  %v3905_v43 = vrot.slane %v3891_v9, %v6836_v17  ;;  %v3914_v47 = vrot.slane %v3906_v22, %v6836_v17  ;;  %v3921_v18 = vrot.slane %v3907_v6, %v6836_v17 }
 0x5b7   : >> { %v3751_v2 = vmul.f32 %v5711_v14, %v3674_v8  ;;  %v3753_v5 = vmul.f32 %v5717_v41, %v3718_v26  ;;  %5646 = vrot.lane.b32.xlu1 %v5645_v12, %s6031_s28  ;;  %v5424_v15 = vpop.f32.mrf.mxu1  ;;  %v5430_v10 = vpop.f32.mrf.mxu0  ;;  %5438 = vmatpush3.bf16.msra.mxu1 %v5182_v45 }
 0x5b8   : >> { %v3922_v19 = vcombine.low %v3898_v42, %v3914_v47  ;;  %v3923_v44 = vcombine.high %v3898_v42, %v3914_v47  ;;  %v3938_v0 = vcombine.low %v3905_v43, %v3921_v18  ;;  %v3939_v52 = vcombine.high %v3905_v43, %v3921_v18  ;;  %5439 = vmatprep.subr.bf16.mxu1 %v5181_v27 }
 0x5b9   : >> { %v3958_v11 = vcombine.low %v3747_v7, %v3751_v2  ;;  %v3959_v60 = vcombine.high %v3747_v7, %v3751_v2  ;;  %v3974_v16 = vcombine.low %v3749_v62, %v3753_v5  ;;  %v3975_v1 = vcombine.high %v3749_v62, %v3753_v5 }
 0x5ba   : >> { %v3930_v14 = vrot.slane %v3922_v19, %v6841_v23  ;;  %v3937_v29 = vrot.slane %v3923_v44, %v6841_v23  ;;  %v3946_v48 = vrot.slane %v3938_v0, %v6841_v23  ;;  %v3953_v53 = vrot.slane %v3939_v52, %v6841_v23 }
 0x5bb   : >> { %v3966_v57 = vrot.slane %v3958_v11, %v6836_v17  ;;  %v3973_v54 = vrot.slane %v3959_v60, %v6836_v17  ;;  %v3982_v3 = vrot.slane %v3974_v16, %v6836_v17  ;;  %v3989_v39 = vrot.slane %v3975_v1, %v6836_v17  ;;  %5440 = vmatpush3.bf16.msra.mxu1 %v5181_v27 }
 0x5bc   : >> { %v4162_v38 = vcombine.low %v3930_v14, %v3937_v29  ;;  %v5173_v51 = vcombine.high %v3930_v14, %v3937_v29  ;;  %v4178_v56 = vcombine.low %v3946_v48, %v3953_v53  ;;  %v5174_v9 = vcombine.high %v3946_v48, %v3953_v53  ;;  %5441 = vmatprep.subr.bf16.mxu1 %v5180_v13  ;;  %v8082_v53 = vld [vmem:[#allocation46_spill] sm:$0xff] }
 0x5bd   : >> { %v3990_v22 = vcombine.low %v3966_v57, %v3982_v3  ;;  %v3991_v6 = vcombine.high %v3966_v57, %v3982_v3  ;;  %v4006_v41 = vcombine.low %v3973_v54, %v3989_v39  ;;  %v4007_v7 = vcombine.high %v3973_v54, %v3989_v39  ;;  %v8083_v57 = vld [vmem:[#allocation45_spill] sm:$0xff] }
 0x5be   : >> { %v4169_v62 = vrot.slane %v4162_v38, %v6836_v17  ;;  %v4177_v8 = vrot.slane %v5173_v51, %v6836_v17  ;;  %v4185_v26 = vrot.slane %v4178_v56, %v6836_v17  ;;  %v4193_v12 = vrot.slane %v5174_v9, %v6836_v17  ;;  %v8084_v51 = vld [vmem:[#allocation44_spill] sm:$0xff]  ;;  %v8085_v56 = vld [vmem:[#allocation43_spill] sm:$0xff] }
 0x5bf   : >> { %v3998_v61 = vrot.slane %v3990_v22, %v6841_v23  ;;  %v4005_v45 = vrot.slane %v3991_v6, %v6841_v23  ;;  %v4014_v40 = vrot.slane %v4006_v41, %v6841_v23  ;;  %v4021_v42 = vrot.slane %v4007_v7, %v6841_v23  ;;  %5442 = vmatpush3.bf16.msra.mxu1 %v5180_v13 }
 0x5c0   : >> { %v4195_v43 = vcombine.high %v4169_v62, %v4177_v8  ;;  %v4211_v47 = vcombine.high %v4185_v26, %v4193_v12  ;;  %v4194_v18 = vcombine.low %v4169_v62, %v4177_v8  ;;  %v4210_v2 = vcombine.low %v4185_v26, %v4193_v12 }
 0x5c1   : >> { %v4230_v5 = vcombine.low %v3998_v61, %v4005_v45  ;;  %v5175_v15 = vcombine.high %v3998_v61, %v4005_v45  ;;  %v4246_v10 = vcombine.low %v4014_v40, %v4021_v42  ;;  %v5176_v58 = vcombine.high %v4014_v40, %v4021_v42 }
 0x5c2   : >> { %v4202_v63 = vrot.slane %v4194_v18, %v6841_v23  ;;  %v4218_v19 = vrot.slane %v4210_v2, %v6841_v23  ;;  %v4209_v11 = vrot.slane %v4195_v43, %v6841_v23  ;;  %v4225_v60 = vrot.slane %v4211_v47, %v6841_v23 }
 0x5c3   : >> { %v4237_v44 = vrot.slane %v4230_v5, %v6836_v17  ;;  %v4245_v0 = vrot.slane %v5175_v15, %v6836_v17  ;;  %v4253_v52 = vrot.slane %v4246_v10, %v6836_v17  ;;  %v4261_v27 = vrot.slane %v5176_v58, %v6836_v17 }
 0x5c4   : >> { %v4226_v16 = vcombine.low %v4202_v63, %v4218_v19  ;;  %v5179_v54 = vcombine.low %v8083_v57, %v8082_v53  ;;  %v4228_v13 = vcombine.low %v4209_v11, %v4225_v60  ;;  %v5178_v9 = vcombine.low %v8085_v56, %v8084_v51 }
 0x5c5   : >> { %v4263_v1 = vcombine.high %v4237_v44, %v4245_v0  ;;  %v4279_v14 = vcombine.high %v4253_v52, %v4261_v27  ;;  %v4262_v29 = vcombine.low %v4237_v44, %v4245_v0  ;;  %v4278_v48 = vcombine.low %v4253_v52, %v4261_v27 }
 0x5c6   : >> { %5443 = vmatprep.subr.bf16.mxu1 %v5179_v54  ;;  %v4227_v6 = vcombine.high %v4202_v63, %v4218_v19  ;;  %v4161_v12 = vcombine.high %v7515_v49, %v7523_v59  ;;  %v4093_v61 = vcombine.high %v7520_v21, %v7532_v20 }
 0x5c7   : >> { %v4277_v3 = vrot.slane %v4263_v1, %v6841_v23  ;;  %v4293_v39 = vrot.slane %v4279_v14, %v6841_v23  ;;  %v4270_v38 = vrot.slane %v4262_v29, %v6841_v23  ;;  %v4286_v17 = vrot.slane %v4278_v48, %v6841_v23  ;;  %5444 = vmatpush3.bf16.msra.mxu1 %v5179_v54 }
 0x5c8   : >> { %5445 = vmatprep.subr.bf16.mxu1 %v5178_v9  ;;  %v4229_v23 = vcombine.high %v4209_v11, %v4225_v60  ;;  %v5655_v40 = vpack.i.bf16 %v4161_v12, %v4093_v61  ;;  %v8092_v12 = vld [vmem:[#allocation69_spill] sm:$0xff] }
 0x5c9   : >> { %v4296_v22 = vcombine.low %v4277_v3, %v4293_v39  ;;  %v4294_v41 = vcombine.low %v4270_v38, %v4286_v17  ;;  %v4295_v7 = vcombine.high %v4270_v38, %v4286_v17  ;;  %v4297_v26 = vcombine.high %v4277_v3, %v4293_v39 }
 0x5cb   : >> { %v5660_v62 = vpack.i.bf16 %v4296_v22, %v4228_v13  ;;  %v5650_v8 = vpack.i.bf16 %v4295_v7, %v4227_v6  ;;  %5446 = vmatpush3.bf16.msra.mxu1 %v5178_v9  ;;  %v5665_v45 = vpack.i.bf16 %v4297_v26, %v4229_v23  ;;  %v8088_v13 = vld [vmem:[#allocation134_spill] sm:$0xff]  ;;  %v8089_v6 = vld [vmem:[#allocation133_spill] sm:$0xff]  ;;  %v8090_v7 = vld [vmem:[#allocation132_spill] sm:$0xff] }
 0x5cc   : >> { %v8093_v23 = vld [vmem:[#allocation68_spill] sm:$0xff] }
 0x5cd   : >> { %5661 = vrot.lane.b32.xlu1 %v5660_v62, %s6031_s28  ;;  %5651 = vrot.lane.b32.xlu0 %v5650_v8, %s6032_s16  ;;  %v8091_v8 = vld [vmem:[#allocation131_spill] sm:$0xff]  ;;  %v5203_v61 = vcombine.high %v8093_v23, %v8092_v12 }
 0x5cf   : >> { %4627 = vmatprep.subr.bf16.mxu0 %v5203_v61 }
 0x5d1   : >> { %5666 = vrot.lane.b32.xlu1 %v5665_v45, %s6030_s15  ;;  %5656 = vrot.lane.b32.xlu0 %v5655_v40, %s6030_s15  ;;  %v5202_v45 = vcombine.low %v8093_v23, %v8092_v12 }
 0x5d3   : >> { %4628 = vmatpush1.bf16.msra.mxu0 %v5202_v45  ;;  %v8113_v45 = vld [vmem:[#allocation100_spill] sm:$0xff] }
 0x625   : >> { %v5642_v42 = vpop.permute.xlu1 %5641 }
 0x626   : >> { %v5644_v47 = vunpack.i.h.bf16 %v5642_v42  ;;  %v5643_v18 = vunpack.i.l.bf16 %v5642_v42 }
 0x628   : >> { %v4347_v19 = vsel %vm2832_vm1, %v4158_v55, %v5644_v47  ;;  %v4346_v44 = vsel %vm2832_vm1, %v4090_v4, %v5643_v18  ;;  %v8086_v4 = vld [vmem:[#allocation51_spill] sm:$0xff] }
 0x629   : >> { %v5647_v43 = vpop.permute.xlu1 %5646  ;;  %v8087_v39 = vmov %v8086_v4 }
 0x62a   : >> { %v5649_v15 = vunpack.i.h.bf16 %v5647_v43  ;;  %v5648_v10 = vunpack.i.l.bf16 %v5647_v43 }
 0x62c   : >> { %v4351_v14 = vsel %vm4350_vm3, %v4346_v44, %v5648_v10  ;;  %v4352_v29 = vsel %vm4350_vm3, %v4347_v19, %v5649_v15  ;;  %v8094_v44 = vld [vmem:[#allocation67_spill] sm:$0xff] }
 0x63f   : >> { %v5652_v49 = vpop.permute.xlu0 %5651  ;;  %v5662_v59 = vpop.permute.xlu1 %5661 }
 0x640   : >> { %v5654_v2 = vunpack.i.h.bf16 %v5652_v49  ;;  %v5653_v5 = vunpack.i.l.bf16 %v5652_v49  ;;  %v5664_v58 = vunpack.i.h.bf16 %v5662_v59  ;;  %v5663_v63 = vunpack.i.l.bf16 %v5662_v59 }
 0x642   : >> { %v4349_v21 = vsel %vm2832_vm1, %v4294_v41, %v5654_v2  ;;  %v4348_v20 = vsel %vm2832_vm1, %v4226_v16, %v5653_v5 }
 0x643   : >> { %v5657_v0 = vpop.permute.xlu0 %5656  ;;  %v5667_v52 = vpop.permute.xlu1 %5666  ;;  %v4354_v16 = vsel %vm4350_vm3, %v4349_v21, %v5664_v58  ;;  %v4353_v48 = vsel %vm4350_vm3, %v4348_v20, %v5663_v63 }
 0x644   : >> { %v5659_v27 = vunpack.i.h.bf16 %v5657_v0  ;;  %v5658_v11 = vunpack.i.l.bf16 %v5657_v0  ;;  %v5669_v60 = vunpack.i.h.bf16 %v5667_v52  ;;  %v5668_v1 = vunpack.i.l.bf16 %v5667_v52  ;;  %v8095_v0 = vld [vmem:[#allocation66_spill] sm:$0xff] }
 0x645   : >> { %v5201_v52 = vcombine.high %v8095_v0, %v8094_v44 }
 0x646   : >> { %v4358_v53 = vsel %vm4355_vm4, %v4353_v48, %v5668_v1  ;;  %v4359_v50 = vsel %vm4355_vm4, %v4354_v16, %v5669_v60  ;;  %v4356_v24 = vsel %vm4355_vm4, %v4351_v14, %v5658_v11  ;;  %v4357_v55 = vsel %vm4355_vm4, %v4352_v29, %v5659_v27  ;;  %v8096_v11 = vld [vmem:[#allocation65_spill] sm:$0xff]  ;;  %v8097_v60 = vld [vmem:[#allocation64_spill] sm:$0xff]  ;;  %v8098_v29 = vld [vmem:[#allocation63_spill] sm:$0xff] }
 0x647   : >> { %v4361_v57 = vpack.c.bf16 %v4359_v50, %v4358_v53  ;;  %v4360_v54 = vpack.c.bf16 %v4357_v55, %v4356_v24  ;;  %v5200_v27 = vcombine.low %v8095_v0, %v8094_v44  ;;  %4629 = vmatprep.subr.bf16.mxu0 %v5201_v52  ;;  %v5199_v1 = vcombine.high %v8097_v60, %v8096_v11  ;;  %v8099_v16 = vld [vmem:[#allocation62_spill] sm:$0xff]  ;;  %v8100_v50 = vld [vmem:[#allocation61_spill] sm:$0xff]  ;;  %v8101_v24 = vld [vmem:[#allocation60_spill] sm:$0xff] }
 0x648   : >> { %v5198_v14 = vcombine.low %v8097_v60, %v8096_v11  ;;  %v5197_v48 = vcombine.high %v8099_v16, %v8098_v29  ;;  %v5196_v53 = vcombine.low %v8099_v16, %v8098_v29  ;;  %v5195_v55 = vcombine.high %v8101_v24, %v8100_v50  ;;  %v8122_v52 = vld [vmem:[#allocation95_spill] sm:$0xff] }
 0x649   : >> { %5447 = vmatprep.mubr.bf16.mxu1 %v4360_v54  ;;  %4630 = vmatpush1.bf16.msra.mxu0 %v5200_v27  ;;  %v8102_v54 = vld [vmem:[#allocation59_spill] sm:$0xff] }
 0x64a   : >> { %5448 = vmatmul.mubr.bf16.vlgmr.msra.gmra.mxu1 %v4361_v57  ;;  %4631 = vmatprep.subr.bf16.mxu0 %v5199_v1  ;;  %v5194_v57 = vcombine.low %v8101_v24, %v8100_v50  ;;  %v8123_v1 = vld [vmem:[#allocation80_spill] sm:$0xff] }
 0x64d   : >> { %4632 = vmatpush1.bf16.msra.mxu0 %v5198_v14  ;;  %v8124_v14 = vld [vmem:[#allocation79_spill] sm:$0xff] }
 0x64e   : >> { %4633 = vmatprep.subr.bf16.mxu0 %v5197_v48  ;;  %v5209_v48 = vcombine.low %v8124_v14, %v8123_v1 }
 0x651   : >> { %4634 = vmatpush1.bf16.msra.mxu0 %v5196_v53  ;;  %v8125_v53 = vld [vmem:[#allocation94_spill] sm:$0xff] }
 0x652   : >> { %4635 = vmatprep.subr.bf16.mxu0 %v5195_v55  ;;  %v8126_v55 = vld [vmem:[#allocation93_spill] sm:$0xff] }
 0x655   : >> { %4636 = vmatpush1.bf16.msra.mxu0 %v5194_v57  ;;  %v5216_v57 = vcombine.low %v8126_v55, %v8125_v53  ;;  %v8132_v55 = vld [vmem:[#allocation91_spill] sm:$0xff] }
 0x70a   : >> { %v5449_v46 = vpop.f32.mrf.mxu1 }
 0x70b   : >> { %v4459_v17 = vadd.f32 %v5449_v46, %v8087_v39  ;;  %v8103_v46 = vld [vmem:[#allocation58_spill] sm:$0xff] }
 0x70c   : >> { %v4450_v25 = vpop.f32.mrf.mxu1 }
 0x70d   : >> { %v4451_v3 = vadd.f32 %v8086_v4, %v4450_v25  ;;  %v4467_v62 = vadd.f32 %v8090_v7, %v4459_v17  ;;  %v5193_v25 = vcombine.high %v8103_v46, %v8102_v54  ;;  %v5192_v4 = vcombine.low %v8103_v46, %v8102_v54  ;;  %v8106_v17 = vld [vmem:[#allocation56_spill] sm:$0xff]  ;;  %v8110_v7 = vld [vmem:[#allocation101_spill] sm:$0xff] }
 0x70e   : >> { %v5450_v38 = vpop.f32.mrf.mxu1 }
 0x70f   : >> { %v4465_v51 = vadd.f32 %v8088_v13, %v4451_v3  ;;  %v4462_v22 = vadd.f32 %v5450_v38, %v8087_v39  ;;  %4637 = vmatprep.subr.bf16.mxu0 %v5193_v25  ;;  %v8104_v3 = vld [vmem:[#allocation57_spill] sm:$0xff]  ;;  %v8127_v25 = vld [vmem:[#allocation78_spill] sm:$0xff] }
 0x710   : >> { %v4453_v56 = vpop.f32.mrf.mxu1  ;;  %v8105_v38 = vmov %v8104_v3  ;;  %v5191_v13 = vcombine.high %v8106_v17, %v8104_v3  ;;  %4638 = vmatpush1.bf16.msra.mxu0 %v5192_v4  ;;  %v8128_v4 = vld [vmem:[#allocation77_spill] sm:$0xff] }
 0x711   : >> { %v4454_v9 = vadd.f32 %v8087_v39, %v4453_v56  ;;  %4469 = vadd.xlane.f32.xlu0 %v4465_v51  ;;  %v4468_v26 = vadd.f32 %v8091_v8, %v4462_v22  ;;  %v8107_v56 = vld [vmem:[#allocation55_spill] sm:$0xff]  ;;  %v8111_v8 = vld [vmem:[#allocation86_spill] sm:$0xff]  ;;  %v5208_v3 = vcombine.low %v8128_v4, %v8127_v25  ;;  %v8133_v25 = vld [vmem:[#allocation76_spill] sm:$0xff] }
 0x712   : >> { %4639 = vmatprep.subr.bf16.mxu0 %v5191_v13  ;;  %v8134_v4 = vld [vmem:[#allocation75_spill] sm:$0xff] }
 0x713   : >> { %v4466_v41 = vadd.f32 %v8089_v6, %v4454_v9  ;;  %v8108_v9 = vld [vmem:[#allocation54_spill] sm:$0xff] }
 0x714   : >> { %v5189_v22 = vcombine.high %v8108_v9, %v8107_v56  ;;  %v5188_v6 = vcombine.low %v8108_v9, %v8107_v56 }
 0x715   : >> { %4471 = vadd.xlane.f32.xlu1 %v4466_v41  ;;  %4473 = vadd.xlane.f32.xlu0 %v4467_v62 }
 0x719   : >> { %4475 = vadd.xlane.f32.xlu0 %v4468_v26 }
 0x79a   : >> { %v4470_v40 = vpop.xlane.xlu0 %4469 }
 0x79b   : >> { %v4478_v42 = vmul.f32 0.0078125, %v4470_v40  ;;  %v8114_v40 = vld [vmem:[#allocation99_spill] sm:$0xff] }
 0x79d   : >> { %v7615_v43 = vsub.f32 %v4465_v51, %v4478_v42  ;;  %v5190_v51 = vcombine.low %v8106_v17, %v8105_v38  ;;  %v5219_v42 = vcombine.low %v8114_v40, %v8113_v45 }
 0x79e   : >> { %v4472_v47 = vpop.xlane.xlu1 %4471  ;;  %v4474_v18 = vpop.xlane.xlu0 %4473 }
 0x79f   : >> { %v4479_v49 = vmul.f32 0.0078125, %v4472_v47  ;;  %v4480_v59 = vmul.f32 0.0078125, %v4474_v18  ;;  %v4486_v2 = vmul.f32 %v7615_v43, %v7615_v43  ;;  %4640 = vmatpush1.bf16.msra.mxu0 %v5190_v51  ;;  %v8115_v47 = vld [vmem:[#allocation84_spill] sm:$0xff]  ;;  %v8116_v18 = vld [vmem:[#allocation83_spill] sm:$0xff] }
 0x7a0   : >> { %4641 = vmatprep.subr.bf16.mxu0 %v5189_v22 }
 0x7a1   : >> { %v7619_v5 = vsub.f32 %v4466_v41, %v4479_v49  ;;  %v7621_v15 = vsub.f32 %v4467_v62, %v4480_v59  ;;  %4490 = vadd.xlane.f32.xlu1 %v4486_v2  ;;  %v8109_v41 = vld [vmem:[#allocation102_spill] sm:$0xff]  ;;  %v5211_v49 = vcombine.low %v8116_v18, %v8115_v47  ;;  %v8118_v2 = vld [vmem:[#allocation97_spill] sm:$0xff] }
 0x7a2   : >> { %v4476_v10 = vpop.xlane.xlu0 %4475  ;;  %v5220_v62 = vcombine.low %v8110_v7, %v8109_v41  ;;  %v8117_v59 = vld [vmem:[#allocation98_spill] sm:$0xff] }
 0x7a3   : >> { %v4481_v58 = vmul.f32 0.0078125, %v4476_v10  ;;  %v4487_v63 = vmul.f32 %v7619_v5, %v7619_v5  ;;  %v4488_v21 = vmul.f32 %v7621_v15, %v7621_v15  ;;  %4642 = vmatpush1.bf16.msra.mxu0 %v5188_v6  ;;  %v5218_v10 = vcombine.low %v8118_v2, %v8117_v59  ;;  %v8129_v59 = vld [vmem:[#allocation52_spill] sm:$0xff] }
 0x7a4   : >> { %5287 = vmatprep.subr.bf16.mxu1 %v5220_v62 }
 0x7a5   : >> { %v7627_v20 = vsub.f32 %v4468_v26, %v4481_v58  ;;  %4492 = vadd.xlane.f32.xlu0 %v4487_v63  ;;  %4494 = vadd.xlane.f32.xlu1 %v4488_v21  ;;  %v8112_v26 = vld [vmem:[#allocation85_spill] sm:$0xff]  ;;  %v8119_v58 = vld [vmem:[#allocation82_spill] sm:$0xff] }
 0x7a6   : >> { %v5212_v61 = vcombine.low %v8112_v26, %v8111_v8  ;;  %v8120_v63 = vld [vmem:[#allocation81_spill] sm:$0xff] }
 0x7a7   : >> { %v4489_v19 = vmul.f32 %v7627_v20, %v7627_v20  ;;  %v5210_v21 = vcombine.low %v8120_v63, %v8119_v58 }
 0x7a8   : >> { %5288 = vmatpush3.bf16.msra.mxu1 %v5212_v61 }
 0x7a9   : >> { %4496 = vadd.xlane.f32.xlu0 %v4489_v19  ;;  %5289 = vmatprep.subr.bf16.mxu1 %v5219_v42  ;;  %v8121_v19 = vld [vmem:[#allocation96_spill] sm:$0xff] }
 0x7aa   : >> { %v5217_v27 = vcombine.low %v8122_v52, %v8121_v19  ;;  %v8130_v19 = vld [vmem:[#allocation53_spill] sm:$0xff] }
 0x7ac   : >> { %5290 = vmatpush3.bf16.msra.mxu1 %v5211_v49 }
 0x7ad   : >> { %5291 = vmatprep.subr.bf16.mxu1 %v5218_v10 }
 0x7b0   : >> { %5292 = vmatpush3.bf16.msra.mxu1 %v5210_v21 }
 0x7b1   : >> { %5293 = vmatprep.subr.bf16.mxu1 %v5217_v27 }
 0x7b4   : >> { %5294 = vmatpush3.bf16.msra.mxu1 %v5209_v48 }
 0x7b5   : >> { %5295 = vmatprep.subr.bf16.mxu1 %v5216_v57 }
 0x7b8   : >> { %5296 = vmatpush3.bf16.msra.mxu1 %v5208_v3  ;;  %v5207_v3 = vcombine.low %v8134_v4, %v8133_v25 }
 0x82a   : >> { %v4491_v13 = vpop.xlane.xlu1 %4490 }
 0x82b   : >> { %v4498_v51 = vmul.f32 0.0078125, %v4491_v13  ;;  %v8135_v13 = vld [vmem:[#allocation90_spill] sm:$0xff] }
 0x82d   : >> { %v4502_v22 = vadd.f32 1e-05, %v4498_v51 }
 0x82e   : >> { %v4495_v6 = vpop.xlane.xlu1 %4494  ;;  %v4493_v41 = vpop.xlane.xlu0 %4492 }
 0x82f   : >> { %5718 = vrsqrt.f32 %v4502_v22  ;;  %v4500_v7 = vmul.f32 0.0078125, %v4495_v6  ;;  %v4499_v62 = vmul.f32 0.0078125, %v4493_v41  ;;  %v8137_v22 = vld [vmem:[#allocation74_spill] sm:$0xff]  ;;  %v8138_v6 = vld [vmem:[#allocation73_spill] sm:$0xff] }
 0x830   : >> { %v5206_v41 = vcombine.low %v8138_v6, %v8137_v22 }
 0x831   : >> { %v4503_v8 = vadd.f32 1e-05, %v4499_v62  ;;  %v4504_v26 = vadd.f32 1e-05, %v4500_v7  ;;  %v8139_v7 = vld [vmem:[#allocation88_spill] sm:$0xff]  ;;  %v8140_v62 = vld [vmem:[#allocation87_spill] sm:$0xff] }
 0x832   : >> { %v4497_v61 = vpop.xlane.xlu0 %4496 }
 0x833   : >> { %v4501_v45 = vmul.f32 0.0078125, %v4497_v61  ;;  %5720 = vrsqrt.f32 %v4503_v8  ;;  %v5213_v8 = vcombine.low %v8140_v62, %v8139_v7  ;;  %v8142_v61 = vld [vmem:[#allocation71_spill] sm:$0xff] }
 0x834   : >> { %5722 = vrsqrt.f32 %v4504_v26  ;;  %v8141_v26 = vld [vmem:[#allocation72_spill] sm:$0xff] }
 0x835   : >> { %v4505_v40 = vadd.f32 1e-05, %v4501_v45  ;;  %v5205_v45 = vcombine.low %v8142_v61, %v8141_v26 }
 0x837   : >> { %5724 = vrsqrt.f32 %v4505_v40 }
 0x83c   : >> { %v5719_v42 = vpop.eup %5718 }
 0x83d   : >> { %v4510_v47 = vmul.f32 %v5719_v42, %v7615_v43  ;;  %v8143_v42 = vld [vmem:[#allocation122_spill] sm:$0xff] }
 0x83f   : >> { %v4520_v2 = vmul.f32 %v8129_v59, %v4510_v47  ;;  %v8144_v47 = vsub.s32 1, %v8143_v42 }
 0x840   : >> { %v5721_v18 = vpop.eup %5720 }
 0x841   : >> { %v4511_v49 = vmul.f32 %v5721_v18, %v7619_v5  ;;  %v5723_v10 = vpop.eup %5722  ;;  %v7685_v52 = vadd.f32 %v8130_v19, %v4520_v2  ;;  %v8145_v18 = vld [vmem:[#allocation70_spill] sm:$0xff]  ;;  %v8146_v2 = vsub.s32 0, %v8143_v42 }
 0x842   : >> { %v4512_v1 = vmul.f32 %v5723_v10, %v7621_v15  ;;  %v8131_v15 = vld [vmem:[#allocation92_spill] sm:$0xff] }
 0x843   : >> { %v4521_v63 = vmul.f32 %v8129_v59, %v4511_v49  ;;  %v5215_v57 = vcombine.low %v8132_v55, %v8131_v15  ;;  %v4544_v49 = vrot.slane %v8145_v18, %v8144_v47  ;;  %v4540_v10 = vrot.slane %v8145_v18, %v8146_v2 }
 0x844   : >> { %v5725_v58 = vpop.eup %5724  ;;  %v4522_v14 = vmul.f32 %v8129_v59, %v4512_v1 }
 0x845   : >> { %v4513_v21 = vmul.f32 %v5725_v58, %v7627_v20  ;;  %v7688_v27 = vadd.f32 %v8130_v19, %v4521_v63  ;;  %5297 = vmatprep.subr.bf16.mxu1 %v5215_v57 }
 0x846   : >> { %v7700_v48 = vadd.f32 %v8130_v19, %v4522_v14  ;;  %5298 = vmatpush3.bf16.msra.mxu1 %v5207_v3 }
 0x847   : >> { %v4534_v43 = vpack.c.bf16 %v7688_v27, %v7685_v52  ;;  %v4523_v5 = vmul.f32 %v8129_v59, %v4513_v21 }
 0x849   : >> { %4660 = vmatmul.mubr.bf16.vlgmr.msra.gmra.mxu0 %v4534_v43  ;;  %v7697_v20 = vadd.f32 %v8130_v19, %v4523_v5 }
 0x84a   : >> { %4669 = vmatprep.mubr.bf16.mxu0 %v8077_v28  ;;  %v8136_v28 = vld [vmem:[#allocation89_spill] sm:$0xff] }
 0x84b   : >> { %v4535_v53 = vpack.c.bf16 %v7697_v20, %v7700_v48  ;;  %v5214_v51 = vcombine.low %v8136_v28, %v8135_v13 }
 0x84d   : >> { %5299 = vmatprep.subr.bf16.mxu1 %v5214_v51 }
 0x84e   : >> { %5300 = vmatpush3.bf16.msra.mxu1 %v5206_v41 }
 0x84f   : >> { %5301 = vmatprep.subr.bf16.mxu1 %v5213_v8 }
 0x851   : >> { %4670 = vmatmul.mubr.bf16.gmra.mxu0 %v4535_v53 }
 0x852   : >> { %5302 = vmatpush3.bf16.msra.mxu1 %v5205_v45 }
 0x909   : >> { %v4661_v40 = vpop.f32.mrf.mxu0 }
 0x90a   : >> { %v4662_v43 = vadd.f32 %v4661_v40, %v4540_v10 }
 0x90b   : >> { %v4663_v58 = vpop.f32.mrf.mxu0 }
 0x90c   : >> { %v4664_v21 = vadd.f32 %v4663_v58, %v4544_v49  ;;  %v4680_v25 = vmax.f32 %v4662_v43, 0.0 }
 0x90d   : >> { %v4665_v63 = vpop.f32.mrf.mxu0 }
 0x90e   : >> { %v4666_v1 = vadd.f32 %v4665_v63, %v4540_v10  ;;  %v4681_v55 = vmax.f32 %v4664_v21, 0.0  ;;  %v8147_v63 = vld [vmem:[#allocation103_spill] sm:$0xff] }
 0x90f   : >> { %v4667_v5 = vpop.f32.mrf.mxu0 }
 0x910   : >> { %v4668_v14 = vadd.f32 %v4667_v5, %v4544_v49  ;;  %v4682_v53 = vmax.f32 %v4666_v1, 0.0 }
 0x911   : >> { %v4671_v15 = vpop.f32.mrf.mxu0 }
 0x912   : >> { %v4683_v57 = vmax.f32 %v4668_v14, 0.0  ;;  %v4688_v13 = vpack.c.bf16 %v4682_v53, %v4680_v25  ;;  %v4672_v6 = vadd.f32 %v4671_v15, %v4540_v10 }
 0x913   : >> { %v4673_v4 = vpop.f32.mrf.mxu0 }
 0x914   : >> { %v4689_v3 = vpack.c.bf16 %v4683_v57, %v4681_v55  ;;  %v4674_v51 = vadd.f32 %v4673_v4, %v4544_v49  ;;  %v4684_v61 = vmax.f32 %v4672_v6, 0.0 }
 0x915   : >> { %v4675_v28 = vpop.f32.mrf.mxu0 }
 0x916   : >> { %v4676_v22 = vadd.f32 %v4675_v28, %v4540_v10  ;;  %4826 = vmatprep.mubr.bf16.mxu1 %v4689_v3  ;;  %v4685_v8 = vmax.f32 %v4674_v51, 0.0 }
 0x917   : >> { %v4677_v41 = vpop.f32.mrf.mxu0  ;;  %4827 = vmatmul.mubr.bf16.vlgmr.msra.gmra.mxu1 %v4688_v13 }
 0x918   : >> { %v4678_v7 = vadd.f32 %v4677_v41, %v4544_v49  ;;  %v4686_v62 = vmax.f32 %v4676_v22, 0.0 }
 0x91a   : >> { %v4687_v26 = vmax.f32 %v4678_v7, 0.0  ;;  %v4690_v40 = vpack.c.bf16 %v4686_v62, %v4684_v61 }
 0x91c   : >> { %v4691_v45 = vpack.c.bf16 %v4687_v26, %v4685_v8 }
 0x91e   : >> { %4834 = vmatprep.mubr.bf16.mxu1 %v4691_v45 }
 0x91f   : >> { %4835 = vmatmul.mubr.bf16.gmra.mxu1 %v4690_v40 }
 0x9d7   : >> { %v5303_v42 = vpop.f32.mrf.mxu1 }
 0x9d9   : >> { %v5304_v47 = vpop.f32.mrf.mxu1 }
 0x9da   : >> { %v5305_v2 = vadd.f32 %v5304_v47, %v5303_v42 }
 0x9db   : >> { %v5306_v58 = vpop.f32.mrf.mxu1 }
 0x9dc   : >> { %v4829_v21 = vadd.f32 %v5305_v2, %v8147_v63 }
 0x9dd   : >> { %v5307_v1 = vpop.f32.mrf.mxu1 }
 0x9de   : >> { %v5308_v43 = vadd.f32 %v5307_v1, %v5306_v58  ;;  %v4843_v10 = vadd.f32 %v4829_v21, %v7685_v52 }
 0x9df   : >> { %v5309_v5 = vpop.f32.mrf.mxu1 }
 0x9e0   : >> { %v4832_v49 = vadd.f32 %v5308_v43, %v8147_v63  ;;  %4847 = vadd.xlane.f32.xlu1 %v4843_v10 }
 0x9e1   : >> { %v5310_v14 = vpop.f32.mrf.mxu1 }
 0x9e2   : >> { %v5311_v53 = vadd.f32 %v5310_v14, %v5309_v5  ;;  %v4844_v15 = vadd.f32 %v4832_v49, %v7688_v27 }
 0x9e3   : >> { %v5312_v55 = vpop.f32.mrf.mxu1 }
 0x9e4   : >> { %v4837_v57 = vadd.f32 %v5311_v53, %v8147_v63  ;;  %4849 = vadd.xlane.f32.xlu0 %v4844_v15 }
 0x9e5   : >> { %v5313_v25 = vpop.f32.mrf.mxu1 }
 0x9e6   : >> { %v5314_v4 = vadd.f32 %v5313_v25, %v5312_v55  ;;  %v4845_v3 = vadd.f32 %v4837_v57, %v7700_v48  ;;  %v8148_v25 = vld [vmem:[#allocation104_spill] sm:$0xff] }
 0x9e8   : >> { %v4840_v13 = vadd.f32 %v5314_v4, %v8147_v63  ;;  %4851 = vadd.xlane.f32.xlu1 %v4845_v3 }
 0x9ea   : >> { %v4846_v52 = vadd.f32 %v4840_v13, %v7697_v20  ;;  %v8149_v13 = vld [vmem:[#allocation105_spill] sm:$0xff] }
 0x9ec   : >> { %4853 = vadd.xlane.f32.xlu0 %v4846_v52 }
 0xa69   : >> { %v4848_v28 = vpop.xlane.xlu1 %4847 }
 0xa6a   : >> { %v4855_v51 = vmul.f32 0.0078125, %v4848_v28 }
 0xa6c   : >> { %v4859_v22 = vsub.f32 %v4843_v10, %v4855_v51 }
 0xa6d   : >> { %v4850_v6 = vpop.xlane.xlu0 %4849 }
 0xa6e   : >> { %v4856_v41 = vmul.f32 0.0078125, %v4850_v6  ;;  %v4863_v27 = vmul.f32 %v4859_v22, %v4859_v22 }
 0xa70   : >> { %v4860_v7 = vsub.f32 %v4844_v15, %v4856_v41  ;;  %4867 = vadd.xlane.f32.xlu1 %v4863_v27 }
 0xa71   : >> { %v4852_v62 = vpop.xlane.xlu1 %4851 }
 0xa72   : >> { %v4857_v8 = vmul.f32 0.0078125, %v4852_v62  ;;  %v4864_v26 = vmul.f32 %v4860_v7, %v4860_v7 }
 0xa74   : >> { %v4861_v61 = vsub.f32 %v4845_v3, %v4857_v8  ;;  %4869 = vadd.xlane.f32.xlu0 %v4864_v26 }
 0xa75   : >> { %v4854_v48 = vpop.xlane.xlu0 %4853 }
 0xa76   : >> { %v4858_v45 = vmul.f32 0.0078125, %v4854_v48  ;;  %v4865_v40 = vmul.f32 %v4861_v61, %v4861_v61 }
 0xa78   : >> { %v4862_v42 = vsub.f32 %v4846_v52, %v4858_v45  ;;  %4871 = vadd.xlane.f32.xlu1 %v4865_v40 }
 0xa7a   : >> { %v4866_v20 = vmul.f32 %v4862_v42, %v4862_v42 }
 0xa7c   : >> { %4873 = vadd.xlane.f32.xlu0 %v4866_v20 }
 0xaf9   : >> { %v4868_v47 = vpop.xlane.xlu1 %4867 }
 0xafa   : >> { %v4875_v2 = vmul.f32 0.0078125, %v4868_v47 }
 0xafc   : >> { %v4879_v58 = vadd.f32 1e-05, %v4875_v2 }
 0xafd   : >> { %v4870_v21 = vpop.xlane.xlu0 %4869 }
 0xafe   : >> { %5726 = vrsqrt.f32 %v4879_v58  ;;  %v4876_v1 = vmul.f32 0.0078125, %v4870_v21 }
 0xb00   : >> { %v4880_v43 = vadd.f32 1e-05, %v4876_v1 }
 0xb01   : >> { %v4872_v10 = vpop.xlane.xlu1 %4871 }
 0xb02   : >> { %5728 = vrsqrt.f32 %v4880_v43  ;;  %v4877_v5 = vmul.f32 0.0078125, %v4872_v10 }
 0xb04   : >> { %v4881_v49 = vadd.f32 1e-05, %v4877_v5 }
 0xb05   : >> { %v4874_v14 = vpop.xlane.xlu0 %4873 }
 0xb06   : >> { %5730 = vrsqrt.f32 %v4881_v49  ;;  %v4878_v53 = vmul.f32 0.0078125, %v4874_v14 }
 0xb08   : >> { %v4882_v15 = vadd.f32 1e-05, %v4878_v53 }
 0xb0a   : >> { %5732 = vrsqrt.f32 %v4882_v15 }
 0xb0b   : >> { %v5727_v55 = vpop.eup %5726 }
 0xb0c   : >> { %v4887_v57 = vmul.f32 %v5727_v55, %v4859_v22 }
 0xb0e   : >> { %v4897_v4 = vmul.f32 %v8148_v25, %v4887_v57 }
 0xb0f   : >> { %v5729_v3 = vpop.eup %5728 }
 0xb10   : >> { %v4907_v52 = vadd.f32 %v8149_v13, %v4897_v4   ;;  %v4888_v28 = vmul.f32 %v5729_v3, %v4860_v7 }
 0xb12   : >> { %v4898_v51 = vmul.f32 %v8148_v25, %v4888_v28  ;;  %v8153_v1 = vmov %v4907_v52  ;;  %4911 = vst [vmem:[%s6652_s30] sm:$0xff] (%p878_p10), %v4907_v52 }
 0xb13   : >> { %v5731_v6 = vpop.eup %5730 }
 0xb14   : >> { %v4908_v41 = vadd.f32 %v8149_v13, %v4898_v51   ;;  %v4889_v27 = vmul.f32 %v5731_v6, %v4861_v61 }
 0xb16   : >> { %v4899_v62 = vmul.f32 %v8148_v25, %v4889_v27  ;;  %v8152_v2 = vmov %v4908_v41  ;;  %4912 = vst [vmem:[%s6652_s30 + $0x8] sm:$0xff] (%p878_p10), %v4908_v41 }
 0xb17   : >> { %v5733_v8 = vpop.eup %5732 }
 0xb18   : >> { %v4909_v26 = vadd.f32 %v8149_v13, %v4899_v62   ;;  %v4890_v48 = vmul.f32 %v5733_v8, %v4862_v42 }
 0xb1a   : >> { %v4900_v22 = vmul.f32 %v8148_v25, %v4890_v48  ;;  %v8151_v3 = vmov %v4909_v26  ;;  %880 = sbr.rel (!%p878_p10) target bundleno = 436 (0x1b4), region = 161  ;;  %4913 = vst [vmem:[%s6652_s30 + $0x10] sm:$0xff] (%p878_p10), %v4909_v26 }
 0xb1c   : >> { %v4910_v45 = vadd.f32 %v8149_v13, %v4900_v22  }
 0xb1e   : >> { %v8150_v4 = vmov %v4910_v45  ;;  %4914 = vst [vmem:[%s6652_s30 + $0x18] sm:$0xff] (%p878_p10), %v4910_v45 }
 0xb1f   : > { %5907 = shalt.err (!%p5904_p8)
}
 0xb20   : > { %s5908_s25 = scalar_lea.hbm %s7757_s18, 512  ;;  %s5912_s15 = scalar_lea.hbm %s8155_s11, 1024 }
 0xb21   : > { %p5909_p11 = scmp.ne.s32.totalorder %s7757_s18, %s5908_s25  ;;  %p5913_p13 = scmp.lt.s32.totalorder %s7757_s18, %s8155_s11 }
 0xb22   : > { %p5914_p5 = scmp.lt.s32.totalorder %s5912_s15, %s5908_s25 }
 0xb23   : > { %p5910_p3 = pnand %p5909_p11, %p8156_p6 }
 0xb24   : > { %p5915_p10 = por %p5914_p5, %p5913_p13 }
 0xb25   : > { %p5911_p9 = pneg %p5910_p3 }
 0xb27   : > { %p5916_p1 = pnand %p5915_p10, %p5911_p9 }
 0xb29   : > { %5919 = shalt.err (!%p5916_p1)
}
 0xb2a   : > { %s6038_s2 = smov 128   ;;  %s6039_s5 = smov 8  }
 0xb2b   : > { %5487 = dma.vmem_to_hbm [thread:$0]  (%p8156_p6), %s7760_s9, 512, %s7757_s18, %s4916_s26, %s6038_s2, %s6038_s2, %s6039_s5  }
 0xb2c PF: > { %s8157_s20 = sld [smem:[#allocation20_spill]]  ;;  %p8160_p4 = scmp.ge.s32.totalorder %s5994_s21, 2 }
 0xb2d   : > { %s8158_s27 = sld [smem:[#allocation22_spill]] }
 0xb32   : > { %s4945_s24 = sand.u32 1, %s8157_s20  }
 0xb33   : > { %p8159_p12 = scmp.ne.s32.totalorder %s8158_s27, 0  ;;  %s4946_s17 = scalar_lea.sflag [#allocation4], %s4945_s24 }
 0xb35   : > { %p5510_p0 = pnand %p8160_p4, %p8159_p12 }
 0xb37   : > { %p5511_p7 = pneg %p5510_p0 }
 0xb39   : > { %5977 = dma.done.wait (%p5511_p7), %s4946_s17, 512  }
 0xb3a   : > { %5979 = vsyncadd (%p5511_p7), %s4946_s17, 4294966784  ;;  %s8161_s21 = sld [smem:[#allocation23_spill]]  ;;  %s8164_s18 = smov %s5986_s19 }
 0xb3b   : > { %s8162_s22 = sld [smem:[#allocation21_spill]] }
 0xb3c   : > { %s8163_s20 = sld [smem:[#allocation25_spill]] }
 0xb40   : > { %p33_p2 = scmp.ge.s32.totalorder %s8161_s21, 4  }
 0xb41   : > { %s8165_s19 = smov %s8162_s22 }
 0xb42   :  { %35 = sbr.rel (!%p33_p2) target bundleno = 16 (0x10), region = 172 }
 0xb47   :  { %4951 = vsyncpa [#allocation3], 1 }
 0xb48   :  { %4953 = vsyncpa [#allocation3 + $0x1], 1 }
 0xb49   :  { %4954 = vsyncpa [#allocation6], 1 }
 0xb4a   :  { %4956 = vsyncpa [#allocation6 + $0x1], 1 }
 0xb4b   :  { %4957 = vsyncpa [#allocation9], 1 }
 0xb4c   :  { %4958 = vsyncpa [#allocation12], 1 }
 0xb4d   :  { %4959 = vsyncpa [#allocation4], 1 }
 0xb4e   :  { %4961 = vsyncpa [#allocation4 + $0x1], 1 }

// kernel: tpu_custom_call.1
= control target key start
LH: loop header
LB: loop body
LE: loop exit
PB: predicated region body
PF: predicated region fallthrough
CT: control target
= control target key end

     0   :  { %s7803_s0 = inlined_call_operand.hbm [shape: f32[4,16,128], index: 0, kind: input, shape index: {}]   ;;  %s7804_s1 = inlined_call_operand.hbm [shape: f32[4,16,128], index: 1, kind: input, shape index: {}]   ;;  %s7805_s2 = inlined_call_operand.hbm [shape: bf16[128,384], index: 2, kind: input, shape index: {}]   ;;  %s7806_s3 = inlined_call_operand.vmem [shape: f32[1,256], index: 3, kind: input, shape index: {}]   ;;  %s7807_s4 = inlined_call_operand.vmem [shape: f32[1,128], index: 4, kind: input, shape index: {}]   ;;  %s7808_s5 = inlined_call_operand.hbm [shape: bf16[128,128], index: 5, kind: input, shape index: {}]   ;;  %s7809_s6 = inlined_call_operand.vmem [shape: f32[1,128], index: 6, kind: input, shape index: {}]   ;;  %s7810_s7 = inlined_call_operand.vmem [shape: f32[1,128], index: 7, kind: input, shape index: {}]   ;;  %s7811_s8 = inlined_call_operand.vmem [shape: f32[1,128], index: 8, kind: input, shape index: {}]   ;;  %s7812_s9 = inlined_call_operand.hbm [shape: bf16[128,256], index: 9, kind: input, shape index: {}]   ;;  %s7813_s10 = inlined_call_operand.vmem [shape: f32[1,256], index: 10, kind: input, shape index: {}]   ;;  %s7814_s11 = inlined_call_operand.hbm [shape: bf16[256,128], index: 11, kind: input, shape index: {}]   ;;  %s7815_s12 = inlined_call_operand.vmem [shape: f32[1,128], index: 12, kind: input, shape index: {}]   ;;  %s7816_s13 = inlined_call_operand.vmem [shape: f32[1,128], index: 13, kind: input, shape index: {}]   ;;  %s7817_s14 = inlined_call_operand.vmem [shape: f32[1,128], index: 14, kind: input, shape index: {}]   ;;  %s7818_s15 = inlined_call_operand.hbm [shape: f32[4,16,128], index: 15, kind: output, shape index: {}]  }
   0x1   :  { %7888 = sst [smem:[#allocation135_spill]] %s7803_s0 }
   0x2   :  { %7889 = sst [smem:[#allocation136_spill]] %s7805_s2 }
   0x3   :  { %7890 = sst [smem:[#allocation137_spill]] %s7808_s5 }
   0x4   :  { %7891 = sst [smem:[#allocation138_spill]] %s7812_s9 }
   0x5   :  { %7892 = sst [smem:[#allocation139_spill]] %s7814_s11 }
   0x6   :  { %7893 = sst [smem:[#allocation140_spill]] %s7818_s15 }
   0x7   :  { %20 = vsyncpa [#allocation3], 0 }
   0x8   :  { %22 = vsyncpa [#allocation3 + $0x1], 0 }
   0x9   :  { %23 = vsyncpa [#allocation6], 0 }
   0xa   :  { %25 = vsyncpa [#allocation6 + $0x1], 0 }
   0xb   :  { %26 = vsyncpa [#allocation9], 0 }
   0xc   :  { %27 = vsyncpa [#allocation12], 0 }
   0xd   :  { %28 = vsyncpa [#allocation4], 0 }
   0xe   :  { %30 = vsyncpa [#allocation4 + $0x1], 0  ;;  %s6120_s18 = smov 0   ;;  %s6122_s19 = smov 0  }
   0xf   :  { %s6124_s20 = smov 0   ;;  %s6126_s21 = smov 0  }
  0x10 LB: > { %7894 = sst [smem:[#allocation20_spill]] %s5982_s18  ;;  %s6141_s22 = sadd.s32 4294967295, %s5994_s21   ;;  %s5994_s21 = sphi %s6126_s21, %s8161_s21   ;;  %s5990_s20 = sphi %s6124_s20, %s8163_s20   ;;  %s5986_s19 = sphi %s6122_s19, %s8165_s19   ;;  %s5982_s18 = sphi %s6120_s18, %s8164_s18  }
  0x11   : > { %7895 = sst [smem:[#allocation21_spill]] %s5990_s20  ;;  %s5081_s23 = sadd.s32 4294967294, %s5994_s21  }
  0x12   : > { %p56_p0 = scmp.ne.s32.totalorder %s5986_s19, %s5982_s18  ;;  %p7821_p1 = scmp.eq.s32.totalorder %s6141_s22, 0 }
  0x13   : > { %p385_p3 = scmp.eq.s32.totalorder %s5081_s23, 1  ;;  %p5082_p5 = scmp.ge.s32.totalorder %s5994_s21, 1 }
  0x14   : > { %p6150_p4 = por %p7821_p1, %p56_p0  ;;  %p392_p7 = scmp.lt.s32.totalorder %s5994_s21, 3 }
  0x15   : > { %p6155_p6 = por %p385_p3, %p56_p0  ;;  %s6016_s27 = smov [#allocation7]  }
  0x16   : > { %s7896_s24 = scalar_select %p6150_p4, 1, 0 }
  0x17   : > { %s7897_s25 = scalar_select %p6155_p6, 1, 0 }
  0x18   : > { %p6160_p8 = pnand %p5082_p5, %p392_p7  ;;  %s404_s28 = sshll.u32 %s6016_s27, 4  ;;  %s405_s28 = int_to_ptr.vmem [resolvable:$true] %s404_s28 }
  0x19   : > { %7898 = sst [smem:[#allocation22_spill]] %s7897_s25  ;;  %s6017_s30 = smov [#allocation8]  }
  0x1a   : > { %p5489_p9 = pneg %p6160_p8  ;;  %s423_s16 = sshll.u32 %s6017_s30, 4  ;;  %s424_s16 = int_to_ptr.vmem [resolvable:$true] %s423_s16 }
  0x1b   : > { %s5745_s17 = scalar_lea.vmem %s405_s28, 3072  ;;  %p5753_p5 = scmp.lt.s32.totalorder %s405_s28, %s405_s28 }
  0x1c   : > { %p6169_p11 = pnand %p5489_p9, %p7821_p1  ;;  %p5746_p13 = scmp.ne.s32.totalorder %s405_s28, %s5745_s17 }
  0x1d   : > { %p5754_p7 = scmp.lt.s32.totalorder %s5745_s17, %s5745_s17 }
  0x1e   : > { %p5736_p12 = pneg %p6169_p11 }
  0x1f   : > { %p5755_p10 = por %p5754_p7, %p5753_p5 }
  0x20   : > { %p5748_p0 = pnand %p5746_p13, %p5736_p12 }
  0x22   : > { %p5749_p3 = pneg %p5748_p0 }
  0x24   : > { %p5756_p9 = pnand %p5755_p10, %p5749_p3 }
  0x26   : > { %5759 = shalt.err (!%p5756_p9)
}
  0x27   : > { %s6018_s23 = smov 192   ;;  %s6019_s27 = smov 12  }
  0x28   : > { %s7901_s2 = sld [smem:[#allocation136_spill]]  ;;  %s5771_s18 = scalar_lea.vmem %s424_s16, 1024 }
  0x29   : > { %p5772_p1 = scmp.ne.s32.totalorder %s424_s16, %s5771_s18  ;;  %p5779_p2 = scmp.lt.s32.totalorder %s424_s16, %s424_s16 }
  0x2a   : > { %p5780_p6 = scmp.lt.s32.totalorder %s5771_s18, %s5771_s18 }
  0x2b   : > { %p5774_p13 = pnand %p5772_p1, %p5736_p12 }
  0x2c   : > { %p5781_p5 = por %p5780_p6, %p5779_p2 }
  0x2d   : > { %p5775_p0 = pneg %p5774_p13 }
  0x2e   : > { %5492 = dma.hbm_to_vmem [thread:$0]  (!%p6169_p11), %s7901_s2, 3072, %s405_s28, [#allocation6], %s6018_s23, %s6018_s23, %s6019_s27  }
  0x2f   : > { %p5782_p10 = pnand %p5781_p5, %p5775_p0 }
  0x31   : > { %5785 = shalt.err (!%p5782_p10)
}
  0x32   : > { %s7823_s17 = smov 64   ;;  %s6021_s15 = smov 4  }
  0x33   : > { %s7902_s5 = sld [smem:[#allocation137_spill]]  ;;  %s6022_s23 = smov [#allocation10]  }
  0x34   : > { %s445_s27 = sshll.u32 %s6022_s23, 4  ;;  %s446_s27 = int_to_ptr.vmem [resolvable:$true] %s445_s27 }
  0x35   : > { %s5797_s30 = scalar_lea.vmem %s446_s27, 2048  ;;  %p5805_p3 = scmp.lt.s32.totalorder %s446_s27, %s446_s27 }
  0x36   : > { %p5798_p1 = scmp.ne.s32.totalorder %s446_s27, %s5797_s30  ;;  %p5806_p7 = scmp.lt.s32.totalorder %s5797_s30, %s5797_s30 }
  0x38   : > { %p5800_p2 = pnand %p5798_p1, %p5736_p12  ;;  %p5807_p9 = por %p5806_p7, %p5805_p3 }
  0x39   : > { %5495 = dma.hbm_to_vmem [thread:$0]  (!%p6169_p11), %s7902_s5, 1024, %s424_s16, [#allocation9], %s7823_s17, %s7823_s17, %s6021_s15  }
  0x3a   : > { %p5801_p6 = pneg %p5800_p2 }
  0x3c   : > { %p5808_p13 = pnand %p5807_p9, %p5801_p6 }
  0x3e   : > { %5811 = shalt.err (!%p5808_p13)
}
  0x3f   : > { %s7824_s18 = smov 128   ;;  %s7826_s2 = smov 8  }
  0x40   : > { %s7903_s9 = sld [smem:[#allocation138_spill]]  ;;  %s6025_s28 = smov [#allocation11]  }
  0x41   : > { %s461_s23 = sshll.u32 %s6025_s28, 4  ;;  %s462_s23 = int_to_ptr.vmem [resolvable:$true] %s461_s23 }
  0x42   : > { %s5823_s17 = scalar_lea.vmem %s462_s23, 2048  ;;  %p5831_p1 = scmp.lt.s32.totalorder %s462_s23, %s462_s23 }
  0x43   : > { %p5824_p0 = scmp.ne.s32.totalorder %s462_s23, %s5823_s17  ;;  %p5832_p2 = scmp.lt.s32.totalorder %s5823_s17, %s5823_s17 }
  0x45   : > { %p5826_p5 = pnand %p5824_p0, %p5736_p12  ;;  %p5833_p6 = por %p5832_p2, %p5831_p1 }
  0x46   : > { %5498 = dma.hbm_to_vmem [thread:$0]  (!%p6169_p11), %s7903_s9, 2048, %s446_s27, [#allocation9], %s7824_s18, %s7824_s18, %s7826_s2  }
  0x47   : > { %p5827_p10 = pneg %p5826_p5 }
  0x49   : > { %p5834_p3 = pnand %p5833_p6, %p5827_p10 }
  0x4b   : > { %5837 = shalt.err (!%p5834_p3)
}
  0x4c   : > { %s7904_s30 = smov 64   ;;  %s7905_s11 = sld [smem:[#allocation139_spill]] }
  0x4d   : > { %s6217_s17 = sadd.s32 1, %s5994_s21   ;;  %s43_s29 = sadd.s32 1, %s5990_s20 }
  0x4e   : > { %7906 = sst [smem:[#allocation23_spill]] %s6217_s17  ;;  %s40_s25 = ssub.s32 %s5994_s21, %s6217_s17 }
  0x4f   : > { %p50_p12 = scmp.ne.s32.totalorder %s5990_s20, %s5986_s19  ;;  %p41_p7 = scmp.eq.s32.totalorder %s40_s25, 0 }
  0x50   : > { %p51_p9 = scmp.eq.s32.totalorder %s5994_s21, 0  ;;  %p7907_p13 = scmp.eq.s32.totalorder %s6141_s22, 1 }
  0x51   : > { %p5517_p5 = scmp.lt.s32.totalorder %s5994_s21, 2  ;;  %s484_s16 = sand.u32 1, %s5990_s20  }
  0x52   : > { %5501 = dma.hbm_to_vmem [thread:$0]  (!%p6169_p11), %s7905_s11, 2048, %s462_s23, [#allocation12], %s7904_s30, %s7904_s30, %s6021_s15  }
  0x53   : > { %p6227_p0 = por %p7907_p13, %p50_p12  ;;  %p52_p10 = por %p51_p9, %p50_p12 }
  0x54   : > { %s6233_s27 = scalar_select %p41_p7, %s5990_s20, %s43_s29  }
  0x55   : > { %s7908_s28 = scalar_select %p6227_p0, 1, 0 }
  0x56   : > { %7910 = sst [smem:[#allocation25_spill]] %s6233_s27  ;;  %s5088_s18 = sshll.u32 %s484_s16, 5 }
  0x57   : > { %7909 = sst [smem:[#allocation24_spill]] %s7908_s28  ;;  %s5230_s15 = sshll.u32 %s5994_s21, 9 }
  0x58   : > { %s7911_s0 = sld [smem:[#allocation135_spill]]  ;;  %s488_s25 = scalar_lea.vmem [#allocation2], %s5088_s18 }
  0x59   : > { %s496_s5 = sshll.u32 %s488_s25, 4  ;;  %p6244_p11 = pnand %p5517_p5, %p52_p10  ;;  %s6242_s5 = int_to_ptr.vmem [resolvable:$true] %s496_s5 }
  0x5a   : > { %s6251_s27 = scalar_lea.hbm %s7804_s1, %s5230_s15  ;;  %s510_s23 = scalar_lea.vmem [#allocation5], %s5088_s18 }
  0x5b   : > { %s6253_s30 = sshll.u32 %s510_s23, 4  ;;  %s6255_s20 = scalar_lea.sflag [#allocation3], %s484_s16  ;;  %s6286_s30 = int_to_ptr.vmem [resolvable:$true] %s6253_s30 }
  0x5c   : > { %p5840_p2 = pneg %p6244_p11 }
  0x5e   : > { %s6240_s2 = scalar_lea.hbm %s7911_s0, %s5230_s15  ;;  %s5843_s11 = scalar_lea.hbm %s7911_s0, 1024 }
  0x5f   : > { %s5838_s17 = scalar_lea.hbm %s6240_s2, 512  ;;  %p5844_p12 = scmp.lt.s32.totalorder %s6240_s2, %s7911_s0 }
  0x60   : > { %p5839_p1 = scmp.ne.s32.totalorder %s6240_s2, %s5838_s17  ;;  %p5845_p7 = scmp.lt.s32.totalorder %s5843_s11, %s5838_s17 }
  0x62   : > { %p5841_p6 = pnand %p5840_p2, %p5839_p1  ;;  %p5846_p9 = por %p5845_p7, %p5844_p12 }
  0x64   : > { %p5842_p3 = pneg %p5841_p6 }
  0x66   : > { %p5847_p13 = pnand %p5846_p9, %p5842_p3 }
  0x68   : > { %5850 = shalt.err (!%p5847_p13)
}
  0x69   : > { %s5851_s18 = scalar_lea.vmem %s6242_s5, 512  ;;  %s6026_s28 = smov [#allocation2]  }
  0x6a   : > { %p5852_p5 = scmp.ne.s32.totalorder %s6242_s5, %s5851_s18  ;;  %s5856_s16 = sshll.u32 %s6026_s28, 4  ;;  %s5857_s16 = int_to_ptr.vmem [resolvable:$false] %s5856_s16 }
  0x6b   : > { %s5858_s23 = scalar_lea.vmem %s5857_s16, 1024  ;;  %p5859_p6 = scmp.lt.s32.totalorder %s6242_s5, %s5857_s16 }
  0x6c   : > { %p5854_p10 = pnand %p5852_p5, %p5840_p2  ;;  %p5860_p0 = scmp.lt.s32.totalorder %s5858_s23, %s5851_s18 }
  0x6e   : > { %p5855_p1 = pneg %p5854_p10  ;;  %p5861_p4 = por %p5860_p0, %p5859_p6 }
  0x70   : > { %p5862_p12 = pnand %p5861_p4, %p5855_p1 }
  0x72   : > { %5865 = shalt.err (!%p5862_p12)
}
  0x73   : > { %s7913_s17 = smov 8   ;;  %s7914_s25 = smov 128  }
  0x74   : > { %5505 = dma.hbm_to_vmem [thread:$0]  (!%p6244_p11), %s6240_s2, 512, %s6242_s5, %s6255_s20, %s7914_s25, %s7914_s25, %s7913_s17  }
  0x75   : > { %s506_s11 = sand.u32 1, %s5994_s21   ;;  %s5866_s15 = scalar_lea.hbm %s6251_s27, 512 }
  0x76   : > { %s507_s29 = scalar_lea.sflag [#allocation6], %s506_s11  ;;  %p5867_p4 = scmp.ne.s32.totalorder %s6251_s27, %s5866_s15 }
  0x77   : > { %s5871_s16 = scalar_lea.hbm %s7804_s1, 1024  ;;  %p5872_p7 = scmp.lt.s32.totalorder %s6251_s27, %s7804_s1 }
  0x78   : > { %p5869_p0 = pnand %p5867_p4, %p5840_p2  ;;  %p5873_p9 = scmp.lt.s32.totalorder %s5871_s16, %s5866_s15 }
  0x7a   : > { %p5870_p3 = pneg %p5869_p0  ;;  %p5874_p13 = por %p5873_p9, %p5872_p7 }
  0x7c   : > { %p5875_p5 = pnand %p5874_p13, %p5870_p3 }
  0x7e   : > { %5878 = shalt.err (!%p5875_p5)
}
  0x7f   : > { %s5879_s2 = scalar_lea.vmem %s6286_s30, 512  ;;  %s6027_s5 = smov [#allocation5]  }
  0x80   : > { %p5880_p10 = scmp.ne.s32.totalorder %s6286_s30, %s5879_s2  ;;  %s5884_s20 = sshll.u32 %s6027_s5, 4  ;;  %s5885_s20 = int_to_ptr.vmem [resolvable:$false] %s5884_s20 }
  0x81   : > { %s5886_s11 = scalar_lea.vmem %s5885_s20, 1024  ;;  %p5887_p12 = scmp.lt.s32.totalorder %s6286_s30, %s5885_s20 }
  0x82   : > { %p5882_p1 = pnand %p5880_p10, %p5840_p2  ;;  %p5888_p4 = scmp.lt.s32.totalorder %s5886_s11, %s5879_s2 }
  0x84   : > { %p5883_p6 = pneg %p5882_p1  ;;  %p5889_p0 = por %p5888_p4, %p5887_p12 }
  0x86   : > { %p5890_p7 = pnand %p5889_p0, %p5883_p6 }
  0x88   : > { %5893 = shalt.err (!%p5890_p7)
}
  0x89   : > { %5508 = dma.hbm_to_vmem [thread:$0]  (!%p6244_p11), %s6251_s27, 512, %s6286_s30, %s507_s29, %s7914_s25, %s7914_s25, %s7913_s17  }
  0x8a   : > { %530 = sbr.rel (%p6160_p8) target bundleno = 2860 (0xb2c), region = 80 }
  0x8f   : > { %s6317_s0 = sand.u32 1, %s5986_s19   ;;  %p7915_p2 = scmp.ne.s32.totalorder %s7896_s24, 0 }
  0x90   : > { %s6320_s15 = sshll.u32 %s6317_s0, 5  ;;  %s533_s18 = scalar_lea.sflag [#allocation3], %s6317_s0 }
  0x91   : > { %s536_s9 = scalar_lea.vmem [#allocation2], %s6320_s15 }
  0x92   : > { %5957 = dma.done.wait (%p7915_p2), %s533_s18, 512  }
  0x93   : > { %5959 = vsyncadd (%p7915_p2), %s533_s18, 4294966784  ;;  %s541_s26 = sand.u32 1, %s6141_s22   ;;  %s6330_s30 = scalar_lea.vmem [#allocation5], %s6320_s15 }
  0x94   : > { %s542_s27 = scalar_lea.sflag [#allocation6], %s541_s26 }
  0x95   : > { %5961 = dma.done.wait (%p7915_p2), %s542_s27, 512  }
  0x96   : > { %5963 = vsyncadd (%p7915_p2), %s542_s27, 4294966784  ;;  %p7916_p8 = scmp.eq.s32.totalorder %s6141_s22, 0 }
  0x98   : > { %5965 = dma.done.wait (%p7916_p8), [#allocation6], 3072   ;;  %p7917_p11 = pmov %p7916_p8 }
  0x99   : > { %p7918_p3 = pmov %p7916_p8 }
  0x9a   : > { %5967 = vsyncadd (%p7917_p11), [#allocation6], 4294964224 }
  0x9b   : > { %5969 = dma.done.wait (%p7918_p3), [#allocation9], 3072   ;;  %p7919_p9 = pmov %p7918_p3 }
  0x9c   : > { %p7920_p13 = pmov %p7918_p3 }
  0x9d   : > { %5971 = vsyncadd (%p7919_p9), [#allocation9], 4294964224 }
  0x9e   : > { %5973 = dma.done.wait (%p7920_p13), [#allocation12], 2048   ;;  %p7921_p5 = pmov %p7918_p3 }
  0x9f   : > { %v6028_v0 = vmov 0   ;;  %v6348_v1 = vld [vmem:[%s536_s9] sm:$0xff]   ;;  %v6350_v2 = vld [vmem:[%s536_s9 + $0x8] sm:$0xff]   ;;  %v6352_v3 = vld [vmem:[%s536_s9 + $0x10] sm:$0xff]   ;;  %s6666_s29 = smov 0  }
  0xa0   : > { %5975 = vsyncadd (%p7921_p5), [#allocation12], 4294965248  ;;  %855 = vmatprep.mubr.bf16.mxu0 %v6028_v0  ;;  %865 = vmatprep.mubr.bf16.mxu1 %v6028_v0  ;;  %v6354_v4 = vld [vmem:[%s536_s9 + $0x18] sm:$0xff]   ;;  %v6356_v5 = vld [vmem:[#allocation7 + $0x8] sm:$0xf] }
  0xa1   : > { %7922 = vst [vmem:[#allocation26_spill] sm:$0xff] %v6356_v5  ;;  %v6358_v6 = vld [vmem:[#allocation7 + $0x14] sm:$0xf]  ;;  %v6360_v7 = vld [vmem:[#allocation7 + $0x20] sm:$0xf]  ;;  %v6442_v42 = vld [vmem:[#allocation10 + $0x8] sm:$0xff] }
  0xa2   : > { %7923 = vst [vmem:[#allocation27_spill] sm:$0xff] %v6358_v6  ;;  %7924 = vst [vmem:[#allocation28_spill] sm:$0xff] %v6360_v7  ;;  %v6362_v8 = vld [vmem:[#allocation7 + $0x2c] sm:$0xf]  ;;  %v6364_v9 = vld [vmem:[#allocation7 + $0x38] sm:$0xf] }
  0xa3   : > { %7925 = vst [vmem:[#allocation29_spill] sm:$0xff] %v6362_v8  ;;  %7926 = vst [vmem:[#allocation30_spill] sm:$0xff] %v6364_v9  ;;  %v6366_v10 = vld [vmem:[#allocation7 + $0x44] sm:$0xf]  ;;  %v6368_v11 = vld [vmem:[#allocation7 + $0x50] sm:$0xf] }
  0xa4   : > { %7927 = vst [vmem:[#allocation31_spill] sm:$0xff] %v6366_v10  ;;  %7928 = vst [vmem:[#allocation32_spill] sm:$0xff] %v6368_v11  ;;  %v6370_v12 = vld [vmem:[#allocation7 + $0x5c] sm:$0xf]  ;;  %v6372_v13 = vld [vmem:[#allocation7 + $0x68] sm:$0xf] }
  0xa5   : > { %7929 = vst [vmem:[#allocation33_spill] sm:$0xff] %v6370_v12  ;;  %7930 = vst [vmem:[#allocation34_spill] sm:$0xff] %v6372_v13  ;;  %v6374_v14 = vld [vmem:[#allocation7 + $0x74] sm:$0xf]  ;;  %v6376_v15 = vld [vmem:[#allocation7 + $0x80] sm:$0xf] }
  0xa6   : > { %7931 = vst [vmem:[#allocation35_spill] sm:$0xff] %v6374_v14  ;;  %7932 = vst [vmem:[#allocation36_spill] sm:$0xff] %v6376_v15  ;;  %v6378_v16 = vld [vmem:[#allocation7 + $0x8c] sm:$0xf]  ;;  %v6380_v17 = vld [vmem:[#allocation7 + $0x98] sm:$0xf] }
  0xa7   : > { %7933 = vst [vmem:[#allocation37_spill] sm:$0xff] %v6378_v16  ;;  %7934 = vst [vmem:[#allocation38_spill] sm:$0xff] %v6380_v17  ;;  %v6382_v18 = vld [vmem:[#allocation7 + $0xa4] sm:$0xf]  ;;  %v6384_v19 = vld [vmem:[#allocation7 + $0xb0] sm:$0xf] }
  0xa8   : > { %7935 = vst [vmem:[#allocation39_spill] sm:$0xff] %v6382_v18  ;;  %7936 = vst [vmem:[#allocation40_spill] sm:$0xff] %v6384_v19  ;;  %v6386_v20 = vld [vmem:[#allocation7 + $0xbc] sm:$0xf]  ;;  %v6391_v21 = vld [vmem:[%s7807_s4] ss:$0 sm:$0xff] }
  0xa9   : > { %7937 = vst [vmem:[#allocation41_spill] sm:$0xff] %v6386_v20  ;;  %7938 = vst [vmem:[#allocation42_spill] sm:$0xff] %v6391_v21  ;;  %v6393_v22 = vld [vmem:[#allocation8] sm:$0xf]  ;;  %v6395_v23 = vld [vmem:[#allocation8 + $0x4] sm:$0xf] }
  0xaa   : > { %7939 = vst [vmem:[#allocation43_spill] sm:$0xff] %v6393_v22  ;;  %7940 = vst [vmem:[#allocation44_spill] sm:$0xff] %v6395_v23  ;;  %v6397_v24 = vld [vmem:[#allocation8 + $0x8] sm:$0xf]  ;;  %v6399_v25 = vld [vmem:[#allocation8 + $0xc] sm:$0xf] }
  0xab   : > { %7941 = vst [vmem:[#allocation45_spill] sm:$0xff] %v6397_v24  ;;  %7942 = vst [vmem:[#allocation46_spill] sm:$0xff] %v6399_v25  ;;  %v6401_v26 = vld [vmem:[#allocation8 + $0x10] sm:$0xf]  ;;  %v6403_v27 = vld [vmem:[#allocation8 + $0x14] sm:$0xf] }
  0xac   : > { %7943 = vst [vmem:[#allocation47_spill] sm:$0xff] %v6401_v26  ;;  %7944 = vst [vmem:[#allocation48_spill] sm:$0xff] %v6403_v27  ;;  %v6405_v28 = vld [vmem:[#allocation8 + $0x18] sm:$0xf]  ;;  %v6407_v29 = vld [vmem:[#allocation8 + $0x1c] sm:$0xf] }
  0xad   : > { %7945 = vst [vmem:[#allocation49_spill] sm:$0xff] %v6405_v28  ;;  %7946 = vst [vmem:[#allocation50_spill] sm:$0xff] %v6407_v29  ;;  %v6409_v30 = vld [vmem:[#allocation8 + $0x20] sm:$0xf]  ;;  %v6411_v31 = vld [vmem:[#allocation8 + $0x24] sm:$0xf] }
  0xae   : > { %v6413_v32 = vld [vmem:[#allocation8 + $0x28] sm:$0xf]  ;;  %v6415_v33 = vld [vmem:[#allocation8 + $0x2c] sm:$0xf]  ;;  %v6417_v34 = vld [vmem:[#allocation8 + $0x30] sm:$0xf] }
  0xaf   : > { %v6419_v35 = vld [vmem:[#allocation8 + $0x34] sm:$0xf]  ;;  %v6421_v36 = vld [vmem:[#allocation8 + $0x38] sm:$0xf]  ;;  %v6423_v37 = vld [vmem:[#allocation8 + $0x3c] sm:$0xf] }
  0xb0   : > { %v6428_v38 = vld [vmem:[%s7809_s6] ss:$0 sm:$0xff]  ;;  %7951 = vst [vmem:[#allocation55_spill] sm:$0xff] %v6442_v42  ;;  %v6444_v43 = vld [vmem:[#allocation10 + $0x10] sm:$0xff]  ;;  %v6446_v44 = vld [vmem:[#allocation10 + $0x18] sm:$0xff] }
  0xb1   : > { %7947 = vst [vmem:[#allocation51_spill] sm:$0xff] %v6428_v38  ;;  %v6433_v39 = vld [vmem:[%s7810_s7] ss:$0 sm:$0xff]  ;;  %7952 = vst [vmem:[#allocation56_spill] sm:$0xff] %v6444_v43  ;;  %v6450_v46 = vld [vmem:[#allocation10 + $0x28] sm:$0xff] }
  0xb2   : > { %7948 = vst [vmem:[#allocation52_spill] sm:$0xff] %v6433_v39  ;;  %v6438_v40 = vld [vmem:[%s7811_s8] ss:$0 sm:$0xff]  ;;  %7953 = vst [vmem:[#allocation57_spill] sm:$0xff] %v6446_v44  ;;  %v6452_v47 = vld [vmem:[#allocation10 + $0x30] sm:$0xff] }
  0xb3   : > { %7949 = vst [vmem:[#allocation53_spill] sm:$0xff] %v6438_v40  ;;  %v6440_v41 = vld [vmem:[#allocation10] sm:$0xff]  ;;  %7955 = vst [vmem:[#allocation59_spill] sm:$0xff] %v6450_v46  ;;  %v6454_v48 = vld [vmem:[#allocation10 + $0x38] sm:$0xff] }
  0xb4   : > { %7950 = vst [vmem:[#allocation54_spill] sm:$0xff] %v6440_v41  ;;  %v6448_v45 = vld [vmem:[#allocation10 + $0x20] sm:$0xff]  ;;  %7956 = vst [vmem:[#allocation60_spill] sm:$0xff] %v6452_v47  ;;  %v6458_v50 = vld [vmem:[#allocation10 + $0x48] sm:$0xff] }
  0xb5   : > { %7954 = vst [vmem:[#allocation58_spill] sm:$0xff] %v6448_v45  ;;  %7957 = vst [vmem:[#allocation61_spill] sm:$0xff] %v6454_v48  ;;  %v6456_v49 = vld [vmem:[#allocation10 + $0x40] sm:$0xff]  ;;  %v6460_v51 = vld [vmem:[#allocation10 + $0x50] sm:$0xff] }
  0xb6   : > { %7958 = vst [vmem:[#allocation62_spill] sm:$0xff] %v6456_v49  ;;  %7959 = vst [vmem:[#allocation63_spill] sm:$0xff] %v6458_v50  ;;  %v6462_v52 = vld [vmem:[#allocation10 + $0x58] sm:$0xff]  ;;  %v6464_v53 = vld [vmem:[#allocation10 + $0x60] sm:$0xff] }
  0xb7   : > { %7960 = vst [vmem:[#allocation64_spill] sm:$0xff] %v6460_v51  ;;  %7961 = vst [vmem:[#allocation65_spill] sm:$0xff] %v6462_v52  ;;  %v6466_v54 = vld [vmem:[#allocation10 + $0x68] sm:$0xff]  ;;  %v6468_v55 = vld [vmem:[#allocation10 + $0x70] sm:$0xff] }
  0xb8   : > { %7962 = vst [vmem:[#allocation66_spill] sm:$0xff] %v6464_v53  ;;  %7963 = vst [vmem:[#allocation67_spill] sm:$0xff] %v6466_v54  ;;  %v6470_v56 = vld [vmem:[#allocation10 + $0x78] sm:$0xff]  ;;  %v6475_v57 = vld [vmem:[%s7813_s10] sm:$0x3]  ;;  %v733_v53 = vlaneseq }
  0xb9   : > { %7964 = vst [vmem:[#allocation68_spill] sm:$0xff] %v6468_v55  ;;  %7965 = vst [vmem:[#allocation69_spill] sm:$0xff] %v6470_v56  ;;  %v6477_v58 = vld [vmem:[#allocation11] sm:$0xf]  ;;  %v6479_v59 = vld [vmem:[#allocation11 + $0x4] sm:$0xf] }
  0xba   : > { %7966 = vst [vmem:[#allocation70_spill] sm:$0xff] %v6475_v57  ;;  %7967 = vst [vmem:[#allocation71_spill] sm:$0xff] %v6477_v58  ;;  %v6481_v60 = vld [vmem:[#allocation11 + $0x8] sm:$0xf]  ;;  %v6483_v61 = vld [vmem:[#allocation11 + $0xc] sm:$0xf] }
  0xbb   : > { %7968 = vst [vmem:[#allocation72_spill] sm:$0xff] %v6479_v59  ;;  %7969 = vst [vmem:[#allocation73_spill] sm:$0xff] %v6481_v60  ;;  %v6485_v62 = vld [vmem:[#allocation11 + $0x10] sm:$0xf]  ;;  %v6487_v63 = vld [vmem:[#allocation11 + $0x14] sm:$0xf] }
  0xbc   : > { %7970 = vst [vmem:[#allocation74_spill] sm:$0xff] %v6483_v61  ;;  %7971 = vst [vmem:[#allocation75_spill] sm:$0xff] %v6485_v62  ;;  %v6489_v0 = vld [vmem:[#allocation11 + $0x18] sm:$0xf]  ;;  %v6491_v40 = vld [vmem:[#allocation11 + $0x1c] sm:$0xf] }
  0xbd   : > { %7972 = vst [vmem:[#allocation76_spill] sm:$0xff] %v6487_v63  ;;  %7973 = vst [vmem:[#allocation77_spill] sm:$0xff] %v6489_v0  ;;  %v6493_v39 = vld [vmem:[#allocation11 + $0x20] sm:$0xf]  ;;  %v6495_v41 = vld [vmem:[#allocation11 + $0x24] sm:$0xf] }
  0xbe   : > { %7974 = vst [vmem:[#allocation78_spill] sm:$0xff] %v6491_v40  ;;  %7975 = vst [vmem:[#allocation79_spill] sm:$0xff] %v6493_v39  ;;  %v6497_v57 = vld [vmem:[#allocation11 + $0x28] sm:$0xf]  ;;  %v6499_v58 = vld [vmem:[#allocation11 + $0x2c] sm:$0xf] }
  0xbf   : > { %7976 = vst [vmem:[#allocation80_spill] sm:$0xff] %v6495_v41  ;;  %7977 = vst [vmem:[#allocation81_spill] sm:$0xff] %v6497_v57  ;;  %v6501_v59 = vld [vmem:[#allocation11 + $0x30] sm:$0xf]  ;;  %v6503_v60 = vld [vmem:[#allocation11 + $0x34] sm:$0xf] }
  0xc0   : > { %7978 = vst [vmem:[#allocation82_spill] sm:$0xff] %v6499_v58  ;;  %7979 = vst [vmem:[#allocation83_spill] sm:$0xff] %v6501_v59  ;;  %v6505_v61 = vld [vmem:[#allocation11 + $0x38] sm:$0xf]  ;;  %v6507_v62 = vld [vmem:[#allocation11 + $0x3c] sm:$0xf] }
  0xc1   : > { %7980 = vst [vmem:[#allocation84_spill] sm:$0xff] %v6503_v60  ;;  %7981 = vst [vmem:[#allocation85_spill] sm:$0xff] %v6505_v61  ;;  %v6509_v63 = vld [vmem:[#allocation11 + $0x40] sm:$0xf]  ;;  %v6511_v0 = vld [vmem:[#allocation11 + $0x44] sm:$0xf] }
  0xc2   : > { %7982 = vst [vmem:[#allocation86_spill] sm:$0xff] %v6507_v62  ;;  %7983 = vst [vmem:[#allocation87_spill] sm:$0xff] %v6509_v63  ;;  %v6513_v40 = vld [vmem:[#allocation11 + $0x48] sm:$0xf]  ;;  %v6515_v39 = vld [vmem:[#allocation11 + $0x4c] sm:$0xf] }
  0xc3   : > { %7984 = vst [vmem:[#allocation88_spill] sm:$0xff] %v6511_v0  ;;  %7985 = vst [vmem:[#allocation89_spill] sm:$0xff] %v6513_v40  ;;  %v6517_v41 = vld [vmem:[#allocation11 + $0x50] sm:$0xf]  ;;  %v6519_v57 = vld [vmem:[#allocation11 + $0x54] sm:$0xf] }
  0xc4   : > { %7986 = vst [vmem:[#allocation90_spill] sm:$0xff] %v6515_v39  ;;  %7987 = vst [vmem:[#allocation91_spill] sm:$0xff] %v6517_v41  ;;  %v6521_v58 = vld [vmem:[#allocation11 + $0x58] sm:$0xf]  ;;  %v6523_v59 = vld [vmem:[#allocation11 + $0x5c] sm:$0xf] }
  0xc5   : > { %7988 = vst [vmem:[#allocation92_spill] sm:$0xff] %v6519_v57  ;;  %7989 = vst [vmem:[#allocation93_spill] sm:$0xff] %v6521_v58  ;;  %v6525_v60 = vld [vmem:[#allocation11 + $0x60] sm:$0xf]  ;;  %v6527_v61 = vld [vmem:[#allocation11 + $0x64] sm:$0xf] }
  0xc6   : > { %7990 = vst [vmem:[#allocation94_spill] sm:$0xff] %v6523_v59  ;;  %7991 = vst [vmem:[#allocation95_spill] sm:$0xff] %v6525_v60  ;;  %v6529_v62 = vld [vmem:[#allocation11 + $0x68] sm:$0xf]  ;;  %v6531_v63 = vld [vmem:[#allocation11 + $0x6c] sm:$0xf] }
  0xc7   : > { %7992 = vst [vmem:[#allocation96_spill] sm:$0xff] %v6527_v61  ;;  %7993 = vst [vmem:[#allocation97_spill] sm:$0xff] %v6529_v62  ;;  %v6533_v0 = vld [vmem:[#allocation11 + $0x70] sm:$0xf]  ;;  %v6535_v40 = vld [vmem:[#allocation11 + $0x74] sm:$0xf] }
  0xc8   : > { %7994 = vst [vmem:[#allocation98_spill] sm:$0xff] %v6531_v63  ;;  %7995 = vst [vmem:[#allocation99_spill] sm:$0xff] %v6533_v0  ;;  %v6537_v39 = vld [vmem:[#allocation11 + $0x78] sm:$0xf]  ;;  %v6539_v41 = vld [vmem:[#allocation11 + $0x7c] sm:$0xf] }
  0xc9   : > { %7996 = vst [vmem:[#allocation100_spill] sm:$0xff] %v6535_v40  ;;  %7997 = vst [vmem:[#allocation101_spill] sm:$0xff] %v6537_v39  ;;  %v6544_v57 = vld [vmem:[%s7815_s12] ss:$0 sm:$0xff]  ;;  %v6556_v60 = vld [vmem:[#allocation7 + $0xac] ss:$12 sps:$4 sm:$0xff]  }
  0xca   : > { %7998 = vst [vmem:[#allocation102_spill] sm:$0xff] %v6539_v41  ;;  %7999 = vst [vmem:[#allocation103_spill] sm:$0xff] %v6544_v57  ;;  %v6549_v58 = vld [vmem:[%s7816_s13] ss:$0 sm:$0xff]  ;;  %v6558_v61 = vld [vmem:[#allocation7 + $0xa8] ss:$12 sps:$4 sm:$0xff]   ;;  %823 = vmatprep.subr.bf16.mxu0 %v6556_v60  ;;  %5451 = vmatprep.subr.bf16.mxu1 %v6556_v60 }
  0xcb   : > { %8000 = vst [vmem:[#allocation104_spill] sm:$0xff] %v6549_v58  ;;  %v6554_v59 = vld [vmem:[%s7817_s14] ss:$0 sm:$0xff]  ;;  %8002 = vst [vmem:[#allocation106_spill] sm:$0xff] %v6556_v60  ;;  %824 = vmatpush1.bf16.msra.mxu0 %v6558_v61  ;;  %5459 = vmatpush1.bf16.msra.mxu1 %v6558_v61  ;;  %v6566_v58 = vld [vmem:[#allocation7 + $0x90] ss:$12 sps:$4 sm:$0xff]  }
  0xcc   : > { %8001 = vst [vmem:[#allocation105_spill] sm:$0xff] %v6554_v59  ;;  %8003 = vst [vmem:[#allocation107_spill] sm:$0xff] %v6558_v61  ;;  %v6560_v62 = vld [vmem:[#allocation7 + $0x94] ss:$12 sps:$4 sm:$0xff]   ;;  %v6570_v59 = vld [vmem:[#allocation7 + $0x7c] ss:$12 sps:$4 sm:$0xff]  }
  0xcd   : > { %8004 = vst [vmem:[#allocation108_spill] sm:$0xff] %v6560_v62  ;;  %8005 = vst [vmem:[#allocation109_spill] sm:$0xff] %v6566_v58  ;;  %825 = vmatprep.subr.bf16.mxu0 %v6560_v62  ;;  %5452 = vmatprep.subr.bf16.mxu1 %v6560_v62  ;;  %v6574_v57 = vld [vmem:[#allocation7 + $0x78] ss:$12 sps:$4 sm:$0xff]   ;;  %v6582_v0 = vld [vmem:[#allocation7 + $0x60] ss:$12 sps:$4 sm:$0xff]  }
  0xce   : > { %8006 = vst [vmem:[#allocation110_spill] sm:$0xff] %v6570_v59  ;;  %8007 = vst [vmem:[#allocation111_spill] sm:$0xff] %v6574_v57  ;;  %v6578_v63 = vld [vmem:[#allocation7 + $0x64] ss:$12 sps:$4 sm:$0xff]   ;;  %v6586_v40 = vld [vmem:[#allocation7 + $0x4c] ss:$12 sps:$4 sm:$0xff]  }
  0xcf   : > { %826 = vmatpush1.bf16.msra.mxu0 %v6566_v58  ;;  %5460 = vmatpush1.bf16.msra.mxu1 %v6566_v58  ;;  %8008 = vst [vmem:[#allocation112_spill] sm:$0xff] %v6578_v63  ;;  %8009 = vst [vmem:[#allocation113_spill] sm:$0xff] %v6582_v0  ;;  %v6590_v39 = vld [vmem:[#allocation7 + $0x48] ss:$12 sps:$4 sm:$0xff]   ;;  %v6598_v42 = vld [vmem:[#allocation7 + $0x30] ss:$12 sps:$4 sm:$0xff]  }
  0xd0   : > { %827 = vmatprep.subr.bf16.mxu0 %v6570_v59  ;;  %5453 = vmatprep.subr.bf16.mxu1 %v6570_v59  ;;  %8010 = vst [vmem:[#allocation114_spill] sm:$0xff] %v6586_v40  ;;  %8011 = vst [vmem:[#allocation115_spill] sm:$0xff] %v6590_v39  ;;  %v6594_v41 = vld [vmem:[#allocation7 + $0x34] ss:$12 sps:$4 sm:$0xff]   ;;  %v6602_v43 = vld [vmem:[#allocation7 + $0x1c] ss:$12 sps:$4 sm:$0xff]  }
  0xd1   : > { %8012 = vst [vmem:[#allocation116_spill] sm:$0xff] %v6594_v41  ;;  %8013 = vst [vmem:[#allocation117_spill] sm:$0xff] %v6598_v42  ;;  %v6606_v44 = vld [vmem:[#allocation7 + $0x18] ss:$12 sps:$4 sm:$0xff]   ;;  %v6612_v46 = vld [vmem:[#allocation7] ss:$12 sps:$4 sm:$0xff]  }
  0xd2   : > { %8014 = vst [vmem:[#allocation118_spill] sm:$0xff] %v6602_v43  ;;  %8015 = vst [vmem:[#allocation119_spill] sm:$0xff] %v6606_v44  ;;  %v6610_v45 = vld [vmem:[#allocation7 + $0x4] ss:$12 sps:$4 sm:$0xff]   ;;  %v622_v48 = vld [vmem:[%s6330_s30 + $0x8] sm:$0xff]  ;;  %v6624_v54 = vshrl.u32 %v733_v53, 7 }
  0xd3   : > { %828 = vmatpush1.bf16.msra.mxu0 %v6574_v57  ;;  %5461 = vmatpush1.bf16.msra.mxu1 %v6574_v57  ;;  %8016 = vst [vmem:[#allocation120_spill] sm:$0xff] %v6610_v45  ;;  %8017 = vst [vmem:[#allocation121_spill] sm:$0xff] %v6612_v46  ;;  %v621_v47 = vld [vmem:[%s6330_s30] sm:$0xff]  ;;  %v623_v49 = vld [vmem:[%s6330_s30 + $0x10] sm:$0xff] }
  0xd4   : > { %829 = vmatprep.subr.bf16.mxu0 %v6578_v63  ;;  %5454 = vmatprep.subr.bf16.mxu1 %v6578_v63  ;;  %v624_v50 = vld [vmem:[%s6330_s30 + $0x18] sm:$0xff]  ;;  %v625_v51 = vpack.c.bf16 %v622_v48, %v621_v47  ;;  %8018 = vst [vmem:[#allocation122_spill] sm:$0xff] %v6624_v54  ;;  %v7858_v55 = vsub.s32 0, %v6624_v54  ;;  %v659_v56 = vld [vmem:[%s7806_s3] sm:$0x3]  ;;  %v7859_v38 = vsub.s32 1, %v6624_v54 }
  0xd5   : > { %v626_v52 = vpack.c.bf16 %v624_v50, %v623_v49  ;;  %s6652_s30 = scalar_lea.vmem [#allocation13], %s6320_s15 }
  0xd6   : > { %v736_v47 = vrot.slane %v659_v56, %v7858_v55  ;;  %v740_v48 = vrot.slane %v659_v56, %v7859_v38 }
  0xd7   : > { %830 = vmatpush1.bf16.msra.mxu0 %v6582_v0  ;;  %5462 = vmatpush1.bf16.msra.mxu1 %v6582_v0 }
  0xd8   : > { %831 = vmatprep.subr.bf16.mxu0 %v6586_v40  ;;  %5455 = vmatprep.subr.bf16.mxu1 %v6586_v40 }
  0xdb   : > { %832 = vmatpush1.bf16.msra.mxu0 %v6590_v39  ;;  %5463 = vmatpush1.bf16.msra.mxu1 %v6590_v39 }
  0xdc   : > { %833 = vmatprep.subr.bf16.mxu0 %v6594_v41  ;;  %5456 = vmatprep.subr.bf16.mxu1 %v6594_v41 }
  0xdf   : > { %834 = vmatpush1.bf16.msra.mxu0 %v6598_v42  ;;  %5464 = vmatpush1.bf16.msra.mxu1 %v6598_v42 }
  0xe0   : > { %835 = vmatprep.subr.bf16.mxu0 %v6602_v43  ;;  %5457 = vmatprep.subr.bf16.mxu1 %v6602_v43 }
  0xe3   : > { %836 = vmatpush1.bf16.msra.mxu0 %v6606_v44  ;;  %5465 = vmatpush1.bf16.msra.mxu1 %v6606_v44 }
  0xe4   : > { %837 = vmatprep.subr.bf16.mxu0 %v6610_v45  ;;  %5458 = vmatprep.subr.bf16.mxu1 %v6610_v45 }
  0xe7   : > { %838 = vmatpush1.bf16.msra.mxu0 %v6612_v46  ;;  %5466 = vmatpush1.bf16.msra.mxu1 %v6612_v46 }
  0xea   : > { %856 = vmatmul.mubr.bf16.vlgmr.msra.gmra.mxu0 %v625_v51  ;;  %866 = vmatmul.mubr.bf16.vlgmr.msra.gmra.mxu1 %v626_v52 }
 0x1aa   : > { %v857_v49 = vpop.f32.mrf.mxu0  ;;  %v867_v50 = vpop.f32.mrf.mxu1 }
 0x1ab   : > { %v6635_v51 = vadd.f32 %v857_v49, %v736_v47  ;;  %v6637_v52 = vadd.f32 %v867_v50, %v736_v47 }
 0x1ac   : > { %v859_v53 = vpop.f32.mrf.mxu0  ;;  %v869_v22 = vpop.f32.mrf.mxu1 }
 0x1ad   : > { %8019 = vst [vmem:[#allocation123_spill] sm:$0xff] %v6635_v51  ;;  %8020 = vst [vmem:[#allocation124_spill] sm:$0xff] %v6637_v52  ;;  %v6639_v23 = vadd.f32 %v859_v53, %v740_v48  ;;  %v6641_v24 = vadd.f32 %v869_v22, %v740_v48 }
 0x1ae   : > { %v861_v25 = vpop.f32.mrf.mxu0  ;;  %v871_v26 = vpop.f32.mrf.mxu1 }
 0x1af   : > { %8021 = vst [vmem:[#allocation125_spill] sm:$0xff] %v6639_v23  ;;  %8022 = vst [vmem:[#allocation126_spill] sm:$0xff] %v6641_v24  ;;  %v6643_v27 = vadd.f32 %v861_v25, %v736_v47  ;;  %v6645_v55 = vadd.f32 %v871_v26, %v736_v47 }
 0x1b0   : > { %v863_v56 = vpop.f32.mrf.mxu0  ;;  %v873_v38 = vpop.f32.mrf.mxu1 }
 0x1b1   : > { %8023 = vst [vmem:[#allocation127_spill] sm:$0xff] %v6643_v27  ;;  %8024 = vst [vmem:[#allocation128_spill] sm:$0xff] %v6645_v55  ;;  %v6647_v28 = vadd.f32 %v863_v56, %v740_v48  ;;  %v6649_v49 = vadd.f32 %v873_v38, %v740_v48 }
 0x1b3   : > { %8025 = vst [vmem:[#allocation129_spill] sm:$0xff] %v6647_v28  ;;  %8026 = vst [vmem:[#allocation130_spill] sm:$0xff] %v6649_v49 }
 0x1b4 LB: >> { %v8027_v54 = vld [vmem:[#allocation122_spill] sm:$0xff]  ;;  %8029 = vst [vmem:[#allocation131_spill] sm:$0xff] %v5998_v4  ;;  %8030 = vst [vmem:[#allocation132_spill] sm:$0xff] %v6002_v3  ;;  %v8034_v61 = vld [vmem:[#allocation107_spill] sm:$0xff]  ;;  %v7860_v22 = vmov 0   ;;  %v886_v25 = vpack.c.bf16 %v6006_v2, %v6010_v1  ;;  %s6030_s15 = smov 96   ;;  %v6002_v3 = vphi %v6352_v3, %v8151_v3   ;;  %v5998_v4 = vphi %v6354_v4, %v8150_v4   ;;  %s6014_s29 = sphi %s6666_s29, %s881_s29   ;;  %v6010_v1 = vphi %v6348_v1, %v8153_v1   ;;  %v6006_v2 = vphi %v6350_v2, %v8152_v2  }
 0x1b5   : >> { %v8028_v21 = vld [vmem:[#allocation42_spill] sm:$0xff]  ;;  %8031 = vst [vmem:[#allocation133_spill] sm:$0xff] %v6006_v2  ;;  %8032 = vst [vmem:[#allocation134_spill] sm:$0xff] %v6010_v1  ;;  %968 = vmatprep.mubr.bf16.mxu0 %v7860_v22  ;;  %v8035_v62 = vld [vmem:[#allocation108_spill] sm:$0xff]  ;;  %s6031_s28 = smov 64   ;;  %s6032_s16 = smov 32  }
 0x1b6   : >> { %v8033_v60 = vld [vmem:[#allocation106_spill] sm:$0xff]  ;;  %v8036_v20 = vld [vmem:[#allocation41_spill] sm:$0xff]  ;;  %v8037_v19 = vld [vmem:[#allocation40_spill] sm:$0xff]  ;;  %5331 = vmatprep.mubr.bf16.mxu1 %v886_v25  ;;  %vm6034_vm0 = vmmov 0   ;;  %vm2832_vm1 = vcmask 261120   ;;  %vm3209_vm2 = vcmask 130048  }
 0x1b7   : >> { %936 = vmatprep.subr.bf16.mxu0 %v8033_v60  ;;  %v5127_v26 = vcombine.low %v8037_v19, %v8036_v20  ;;  %v8038_v18 = vld [vmem:[#allocation39_spill] sm:$0xff]  ;;  %v8039_v17 = vld [vmem:[#allocation38_spill] sm:$0xff]  ;;  %v8040_v58 = vld [vmem:[#allocation109_spill] sm:$0xff]  ;;  %vm4350_vm3 = vcmask 523264   ;;  %vm4355_vm4 = vcmask 785408   ;;  %s881_s29 = sadd.s32 1, %s6014_s29  }
 0x1b8   : >> { %937 = vmatpush1.bf16.msra.mxu0 %v8034_v61  ;;  %v5126_v38 = vcombine.low %v8039_v17, %v8038_v18  ;;  %v8041_v59 = vld [vmem:[#allocation110_spill] sm:$0xff]  ;;  %v8042_v16 = vld [vmem:[#allocation37_spill] sm:$0xff]  ;;  %v8043_v15 = vld [vmem:[#allocation36_spill] sm:$0xff]  ;;  %p878_p10 = scmp.ge.s32.totalorder %s881_s29, 2  }
 0x1b9   : >> { %938 = vmatprep.subr.bf16.mxu0 %v8035_v62  ;;  %5315 = vmatprep.subr.bf16.mxu1 %v5127_v26  ;;  %v5125_v47 = vcombine.low %v8043_v15, %v8042_v16  ;;  %v8044_v57 = vld [vmem:[#allocation111_spill] sm:$0xff]  ;;  %v8045_v63 = vld [vmem:[#allocation112_spill] sm:$0xff]  ;;  %v8047_v13 = vld [vmem:[#allocation34_spill] sm:$0xff]  ;;  %s8154_s23 = sld [smem:[#allocation24_spill]] (%p878_p10)  ;;  %s5234_s2 = sshll.u32 (%p878_p10), %s6141_s22, 9 }
 0x1ba   : >> { %5316 = vmatpush3.bf16.msra.mxu1 %v5127_v26  ;;  %v8046_v14 = vld [vmem:[#allocation35_spill] sm:$0xff]  ;;  %v8048_v0 = vld [vmem:[#allocation113_spill] sm:$0xff]  ;;  %v8049_v40 = vld [vmem:[#allocation114_spill] sm:$0xff]  ;;  %s8155_s11 = sld [smem:[#allocation140_spill]] (%p878_p10)  ;;  %s4930_s9 = sshll.u32 (%p878_p10), %s6652_s30, 4  ;;  %s7760_s9 = int_to_ptr.vmem [resolvable:$true] %s4930_s9 }
 0x1bb   : >> { %5317 = vmatprep.subr.bf16.mxu1 %v5126_v38  ;;  %v5124_v48 = vcombine.low %v8047_v13, %v8046_v14  ;;  %v8050_v12 = vld [vmem:[#allocation33_spill] sm:$0xff]  ;;  %v8051_v11 = vld [vmem:[#allocation32_spill] sm:$0xff]  ;;  %v8052_v39 = vld [vmem:[#allocation115_spill] sm:$0xff]  ;;  %s4916_s26 = scalar_lea.sflag (%p878_p10), [#allocation4], %s6317_s0  ;;  %s5894_s27 = scalar_lea.vmem (%p878_p10), %s7760_s9, 512 }
 0x1bc   : >> { %939 = vmatpush1.bf16.msra.mxu0 %v8040_v58  ;;  %v5123_v50 = vcombine.low %v8051_v11, %v8050_v12  ;;  %v8053_v41 = vld [vmem:[#allocation116_spill] sm:$0xff]  ;;  %v8054_v10 = vld [vmem:[#allocation31_spill] sm:$0xff]  ;;  %v8055_v9 = vld [vmem:[#allocation30_spill] sm:$0xff]  ;;  %v6036_v12 = vmov 1934713408   ;;  %p5895_p1 = scmp.ne.s32.totalorder (%p878_p10), %s7760_s9, %s5894_s27  ;;  %s6037_s24 = smov (%p878_p10), [#allocation13]  }
 0x1bd   : >> { %940 = vmatprep.subr.bf16.mxu0 %v8041_v59  ;;  %v5122_v53 = vcombine.low %v8055_v9, %v8054_v10  ;;  %v8056_v42 = vld [vmem:[#allocation117_spill] sm:$0xff]  ;;  %v8057_v43 = vld [vmem:[#allocation118_spill] sm:$0xff]  ;;  %v8059_v7 = vld [vmem:[#allocation28_spill] sm:$0xff]  ;;  %s5898_s17 = sshll.u32 (%p878_p10), %s6037_s24, 4  ;;  %s5899_s17 = int_to_ptr.vmem [resolvable:$false] %s5898_s17 }
 0x1be   : >> { %5318 = vmatpush3.bf16.msra.mxu1 %v5126_v38  ;;  %v8058_v8 = vld [vmem:[#allocation29_spill] sm:$0xff]  ;;  %v8060_v44 = vld [vmem:[#allocation119_spill] sm:$0xff]  ;;  %v8061_v45 = vld [vmem:[#allocation120_spill] sm:$0xff]  ;;  %v887_v38 = vpack.c.bf16 %v5998_v4, %v6002_v3  ;;  %s5900_s22 = scalar_lea.vmem (%p878_p10), %s5899_s17, 1024  ;;  %p5901_p0 = scmp.lt.s32.totalorder (%p878_p10), %s7760_s9, %s5899_s17 }
 0x1bf   : >> { %5319 = vmatprep.subr.bf16.mxu1 %v5125_v47  ;;  %v5121_v56 = vcombine.low %v8059_v7, %v8058_v8  ;;  %v8062_v6 = vld [vmem:[#allocation27_spill] sm:$0xff]  ;;  %v8063_v5 = vld [vmem:[#allocation26_spill] sm:$0xff]  ;;  %v8064_v46 = vld [vmem:[#allocation121_spill] sm:$0xff]  ;;  %p8156_p6 = scmp.ne.s32.totalorder (%p878_p10), %s8154_s23, 0  ;;  %p5902_p7 = scmp.lt.s32.totalorder (%p878_p10), %s5900_s22, %s5894_s27 }
 0x1c0   : >> { %941 = vmatpush1.bf16.msra.mxu0 %v8044_v57  ;;  %v5120_v26 = vcombine.low %v8063_v5, %v8062_v6  ;;  %v8065_v51 = vld [vmem:[#allocation123_spill] sm:$0xff]  ;;  %v8066_v23 = vld [vmem:[#allocation125_spill] sm:$0xff]  ;;  %v8069_v52 = vld [vmem:[#allocation124_spill] sm:$0xff]  ;;  %v7863_v6 = vmov 0.0   ;;  %s7757_s18 = scalar_lea.hbm (%p878_p10), %s8155_s11, %s5234_s2 }
 0x1c1   : >> { %942 = vmatprep.subr.bf16.mxu0 %v8045_v63  ;;  %v8067_v27 = vld [vmem:[#allocation127_spill] sm:$0xff]  ;;  %v8068_v28 = vld [vmem:[#allocation129_spill] sm:$0xff]  ;;  %v8070_v55 = vld [vmem:[#allocation128_spill] sm:$0xff]  ;;  %p5896_p12 = pnand (%p878_p10), %p5895_p1, %p8156_p6  ;;  %p5903_p2 = por (%p878_p10), %p5902_p7, %p5901_p0 }
 0x1c2   : >> { %5320 = vmatpush3.bf16.msra.mxu1 %v5125_v47  ;;  %v8071_v24 = vld [vmem:[#allocation126_spill] sm:$0xff] }
 0x1c3   : >> { %5321 = vmatprep.subr.bf16.mxu1 %v5124_v48  ;;  %v8072_v49 = vld [vmem:[#allocation130_spill] sm:$0xff]  ;;  %p5897_p4 = pneg (%p878_p10), %p5896_p12 }
 0x1c4   : >> { %943 = vmatpush1.bf16.msra.mxu0 %v8048_v0 }
 0x1c5   : >> { %944 = vmatprep.subr.bf16.mxu0 %v8049_v40  ;;  %p5904_p8 = pnand (%p878_p10), %p5903_p2, %p5897_p4 }
 0x1c6   : >> { %5322 = vmatpush3.bf16.msra.mxu1 %v5124_v48 }
 0x1c7   : >> { %5323 = vmatprep.subr.bf16.mxu1 %v5123_v50 }
 0x1c8   : >> { %945 = vmatpush1.bf16.msra.mxu0 %v8052_v39 }
 0x1c9   : >> { %946 = vmatprep.subr.bf16.mxu0 %v8053_v41 }
 0x1ca   : >> { %5324 = vmatpush3.bf16.msra.mxu1 %v5123_v50 }
 0x1cb   : >> { %5325 = vmatprep.subr.bf16.mxu1 %v5122_v53 }
 0x1cc   : >> { %947 = vmatpush1.bf16.msra.mxu0 %v8056_v42 }
 0x1cd   : >> { %948 = vmatprep.subr.bf16.mxu0 %v8057_v43 }
 0x1ce   : >> { %5326 = vmatpush3.bf16.msra.mxu1 %v5122_v53 }
 0x1cf   : >> { %5327 = vmatprep.subr.bf16.mxu1 %v5121_v56 }
 0x1d0   : >> { %949 = vmatpush1.bf16.msra.mxu0 %v8060_v44 }
 0x1d1   : >> { %950 = vmatprep.subr.bf16.mxu0 %v8061_v45 }
 0x1d2   : >> { %5328 = vmatpush3.bf16.msra.mxu1 %v5121_v56 }
 0x1d3   : >> { %5329 = vmatprep.subr.bf16.mxu1 %v5120_v26 }
 0x1d4   : >> { %951 = vmatpush1.bf16.msra.mxu0 %v8064_v46 }
 0x1d5   : >> { %5335 = vmatprep.subr.bf16.mxu0 %v7863_v6 }
 0x1d6   : >> { %5330 = vmatpush3.bf16.msra.mxu1 %v5120_v26 }
 0x1d7   : >> { %969 = vmatmul.mubr.bf16.vlgmr.msra.gmra.mxu0 %v886_v25  ;;  %5347 = vmatprep.subr.bf16.mxu1 %v7863_v6 }
 0x1d8   : >> { %978 = vmatprep.mubr.bf16.mxu0 %v7860_v22 }
 0x1d9   : >> { %5332 = vmatmul.mubr.bf16.vlgmr.msra.gmra.mxu1 %v887_v38 }
 0x1da   : >> { %5349 = vmatprep.mubr.msk.bf16.mxu1 %vm6034_vm0, %v7863_v6 }
 0x1df   : >> { %979 = vmatmul.mubr.bf16.gmra.mxu0 %v887_v38 }
 0x1e0   : >> { %5337 = vmatprep.mubr.msk.bf16.mxu0 %vm6034_vm0, %v7863_v6 }
 0x297   : >> { %v970_v47 = vpop.f32.mrf.mxu0 }
 0x298   : >> { %v6722_v48 = vadd.f32 %v970_v47, %v8065_v51 }
 0x299   : >> { %v972_v50 = vpop.f32.mrf.mxu0 }
 0x29a   : >> { %v6725_v53 = vadd.f32 %v972_v50, %v8066_v23  ;;  %1046 = vrot.lane.b32.xlu0 %v6722_v48, %s6030_s15 }
 0x29b   : >> { %v974_v25 = vpop.f32.mrf.mxu0 }
 0x29c   : >> { %1654 = vrot.lane.b32.xlu1 %v6725_v53, %s6031_s28  ;;  %v6732_v56 = vadd.f32 %v974_v25, %v8067_v27 }
 0x29d   : >> { %v976_v26 = vpop.f32.mrf.mxu0 }
 0x29e   : >> { %1642 = vrot.lane.b32.xlu0 %v6725_v53, %s6030_s15  ;;  %v6739_v38 = vadd.f32 %v976_v26, %v8068_v28 }
 0x29f   : >> { %v980_v47 = vpop.f32.mrf.mxu0 }
 0x2a0   : >> { %1048 = vrot.lane.b32.xlu1 %v6732_v56, %s6030_s15  ;;  %v6756_v26 = vadd.f32 %v980_v47, %v8069_v52 }
 0x2a1   : >> { %v982_v50 = vpop.f32.mrf.mxu0 }
 0x2a2   : >> { %1666 = vrot.lane.b32.xlu0 %v6725_v53, %s6032_s16  ;;  %v6766_v5 = vadd.f32 %v982_v50, %v8071_v24 }
 0x2a3   : >> { %v984_v25 = vpop.f32.mrf.mxu0 }
 0x2a4   : >> { %1656 = vrot.lane.b32.xlu1 %v6739_v38, %s6031_s28  ;;  %v6761_v22 = vadd.f32 %v984_v25, %v8070_v55 }
 0x2a5   : >> { %v986_v0 = vpop.f32.mrf.mxu0 }
 0x2a6   : >> { %1644 = vrot.lane.b32.xlu0 %v6739_v38, %s6030_s15  ;;  %v6773_v47 = vadd.f32 %v986_v0, %v8072_v49  ;;  %v5333_v0 = vpop.f32.mrf.mxu1 }
 0x2a8   : >> { %1668 = vrot.lane.b32.xlu1 %v6739_v38, %s6032_s16  ;;  %v1023_v50 = vpop.f32.mrf.mxu1 }
 0x2a9   : >> { %v6800_v25 = vadd.f32 %v8028_v21, %v1023_v50  ;;  %v6814_v50 = vadd.f32 %v5333_v0, %v8028_v21 }
 0x2aa   : >> { %1058 = vrot.lane.b32.xlu0 %v6722_v48, %s6031_s28  ;;  %v5334_v7 = vpop.f32.mrf.mxu1 }
 0x2ab   : >> { %v6821_v6 = vadd.f32 %v5334_v7, %v8028_v21  ;;  %v1117_v7 = vunpack.c.l.s4 %v6036_v12 }
 0x2ac   : >> { %1060 = vrot.lane.b32.xlu1 %v6732_v56, %s6031_s28  ;;  %v1026_v8 = vpop.f32.mrf.mxu1 }
 0x2ad   : >> { %v6807_v9 = vadd.f32 %v8028_v21, %v1026_v8  ;;  %v6035_v8 = vmov 1983009808   ;;  %v1118_v16 = vunpack.c.0.s8 %v1117_v7 }
 0x2ae   : >> { %1070 = vrot.lane.b32.xlu0 %v6722_v48, %s6032_s16  ;;  %v1085_v0 = vunpack.c.l.s4 %v6035_v8 }
 0x2af   : >> { %v6841_v23 = vsub.s32 %v1118_v16, %v8027_v54 }
 0x2b0   : >> { %1072 = vrot.lane.b32.xlu1 %v6732_v56, %s6032_s16  ;;  %v1086_v13 = vunpack.c.0.s8 %v1085_v0 }
 0x2b2   : >> { %1050 = vrot.lane.b32.xlu0 %v6756_v26, %s6030_s15  ;;  %v6836_v17 = vsub.s32 %v1086_v13, %v8027_v54 }
 0x2b4   : >> { %1052 = vrot.lane.b32.xlu1 %v6761_v22, %s6030_s15 }
 0x2b6   : >> { %1646 = vrot.lane.b32.xlu0 %v6766_v5, %s6030_s15 }
 0x2b8   : >> { %1648 = vrot.lane.b32.xlu1 %v6773_v47, %s6030_s15 }
 0x2ba   : >> { %1658 = vrot.lane.b32.xlu0 %v6766_v5, %s6031_s28 }
 0x2bc   : >> { %1660 = vrot.lane.b32.xlu1 %v6773_v47, %s6031_s28 }
 0x2be   : >> { %1670 = vrot.lane.b32.xlu0 %v6766_v5, %s6032_s16 }
 0x2c0   : >> { %1672 = vrot.lane.b32.xlu1 %v6773_v47, %s6032_s16 }
 0x2c2   : >> { %1062 = vrot.lane.b32.xlu0 %v6756_v26, %s6031_s28 }
 0x2c4   : >> { %1064 = vrot.lane.b32.xlu1 %v6761_v22, %s6031_s28 }
 0x2c6   : >> { %1074 = vrot.lane.b32.xlu0 %v6756_v26, %s6032_s16 }
 0x2c8   : >> { %1076 = vrot.lane.b32.xlu1 %v6761_v22, %s6032_s16 }
 0x2ca   : >> { %2246 = vrot.lane.b32.xlu0 %v6807_v9, %s6030_s15 }
 0x2cc   : >> { %2244 = vrot.lane.b32.xlu1 %v6800_v25, %s6030_s15 }
 0x2ce   : >> { %2268 = vrot.lane.b32.xlu0 %v6800_v25, %s6032_s16 }
 0x2d0   : >> { %2256 = vrot.lane.b32.xlu1 %v6800_v25, %s6031_s28 }
 0x2d2   : >> { %2250 = vrot.lane.b32.xlu0 %v6821_v6, %s6030_s15 }
 0x2d4   : >> { %2258 = vrot.lane.b32.xlu1 %v6807_v9, %s6031_s28 }
 0x2d8   : >> { %2270 = vrot.lane.b32.xlu1 %v6807_v9, %s6032_s16 }
 0x2dc   : >> { %2248 = vrot.lane.b32.xlu1 %v6814_v50, %s6030_s15 }
 0x2e0   : >> { %2260 = vrot.lane.b32.xlu1 %v6814_v50, %s6031_s28 }
 0x2e4   : >> { %2262 = vrot.lane.b32.xlu1 %v6821_v6, %s6031_s28 }
 0x30c   : >> { %v6831_v10 = vpop.permute.xlu0 %1046 }
 0x30e   : >> { %v1655_v11 = vpop.permute.xlu1 %1654 }
 0x30f   : >> { %v1678_v18 = vcombine.low %v6725_v53, %v1655_v11  ;;  %v1679_v19 = vcombine.high %v6725_v53, %v1655_v11 }
 0x310   : >> { %v1643_v14 = vpop.permute.xlu0 %1642 }
 0x311   : >> { %v1686_v12 = vrot.slane %v1678_v18, %v6836_v17  ;;  %v1693_v0 = vrot.slane %v1679_v19, %v6836_v17 }
 0x312   : >> { %v6833_v15 = vpop.permute.xlu1 %1048 }
 0x314   : >> { %v1667_v20 = vpop.permute.xlu0 %1666 }
 0x315   : >> { %v1694_v21 = vcombine.low %v1643_v14, %v1667_v20  ;;  %v1695_v8 = vcombine.high %v1643_v14, %v1667_v20 }
 0x316   : >> { %v1657_v24 = vpop.permute.xlu1 %1656 }
 0x317   : >> { %v1702_v7 = vrot.slane %v1694_v21, %v6836_v17  ;;  %v1709_v13 = vrot.slane %v1695_v8, %v6836_v17  ;;  %v1746_v53 = vcombine.low %v6739_v38, %v1657_v24  ;;  %v1747_v14 = vcombine.high %v6739_v38, %v1657_v24 }
 0x318   : >> { %v1645_v27 = vpop.permute.xlu0 %1644 }
 0x319   : >> { %v1710_v28 = vcombine.low %v1686_v12, %v1702_v7  ;;  %v1711_v39 = vcombine.high %v1686_v12, %v1702_v7  ;;  %v1726_v40 = vcombine.low %v1693_v0, %v1709_v13  ;;  %v1727_v11 = vcombine.high %v1693_v0, %v1709_v13 }
 0x31a   : >> { %v1669_v16 = vpop.permute.xlu1 %1668  ;;  %v1754_v0 = vrot.slane %v1746_v53, %v6836_v17  ;;  %v1761_v7 = vrot.slane %v1747_v14, %v6836_v17 }
 0x31b   : >> { %v1718_v20 = vrot.slane %v1710_v28, %v6841_v23  ;;  %v1725_v18 = vrot.slane %v1711_v39, %v6841_v23  ;;  %v1734_v19 = vrot.slane %v1726_v40, %v6841_v23  ;;  %v1741_v21 = vrot.slane %v1727_v11, %v6841_v23 }
 0x31c   : >> { %v1762_v41 = vcombine.low %v1645_v27, %v1669_v16  ;;  %v1763_v8 = vcombine.high %v1645_v27, %v1669_v16  ;;  %v1059_v42 = vpop.permute.xlu0 %1058 }
 0x31d   : >> { %v1950_v43 = vcombine.low %v1718_v20, %v1725_v18  ;;  %v5136_v12 = vcombine.high %v1718_v20, %v1725_v18  ;;  %v1966_v13 = vcombine.low %v1734_v19, %v1741_v21  ;;  %v5137_v39 = vcombine.high %v1734_v19, %v1741_v21 }
 0x31e   : >> { %v1770_v24 = vrot.slane %v1762_v41, %v6836_v17  ;;  %v1777_v38 = vrot.slane %v1763_v8, %v6836_v17  ;;  %v1061_v28 = vpop.permute.xlu1 %1060  ;;  %v1082_v40 = vcombine.low %v6722_v48, %v1059_v42  ;;  %v1083_v11 = vcombine.high %v6722_v48, %v1059_v42 }
 0x31f   : >> { %v6860_v53 = vrot.slane %v1950_v43, %v6836_v17  ;;  %v6863_v14 = vrot.slane %v5136_v12, %v6836_v17  ;;  %v1150_v19 = vcombine.low %v6732_v56, %v1061_v28  ;;  %v1151_v42 = vcombine.high %v6732_v56, %v1061_v28 }
 0x320   : >> { %v1778_v44 = vcombine.low %v1754_v0, %v1770_v24  ;;  %v1779_v27 = vcombine.high %v1754_v0, %v1770_v24  ;;  %v1794_v16 = vcombine.low %v1761_v7, %v1777_v38  ;;  %v1795_v45 = vcombine.high %v1761_v7, %v1777_v38  ;;  %v1071_v20 = vpop.permute.xlu0 %1070 }
 0x321   : >> { %v6874_v21 = vrot.slane %v1966_v13, %v6836_v17  ;;  %v6877_v43 = vrot.slane %v5137_v39, %v6836_v17  ;;  %v1098_v8 = vcombine.low %v6831_v10, %v1071_v20  ;;  %v1099_v12 = vcombine.high %v6831_v10, %v1071_v20 }
 0x322   : >> { %v6866_v41 = vrot.slane %v1778_v44, %v6841_v23  ;;  %v6869_v18 = vrot.slane %v1779_v27, %v6841_v23  ;;  %v1073_v48 = vpop.permute.xlu1 %1072  ;;  %v1802_v44 = vrot.slane %v1794_v16, %v6841_v23  ;;  %v1809_v0 = vrot.slane %v1795_v45, %v6841_v23 }
 0x323   : >> { %v1090_v7 = vrot.slane %v1082_v40, %v6836_v17  ;;  %v1097_v24 = vrot.slane %v1083_v11, %v6836_v17  ;;  %v1106_v38 = vrot.slane %v1098_v8, %v6836_v17  ;;  %v1113_v28 = vrot.slane %v1099_v12, %v6836_v17 }
 0x324   : >> { %v6885_v56 = vpop.permute.xlu0 %1050  ;;  %v1166_v13 = vcombine.low %v6833_v15, %v1073_v48  ;;  %v1167_v39 = vcombine.high %v6833_v15, %v1073_v48  ;;  %v2018_v10 = vcombine.low %v6866_v41, %v6869_v18  ;;  %v5138_v45 = vcombine.high %v6866_v41, %v6869_v18 }
 0x325   : >> { %v1158_v40 = vrot.slane %v1150_v19, %v6836_v17  ;;  %v1165_v11 = vrot.slane %v1151_v42, %v6836_v17  ;;  %v1114_v16 = vcombine.low %v1090_v7, %v1106_v38  ;;  %v1115_v20 = vcombine.high %v1090_v7, %v1106_v38 }
 0x326   : >> { %v6897_v27 = vpop.permute.xlu1 %1052  ;;  %v1130_v8 = vcombine.low %v1097_v24, %v1113_v28  ;;  %v1131_v12 = vcombine.high %v1097_v24, %v1113_v28  ;;  %v2034_v46 = vcombine.low %v1802_v44, %v1809_v0  ;;  %v5139_v49 = vcombine.high %v1802_v44, %v1809_v0 }
 0x327   : >> { %v1174_v15 = vrot.slane %v1166_v13, %v6836_v17  ;;  %v1181_v48 = vrot.slane %v1167_v39, %v6836_v17  ;;  %v1122_v51 = vrot.slane %v1114_v16, %v6841_v23  ;;  %v1129_v41 = vrot.slane %v1115_v20, %v6841_v23 }
 0x328   : >> { %v1138_v18 = vrot.slane %v1130_v8, %v6841_v23  ;;  %v1145_v19 = vrot.slane %v1131_v12, %v6841_v23  ;;  %v6905_v38 = vpop.permute.xlu0 %1646 }
 0x329   : >> { %v1182_v42 = vcombine.low %v1158_v40, %v1174_v15  ;;  %v1183_v52 = vcombine.high %v1158_v40, %v1174_v15  ;;  %v1198_v55 = vcombine.low %v1165_v11, %v1181_v48  ;;  %v1199_v7 = vcombine.high %v1165_v11, %v1181_v48 }
 0x32a   : >> { %v6907_v24 = vpop.permute.xlu1 %1648  ;;  %v1354_v44 = vcombine.low %v1122_v51, %v1129_v41  ;;  %v5128_v0 = vcombine.high %v1122_v51, %v1129_v41  ;;  %v1370_v28 = vcombine.low %v1138_v18, %v1145_v19  ;;  %v5129_v13 = vcombine.high %v1138_v18, %v1145_v19 }
 0x32b   : >> { %v1190_v39 = vrot.slane %v1182_v42, %v6841_v23  ;;  %v1197_v16 = vrot.slane %v1183_v52, %v6841_v23  ;;  %v1206_v20 = vrot.slane %v1198_v55, %v6841_v23  ;;  %v1213_v8 = vrot.slane %v1199_v7, %v6841_v23 }
 0x32c   : >> { %v1361_v40 = vrot.slane %v1354_v44, %v6836_v17  ;;  %v1369_v11 = vrot.slane %v5128_v0, %v6836_v17  ;;  %v6916_v12 = vrot.slane %v1370_v28, %v6836_v17  ;;  %v6919_v15 = vrot.slane %v5129_v13, %v6836_v17  ;;  %v1659_v13 = vpop.permute.xlu0 %1658 }
 0x32d   : >> { %v1422_v51 = vcombine.low %v1190_v39, %v1197_v16  ;;  %v5130_v48 = vcombine.high %v1190_v39, %v1197_v16  ;;  %v1438_v41 = vcombine.low %v1206_v20, %v1213_v8  ;;  %v5131_v18 = vcombine.high %v1206_v20, %v1213_v8 }
 0x32e   : >> { %v2025_v52 = vrot.slane %v2018_v10, %v6836_v17  ;;  %v1386_v19 = vcombine.low %v1361_v40, %v1369_v11  ;;  %v1387_v55 = vcombine.high %v1361_v40, %v1369_v11  ;;  %v1402_v42 = vcombine.low %v6916_v12, %v6919_v15  ;;  %v1661_v39 = vpop.permute.xlu1 %1660 }
 0x32f   : >> { %v6925_v7 = vrot.slane %v1422_v51, %v6836_v17  ;;  %v6928_v44 = vrot.slane %v5130_v48, %v6836_v17  ;;  %v6931_v0 = vrot.slane %v1438_v41, %v6836_v17  ;;  %v6934_v28 = vrot.slane %v5131_v18, %v6836_v17 }
 0x330   : >> { %v2033_v10 = vrot.slane %v5138_v45, %v6836_v17  ;;  %v2041_v16 = vrot.slane %v2034_v46, %v6836_v17  ;;  %v2049_v20 = vrot.slane %v5139_v49, %v6836_v17  ;;  %v1982_v8 = vcombine.low %v6860_v53, %v6863_v14  ;;  %v1671_v58 = vpop.permute.xlu0 %1670 }
 0x331   : >> { %v1454_v11 = vcombine.low %v6925_v7, %v6928_v44  ;;  %v1470_v51 = vcombine.low %v6931_v0, %v6934_v28  ;;  %v1998_v48 = vcombine.low %v6874_v21, %v6877_v43  ;;  %v6950_v45 = vrot.slane %v1386_v19, %v6841_v23 }
 0x332   : >> { %v1814_v46 = vcombine.low %v6766_v5, %v1659_v13  ;;  %v1815_v49 = vcombine.high %v6766_v5, %v1659_v13  ;;  %v1882_v41 = vcombine.low %v6773_v47, %v1661_v39  ;;  %v6956_v18 = vrot.slane %v1387_v55, %v6841_v23 }
 0x333   : >> { %v6959_v40 = vrot.slane %v1402_v42, %v6841_v23  ;;  %v6966_v19 = vrot.slane %v1454_v11, %v6841_v23  ;;  %v6969_v5 = vrot.slane %v1470_v51, %v6841_v23  ;;  %v1883_v55 = vcombine.high %v6773_v47, %v1661_v39  ;;  %v1673_v47 = vpop.permute.xlu1 %1672 }
 0x334   : >> { %v1822_v13 = vrot.slane %v1814_v46, %v6836_v17  ;;  %v1829_v42 = vrot.slane %v1815_v49, %v6836_v17  ;;  %v1890_v59 = vrot.slane %v1882_v41, %v6836_v17  ;;  %v6976_v57 = vrot.slane %v1982_v8, %v6841_v23  ;;  %v1063_v29 = vpop.permute.xlu0 %1062 }
 0x335   : >> { %v2050_v60 = vcombine.low %v2025_v52, %v2033_v10  ;;  %v6979_v61 = vrot.slane %v1998_v48, %v6841_v23  ;;  %v2066_v11 = vcombine.low %v2041_v16, %v2049_v20  ;;  %v1983_v51 = vcombine.high %v6860_v53, %v6863_v14 }
 0x336   : >> { %v1999_v46 = vcombine.high %v6874_v21, %v6877_v43  ;;  %v1897_v39 = vrot.slane %v1883_v55, %v6836_v17  ;;  %v2051_v8 = vcombine.high %v2025_v52, %v2033_v10  ;;  %v2067_v41 = vcombine.high %v2041_v16, %v2049_v20 }
 0x337   : >> { %v6987_v49 = vrot.slane %v2050_v60, %v6841_v23  ;;  %v6990_v62 = vrot.slane %v2066_v11, %v6841_v23  ;;  %v6993_v48 = vrot.slane %v1983_v51, %v6841_v23  ;;  %v1830_v53 = vcombine.low %v6905_v38, %v1671_v58 }
 0x338   : >> { %v6996_v63 = vrot.slane %v1999_v46, %v6841_v23  ;;  %v7000_v14 = vrot.slane %v2051_v8, %v6841_v23  ;;  %v7003_v21 = vrot.slane %v2067_v41, %v6841_v23  ;;  %v1831_v60 = vcombine.high %v6905_v38, %v1671_v58 }
 0x339   : >> { %v1898_v43 = vcombine.low %v6907_v24, %v1673_v47  ;;  %v2014_v52 = vcombine.low %v6976_v57, %v6979_v61  ;;  %v2082_v10 = vcombine.low %v6987_v49, %v6990_v62  ;;  %v1838_v16 = vrot.slane %v1830_v53, %v6836_v17 }
 0x33a   : >> { %v1899_v20 = vcombine.high %v6907_v24, %v1673_v47  ;;  %v2016_v55 = vcombine.low %v6993_v48, %v6996_v63  ;;  %v2084_v11 = vcombine.low %v7000_v14, %v7003_v21  ;;  %v1845_v58 = vrot.slane %v1831_v60, %v6836_v17 }
 0x33b   : >> { %v1906_v38 = vrot.slane %v1898_v43, %v6836_v17  ;;  %v2222_v51 = vpack.c.bf16 %v2082_v10, %v2014_v52  ;;  %v1846_v46 = vcombine.low %v1822_v13, %v1838_v16  ;;  %v1847_v8 = vcombine.high %v1822_v13, %v1838_v16 }
 0x33c   : >> { %v1913_v41 = vrot.slane %v1899_v20, %v6836_v17  ;;  %v2224_v54 = vpack.c.bf16 %v2084_v11, %v2016_v55  ;;  %v1862_v4 = vcombine.low %v1829_v42, %v1845_v58  ;;  %v1863_v53 = vcombine.high %v1829_v42, %v1845_v58  ;;  %v1065_v20 = vpop.permute.xlu1 %1064 }
 0x33d   : >> { %v1914_v3 = vcombine.low %v1890_v59, %v1906_v38  ;;  %v2837_v24 = vsel %vm2832_vm1, %v2222_v51, 0  ;;  %v1854_v47 = vrot.slane %v1846_v46, %v6841_v23  ;;  %v1861_v2 = vrot.slane %v1847_v8, %v6841_v23 }
 0x33e   : >> { %v1915_v1 = vcombine.high %v1890_v59, %v1906_v38  ;;  %5336 = vmatpush3.bf16.xpose.msra.mxu0 %v2837_v24  ;;  %v2931_v60 = vsel %vm2832_vm1, %v2224_v54, 0  ;;  %v7025_v43 = vrot.slane %v1862_v4, %v6841_v23  ;;  %v7028_v13 = vrot.slane %v1863_v53, %v6841_v23 }
 0x33f   : >> { %v7031_v42 = vrot.slane %v1914_v3, %v6841_v23  ;;  %5348 = vmatpush3.bf16.xpose.msra.mxu1 %v2931_v60  ;;  %v2086_v52 = vcombine.low %v1854_v47, %v1861_v2  ;;  %v5140_v10 = vcombine.high %v1854_v47, %v1861_v2  ;;  %v1930_v59 = vcombine.low %v1897_v39, %v1913_v41  ;;  %v1075_v47 = vpop.permute.xlu0 %1074 }
 0x340   : >> { %v7034_v16 = vrot.slane %v1915_v1, %v6841_v23  ;;  %v2102_v54 = vcombine.low %v7025_v43, %v7028_v13  ;;  %v1931_v55 = vcombine.high %v1897_v39, %v1913_v41  ;;  %v1218_v4 = vcombine.low %v6756_v26, %v1063_v29 }
 0x341   : >> { %v1219_v11 = vcombine.high %v6756_v26, %v1063_v29  ;;  %v8073_v58 = vmov 0.0   ;;  %v8074_v3 = vcombine.high %v6916_v12, %v6919_v15  ;;  %v8075_v1 = vcombine.high %v6925_v7, %v6928_v44 }
 0x342   : >> { %5341 = vmatprep.subr.bf16.mxu0 %v8073_v58  ;;  %v8076_v39 = vcombine.high %v6931_v0, %v6934_v28  ;;  %v1486_v29 = vcombine.low %v6966_v19, %v6969_v5  ;;  %5359 = vmatprep.subr.bf16.mxu1 %v8073_v58  ;;  %v1418_v26 = vcombine.low %v6950_v45, %v6959_v40 }
 0x343   : >> { %v7045_v2 = vrot.slane %v8074_v3, %v6841_v23  ;;  %v7051_v38 = vrot.slane %v8075_v1, %v6841_v23  ;;  %v5141_v12 = vcombine.high %v7025_v43, %v7028_v13  ;;  %v7067_v15 = vrot.slane %v1930_v59, %v6841_v23 }
 0x344   : >> { %v7057_v51 = vrot.slane %v8076_v39, %v6841_v23  ;;  %v7070_v7 = vrot.slane %v1931_v55, %v6841_v23  ;;  %v7073_v44 = vrot.slane %v2086_v52, %v6836_v17  ;;  %v7076_v0 = vrot.slane %v5140_v10, %v6836_v17  ;;  %v1077_v55 = vpop.permute.xlu1 %1076 }
 0x345   : >> { %v2154_v28 = vcombine.low %v7031_v42, %v7034_v16  ;;  %v1286_v46 = vcombine.low %v6761_v22, %v1065_v20  ;;  %v7082_v8 = vrot.slane %v2102_v54, %v6836_v17  ;;  %v5142_v41 = vcombine.high %v7031_v42, %v7034_v16 }
 0x346   : >> { %v1226_v53 = vrot.slane %v1218_v4, %v6836_v17  ;;  %v1233_v24 = vrot.slane %v1219_v11, %v6836_v17  ;;  %v1287_v60 = vcombine.high %v6761_v22, %v1065_v20  ;;  %v1626_v52 = vpack.c.bf16 %v1486_v29, %v1418_v26 }
 0x347   : >> { %v1420_v10 = vcombine.low %v6956_v18, %v7045_v2  ;;  %v1488_v59 = vcombine.low %v7051_v38, %v7057_v51  ;;  %v2170_v54 = vcombine.low %v7067_v15, %v7070_v7  ;;  %v5143_v3 = vcombine.high %v7067_v15, %v7070_v7 }
 0x348   : >> { %v1294_v4 = vrot.slane %v1286_v46, %v6836_v17  ;;  %v2015_v11 = vcombine.high %v6976_v57, %v6979_v61  ;;  %5338 = vmatmul.mubr.msk.bf16.vlgmr.msra.gmra.mxu0 %vm2832_vm1, %v1626_v52  ;;  %v2083_v20 = vcombine.high %v6987_v49, %v6990_v62  ;;  %v1234_v1 = vcombine.low %v6885_v56, %v1075_v47 }
 0x349   : >> { %v1628_v22 = vpack.c.bf16 %v1488_v59, %v1420_v10  ;;  %v1235_v39 = vcombine.high %v6885_v56, %v1075_v47  ;;  %v1302_v29 = vcombine.low %v6897_v27, %v1077_v55  ;;  %v1303_v26 = vcombine.high %v6897_v27, %v1077_v55  ;;  %5343 = vmatprep.mubr.msk.bf16.mxu0 %vm6034_vm0, %v8073_v58 }
 0x34a   : >> { %v1419_v57 = vcombine.high %v6950_v45, %v6959_v40  ;;  %v1487_v61 = vcombine.high %v6966_v19, %v6969_v5  ;;  %v1301_v46 = vrot.slane %v1287_v60, %v6836_v17  ;;  %v2223_v62 = vpack.c.bf16 %v2083_v20, %v2015_v11 }
 0x34b   : >> { %5350 = vmatmul.mubr.msk.bf16.vlgmr.msra.gmra.mxu1 %vm2832_vm1, %v1628_v22  ;;  %v1242_v56 = vrot.slane %v1234_v1, %v6836_v17  ;;  %v1249_v49 = vrot.slane %v1235_v39, %v6836_v17  ;;  %v1310_v27 = vrot.slane %v1302_v29, %v6836_v17  ;;  %v1317_v47 = vrot.slane %v1303_v26, %v6836_v17 }
 0x34c   : >> { %v1627_v52 = vpack.c.bf16 %v1487_v61, %v1419_v57  ;;  %v2017_v40 = vcombine.high %v6993_v48, %v6996_v63  ;;  %5361 = vmatprep.mubr.msk.bf16.mxu1 %vm6034_vm0, %v8073_v58  ;;  %v2884_v45 = vsel %vm2832_vm1, %v2223_v62, 0  ;;  %v2085_v57 = vcombine.high %v7000_v14, %v7003_v21 }
 0x34d   : >> { %v1250_v19 = vcombine.low %v1226_v53, %v1242_v56  ;;  %v1251_v5 = vcombine.high %v1226_v53, %v1242_v56  ;;  %v1266_v60 = vcombine.low %v1233_v24, %v1249_v49  ;;  %5342 = vmatpush3.bf16.xpose.msra.mxu0 %v2884_v45  ;;  %v1267_v10 = vcombine.high %v1233_v24, %v1249_v49 }
 0x34e   : >> { %v1318_v59 = vcombine.low %v1294_v4, %v1310_v27  ;;  %v1319_v55 = vcombine.high %v1294_v4, %v1310_v27  ;;  %v1334_v11 = vcombine.low %v1301_v46, %v1317_v47  ;;  %v1335_v63 = vcombine.high %v1301_v46, %v1317_v47  ;;  %5353 = vmatprep.subr.bf16.mxu0 %v8073_v58 }
 0x34f   : >> { %v1258_v22 = vrot.slane %v1250_v19, %v6841_v23  ;;  %v1265_v20 = vrot.slane %v1251_v5, %v6841_v23  ;;  %v1274_v1 = vrot.slane %v1266_v60, %v6841_v23  ;;  %v1281_v48 = vrot.slane %v1267_v10, %v6841_v23 }
 0x350   : >> { %v1326_v39 = vrot.slane %v1318_v59, %v6841_v23  ;;  %v1333_v53 = vrot.slane %v1319_v55, %v6841_v23  ;;  %v1342_v24 = vrot.slane %v1334_v11, %v6841_v23  ;;  %v1349_v26 = vrot.slane %v1335_v63, %v6841_v23  ;;  %v7169_v63 = vpop.permute.xlu1 %2244 }
 0x351   : >> { %v1490_v29 = vcombine.low %v1258_v22, %v1265_v20  ;;  %v5132_v4 = vcombine.high %v1258_v22, %v1265_v20  ;;  %v1506_v61 = vcombine.low %v1274_v1, %v1281_v48  ;;  %v5133_v62 = vcombine.high %v1274_v1, %v1281_v48 }
 0x352   : >> { %v1558_v46 = vcombine.low %v1326_v39, %v1333_v53  ;;  %v5134_v56 = vcombine.high %v1326_v39, %v1333_v53  ;;  %v1574_v47 = vcombine.low %v1342_v24, %v1349_v26  ;;  %v5135_v45 = vcombine.high %v1342_v24, %v1349_v26 }
 0x353   : >> { %v1497_v49 = vrot.slane %v1490_v29, %v6836_v17  ;;  %v1505_v27 = vrot.slane %v5132_v4, %v6836_v17  ;;  %v1513_v19 = vrot.slane %v1506_v61, %v6836_v17  ;;  %v1521_v5 = vrot.slane %v5133_v62, %v6836_v17 }
 0x354   : >> { %v1565_v60 = vrot.slane %v1558_v46, %v6836_v17  ;;  %v1573_v10 = vrot.slane %v5134_v56, %v6836_v17  ;;  %v2117_v14 = vrot.slane %v5141_v12, %v6836_v17  ;;  %v1581_v21 = vrot.slane %v1574_v47, %v6836_v17  ;;  %5344 = vmatmul.mubr.msk.bf16.vlgmr.msra.gmra.mxu0 %vm2832_vm1, %v1627_v52  ;;  %v2257_v56 = vpop.permute.xlu1 %2256 }
 0x355   : >> { %v1589_v59 = vrot.slane %v5135_v45, %v6836_v17  ;;  %v2225_v55 = vpack.c.bf16 %v2085_v57, %v2017_v40  ;;  %v2161_v11 = vrot.slane %v2154_v28, %v6836_v17  ;;  %v2169_v22 = vrot.slane %v5142_v41, %v6836_v17  ;;  %5355 = vmatprep.mubr.msk.bf16.mxu0 %vm6034_vm0, %v8073_v58 }
 0x356   : >> { %v2177_v43 = vrot.slane %v2170_v54, %v6836_v17  ;;  %v1590_v13 = vcombine.low %v1565_v60, %v1573_v10  ;;  %v2185_v12 = vrot.slane %v5143_v3, %v6836_v17  ;;  %v1522_v28 = vcombine.low %v1497_v49, %v1505_v27 }
 0x357   : >> { %v1523_v52 = vcombine.high %v1497_v49, %v1505_v27  ;;  %v1606_v40 = vcombine.low %v1581_v21, %v1589_v59  ;;  %v1538_v20 = vcombine.low %v1513_v19, %v1521_v5  ;;  %v1539_v42 = vcombine.high %v1513_v19, %v1521_v5 }
 0x358   : >> { %v1591_v16 = vcombine.high %v1565_v60, %v1573_v10  ;;  %v1598_v41 = vrot.slane %v1590_v13, %v6841_v23  ;;  %v2978_v54 = vsel %vm2832_vm1, %v2225_v55, 0  ;;  %v1489_v48 = vcombine.high %v7051_v38, %v7057_v51 }
 0x359   : >> { %v1614_v1 = vrot.slane %v1606_v40, %v6841_v23  ;;  %5354 = vmatpush3.bf16.xpose.msra.mxu0 %v2978_v54  ;;  %v2118_v15 = vcombine.low %v7073_v44, %v7076_v0  ;;  %v2134_v7 = vcombine.low %v7082_v8, %v2117_v14  ;;  %v2186_v3 = vcombine.low %v2161_v11, %v2169_v22 }
 0x35a   : >> { %v1530_v39 = vrot.slane %v1522_v28, %v6841_v23  ;;  %v7178_v53 = vrot.slane %v1523_v52, %v6841_v23  ;;  %v1607_v24 = vcombine.high %v1581_v21, %v1589_v59  ;;  %5365 = vmatprep.subr.bf16.mxu0 %v8073_v58  ;;  %v2202_v29 = vcombine.low %v2177_v43, %v2185_v12 }
 0x35b   : >> { %v1421_v4 = vcombine.high %v6956_v18, %v7045_v2  ;;  %v2126_v38 = vrot.slane %v2118_v15, %v6841_v23  ;;  %v2142_v51 = vrot.slane %v2134_v7, %v6841_v23  ;;  %v2194_v26 = vrot.slane %v2186_v3, %v6841_v23 }
 0x35c   : >> { %v1546_v57 = vrot.slane %v1538_v20, %v6841_v23  ;;  %v2210_v61 = vrot.slane %v2202_v29, %v6841_v23  ;;  %v1622_v62 = vcombine.low %v1598_v41, %v1614_v1  ;;  %v2119_v46 = vcombine.high %v7073_v44, %v7076_v0 }
 0x35d   : >> { %v1629_v49 = vpack.c.bf16 %v1489_v48, %v1421_v4  ;;  %v2150_v27 = vcombine.low %v2126_v38, %v2142_v51  ;;  %v2135_v47 = vcombine.high %v7082_v8, %v2117_v14  ;;  %v2187_v18 = vcombine.high %v2161_v11, %v2169_v22  ;;  %v2259_v14 = vpop.permute.xlu1 %2258  ;;  %v2247_v11 = vpop.permute.xlu0 %2246 }
 0x35e   : >> { %v2218_v2 = vcombine.low %v2194_v26, %v2210_v61  ;;  %v2151_v45 = vcombine.high %v2126_v38, %v2142_v51  ;;  %v2219_v19 = vcombine.high %v2194_v26, %v2210_v61  ;;  %v2133_v5 = vrot.slane %v2119_v46, %v6841_v23 }
 0x35f   : >> { %v7193_v60 = vrot.slane %v1539_v42, %v6841_v23  ;;  %v2149_v10 = vrot.slane %v2135_v47, %v6841_v23  ;;  %v2201_v21 = vrot.slane %v2187_v18, %v6841_v23  ;;  %v2203_v59 = vcombine.high %v2177_v43, %v2185_v12 }
 0x360   : >> { %5356 = vmatmul.mubr.msk.bf16.vlgmr.msra.gmra.mxu0 %vm2832_vm1, %v1629_v49  ;;  %v2226_v44 = vpack.c.bf16 %v2218_v2, %v2150_v27  ;;  %v2227_v0 = vpack.c.bf16 %v2219_v19, %v2151_v45  ;;  %v1554_v55 = vcombine.low %v1530_v39, %v1546_v57  ;;  %v1623_v8 = vcombine.high %v1598_v41, %v1614_v1 }
 0x361   : >> { %v7199_v22 = vrot.slane %v1591_v16, %v6841_v23  ;;  %v7202_v13 = vrot.slane %v1607_v24, %v6841_v23  ;;  %5367 = vmatprep.mubr.msk.bf16.mxu0 %vm6034_vm0, %v8073_v58  ;;  %v1555_v28 = vcombine.high %v1530_v39, %v1546_v57  ;;  %v2217_v43 = vrot.slane %v2203_v59, %v6841_v23  ;;  %v2271_v15 = vpop.permute.xlu1 %2270  ;;  %v2269_v7 = vpop.permute.xlu0 %2268 }
 0x362   : >> { %v3025_v12 = vsel %vm2832_vm1, %v2226_v44, 0  ;;  %v3072_v52 = vsel %vm2832_vm1, %v2227_v0, 0  ;;  %v1630_v40 = vpack.c.bf16 %v1622_v62, %v1554_v55  ;;  %v2152_v20 = vcombine.low %v2133_v5, %v2149_v10 }
 0x363   : >> { %5360 = vmatpush3.bf16.xpose.msra.mxu1 %v3025_v12  ;;  %5366 = vmatpush3.bf16.xpose.msra.mxu0 %v3072_v52  ;;  %v2220_v42 = vcombine.low %v2201_v21, %v2217_v43  ;;  %v2221_v16 = vcombine.high %v2201_v21, %v2217_v43  ;;  %v2280_v41 = vcombine.low %v6800_v25, %v2257_v56 }
 0x364   : >> { %v1631_v1 = vpack.c.bf16 %v1623_v8, %v1555_v28  ;;  %5371 = vmatprep.subr.bf16.mxu1 %v8073_v58  ;;  %5377 = vmatprep.subr.bf16.mxu0 %v8073_v58  ;;  %v2153_v54 = vcombine.high %v2133_v5, %v2149_v10  ;;  %v2348_v48 = vcombine.low %v6807_v9, %v2259_v14 }
 0x365   : >> { %v2228_v3 = vpack.c.bf16 %v2220_v42, %v2152_v20  ;;  %v2281_v39 = vcombine.high %v6800_v25, %v2257_v56  ;;  %v2349_v24 = vcombine.high %v6807_v9, %v2259_v14  ;;  %v2364_v29 = vcombine.low %v2247_v11, %v2271_v15 }
 0x366   : >> { %v2229_v4 = vpack.c.bf16 %v2221_v16, %v2153_v54  ;;  %v2356_v38 = vrot.slane %v2348_v48, %v6836_v17  ;;  %v2365_v51 = vcombine.high %v2247_v11, %v2271_v15  ;;  %v2296_v26 = vcombine.low %v7169_v63, %v2269_v7 }
 0x367   : >> { %v1624_v57 = vcombine.low %v7199_v22, %v7202_v13  ;;  %v2288_v61 = vrot.slane %v2280_v41, %v6836_v17  ;;  %v2363_v62 = vrot.slane %v2349_v24, %v6836_v17  ;;  %v2372_v46 = vrot.slane %v2364_v29, %v6836_v17 }
 0x368   : >> { %v1625_v25 = vcombine.high %v7199_v22, %v7202_v13  ;;  %v2379_v9 = vrot.slane %v2365_v51, %v6836_v17  ;;  %v2297_v56 = vcombine.high %v7169_v63, %v2269_v7  ;;  %v2304_v49 = vrot.slane %v2296_v26, %v6836_v17 }
 0x369   : >> { %v3119_v27 = vsel %vm2832_vm1, %v2228_v3, 0  ;;  %v2295_v47 = vrot.slane %v2281_v39, %v6836_v17  ;;  %v2380_v18 = vcombine.low %v2356_v38, %v2372_v46  ;;  %v2381_v2 = vcombine.high %v2356_v38, %v2372_v46 }
 0x36a   : >> { %5362 = vmatmul.mubr.msk.bf16.vlgmr.msra.gmra.mxu1 %vm2832_vm1, %v1630_v40  ;;  %5368 = vmatmul.mubr.msk.bf16.vlgmr.msra.gmra.mxu0 %vm2832_vm1, %v1631_v1  ;;  %v3166_v45 = vsel %vm2832_vm1, %v2229_v4, 0  ;;  %v2396_v19 = vcombine.low %v2363_v62, %v2379_v9  ;;  %v2397_v5 = vcombine.high %v2363_v62, %v2379_v9  ;;  %v2311_v10 = vrot.slane %v2297_v56, %v6836_v17 }
 0x36b   : >> { %5372 = vmatpush3.bf16.xpose.msra.mxu1 %v3119_v27  ;;  %5378 = vmatpush3.bf16.xpose.msra.mxu0 %v3166_v45  ;;  %v2388_v63 = vrot.slane %v2380_v18, %v6841_v23  ;;  %v2395_v21 = vrot.slane %v2381_v2, %v6841_v23  ;;  %v2312_v59 = vcombine.low %v2288_v61, %v2304_v49 }
 0x36c   : >> { %5373 = vmatprep.mubr.msk.bf16.mxu1 %vm6034_vm0, %v8073_v58  ;;  %5379 = vmatprep.mubr.msk.bf16.mxu0 %vm6034_vm0, %v8073_v58  ;;  %v2404_v44 = vrot.slane %v2396_v19, %v6841_v23  ;;  %v2411_v0 = vrot.slane %v2397_v5, %v6841_v23  ;;  %v2313_v55 = vcombine.high %v2288_v61, %v2304_v49 }
 0x36d   : >> { %v1556_v8 = vcombine.low %v7178_v53, %v7193_v60  ;;  %v1557_v14 = vcombine.high %v7178_v53, %v7193_v60  ;;  %v2620_v11 = vcombine.low %v2388_v63, %v2395_v21  ;;  %v5147_v22 = vcombine.high %v2388_v63, %v2395_v21  ;;  %5383 = vmatprep.subr.bf16.mxu1 %v8073_v58 }
 0x36e   : >> { %v2636_v13 = vcombine.low %v2404_v44, %v2411_v0  ;;  %v5148_v28 = vcombine.high %v2404_v44, %v2411_v0  ;;  %v2320_v43 = vrot.slane %v2312_v59, %v6841_v23  ;;  %v2327_v12 = vrot.slane %v2313_v55, %v6841_v23  ;;  %5389 = vmatprep.subr.bf16.mxu0 %v8073_v58 }
 0x36f   : >> { %v1632_v52 = vpack.c.bf16 %v1624_v57, %v1556_v8  ;;  %v1633_v40 = vpack.c.bf16 %v1625_v25, %v1557_v14  ;;  %v2627_v20 = vrot.slane %v2620_v11, %v6836_v17  ;;  %v2635_v42 = vrot.slane %v5147_v22, %v6836_v17 }
 0x370   : >> { %v2643_v53 = vrot.slane %v2636_v13, %v6836_v17  ;;  %v2651_v60 = vrot.slane %v5148_v28, %v6836_v17  ;;  %v2328_v16 = vcombine.low %v2295_v47, %v2311_v10  ;;  %v2329_v41 = vcombine.high %v2295_v47, %v2311_v10 }
 0x371   : >> { %v2552_v1 = vcombine.low %v2320_v43, %v2327_v12  ;;  %v5145_v54 = vcombine.high %v2320_v43, %v2327_v12  ;;  %v2652_v7 = vcombine.low %v2627_v20, %v2635_v42  ;;  %v2653_v19 = vcombine.high %v2627_v20, %v2635_v42 }
 0x372   : >> { %5374 = vmatmul.mubr.msk.bf16.vlgmr.msra.gmra.mxu1 %vm2832_vm1, %v1632_v52  ;;  %5380 = vmatmul.mubr.msk.bf16.vlgmr.msra.gmra.mxu0 %vm2832_vm1, %v1633_v40  ;;  %v2336_v48 = vrot.slane %v2328_v16, %v6841_v23  ;;  %v2343_v15 = vrot.slane %v2329_v41, %v6841_v23  ;;  %v2668_v4 = vcombine.low %v2643_v53, %v2651_v60 }
 0x373   : >> { %v2559_v3 = vrot.slane %v2552_v1, %v6836_v17  ;;  %v2567_v39 = vrot.slane %v5145_v54, %v6836_v17  ;;  %5385 = vmatprep.mubr.msk.bf16.mxu1 %vm6034_vm0, %v8073_v58  ;;  %5391 = vmatprep.mubr.msk.bf16.mxu0 %vm6034_vm0, %v8073_v58  ;;  %v2660_v57 = vrot.slane %v2652_v7, %v6841_v23 }
 0x374   : >> { %v2568_v24 = vcombine.low %v2336_v48, %v2343_v15  ;;  %v5146_v29 = vcombine.high %v2336_v48, %v2343_v15  ;;  %v2676_v61 = vrot.slane %v2668_v4, %v6841_v23  ;;  %v2669_v5 = vcombine.high %v2643_v53, %v2651_v60 }
 0x375   : >> { %v2584_v38 = vcombine.low %v2559_v3, %v2567_v39  ;;  %v2585_v2 = vcombine.high %v2559_v3, %v2567_v39  ;;  %v2667_v21 = vrot.slane %v2653_v19, %v6841_v23 }
 0x376   : >> { %v2575_v51 = vrot.slane %v2568_v24, %v6836_v17  ;;  %v2583_v26 = vrot.slane %v5146_v29, %v6836_v17  ;;  %v2684_v9 = vcombine.low %v2660_v57, %v2676_v61  ;;  %v2685_v56 = vcombine.high %v2660_v57, %v2676_v61 }
 0x377   : >> { %v2592_v62 = vrot.slane %v2584_v38, %v6841_v23  ;;  %v2599_v10 = vrot.slane %v2585_v2, %v6841_v23  ;;  %v2683_v59 = vrot.slane %v2669_v5, %v6841_v23 }
 0x378   : >> { %v2600_v46 = vcombine.low %v2575_v51, %v2583_v26  ;;  %v2601_v45 = vcombine.high %v2575_v51, %v2583_v26 }
 0x379   : >> { %v2686_v55 = vcombine.low %v2667_v21, %v2683_v59  ;;  %v2687_v8 = vcombine.high %v2667_v21, %v2683_v59 }
 0x37a   : >> { %v2608_v25 = vrot.slane %v2600_v46, %v6841_v23  ;;  %v2615_v63 = vrot.slane %v2601_v45, %v6841_v23 }
 0x37c   : >> { %v2616_v49 = vcombine.low %v2592_v62, %v2608_v25  ;;  %v2617_v27 = vcombine.high %v2592_v62, %v2608_v25  ;;  %v2618_v44 = vcombine.low %v2599_v10, %v2615_v63  ;;  %v2619_v0 = vcombine.high %v2599_v10, %v2615_v63 }
 0x37e   : >> { %v2824_v47 = vpack.c.bf16 %v2684_v9, %v2616_v49  ;;  %v2825_v18 = vpack.c.bf16 %v2685_v56, %v2617_v27  ;;  %v7275_v14 = vpack.c.bf16 %v2686_v55, %v2618_v44  ;;  %v7277_v11 = vpack.c.bf16 %v2687_v8, %v2619_v0  ;;  %v7347_v8 = vpop.permute.xlu1 %2248 }
 0x380   : >> { %5384 = vmatpush3.bf16.msra.mxu1 %v2824_v47  ;;  %5390 = vmatpush3.bf16.msra.mxu0 %v2825_v18 }
 0x381   : >> { %5395 = vmatprep.subr.bf16.mxu1 %v8073_v58  ;;  %5401 = vmatprep.subr.bf16.mxu0 %v8073_v58 }
 0x408   : >> { %v7279_v22 = vpop.f32.mrf.mxu0 }
 0x409   : >> { %v3210_v13 = vsel %vm3209_vm2, %v7279_v22, -inf }
 0x40a   : >> { %3211 = vmax.xlane.f32.xlu0 %v3210_v13  ;;  %v5339_v43 = vpop.f32.mrf.mxu0  ;;  %v7349_v13 = vpop.permute.xlu1 %2260 }
 0x40b   : >> { %v7283_v28 = vpop.f32.mrf.mxu1  ;;  %v7351_v43 = vpop.permute.xlu0 %2250 }
 0x40c   : >> { %v3222_v12 = vsel %vm3209_vm2, %v7283_v28, -inf  ;;  %v7287_v40 = vpop.f32.mrf.mxu0 }
 0x40d   : >> { %v5351_v52 = vpop.f32.mrf.mxu1  ;;  %3223 = vmax.xlane.f32.xlu1 %v3222_v12  ;;  %v3213_v20 = vsel %vm3209_vm2, %v7287_v40, -inf }
 0x40e   : >> { %v5340_v53 = vpop.f32.mrf.mxu0  ;;  %v7353_v12 = vpop.permute.xlu1 %2262 }
 0x40f   : >> { %v7291_v42 = vpop.f32.mrf.mxu1 }
 0x410   : >> { %v3225_v60 = vsel %vm3209_vm2, %v7291_v42, -inf }
 0x411   : >> { %v5352_v16 = vpop.f32.mrf.mxu1  ;;  %3226 = vmax.xlane.f32.xlu0 %v3225_v60  ;;  %3214 = vmax.xlane.f32.xlu1 %v3213_v20 }
 0x414   : >> { %v7295_v41 = vpop.f32.mrf.mxu0 }
 0x415   : >> { %v3216_v1 = vsel %vm3209_vm2, %v7295_v41, -inf }
 0x416   : >> { %3217 = vmax.xlane.f32.xlu0 %v3216_v1  ;;  %v5345_v54 = vpop.f32.mrf.mxu0 }
 0x418   : >> { %v7299_v48 = vpop.f32.mrf.mxu0 }
 0x419   : >> { %v3219_v62 = vsel %vm3209_vm2, %v7299_v48, -inf }
 0x41a   : >> { %v5346_v15 = vpop.f32.mrf.mxu0 }
 0x420   : >> { %v7301_v7 = vpop.f32.mrf.mxu0 }
 0x421   : >> { %v3228_v47 = vsel %vm3209_vm2, %v7301_v7, -inf }
 0x422   : >> { %v5357_v3 = vpop.f32.mrf.mxu0 }
 0x424   : >> { %v7303_v39 = vpop.f32.mrf.mxu0 }
 0x425   : >> { %v3231_v27 = vsel %vm3209_vm2, %v7303_v39, -inf }
 0x426   : >> { %v5358_v24 = vpop.f32.mrf.mxu0 }
 0x42a   : >> { %v7305_v29 = vpop.f32.mrf.mxu1  ;;  %v7307_v4 = vpop.f32.mrf.mxu0 }
 0x42b   : >> { %v3234_v38 = vsel %vm3209_vm2, %v7305_v29, -inf  ;;  %v3240_v44 = vsel %vm3209_vm2, %v7307_v4, -inf }
 0x42c   : >> { %v5369_v51 = vpop.f32.mrf.mxu0  ;;  %3235 = vmax.xlane.f32.xlu0 %v3234_v38  ;;  %v5363_v26 = vpop.f32.mrf.mxu1 }
 0x42e   : >> { %v7311_v57 = vpop.f32.mrf.mxu1  ;;  %v7313_v61 = vpop.f32.mrf.mxu0 }
 0x42f   : >> { %v3237_v46 = vsel %vm3209_vm2, %v7311_v57, -inf  ;;  %v3243_v0 = vsel %vm3209_vm2, %v7313_v61, -inf }
 0x430   : >> { %v5370_v25 = vpop.f32.mrf.mxu0  ;;  %3220 = vmax.xlane.f32.xlu0 %v3219_v62  ;;  %3238 = vmax.xlane.f32.xlu1 %v3237_v46  ;;  %v5364_v9 = vpop.f32.mrf.mxu1 }
 0x432   : >> { %v7319_v56 = vpop.f32.mrf.mxu1  ;;  %v7321_v49 = vpop.f32.mrf.mxu0 }
 0x433   : >> { %v3246_v5 = vsel %vm3209_vm2, %v7319_v56, -inf  ;;  %v3252_v59 = vsel %vm3209_vm2, %v7321_v49, -inf }
 0x434   : >> { %v5381_v18 = vpop.f32.mrf.mxu0  ;;  %3232 = vmax.xlane.f32.xlu0 %v3231_v27  ;;  %3229 = vmax.xlane.f32.xlu1 %v3228_v47  ;;  %v5375_v2 = vpop.f32.mrf.mxu1 }
 0x436   : >> { %v7327_v45 = vpop.f32.mrf.mxu1  ;;  %v7329_v19 = vpop.f32.mrf.mxu0 }
 0x437   : >> { %v3249_v10 = vsel %vm3209_vm2, %v7327_v45, -inf  ;;  %v3255_v55 = vsel %vm3209_vm2, %v7329_v19, -inf }
 0x438   : >> { %v5382_v63 = vpop.f32.mrf.mxu0  ;;  %3247 = vmax.xlane.f32.xlu1 %v3246_v5  ;;  %3250 = vmax.xlane.f32.xlu0 %v3249_v10  ;;  %v5376_v21 = vpop.f32.mrf.mxu1 }
 0x43c   : >> { %3253 = vmax.xlane.f32.xlu1 %v3252_v59  ;;  %3241 = vmax.xlane.f32.xlu0 %v3240_v44 }
 0x440   : >> { %3244 = vmax.xlane.f32.xlu0 %v3243_v0 }
 0x444   : >> { %3256 = vmax.xlane.f32.xlu0 %v3255_v55 }
 0x44d   : >> { %2274 = vrot.lane.b32.xlu1 %v6821_v6, %s6032_s16 }
 0x45a   : >> { %2272 = vrot.lane.b32.xlu0 %v6814_v50, %s6032_s16 }
 0x493   : >> { %v3212_v52 = vpop.xlane.xlu0 %3211 }
 0x494   : >> { %v3258_v16 = vsub.f32 %v7279_v22, %v3212_v52 }
 0x496   : >> { %v3224_v20 = vpop.xlane.xlu1 %3223 }
 0x497   : >> { %v3262_v1 = vsub.f32 %v7283_v28, %v3224_v20 }
 0x49a   : >> { %v3227_v53 = vpop.xlane.xlu0 %3226  ;;  %v3215_v60 = vpop.xlane.xlu1 %3214 }
 0x49b   : >> { %v3263_v54 = vsub.f32 %v7291_v42, %v3227_v53  ;;  %v3259_v15 = vsub.f32 %v7287_v40, %v3215_v60 }
 0x49d   : >> { %v3276_v3 = vpack.c.bf16 %v3263_v54, %v3262_v1  ;;  %v3274_v24 = vpack.c.bf16 %v3259_v15, %v3258_v16 }
 0x49f   : >> { %v3289_v38 = vmul.bf16 1069105081, %v3276_v3  ;;  %v3283_v51 = vmul.bf16 1069105081, %v3274_v24  ;;  %v3218_v9 = vpop.xlane.xlu0 %3217 }
 0x4a0   : >> { %v3260_v5 = vsub.f32 %v7295_v41, %v3218_v9 }
 0x4a1   : >> { %5670 = vpow.bf16 %v3289_v38  ;;  %v2416_v38 = vcombine.low %v6814_v50, %v7349_v13 }
 0x4a2   : >> { %5672 = vpow.bf16 %v3283_v51 }
 0x4af   : >> { %v5671_v26 = vpop.eup %5670 }
 0x4b0   : >> { %v5673_v62 = vpop.eup %5672  ;;  %v3310_v40 = vunpack.c.l.bf16 %v5671_v26  ;;  %v3311_v42 = vunpack.c.h.bf16 %v5671_v26 }
 0x4b1   : >> { %5386 = vmatmul.mubr.msk.bf16.vlgmr.msra.gmra.mxu1 %vm3209_vm2, %v5673_v62  ;;  %v3307_v46 = vunpack.c.h.bf16 %v5673_v62  ;;  %v3306_v25 = vunpack.c.l.bf16 %v5673_v62 }
 0x4b2   : >> { %5396 = vmatpush3.bf16.msra.mxu1 %v7275_v14  ;;  %5397 = vmatprep.mubr.msk.bf16.mxu1 %vm6034_vm0, %v8073_v58  ;;  %v3334_v47 = vsel %vm3209_vm2, %v3310_v40, 0.0  ;;  %v3337_v18 = vsel %vm3209_vm2, %v3311_v42, 0.0 }
 0x4b3   : >> { %v3325_v22 = vsel %vm3209_vm2, %v3307_v46, 0.0  ;;  %v3322_v28 = vsel %vm3209_vm2, %v3306_v25, 0.0  ;;  %5407 = vmatprep.subr.bf16.mxu1 %v8073_v58 }
 0x4b4   : >> { %3326 = vadd.xlane.f32.xlu1 %v3325_v22  ;;  %3323 = vadd.xlane.f32.xlu0 %v3322_v28  ;;  %v2417_v28 = vcombine.high %v6814_v50, %v7349_v13 }
 0x4b5   : >> { %v3236_v27 = vpop.xlane.xlu0 %3235 }
 0x4b6   : >> { %v3266_v10 = vsub.f32 %v7305_v29, %v3236_v27 }
 0x4b8   : >> { %3335 = vadd.xlane.f32.xlu1 %v3334_v47  ;;  %3338 = vadd.xlane.f32.xlu0 %v3337_v18 }
 0x4b9   : >> { %5398 = vmatmul.mubr.msk.bf16.vlgmr.msra.gmra.mxu1 %vm3209_vm2, %v5671_v26  ;;  %v3221_v14 = vpop.xlane.xlu0 %3220  ;;  %v3239_v2 = vpop.xlane.xlu1 %3238 }
 0x4ba   : >> { %5409 = vmatprep.mubr.msk.bf16.mxu1 %vm6034_vm0, %v8073_v58  ;;  %v3261_v63 = vsub.f32 %v7299_v48, %v3221_v14  ;;  %v3267_v21 = vsub.f32 %v7311_v57, %v3239_v2 }
 0x4bc   : >> { %v3275_v59 = vpack.c.bf16 %v3261_v63, %v3260_v5  ;;  %v3278_v44 = vpack.c.bf16 %v3267_v21, %v3266_v10 }
 0x4bd   : >> { %v3233_v0 = vpop.xlane.xlu0 %3232  ;;  %v3230_v55 = vpop.xlane.xlu1 %3229 }
 0x4be   : >> { %v3286_v52 = vmul.bf16 1069105081, %v3275_v59  ;;  %v3295_v20 = vmul.bf16 1069105081, %v3278_v44  ;;  %v3265_v53 = vsub.f32 %v7303_v39, %v3233_v0  ;;  %v3264_v60 = vsub.f32 %v7301_v7, %v3230_v55 }
 0x4bf   : >> { %v2484_v39 = vcombine.low %v6821_v6, %v7353_v12  ;;  %v2485_v7 = vcombine.high %v6821_v6, %v7353_v12 }
 0x4c0   : >> { %5674 = vpow.bf16 %v3286_v52  ;;  %v3277_v16 = vpack.c.bf16 %v3265_v53, %v3264_v60 }
 0x4c1   : >> { %5676 = vpow.bf16 %v3295_v20  ;;  %v3251_v41 = vpop.xlane.xlu0 %3250  ;;  %v3248_v1 = vpop.xlane.xlu1 %3247  ;;  %v2492_v25 = vrot.slane %v2484_v39, %v6836_v17  ;;  %v2499_v9 = vrot.slane %v2485_v7, %v6836_v17 }
 0x4c2   : >> { %v3292_v29 = vmul.bf16 1069105081, %v3277_v16  ;;  %v3271_v48 = vsub.f32 %v7327_v45, %v3251_v41  ;;  %v3270_v57 = vsub.f32 %v7319_v56, %v3248_v1 }
 0x4c4   : >> { %v3280_v54 = vpack.c.bf16 %v3271_v48, %v3270_v57  ;;  %5678 = vpow.bf16 %v3292_v29  ;;  %v2431_v29 = vrot.slane %v2417_v28, %v6836_v17 }
 0x4c5   : >> { %v3242_v15 = vpop.xlane.xlu0 %3241  ;;  %v3254_v3 = vpop.xlane.xlu1 %3253 }
 0x4c6   : >> { %v3301_v24 = vmul.bf16 1069105081, %v3280_v54  ;;  %v3268_v45 = vsub.f32 %v7307_v4, %v3242_v15  ;;  %v2424_v4 = vrot.slane %v2416_v38, %v6836_v17 }
 0x4c8   : >> { %5680 = vpow.bf16 %v3301_v24 }
 0x4c9   : >> { %v3245_v51 = vpop.xlane.xlu0 %3244  ;;  %v2275_v26 = vpop.permute.xlu1 %2274 }
 0x4ca   : >> { %v3269_v56 = vsub.f32 %v7313_v61, %v3245_v51  ;;  %v2500_v62 = vcombine.low %v7351_v43, %v2275_v26  ;;  %v2501_v46 = vcombine.high %v7351_v43, %v2275_v26  ;;  %v3272_v61 = vsub.f32 %v7321_v49, %v3254_v3 }
 0x4cc   : >> { %v3279_v22 = vpack.c.bf16 %v3269_v56, %v3268_v45  ;;  %v2508_v6 = vrot.slane %v2500_v62, %v6836_v17  ;;  %v2515_v12 = vrot.slane %v2501_v46, %v6836_v17 }
 0x4cd   : >> { %v3257_v40 = vpop.xlane.xlu0 %3256 }
 0x4ce   : >> { %v5675_v42 = vpop.eup %5674  ;;  %v3298_v27 = vmul.bf16 1069105081, %v3279_v22  ;;  %v2516_v43 = vcombine.low %v2492_v25, %v2508_v6  ;;  %v2517_v47 = vcombine.high %v2492_v25, %v2508_v6  ;;  %v2532_v18 = vcombine.low %v2499_v9, %v2515_v12 }
 0x4cf   : >> { %v7397_v14 = vpop.eup %5676  ;;  %v2533_v2 = vcombine.high %v2499_v9, %v2515_v12  ;;  %v3273_v5 = vsub.f32 %v7329_v19, %v3257_v40  ;;  %5392 = vmatmul.mubr.msk.bf16.vlgmr.msra.gmra.mxu0 %vm3209_vm2, %v5675_v42  ;;  %v3308_v10 = vunpack.c.l.bf16 %v5675_v42  ;;  %v3309_v63 = vunpack.c.h.bf16 %v5675_v42 }
 0x4d0   : >> { %5682 = vpow.bf16 %v3298_v27  ;;  %v2524_v50 = vrot.slane %v2516_v43, %v6841_v23  ;;  %v2531_v49 = vrot.slane %v2517_v47, %v6841_v23  ;;  %v2540_v13 = vrot.slane %v2532_v18, %v6841_v23  ;;  %5402 = vmatpush3.bf16.msra.mxu0 %v7277_v11  ;;  %5403 = vmatprep.mubr.msk.bf16.mxu0 %vm6034_vm0, %v8073_v58 }
 0x4d1   : >> { %v2547_v21 = vrot.slane %v2533_v2, %v6841_v23  ;;  %v3281_v59 = vpack.c.bf16 %v3273_v5, %v3272_v61  ;;  %v2273_v19 = vpop.permute.xlu0 %2272  ;;  %v3328_v44 = vsel %vm3209_vm2, %v3308_v10, 0.0  ;;  %v3314_v0 = vunpack.c.l.bf16 %v7397_v14  ;;  %5413 = vmatprep.subr.bf16.mxu0 %v8073_v58 }
 0x4d2   : >> { %v2756_v55 = vcombine.low %v2524_v50, %v2531_v49  ;;  %v5151_v52 = vcombine.high %v2524_v50, %v2531_v49  ;;  %v2432_v20 = vcombine.low %v7347_v8, %v2273_v19  ;;  %v2433_v53 = vcombine.high %v7347_v8, %v2273_v19  ;;  %3329 = vadd.xlane.f32.xlu0 %v3328_v44  ;;  %v5679_v1 = vpop.eup %5678 }
 0x4d3   : >> { %v2772_v11 = vcombine.low %v2540_v13, %v2547_v21  ;;  %v5152_v60 = vcombine.high %v2540_v13, %v2547_v21  ;;  %v3304_v16 = vmul.bf16 1069105081, %v3281_v59  ;;  %v3346_v41 = vsel %vm3209_vm2, %v3314_v0, 0.0 }
 0x4d4   : >> { %v2763_v48 = vrot.slane %v2756_v55, %v6836_v17  ;;  %v2440_v57 = vrot.slane %v2432_v20, %v6836_v17  ;;  %v2447_v54 = vrot.slane %v2433_v53, %v6836_v17  ;;  %3347 = vadd.xlane.f32.xlu1 %v3346_v41  ;;  %v2771_v15 = vrot.slane %v5151_v52, %v6836_v17 }
 0x4d5   : >> { %v7420_v8 = vrot.slane %v2772_v11, %v6836_v17  ;;  %5684 = vpow.bf16 %v3304_v16  ;;  %v3331_v3 = vsel %vm3209_vm2, %v3309_v63, 0.0  ;;  %v2787_v26 = vrot.slane %v5152_v60, %v6836_v17 }
 0x4d6   : >> { %v7423_v24 = vpop.eup %5680  ;;  %v2448_v39 = vcombine.low %v2424_v4, %v2440_v57  ;;  %v2449_v7 = vcombine.high %v2424_v4, %v2440_v57  ;;  %v2464_v38 = vcombine.low %v2431_v29, %v2447_v54  ;;  %v2465_v51 = vcombine.high %v2431_v29, %v2447_v54  ;;  %3332 = vadd.xlane.f32.xlu0 %v3331_v3 }
 0x4d7   : >> { %v3312_v45 = vunpack.c.l.bf16 %v5679_v1  ;;  %5404 = vmatmul.mubr.msk.bf16.vlgmr.msra.gmra.mxu0 %vm3209_vm2, %v5679_v1  ;;  %v3315_v56 = vunpack.c.h.bf16 %v7397_v14  ;;  %v3318_v62 = vunpack.c.l.bf16 %v7423_v24  ;;  %v3313_v28 = vunpack.c.h.bf16 %v5679_v1 }
 0x4d8   : >> { %v2456_v46 = vrot.slane %v2448_v39, %v6841_v23  ;;  %v2463_v25 = vrot.slane %v2449_v7, %v6841_v23  ;;  %v2472_v9 = vrot.slane %v2464_v38, %v6841_v23  ;;  %v2479_v22 = vrot.slane %v2465_v51, %v6841_v23  ;;  %5415 = vmatprep.mubr.msk.bf16.mxu0 %vm6034_vm0, %v8073_v58 }
 0x4d9   : >> { %v3340_v6 = vsel %vm3209_vm2, %v3312_v45, 0.0  ;;  %v3349_v12 = vsel %vm3209_vm2, %v3315_v56, 0.0  ;;  %v3358_v27 = vsel %vm3209_vm2, %v3318_v62, 0.0  ;;  %v3319_v43 = vunpack.c.h.bf16 %v7423_v24 }
 0x4da   : >> { %v2688_v4 = vcombine.low %v2456_v46, %v2463_v25  ;;  %v5149_v61 = vcombine.high %v2456_v46, %v2463_v25  ;;  %v2704_v40 = vcombine.low %v2472_v9, %v2479_v22  ;;  %v5150_v42 = vcombine.high %v2472_v9, %v2479_v22  ;;  %3341 = vadd.xlane.f32.xlu1 %v3340_v6 }
 0x4db   : >> { %3350 = vadd.xlane.f32.xlu0 %v3349_v12  ;;  %v2788_v47 = vcombine.low %v2763_v48, %v2771_v15  ;;  %v2804_v18 = vcombine.low %v7420_v8, %v2787_v26  ;;  %v3343_v50 = vsel %vm3209_vm2, %v3313_v28, 0.0  ;;  %v2789_v21 = vcombine.high %v2763_v48, %v2771_v15 }
 0x4dc   : >> { %v2695_v2 = vrot.slane %v2688_v4, %v6836_v17  ;;  %v2703_v5 = vrot.slane %v5149_v61, %v6836_v17  ;;  %v2711_v10 = vrot.slane %v2704_v40, %v6836_v17  ;;  %v2719_v63 = vrot.slane %v5150_v42, %v6836_v17 }
 0x4dd   : >> { %v2796_v49 = vrot.slane %v2788_v47, %v6841_v23  ;;  %v2812_v13 = vrot.slane %v2804_v18, %v6841_v23  ;;  %v3361_v52 = vsel %vm3209_vm2, %v3319_v43, 0.0  ;;  %v2803_v29 = vrot.slane %v2789_v21, %v6841_v23 }
 0x4de   : >> { %v5683_v59 = vpop.eup %5682  ;;  %3359 = vadd.xlane.f32.xlu1 %v3358_v27  ;;  %v2720_v19 = vcombine.low %v2695_v2, %v2703_v5  ;;  %v2736_v44 = vcombine.low %v2711_v10, %v2719_v63  ;;  %v2721_v0 = vcombine.high %v2695_v2, %v2703_v5  ;;  %v2737_v55 = vcombine.high %v2711_v10, %v2719_v63 }
 0x4df   : >> { %3344 = vadd.xlane.f32.xlu0 %v3343_v50  ;;  %v3316_v20 = vunpack.c.l.bf16 %v5683_v59  ;;  %v3317_v1 = vunpack.c.h.bf16 %v5683_v59  ;;  %v2805_v48 = vcombine.high %v7420_v8, %v2787_v26  ;;  %v2820_v54 = vcombine.low %v2796_v49, %v2812_v13 }
 0x4e0   : >> { %v2728_v53 = vrot.slane %v2720_v19, %v6841_v23  ;;  %v2744_v11 = vrot.slane %v2736_v44, %v6841_v23  ;;  %v2735_v60 = vrot.slane %v2721_v0, %v6841_v23  ;;  %v2751_v16 = vrot.slane %v2737_v55, %v6841_v23 }
 0x4e1   : >> { %v3352_v41 = vsel %vm3209_vm2, %v3316_v20, 0.0  ;;  %v2821_v3 = vcombine.high %v2796_v49, %v2812_v13  ;;  %v2819_v38 = vrot.slane %v2805_v48, %v6841_v23  ;;  %v3355_v46 = vsel %vm3209_vm2, %v3317_v1, 0.0 }
 0x4e2   : >> { %3353 = vadd.xlane.f32.xlu1 %v3352_v41  ;;  %v2752_v57 = vcombine.low %v2728_v53, %v2744_v11  ;;  %v2753_v15 = vcombine.high %v2728_v53, %v2744_v11  ;;  %v2754_v7 = vcombine.low %v2735_v60, %v2751_v16  ;;  %v2755_v62 = vcombine.high %v2735_v60, %v2751_v16 }
 0x4e3   : >> { %v5685_v39 = vpop.eup %5684  ;;  %3362 = vadd.xlane.f32.xlu0 %v3361_v52  ;;  %v2822_v26 = vcombine.low %v2803_v29, %v2819_v38  ;;  %v2823_v9 = vcombine.high %v2803_v29, %v2819_v38  ;;  %v8077_v28 = vmov 0  }
 0x4e4   : >> { %v3320_v51 = vunpack.c.l.bf16 %v5685_v39  ;;  %v2828_v45 = vpack.c.bf16 %v2820_v54, %v2752_v57  ;;  %v2829_v56 = vpack.c.bf16 %v2821_v3, %v2753_v15  ;;  %v3321_v8 = vunpack.c.h.bf16 %v5685_v39 }
 0x4e5   : >> { %v2830_v22 = vpack.c.bf16 %v2822_v26, %v2754_v7  ;;  %v2831_v6 = vpack.c.bf16 %v2823_v9, %v2755_v62 }
 0x4e6   : >> { %v3364_v25 = vsel %vm3209_vm2, %v3320_v51, 0.0  ;;  %5408 = vmatpush3.bf16.msra.mxu1 %v2828_v45  ;;  %5414 = vmatpush3.bf16.msra.mxu0 %v2829_v56  ;;  %v3367_v12 = vsel %vm3209_vm2, %v3321_v8, 0.0 }
 0x4e7   : >> { %3356 = vadd.xlane.f32.xlu0 %v3355_v46  ;;  %3365 = vadd.xlane.f32.xlu1 %v3364_v25 }
 0x4e8   : >> { %5419 = vmatprep.subr.bf16.mxu1 %v8073_v58  ;;  %5425 = vmatprep.subr.bf16.mxu0 %v8073_v58 }
 0x4e9   : >> { %5410 = vmatmul.mubr.msk.bf16.vlgmr.msra.gmra.mxu1 %vm3209_vm2, %v7397_v14  ;;  %5416 = vmatmul.mubr.msk.bf16.vlgmr.msra.gmra.mxu0 %vm3209_vm2, %v5683_v59 }
 0x4ea   : >> { %5420 = vmatpush3.bf16.msra.mxu1 %v2830_v22  ;;  %5426 = vmatpush3.bf16.msra.mxu0 %v2831_v6 }
 0x4eb   : >> { %3368 = vadd.xlane.f32.xlu0 %v3367_v12  ;;  %5421 = vmatprep.mubr.msk.bf16.mxu1 %vm6034_vm0, %v8073_v58 }
 0x4ec   : >> { %5427 = vmatprep.mubr.msk.bf16.mxu0 %vm6034_vm0, %v8073_v58 }
 0x4f1   : >> { %5422 = vmatmul.mubr.msk.bf16.vlgmr.msra.gmra.mxu1 %vm3209_vm2, %v7423_v24  ;;  %5428 = vmatmul.mubr.msk.bf16.vlgmr.msra.gmra.mxu0 %vm3209_vm2, %v5685_v39 }
 0x4f2   : >> { %4659 = vmatprep.mubr.bf16.mxu0 %v8077_v28 }
 0x53d   : >> { %v3324_v14 = vpop.xlane.xlu0 %3323  ;;  %v3327_v27 = vpop.xlane.xlu1 %3326 }
 0x541   : >> { %v3339_v40 = vpop.xlane.xlu0 %3338  ;;  %v3336_v5 = vpop.xlane.xlu1 %3335 }
 0x542   : >> { %5686 = vrcp.f32 %v3336_v5 }
 0x543   : >> { %5688 = vrcp.f32 %v3324_v14 }
 0x54f   : >> { %v5687_v19 = vpop.eup %5686 }
 0x550   : >> { %v5689_v52 = vpop.eup %5688 }
 0x55b   : >> { %v3330_v47 = vpop.xlane.xlu0 %3329 }
 0x55c   : >> { %5690 = vrcp.f32 %v3330_v47 }
 0x55d   : >> { %v3348_v50 = vpop.xlane.xlu1 %3347 }
 0x55f   : >> { %v3333_v58 = vpop.xlane.xlu0 %3332 }
 0x563   : >> { %v3342_v49 = vpop.xlane.xlu1 %3341 }
 0x564   : >> { %v3351_v24 = vpop.xlane.xlu0 %3350  ;;  %5692 = vrcp.f32 %v3342_v49 }
 0x565   : >> { %5694 = vrcp.f32 %v3339_v40 }
 0x566   : >> { %5696 = vrcp.f32 %v3327_v27 }
 0x567   : >> { %v3360_v44 = vpop.xlane.xlu1 %3359 }
 0x568   : >> { %v3345_v13 = vpop.xlane.xlu0 %3344 }
 0x569   : >> { %5698 = vrcp.f32 %v3345_v13  ;;  %v5691_v11 = vpop.eup %5690 }
 0x56a   : >> { %5700 = vrcp.f32 %v3333_v58 }
 0x56b   : >> { %v3354_v60 = vpop.xlane.xlu1 %3353  ;;  %5702 = vrcp.f32 %v3348_v50 }
 0x56c   : >> { %5704 = vrcp.f32 %v3351_v24  ;;  %v3363_v15 = vpop.xlane.xlu0 %3362 }
 0x56d   : >> { %5706 = vrcp.f32 %v3360_v44 }
 0x56e   : >> { %5708 = vrcp.f32 %v3354_v60 }
 0x56f   : >> { %5710 = vrcp.f32 %v3363_v15 }
 0x570   : >> { %v3366_v8 = vpop.xlane.xlu1 %3365  ;;  %v3357_v47 = vpop.xlane.xlu0 %3356 }
 0x571   : >> { %v3407_v4 = vpop.f32.mrf.mxu1  ;;  %v5693_v16 = vpop.eup %5692  ;;  %5712 = vrcp.f32 %v3366_v8 }
 0x572   : >> { %v3738_v20 = vmul.f32 %v5689_v52, %v3407_v4  ;;  %v5695_v29 = vpop.eup %5694  ;;  %5714 = vrcp.f32 %v3357_v47 }
 0x573   : >> { %v5387_v61 = vpop.f32.mrf.mxu1  ;;  %v5697_v7 = vpop.eup %5696 }
 0x575   : >> { %v3410_v42 = vpop.f32.mrf.mxu1 }
 0x576   : >> { %v5699_v45 = vpop.eup %5698  ;;  %v3739_v56 = vmul.f32 %v5697_v7, %v3410_v42 }
 0x577   : >> { %v5388_v43 = vpop.f32.mrf.mxu1  ;;  %v5701_v25 = vpop.eup %5700 }
 0x579   : >> { %v3495_v18 = vpop.f32.mrf.mxu1 }
 0x57a   : >> { %v3742_v0 = vmul.f32 %v5687_v19, %v3495_v18 }
 0x57b   : >> { %v5399_v2 = vpop.f32.mrf.mxu1 }
 0x57c   : >> { %v3754_v41 = vcombine.low %v3738_v20, %v3742_v0  ;;  %v3755_v48 = vcombine.high %v3738_v20, %v3742_v0 }
 0x57d   : >> { %v3498_v10 = vpop.f32.mrf.mxu1 }
 0x57e   : >> { %v3743_v3 = vmul.f32 %v5695_v29, %v3498_v10  ;;  %v3762_v62 = vrot.slane %v3754_v41, %v6836_v17  ;;  %v3769_v26 = vrot.slane %v3755_v48, %v6836_v17  ;;  %v5703_v41 = vpop.eup %5702 }
 0x57f   : >> { %v5400_v63 = vpop.f32.mrf.mxu1  ;;  %v7492_v15 = vpop.eup %5704 }
 0x580   : >> { %v3822_v12 = vcombine.low %v3739_v56, %v3743_v3  ;;  %v3823_v14 = vcombine.high %v3739_v56, %v3743_v3  ;;  %v5707_v7 = vpop.eup %5706 }
 0x582   : >> { %v3830_v50 = vrot.slane %v3822_v12, %v6836_v17  ;;  %v3837_v24 = vrot.slane %v3823_v14, %v6836_v17 }
 0x58f   : >> { %v3451_v21 = vpop.f32.mrf.mxu0 }
 0x590   : >> { %v3740_v57 = vmul.f32 %v5691_v11, %v3451_v21 }
 0x591   : >> { %v5393_v59 = vpop.f32.mrf.mxu0 }
 0x593   : >> { %v3454_v55 = vpop.f32.mrf.mxu0 }
 0x594   : >> { %v3741_v4 = vmul.f32 %v5701_v25, %v3454_v55 }
 0x595   : >> { %v5394_v53 = vpop.f32.mrf.mxu0 }
 0x597   : >> { %v3539_v1 = vpop.f32.mrf.mxu0 }
 0x598   : >> { %v3744_v54 = vmul.f32 %v5693_v16, %v3539_v1  ;;  %v3369_v1 = vpop.xlane.xlu0 %3368 }
 0x599   : >> { %v5405_v39 = vpop.f32.mrf.mxu0  ;;  %5716 = vrcp.f32 %v3369_v1 }
 0x59a   : >> { %v3770_v38 = vcombine.low %v3740_v57, %v3744_v54  ;;  %v3771_v51 = vcombine.high %v3740_v57, %v3744_v54 }
 0x59b   : >> { %v3542_v46 = vpop.f32.mrf.mxu0 }
 0x59c   : >> { %v3778_v9 = vrot.slane %v3770_v38, %v6836_v17  ;;  %v3785_v22 = vrot.slane %v3771_v51, %v6836_v17  ;;  %v3745_v6 = vmul.f32 %v5699_v45, %v3542_v46 }
 0x59d   : >> { %v5406_v61 = vpop.f32.mrf.mxu0 }
 0x59e   : >> { %v3786_v40 = vcombine.low %v3762_v62, %v3778_v9  ;;  %v3787_v27 = vcombine.high %v3762_v62, %v3778_v9  ;;  %v3802_v42 = vcombine.low %v3769_v26, %v3785_v22  ;;  %v3803_v43 = vcombine.high %v3769_v26, %v3785_v22  ;;  %v5709_v62 = vpop.eup %5708 }
 0x59f   : >> { %v3838_v18 = vcombine.low %v3741_v4, %v3745_v6  ;;  %v3839_v2 = vcombine.high %v3741_v4, %v3745_v6  ;;  %v5711_v14 = vpop.eup %5710 }
 0x5a0   : >> { %v3794_v5 = vrot.slane %v3786_v40, %v6841_v23  ;;  %v3801_v10 = vrot.slane %v3787_v27, %v6841_v23  ;;  %v3810_v58 = vrot.slane %v3802_v42, %v6841_v23  ;;  %v3817_v63 = vrot.slane %v3803_v43, %v6841_v23 }
 0x5a1   : >> { %v3846_v49 = vrot.slane %v3838_v18, %v6836_v17  ;;  %v3853_v13 = vrot.slane %v3839_v2, %v6836_v17  ;;  %v5713_v2 = vpop.eup %5712 }
 0x5a2   : >> { %v4026_v21 = vcombine.low %v3794_v5, %v3801_v10  ;;  %v5169_v59 = vcombine.high %v3794_v5, %v3801_v10  ;;  %v4042_v19 = vcombine.low %v3810_v58, %v3817_v63  ;;  %v5170_v44 = vcombine.high %v3810_v58, %v3817_v63 }
 0x5a3   : >> { %v3854_v0 = vcombine.low %v3830_v50, %v3846_v49  ;;  %v3855_v55 = vcombine.high %v3830_v50, %v3846_v49  ;;  %v3870_v52 = vcombine.low %v3837_v24, %v3853_v13  ;;  %v3871_v20 = vcombine.high %v3837_v24, %v3853_v13 }
 0x5a4   : >> { %v4033_v53 = vrot.slane %v4026_v21, %v6836_v17  ;;  %v4041_v11 = vrot.slane %v5169_v59, %v6836_v17  ;;  %v4049_v60 = vrot.slane %v4042_v19, %v6836_v17  ;;  %v4057_v16 = vrot.slane %v5170_v44, %v6836_v17 }
 0x5a5   : >> { %v3862_v29 = vrot.slane %v3854_v0, %v6841_v23  ;;  %v3869_v48 = vrot.slane %v3855_v55, %v6841_v23  ;;  %v3878_v57 = vrot.slane %v3870_v52, %v6841_v23  ;;  %v3885_v54 = vrot.slane %v3871_v20, %v6841_v23 }
 0x5a6   : >> { %v4058_v3 = vcombine.low %v4033_v53, %v4041_v11  ;;  %v4074_v39 = vcombine.low %v4049_v60, %v4057_v16  ;;  %v4059_v61 = vcombine.high %v4033_v53, %v4041_v11  ;;  %v4075_v47 = vcombine.high %v4049_v60, %v4057_v16 }
 0x5a7   : >> { %v4094_v38 = vcombine.low %v3862_v29, %v3869_v48  ;;  %v5171_v51 = vcombine.high %v3862_v29, %v3869_v48  ;;  %v4110_v45 = vcombine.low %v3878_v57, %v3885_v54  ;;  %v5172_v56 = vcombine.high %v3878_v57, %v3885_v54 }
 0x5a8   : >> { %v7495_v46 = vrot.slane %v4058_v3, %v6841_v23  ;;  %v7498_v25 = vrot.slane %v4074_v39, %v6841_v23  ;;  %v5185_v10 = vcombine.low %v6421_v36, %v6423_v37  ;;  %v5184_v13 = vcombine.low %v6417_v34, %v6419_v35  ;;  %v5715_v3 = vpop.eup %5714 }
 0x5a9   : >> { %v3583_v8 = vpop.f32.mrf.mxu1  ;;  %v3627_v26 = vpop.f32.mrf.mxu0  ;;  %v4101_v9 = vrot.slane %v4094_v38, %v6836_v17  ;;  %v4109_v22 = vrot.slane %v5171_v51, %v6836_v17  ;;  %v4117_v6 = vrot.slane %v4110_v45, %v6836_v17  ;;  %v4125_v12 = vrot.slane %v5172_v56, %v6836_v17 }
 0x5aa   : >> { %v4090_v4 = vcombine.low %v7495_v46, %v7498_v25  ;;  %v7520_v21 = vrot.slane %v4059_v61, %v6841_v23  ;;  %5431 = vmatprep.subr.bf16.mxu1 %v5185_v10  ;;  %v4091_v0 = vcombine.high %v7495_v46, %v7498_v25  ;;  %v7532_v20 = vrot.slane %v4075_v47, %v6841_v23  ;;  %v8078_v61 = vld [vmem:[#allocation50_spill] sm:$0xff] }
 0x5ab   : >> { %v5411_v40 = vpop.f32.mrf.mxu1  ;;  %v5417_v27 = vpop.f32.mrf.mxu0  ;;  %v4126_v42 = vcombine.low %v4101_v9, %v4109_v22  ;;  %v4142_v43 = vcombine.low %v4117_v6, %v4125_v12  ;;  %v4127_v18 = vcombine.high %v4101_v9, %v4109_v22  ;;  %v4143_v5 = vcombine.high %v4117_v6, %v4125_v12  ;;  %5432 = vmatpush3.bf16.msra.mxu1 %v5185_v10 }
 0x5ac   : >> { %5433 = vmatprep.subr.bf16.mxu1 %v5184_v13  ;;  %v5183_v53 = vcombine.low %v6413_v32, %v6415_v33  ;;  %v3746_v29 = vmul.f32 %v5703_v41, %v3583_v8  ;;  %v3748_v48 = vmul.f32 %v5709_v62, %v3627_v26  ;;  %v4092_v51 = vcombine.low %v7520_v21, %v7532_v20  ;;  %v5717_v41 = vpop.eup %5716  ;;  %v8079_v40 = vld [vmem:[#allocation49_spill] sm:$0xff] }
 0x5ad   : >> { %v3586_v58 = vpop.f32.mrf.mxu1  ;;  %v3630_v63 = vpop.f32.mrf.mxu0  ;;  %v7509_v50 = vrot.slane %v4126_v42, %v6841_v23  ;;  %v7512_v24 = vrot.slane %v4142_v43, %v6841_v23  ;;  %v7515_v49 = vrot.slane %v4127_v18, %v6841_v23  ;;  %v7523_v59 = vrot.slane %v4143_v5, %v6841_v23 }
 0x5ae   : >> { %v5182_v45 = vcombine.low %v6409_v30, %v6411_v31  ;;  %v3749_v62 = vmul.f32 %v5715_v3, %v3630_v63  ;;  %v5181_v27 = vcombine.low %v8079_v40, %v8078_v61  ;;  %v8081_v63 = vld [vmem:[#allocation47_spill] sm:$0xff] }
 0x5af   : >> { %v5412_v19 = vpop.f32.mrf.mxu1  ;;  %v5418_v44 = vpop.f32.mrf.mxu0  ;;  %v4158_v55 = vcombine.low %v7509_v50, %v7512_v24  ;;  %v4159_v52 = vcombine.high %v7509_v50, %v7512_v24  ;;  %v4160_v1 = vcombine.low %v7515_v49, %v7523_v59  ;;  %5434 = vmatpush3.bf16.msra.mxu1 %v5184_v13 }
 0x5b0   : >> { %5435 = vmatprep.subr.bf16.mxu1 %v5183_v53 }
 0x5b1   : >> { %v3671_v11 = vpop.f32.mrf.mxu1  ;;  %v3715_v60 = vpop.f32.mrf.mxu0  ;;  %v5640_v16 = vpack.i.bf16 %v4159_v52, %v4091_v0  ;;  %v5645_v12 = vpack.i.bf16 %v4160_v1, %v4092_v51 }
 0x5b2   : >> { %v3750_v57 = vmul.f32 %v5707_v7, %v3671_v11  ;;  %v3752_v54 = vmul.f32 %v5713_v2, %v3715_v60  ;;  %v3747_v7 = vmul.f32 %v7492_v15, %v3586_v58  ;;  %v8080_v58 = vld [vmem:[#allocation48_spill] sm:$0xff] }
 0x5b3   : >> { %5641 = vrot.lane.b32.xlu1 %v5640_v16, %s6032_s16  ;;  %v5423_v39 = vpop.f32.mrf.mxu1  ;;  %v5429_v38 = vpop.f32.mrf.mxu0  ;;  %5436 = vmatpush3.bf16.msra.mxu1 %v5183_v53  ;;  %v5180_v13 = vcombine.low %v8081_v63, %v8080_v58 }
 0x5b4   : >> { %v3890_v56 = vcombine.low %v3746_v29, %v3750_v57  ;;  %v3891_v9 = vcombine.high %v3746_v29, %v3750_v57  ;;  %v3906_v22 = vcombine.low %v3748_v48, %v3752_v54  ;;  %v3907_v6 = vcombine.high %v3748_v48, %v3752_v54  ;;  %5437 = vmatprep.subr.bf16.mxu1 %v5182_v45 }
 0x5b5   : >> { %v3674_v8 = vpop.f32.mrf.mxu1  ;;  %v3718_v26 = vpop.f32.mrf.mxu0 }
 0x5b6   : >> { %v3898_v42 = vrot.slane %v3890_v56, %v6836_v17  ;;  %v3905_v43 = vrot.slane %v3891_v9, %v6836_v17  ;;  %v3914_v47 = vrot.slane %v3906_v22, %v6836_v17  ;;  %v3921_v18 = vrot.slane %v3907_v6, %v6836_v17 }
 0x5b7   : >> { %v3751_v2 = vmul.f32 %v5711_v14, %v3674_v8  ;;  %v3753_v5 = vmul.f32 %v5717_v41, %v3718_v26  ;;  %5646 = vrot.lane.b32.xlu1 %v5645_v12, %s6031_s28  ;;  %v5424_v15 = vpop.f32.mrf.mxu1  ;;  %v5430_v10 = vpop.f32.mrf.mxu0  ;;  %5438 = vmatpush3.bf16.msra.mxu1 %v5182_v45 }
 0x5b8   : >> { %v3922_v19 = vcombine.low %v3898_v42, %v3914_v47  ;;  %v3923_v44 = vcombine.high %v3898_v42, %v3914_v47  ;;  %v3938_v0 = vcombine.low %v3905_v43, %v3921_v18  ;;  %v3939_v52 = vcombine.high %v3905_v43, %v3921_v18  ;;  %5439 = vmatprep.subr.bf16.mxu1 %v5181_v27 }
 0x5b9   : >> { %v3958_v11 = vcombine.low %v3747_v7, %v3751_v2  ;;  %v3959_v60 = vcombine.high %v3747_v7, %v3751_v2  ;;  %v3974_v16 = vcombine.low %v3749_v62, %v3753_v5  ;;  %v3975_v1 = vcombine.high %v3749_v62, %v3753_v5 }
 0x5ba   : >> { %v3930_v14 = vrot.slane %v3922_v19, %v6841_v23  ;;  %v3937_v29 = vrot.slane %v3923_v44, %v6841_v23  ;;  %v3946_v48 = vrot.slane %v3938_v0, %v6841_v23  ;;  %v3953_v53 = vrot.slane %v3939_v52, %v6841_v23 }
 0x5bb   : >> { %v3966_v57 = vrot.slane %v3958_v11, %v6836_v17  ;;  %v3973_v54 = vrot.slane %v3959_v60, %v6836_v17  ;;  %v3982_v3 = vrot.slane %v3974_v16, %v6836_v17  ;;  %v3989_v39 = vrot.slane %v3975_v1, %v6836_v17  ;;  %5440 = vmatpush3.bf16.msra.mxu1 %v5181_v27 }
 0x5bc   : >> { %v4162_v38 = vcombine.low %v3930_v14, %v3937_v29  ;;  %v5173_v51 = vcombine.high %v3930_v14, %v3937_v29  ;;  %v4178_v56 = vcombine.low %v3946_v48, %v3953_v53  ;;  %v5174_v9 = vcombine.high %v3946_v48, %v3953_v53  ;;  %5441 = vmatprep.subr.bf16.mxu1 %v5180_v13  ;;  %v8082_v53 = vld [vmem:[#allocation46_spill] sm:$0xff] }
 0x5bd   : >> { %v3990_v22 = vcombine.low %v3966_v57, %v3982_v3  ;;  %v3991_v6 = vcombine.high %v3966_v57, %v3982_v3  ;;  %v4006_v41 = vcombine.low %v3973_v54, %v3989_v39  ;;  %v4007_v7 = vcombine.high %v3973_v54, %v3989_v39  ;;  %v8083_v57 = vld [vmem:[#allocation45_spill] sm:$0xff] }
 0x5be   : >> { %v4169_v62 = vrot.slane %v4162_v38, %v6836_v17  ;;  %v4177_v8 = vrot.slane %v5173_v51, %v6836_v17  ;;  %v4185_v26 = vrot.slane %v4178_v56, %v6836_v17  ;;  %v4193_v12 = vrot.slane %v5174_v9, %v6836_v17  ;;  %v8084_v51 = vld [vmem:[#allocation44_spill] sm:$0xff]  ;;  %v8085_v56 = vld [vmem:[#allocation43_spill] sm:$0xff] }
 0x5bf   : >> { %v3998_v61 = vrot.slane %v3990_v22, %v6841_v23  ;;  %v4005_v45 = vrot.slane %v3991_v6, %v6841_v23  ;;  %v4014_v40 = vrot.slane %v4006_v41, %v6841_v23  ;;  %v4021_v42 = vrot.slane %v4007_v7, %v6841_v23  ;;  %5442 = vmatpush3.bf16.msra.mxu1 %v5180_v13 }
 0x5c0   : >> { %v4195_v43 = vcombine.high %v4169_v62, %v4177_v8  ;;  %v4211_v47 = vcombine.high %v4185_v26, %v4193_v12  ;;  %v4194_v18 = vcombine.low %v4169_v62, %v4177_v8  ;;  %v4210_v2 = vcombine.low %v4185_v26, %v4193_v12 }
 0x5c1   : >> { %v4230_v5 = vcombine.low %v3998_v61, %v4005_v45  ;;  %v5175_v15 = vcombine.high %v3998_v61, %v4005_v45  ;;  %v4246_v10 = vcombine.low %v4014_v40, %v4021_v42  ;;  %v5176_v58 = vcombine.high %v4014_v40, %v4021_v42 }
 0x5c2   : >> { %v4202_v63 = vrot.slane %v4194_v18, %v6841_v23  ;;  %v4218_v19 = vrot.slane %v4210_v2, %v6841_v23  ;;  %v4209_v11 = vrot.slane %v4195_v43, %v6841_v23  ;;  %v4225_v60 = vrot.slane %v4211_v47, %v6841_v23 }
 0x5c3   : >> { %v4237_v44 = vrot.slane %v4230_v5, %v6836_v17  ;;  %v4245_v0 = vrot.slane %v5175_v15, %v6836_v17  ;;  %v4253_v52 = vrot.slane %v4246_v10, %v6836_v17  ;;  %v4261_v27 = vrot.slane %v5176_v58, %v6836_v17 }
 0x5c4   : >> { %v4226_v16 = vcombine.low %v4202_v63, %v4218_v19  ;;  %v5179_v54 = vcombine.low %v8083_v57, %v8082_v53  ;;  %v4228_v13 = vcombine.low %v4209_v11, %v4225_v60  ;;  %v5178_v9 = vcombine.low %v8085_v56, %v8084_v51 }
 0x5c5   : >> { %v4263_v1 = vcombine.high %v4237_v44, %v4245_v0  ;;  %v4279_v14 = vcombine.high %v4253_v52, %v4261_v27  ;;  %v4262_v29 = vcombine.low %v4237_v44, %v4245_v0  ;;  %v4278_v48 = vcombine.low %v4253_v52, %v4261_v27 }
 0x5c6   : >> { %5443 = vmatprep.subr.bf16.mxu1 %v5179_v54  ;;  %v4227_v6 = vcombine.high %v4202_v63, %v4218_v19  ;;  %v4161_v12 = vcombine.high %v7515_v49, %v7523_v59  ;;  %v4093_v61 = vcombine.high %v7520_v21, %v7532_v20 }
 0x5c7   : >> { %v4277_v3 = vrot.slane %v4263_v1, %v6841_v23  ;;  %v4293_v39 = vrot.slane %v4279_v14, %v6841_v23  ;;  %v4270_v38 = vrot.slane %v4262_v29, %v6841_v23  ;;  %v4286_v17 = vrot.slane %v4278_v48, %v6841_v23  ;;  %5444 = vmatpush3.bf16.msra.mxu1 %v5179_v54 }
 0x5c8   : >> { %5445 = vmatprep.subr.bf16.mxu1 %v5178_v9  ;;  %v4229_v23 = vcombine.high %v4209_v11, %v4225_v60  ;;  %v5655_v40 = vpack.i.bf16 %v4161_v12, %v4093_v61  ;;  %v8092_v12 = vld [vmem:[#allocation69_spill] sm:$0xff] }
 0x5c9   : >> { %v4296_v22 = vcombine.low %v4277_v3, %v4293_v39  ;;  %v4294_v41 = vcombine.low %v4270_v38, %v4286_v17  ;;  %v4295_v7 = vcombine.high %v4270_v38, %v4286_v17  ;;  %v4297_v26 = vcombine.high %v4277_v3, %v4293_v39 }
 0x5cb   : >> { %v5660_v62 = vpack.i.bf16 %v4296_v22, %v4228_v13  ;;  %v5650_v8 = vpack.i.bf16 %v4295_v7, %v4227_v6  ;;  %5446 = vmatpush3.bf16.msra.mxu1 %v5178_v9  ;;  %v5665_v45 = vpack.i.bf16 %v4297_v26, %v4229_v23  ;;  %v8088_v13 = vld [vmem:[#allocation134_spill] sm:$0xff]  ;;  %v8089_v6 = vld [vmem:[#allocation133_spill] sm:$0xff]  ;;  %v8090_v7 = vld [vmem:[#allocation132_spill] sm:$0xff] }
 0x5cc   : >> { %v8093_v23 = vld [vmem:[#allocation68_spill] sm:$0xff] }
 0x5cd   : >> { %5661 = vrot.lane.b32.xlu1 %v5660_v62, %s6031_s28  ;;  %5651 = vrot.lane.b32.xlu0 %v5650_v8, %s6032_s16  ;;  %v8091_v8 = vld [vmem:[#allocation131_spill] sm:$0xff]  ;;  %v5203_v61 = vcombine.high %v8093_v23, %v8092_v12 }
 0x5cf   : >> { %4627 = vmatprep.subr.bf16.mxu0 %v5203_v61 }
 0x5d1   : >> { %5666 = vrot.lane.b32.xlu1 %v5665_v45, %s6030_s15  ;;  %5656 = vrot.lane.b32.xlu0 %v5655_v40, %s6030_s15  ;;  %v5202_v45 = vcombine.low %v8093_v23, %v8092_v12 }
 0x5d3   : >> { %4628 = vmatpush1.bf16.msra.mxu0 %v5202_v45  ;;  %v8113_v45 = vld [vmem:[#allocation100_spill] sm:$0xff] }
 0x625   : >> { %v5642_v42 = vpop.permute.xlu1 %5641 }
 0x626   : >> { %v5644_v47 = vunpack.i.h.bf16 %v5642_v42  ;;  %v5643_v18 = vunpack.i.l.bf16 %v5642_v42 }
 0x628   : >> { %v4347_v19 = vsel %vm2832_vm1, %v4158_v55, %v5644_v47  ;;  %v4346_v44 = vsel %vm2832_vm1, %v4090_v4, %v5643_v18  ;;  %v8086_v4 = vld [vmem:[#allocation51_spill] sm:$0xff] }
 0x629   : >> { %v5647_v43 = vpop.permute.xlu1 %5646  ;;  %v8087_v39 = vmov %v8086_v4 }
 0x62a   : >> { %v5649_v15 = vunpack.i.h.bf16 %v5647_v43  ;;  %v5648_v10 = vunpack.i.l.bf16 %v5647_v43 }
 0x62c   : >> { %v4351_v14 = vsel %vm4350_vm3, %v4346_v44, %v5648_v10  ;;  %v4352_v29 = vsel %vm4350_vm3, %v4347_v19, %v5649_v15  ;;  %v8094_v44 = vld [vmem:[#allocation67_spill] sm:$0xff] }
 0x63f   : >> { %v5652_v49 = vpop.permute.xlu0 %5651  ;;  %v5662_v59 = vpop.permute.xlu1 %5661 }
 0x640   : >> { %v5654_v2 = vunpack.i.h.bf16 %v5652_v49  ;;  %v5653_v5 = vunpack.i.l.bf16 %v5652_v49  ;;  %v5664_v58 = vunpack.i.h.bf16 %v5662_v59  ;;  %v5663_v63 = vunpack.i.l.bf16 %v5662_v59 }
 0x642   : >> { %v4349_v21 = vsel %vm2832_vm1, %v4294_v41, %v5654_v2  ;;  %v4348_v20 = vsel %vm2832_vm1, %v4226_v16, %v5653_v5 }
 0x643   : >> { %v5657_v0 = vpop.permute.xlu0 %5656  ;;  %v5667_v52 = vpop.permute.xlu1 %5666  ;;  %v4354_v16 = vsel %vm4350_vm3, %v4349_v21, %v5664_v58  ;;  %v4353_v48 = vsel %vm4350_vm3, %v4348_v20, %v5663_v63 }
 0x644   : >> { %v5659_v27 = vunpack.i.h.bf16 %v5657_v0  ;;  %v5658_v11 = vunpack.i.l.bf16 %v5657_v0  ;;  %v5669_v60 = vunpack.i.h.bf16 %v5667_v52  ;;  %v5668_v1 = vunpack.i.l.bf16 %v5667_v52  ;;  %v8095_v0 = vld [vmem:[#allocation66_spill] sm:$0xff] }
 0x645   : >> { %v5201_v52 = vcombine.high %v8095_v0, %v8094_v44 }
 0x646   : >> { %v4358_v53 = vsel %vm4355_vm4, %v4353_v48, %v5668_v1  ;;  %v4359_v50 = vsel %vm4355_vm4, %v4354_v16, %v5669_v60  ;;  %v4356_v24 = vsel %vm4355_vm4, %v4351_v14, %v5658_v11  ;;  %v4357_v55 = vsel %vm4355_vm4, %v4352_v29, %v5659_v27  ;;  %v8096_v11 = vld [vmem:[#allocation65_spill] sm:$0xff]  ;;  %v8097_v60 = vld [vmem:[#allocation64_spill] sm:$0xff]  ;;  %v8098_v29 = vld [vmem:[#allocation63_spill] sm:$0xff] }
 0x647   : >> { %v4361_v57 = vpack.c.bf16 %v4359_v50, %v4358_v53  ;;  %v4360_v54 = vpack.c.bf16 %v4357_v55, %v4356_v24  ;;  %v5200_v27 = vcombine.low %v8095_v0, %v8094_v44  ;;  %4629 = vmatprep.subr.bf16.mxu0 %v5201_v52  ;;  %v5199_v1 = vcombine.high %v8097_v60, %v8096_v11  ;;  %v8099_v16 = vld [vmem:[#allocation62_spill] sm:$0xff]  ;;  %v8100_v50 = vld [vmem:[#allocation61_spill] sm:$0xff]  ;;  %v8101_v24 = vld [vmem:[#allocation60_spill] sm:$0xff] }
 0x648   : >> { %v5198_v14 = vcombine.low %v8097_v60, %v8096_v11  ;;  %v5197_v48 = vcombine.high %v8099_v16, %v8098_v29  ;;  %v5196_v53 = vcombine.low %v8099_v16, %v8098_v29  ;;  %v5195_v55 = vcombine.high %v8101_v24, %v8100_v50  ;;  %v8122_v52 = vld [vmem:[#allocation95_spill] sm:$0xff] }
 0x649   : >> { %5447 = vmatprep.mubr.bf16.mxu1 %v4360_v54  ;;  %4630 = vmatpush1.bf16.msra.mxu0 %v5200_v27  ;;  %v8102_v54 = vld [vmem:[#allocation59_spill] sm:$0xff] }
 0x64a   : >> { %5448 = vmatmul.mubr.bf16.vlgmr.msra.gmra.mxu1 %v4361_v57  ;;  %4631 = vmatprep.subr.bf16.mxu0 %v5199_v1  ;;  %v5194_v57 = vcombine.low %v8101_v24, %v8100_v50  ;;  %v8123_v1 = vld [vmem:[#allocation80_spill] sm:$0xff] }
 0x64d   : >> { %4632 = vmatpush1.bf16.msra.mxu0 %v5198_v14  ;;  %v8124_v14 = vld [vmem:[#allocation79_spill] sm:$0xff] }
 0x64e   : >> { %4633 = vmatprep.subr.bf16.mxu0 %v5197_v48  ;;  %v5209_v48 = vcombine.low %v8124_v14, %v8123_v1 }
 0x651   : >> { %4634 = vmatpush1.bf16.msra.mxu0 %v5196_v53  ;;  %v8125_v53 = vld [vmem:[#allocation94_spill] sm:$0xff] }
 0x652   : >> { %4635 = vmatprep.subr.bf16.mxu0 %v5195_v55  ;;  %v8126_v55 = vld [vmem:[#allocation93_spill] sm:$0xff] }
 0x655   : >> { %4636 = vmatpush1.bf16.msra.mxu0 %v5194_v57  ;;  %v5216_v57 = vcombine.low %v8126_v55, %v8125_v53  ;;  %v8132_v55 = vld [vmem:[#allocation91_spill] sm:$0xff] }
 0x70a   : >> { %v5449_v46 = vpop.f32.mrf.mxu1 }
 0x70b   : >> { %v4459_v17 = vadd.f32 %v5449_v46, %v8087_v39  ;;  %v8103_v46 = vld [vmem:[#allocation58_spill] sm:$0xff] }
 0x70c   : >> { %v4450_v25 = vpop.f32.mrf.mxu1 }
 0x70d   : >> { %v4451_v3 = vadd.f32 %v8086_v4, %v4450_v25  ;;  %v4467_v62 = vadd.f32 %v8090_v7, %v4459_v17  ;;  %v5193_v25 = vcombine.high %v8103_v46, %v8102_v54  ;;  %v5192_v4 = vcombine.low %v8103_v46, %v8102_v54  ;;  %v8106_v17 = vld [vmem:[#allocation56_spill] sm:$0xff]  ;;  %v8110_v7 = vld [vmem:[#allocation101_spill] sm:$0xff] }
 0x70e   : >> { %v5450_v38 = vpop.f32.mrf.mxu1 }
 0x70f   : >> { %v4465_v51 = vadd.f32 %v8088_v13, %v4451_v3  ;;  %v4462_v22 = vadd.f32 %v5450_v38, %v8087_v39  ;;  %4637 = vmatprep.subr.bf16.mxu0 %v5193_v25  ;;  %v8104_v3 = vld [vmem:[#allocation57_spill] sm:$0xff]  ;;  %v8127_v25 = vld [vmem:[#allocation78_spill] sm:$0xff] }
 0x710   : >> { %v4453_v56 = vpop.f32.mrf.mxu1  ;;  %v8105_v38 = vmov %v8104_v3  ;;  %v5191_v13 = vcombine.high %v8106_v17, %v8104_v3  ;;  %4638 = vmatpush1.bf16.msra.mxu0 %v5192_v4  ;;  %v8128_v4 = vld [vmem:[#allocation77_spill] sm:$0xff] }
 0x711   : >> { %v4454_v9 = vadd.f32 %v8087_v39, %v4453_v56  ;;  %4469 = vadd.xlane.f32.xlu0 %v4465_v51  ;;  %v4468_v26 = vadd.f32 %v8091_v8, %v4462_v22  ;;  %v8107_v56 = vld [vmem:[#allocation55_spill] sm:$0xff]  ;;  %v8111_v8 = vld [vmem:[#allocation86_spill] sm:$0xff]  ;;  %v5208_v3 = vcombine.low %v8128_v4, %v8127_v25  ;;  %v8133_v25 = vld [vmem:[#allocation76_spill] sm:$0xff] }
 0x712   : >> { %4639 = vmatprep.subr.bf16.mxu0 %v5191_v13  ;;  %v8134_v4 = vld [vmem:[#allocation75_spill] sm:$0xff] }
 0x713   : >> { %v4466_v41 = vadd.f32 %v8089_v6, %v4454_v9  ;;  %v8108_v9 = vld [vmem:[#allocation54_spill] sm:$0xff] }
 0x714   : >> { %v5189_v22 = vcombine.high %v8108_v9, %v8107_v56  ;;  %v5188_v6 = vcombine.low %v8108_v9, %v8107_v56 }
 0x715   : >> { %4471 = vadd.xlane.f32.xlu1 %v4466_v41  ;;  %4473 = vadd.xlane.f32.xlu0 %v4467_v62 }
 0x719   : >> { %4475 = vadd.xlane.f32.xlu0 %v4468_v26 }
 0x79a   : >> { %v4470_v40 = vpop.xlane.xlu0 %4469 }
 0x79b   : >> { %v4478_v42 = vmul.f32 0.0078125, %v4470_v40  ;;  %v8114_v40 = vld [vmem:[#allocation99_spill] sm:$0xff] }
 0x79d   : >> { %v7615_v43 = vsub.f32 %v4465_v51, %v4478_v42  ;;  %v5190_v51 = vcombine.low %v8106_v17, %v8105_v38  ;;  %v5219_v42 = vcombine.low %v8114_v40, %v8113_v45 }
 0x79e   : >> { %v4472_v47 = vpop.xlane.xlu1 %4471  ;;  %v4474_v18 = vpop.xlane.xlu0 %4473 }
 0x79f   : >> { %v4479_v49 = vmul.f32 0.0078125, %v4472_v47  ;;  %v4480_v59 = vmul.f32 0.0078125, %v4474_v18  ;;  %v4486_v2 = vmul.f32 %v7615_v43, %v7615_v43  ;;  %4640 = vmatpush1.bf16.msra.mxu0 %v5190_v51  ;;  %v8115_v47 = vld [vmem:[#allocation84_spill] sm:$0xff]  ;;  %v8116_v18 = vld [vmem:[#allocation83_spill] sm:$0xff] }
 0x7a0   : >> { %4641 = vmatprep.subr.bf16.mxu0 %v5189_v22 }
 0x7a1   : >> { %v7619_v5 = vsub.f32 %v4466_v41, %v4479_v49  ;;  %v7621_v15 = vsub.f32 %v4467_v62, %v4480_v59  ;;  %4490 = vadd.xlane.f32.xlu1 %v4486_v2  ;;  %v8109_v41 = vld [vmem:[#allocation102_spill] sm:$0xff]  ;;  %v5211_v49 = vcombine.low %v8116_v18, %v8115_v47  ;;  %v8118_v2 = vld [vmem:[#allocation97_spill] sm:$0xff] }
 0x7a2   : >> { %v4476_v10 = vpop.xlane.xlu0 %4475  ;;  %v5220_v62 = vcombine.low %v8110_v7, %v8109_v41  ;;  %v8117_v59 = vld [vmem:[#allocation98_spill] sm:$0xff] }
 0x7a3   : >> { %v4481_v58 = vmul.f32 0.0078125, %v4476_v10  ;;  %v4487_v63 = vmul.f32 %v7619_v5, %v7619_v5  ;;  %v4488_v21 = vmul.f32 %v7621_v15, %v7621_v15  ;;  %4642 = vmatpush1.bf16.msra.mxu0 %v5188_v6  ;;  %v5218_v10 = vcombine.low %v8118_v2, %v8117_v59  ;;  %v8129_v59 = vld [vmem:[#allocation52_spill] sm:$0xff] }
 0x7a4   : >> { %5287 = vmatprep.subr.bf16.mxu1 %v5220_v62 }
 0x7a5   : >> { %v7627_v20 = vsub.f32 %v4468_v26, %v4481_v58  ;;  %4492 = vadd.xlane.f32.xlu0 %v4487_v63  ;;  %4494 = vadd.xlane.f32.xlu1 %v4488_v21  ;;  %v8112_v26 = vld [vmem:[#allocation85_spill] sm:$0xff]  ;;  %v8119_v58 = vld [vmem:[#allocation82_spill] sm:$0xff] }
 0x7a6   : >> { %v5212_v61 = vcombine.low %v8112_v26, %v8111_v8  ;;  %v8120_v63 = vld [vmem:[#allocation81_spill] sm:$0xff] }
 0x7a7   : >> { %v4489_v19 = vmul.f32 %v7627_v20, %v7627_v20  ;;  %v5210_v21 = vcombine.low %v8120_v63, %v8119_v58 }
 0x7a8   : >> { %5288 = vmatpush3.bf16.msra.mxu1 %v5212_v61 }
 0x7a9   : >> { %4496 = vadd.xlane.f32.xlu0 %v4489_v19  ;;  %5289 = vmatprep.subr.bf16.mxu1 %v5219_v42  ;;  %v8121_v19 = vld [vmem:[#allocation96_spill] sm:$0xff] }
 0x7aa   : >> { %v5217_v27 = vcombine.low %v8122_v52, %v8121_v19  ;;  %v8130_v19 = vld [vmem:[#allocation53_spill] sm:$0xff] }
 0x7ac   : >> { %5290 = vmatpush3.bf16.msra.mxu1 %v5211_v49 }
 0x7ad   : >> { %5291 = vmatprep.subr.bf16.mxu1 %v5218_v10 }
 0x7b0   : >> { %5292 = vmatpush3.bf16.msra.mxu1 %v5210_v21 }
 0x7b1   : >> { %5293 = vmatprep.subr.bf16.mxu1 %v5217_v27 }
 0x7b4   : >> { %5294 = vmatpush3.bf16.msra.mxu1 %v5209_v48 }
 0x7b5   : >> { %5295 = vmatprep.subr.bf16.mxu1 %v5216_v57 }
 0x7b8   : >> { %5296 = vmatpush3.bf16.msra.mxu1 %v5208_v3  ;;  %v5207_v3 = vcombine.low %v8134_v4, %v8133_v25 }
 0x82a   : >> { %v4491_v13 = vpop.xlane.xlu1 %4490 }
 0x82b   : >> { %v4498_v51 = vmul.f32 0.0078125, %v4491_v13  ;;  %v8135_v13 = vld [vmem:[#allocation90_spill] sm:$0xff] }
 0x82d   : >> { %v4502_v22 = vadd.f32 1e-05, %v4498_v51 }
 0x82e   : >> { %v4495_v6 = vpop.xlane.xlu1 %4494  ;;  %v4493_v41 = vpop.xlane.xlu0 %4492 }
 0x82f   : >> { %5718 = vrsqrt.f32 %v4502_v22  ;;  %v4500_v7 = vmul.f32 0.0078125, %v4495_v6  ;;  %v4499_v62 = vmul.f32 0.0078125, %v4493_v41  ;;  %v8137_v22 = vld [vmem:[#allocation74_spill] sm:$0xff]  ;;  %v8138_v6 = vld [vmem:[#allocation73_spill] sm:$0xff] }
 0x830   : >> { %v5206_v41 = vcombine.low %v8138_v6, %v8137_v22 }
 0x831   : >> { %v4503_v8 = vadd.f32 1e-05, %v4499_v62  ;;  %v4504_v26 = vadd.f32 1e-05, %v4500_v7  ;;  %v8139_v7 = vld [vmem:[#allocation88_spill] sm:$0xff]  ;;  %v8140_v62 = vld [vmem:[#allocation87_spill] sm:$0xff] }
 0x832   : >> { %v4497_v61 = vpop.xlane.xlu0 %4496 }
 0x833   : >> { %v4501_v45 = vmul.f32 0.0078125, %v4497_v61  ;;  %5720 = vrsqrt.f32 %v4503_v8  ;;  %v5213_v8 = vcombine.low %v8140_v62, %v8139_v7  ;;  %v8142_v61 = vld [vmem:[#allocation71_spill] sm:$0xff] }
 0x834   : >> { %5722 = vrsqrt.f32 %v4504_v26  ;;  %v8141_v26 = vld [vmem:[#allocation72_spill] sm:$0xff] }
 0x835   : >> { %v4505_v40 = vadd.f32 1e-05, %v4501_v45  ;;  %v5205_v45 = vcombine.low %v8142_v61, %v8141_v26 }
 0x837   : >> { %5724 = vrsqrt.f32 %v4505_v40 }
 0x83c   : >> { %v5719_v42 = vpop.eup %5718 }
 0x83d   : >> { %v4510_v47 = vmul.f32 %v5719_v42, %v7615_v43  ;;  %v8143_v42 = vld [vmem:[#allocation122_spill] sm:$0xff] }
 0x83f   : >> { %v4520_v2 = vmul.f32 %v8129_v59, %v4510_v47  ;;  %v8144_v47 = vsub.s32 1, %v8143_v42 }
 0x840   : >> { %v5721_v18 = vpop.eup %5720 }
 0x841   : >> { %v4511_v49 = vmul.f32 %v5721_v18, %v7619_v5  ;;  %v5723_v10 = vpop.eup %5722  ;;  %v7685_v52 = vadd.f32 %v8130_v19, %v4520_v2  ;;  %v8145_v18 = vld [vmem:[#allocation70_spill] sm:$0xff]  ;;  %v8146_v2 = vsub.s32 0, %v8143_v42 }
 0x842   : >> { %v4512_v1 = vmul.f32 %v5723_v10, %v7621_v15  ;;  %v8131_v15 = vld [vmem:[#allocation92_spill] sm:$0xff] }
 0x843   : >> { %v4521_v63 = vmul.f32 %v8129_v59, %v4511_v49  ;;  %v5215_v57 = vcombine.low %v8132_v55, %v8131_v15  ;;  %v4544_v49 = vrot.slane %v8145_v18, %v8144_v47  ;;  %v4540_v10 = vrot.slane %v8145_v18, %v8146_v2 }
 0x844   : >> { %v5725_v58 = vpop.eup %5724  ;;  %v4522_v14 = vmul.f32 %v8129_v59, %v4512_v1 }
 0x845   : >> { %v4513_v21 = vmul.f32 %v5725_v58, %v7627_v20  ;;  %v7688_v27 = vadd.f32 %v8130_v19, %v4521_v63  ;;  %5297 = vmatprep.subr.bf16.mxu1 %v5215_v57 }
 0x846   : >> { %v7700_v48 = vadd.f32 %v8130_v19, %v4522_v14  ;;  %5298 = vmatpush3.bf16.msra.mxu1 %v5207_v3 }
 0x847   : >> { %v4534_v43 = vpack.c.bf16 %v7688_v27, %v7685_v52  ;;  %v4523_v5 = vmul.f32 %v8129_v59, %v4513_v21 }
 0x849   : >> { %4660 = vmatmul.mubr.bf16.vlgmr.msra.gmra.mxu0 %v4534_v43  ;;  %v7697_v20 = vadd.f32 %v8130_v19, %v4523_v5 }
 0x84a   : >> { %4669 = vmatprep.mubr.bf16.mxu0 %v8077_v28  ;;  %v8136_v28 = vld [vmem:[#allocation89_spill] sm:$0xff] }
 0x84b   : >> { %v4535_v53 = vpack.c.bf16 %v7697_v20, %v7700_v48  ;;  %v5214_v51 = vcombine.low %v8136_v28, %v8135_v13 }
 0x84d   : >> { %5299 = vmatprep.subr.bf16.mxu1 %v5214_v51 }
 0x84e   : >> { %5300 = vmatpush3.bf16.msra.mxu1 %v5206_v41 }
 0x84f   : >> { %5301 = vmatprep.subr.bf16.mxu1 %v5213_v8 }
 0x851   : >> { %4670 = vmatmul.mubr.bf16.gmra.mxu0 %v4535_v53 }
 0x852   : >> { %5302 = vmatpush3.bf16.msra.mxu1 %v5205_v45 }
 0x909   : >> { %v4661_v40 = vpop.f32.mrf.mxu0 }
 0x90a   : >> { %v4662_v43 = vadd.f32 %v4661_v40, %v4540_v10 }
 0x90b   : >> { %v4663_v58 = vpop.f32.mrf.mxu0 }
 0x90c   : >> { %v4664_v21 = vadd.f32 %v4663_v58, %v4544_v49  ;;  %v4680_v25 = vmax.f32 %v4662_v43, 0.0 }
 0x90d   : >> { %v4665_v63 = vpop.f32.mrf.mxu0 }
 0x90e   : >> { %v4666_v1 = vadd.f32 %v4665_v63, %v4540_v10  ;;  %v4681_v55 = vmax.f32 %v4664_v21, 0.0  ;;  %v8147_v63 = vld [vmem:[#allocation103_spill] sm:$0xff] }
 0x90f   : >> { %v4667_v5 = vpop.f32.mrf.mxu0 }
 0x910   : >> { %v4668_v14 = vadd.f32 %v4667_v5, %v4544_v49  ;;  %v4682_v53 = vmax.f32 %v4666_v1, 0.0 }
 0x911   : >> { %v4671_v15 = vpop.f32.mrf.mxu0 }
 0x912   : >> { %v4683_v57 = vmax.f32 %v4668_v14, 0.0  ;;  %v4688_v13 = vpack.c.bf16 %v4682_v53, %v4680_v25  ;;  %v4672_v6 = vadd.f32 %v4671_v15, %v4540_v10 }
 0x913   : >> { %v4673_v4 = vpop.f32.mrf.mxu0 }
 0x914   : >> { %v4689_v3 = vpack.c.bf16 %v4683_v57, %v4681_v55  ;;  %v4674_v51 = vadd.f32 %v4673_v4, %v4544_v49  ;;  %v4684_v61 = vmax.f32 %v4672_v6, 0.0 }
 0x915   : >> { %v4675_v28 = vpop.f32.mrf.mxu0 }
 0x916   : >> { %v4676_v22 = vadd.f32 %v4675_v28, %v4540_v10  ;;  %4826 = vmatprep.mubr.bf16.mxu1 %v4689_v3  ;;  %v4685_v8 = vmax.f32 %v4674_v51, 0.0 }
 0x917   : >> { %v4677_v41 = vpop.f32.mrf.mxu0  ;;  %4827 = vmatmul.mubr.bf16.vlgmr.msra.gmra.mxu1 %v4688_v13 }
 0x918   : >> { %v4678_v7 = vadd.f32 %v4677_v41, %v4544_v49  ;;  %v4686_v62 = vmax.f32 %v4676_v22, 0.0 }
 0x91a   : >> { %v4687_v26 = vmax.f32 %v4678_v7, 0.0  ;;  %v4690_v40 = vpack.c.bf16 %v4686_v62, %v4684_v61 }
 0x91c   : >> { %v4691_v45 = vpack.c.bf16 %v4687_v26, %v4685_v8 }
 0x91e   : >> { %4834 = vmatprep.mubr.bf16.mxu1 %v4691_v45 }
 0x91f   : >> { %4835 = vmatmul.mubr.bf16.gmra.mxu1 %v4690_v40 }
 0x9d7   : >> { %v5303_v42 = vpop.f32.mrf.mxu1 }
 0x9d9   : >> { %v5304_v47 = vpop.f32.mrf.mxu1 }
 0x9da   : >> { %v5305_v2 = vadd.f32 %v5304_v47, %v5303_v42 }
 0x9db   : >> { %v5306_v58 = vpop.f32.mrf.mxu1 }
 0x9dc   : >> { %v4829_v21 = vadd.f32 %v5305_v2, %v8147_v63 }
 0x9dd   : >> { %v5307_v1 = vpop.f32.mrf.mxu1 }
 0x9de   : >> { %v5308_v43 = vadd.f32 %v5307_v1, %v5306_v58  ;;  %v4843_v10 = vadd.f32 %v4829_v21, %v7685_v52 }
 0x9df   : >> { %v5309_v5 = vpop.f32.mrf.mxu1 }
 0x9e0   : >> { %v4832_v49 = vadd.f32 %v5308_v43, %v8147_v63  ;;  %4847 = vadd.xlane.f32.xlu1 %v4843_v10 }
 0x9e1   : >> { %v5310_v14 = vpop.f32.mrf.mxu1 }
 0x9e2   : >> { %v5311_v53 = vadd.f32 %v5310_v14, %v5309_v5  ;;  %v4844_v15 = vadd.f32 %v4832_v49, %v7688_v27 }
 0x9e3   : >> { %v5312_v55 = vpop.f32.mrf.mxu1 }
 0x9e4   : >> { %v4837_v57 = vadd.f32 %v5311_v53, %v8147_v63  ;;  %4849 = vadd.xlane.f32.xlu0 %v4844_v15 }
 0x9e5   : >> { %v5313_v25 = vpop.f32.mrf.mxu1 }
 0x9e6   : >> { %v5314_v4 = vadd.f32 %v5313_v25, %v5312_v55  ;;  %v4845_v3 = vadd.f32 %v4837_v57, %v7700_v48  ;;  %v8148_v25 = vld [vmem:[#allocation104_spill] sm:$0xff] }
 0x9e8   : >> { %v4840_v13 = vadd.f32 %v5314_v4, %v8147_v63  ;;  %4851 = vadd.xlane.f32.xlu1 %v4845_v3 }
 0x9ea   : >> { %v4846_v52 = vadd.f32 %v4840_v13, %v7697_v20  ;;  %v8149_v13 = vld [vmem:[#allocation105_spill] sm:$0xff] }
 0x9ec   : >> { %4853 = vadd.xlane.f32.xlu0 %v4846_v52 }
 0xa69   : >> { %v4848_v28 = vpop.xlane.xlu1 %4847 }
 0xa6a   : >> { %v4855_v51 = vmul.f32 0.0078125, %v4848_v28 }
 0xa6c   : >> { %v4859_v22 = vsub.f32 %v4843_v10, %v4855_v51 }
 0xa6d   : >> { %v4850_v6 = vpop.xlane.xlu0 %4849 }
 0xa6e   : >> { %v4856_v41 = vmul.f32 0.0078125, %v4850_v6  ;;  %v4863_v27 = vmul.f32 %v4859_v22, %v4859_v22 }
 0xa70   : >> { %v4860_v7 = vsub.f32 %v4844_v15, %v4856_v41  ;;  %4867 = vadd.xlane.f32.xlu1 %v4863_v27 }
 0xa71   : >> { %v4852_v62 = vpop.xlane.xlu1 %4851 }
 0xa72   : >> { %v4857_v8 = vmul.f32 0.0078125, %v4852_v62  ;;  %v4864_v26 = vmul.f32 %v4860_v7, %v4860_v7 }
 0xa74   : >> { %v4861_v61 = vsub.f32 %v4845_v3, %v4857_v8  ;;  %4869 = vadd.xlane.f32.xlu0 %v4864_v26 }
 0xa75   : >> { %v4854_v48 = vpop.xlane.xlu0 %4853 }
 0xa76   : >> { %v4858_v45 = vmul.f32 0.0078125, %v4854_v48  ;;  %v4865_v40 = vmul.f32 %v4861_v61, %v4861_v61 }
 0xa78   : >> { %v4862_v42 = vsub.f32 %v4846_v52, %v4858_v45  ;;  %4871 = vadd.xlane.f32.xlu1 %v4865_v40 }
 0xa7a   : >> { %v4866_v20 = vmul.f32 %v4862_v42, %v4862_v42 }
 0xa7c   : >> { %4873 = vadd.xlane.f32.xlu0 %v4866_v20 }
 0xaf9   : >> { %v4868_v47 = vpop.xlane.xlu1 %4867 }
 0xafa   : >> { %v4875_v2 = vmul.f32 0.0078125, %v4868_v47 }
 0xafc   : >> { %v4879_v58 = vadd.f32 1e-05, %v4875_v2 }
 0xafd   : >> { %v4870_v21 = vpop.xlane.xlu0 %4869 }
 0xafe   : >> { %5726 = vrsqrt.f32 %v4879_v58  ;;  %v4876_v1 = vmul.f32 0.0078125, %v4870_v21 }
 0xb00   : >> { %v4880_v43 = vadd.f32 1e-05, %v4876_v1 }
 0xb01   : >> { %v4872_v10 = vpop.xlane.xlu1 %4871 }
 0xb02   : >> { %5728 = vrsqrt.f32 %v4880_v43  ;;  %v4877_v5 = vmul.f32 0.0078125, %v4872_v10 }
 0xb04   : >> { %v4881_v49 = vadd.f32 1e-05, %v4877_v5 }
 0xb05   : >> { %v4874_v14 = vpop.xlane.xlu0 %4873 }
 0xb06   : >> { %5730 = vrsqrt.f32 %v4881_v49  ;;  %v4878_v53 = vmul.f32 0.0078125, %v4874_v14 }
 0xb08   : >> { %v4882_v15 = vadd.f32 1e-05, %v4878_v53 }
 0xb0a   : >> { %5732 = vrsqrt.f32 %v4882_v15 }
 0xb0b   : >> { %v5727_v55 = vpop.eup %5726 }
 0xb0c   : >> { %v4887_v57 = vmul.f32 %v5727_v55, %v4859_v22 }
 0xb0e   : >> { %v4897_v4 = vmul.f32 %v8148_v25, %v4887_v57 }
 0xb0f   : >> { %v5729_v3 = vpop.eup %5728 }
 0xb10   : >> { %v4907_v52 = vadd.f32 %v8149_v13, %v4897_v4   ;;  %v4888_v28 = vmul.f32 %v5729_v3, %v4860_v7 }
 0xb12   : >> { %v4898_v51 = vmul.f32 %v8148_v25, %v4888_v28  ;;  %v8153_v1 = vmov %v4907_v52  ;;  %4911 = vst [vmem:[%s6652_s30] sm:$0xff] (%p878_p10), %v4907_v52 }
 0xb13   : >> { %v5731_v6 = vpop.eup %5730 }
 0xb14   : >> { %v4908_v41 = vadd.f32 %v8149_v13, %v4898_v51   ;;  %v4889_v27 = vmul.f32 %v5731_v6, %v4861_v61 }
 0xb16   : >> { %v4899_v62 = vmul.f32 %v8148_v25, %v4889_v27  ;;  %v8152_v2 = vmov %v4908_v41  ;;  %4912 = vst [vmem:[%s6652_s30 + $0x8] sm:$0xff] (%p878_p10), %v4908_v41 }
 0xb17   : >> { %v5733_v8 = vpop.eup %5732 }
 0xb18   : >> { %v4909_v26 = vadd.f32 %v8149_v13, %v4899_v62   ;;  %v4890_v48 = vmul.f32 %v5733_v8, %v4862_v42 }
 0xb1a   : >> { %v4900_v22 = vmul.f32 %v8148_v25, %v4890_v48  ;;  %v8151_v3 = vmov %v4909_v26  ;;  %880 = sbr.rel (!%p878_p10) target bundleno = 436 (0x1b4), region = 161  ;;  %4913 = vst [vmem:[%s6652_s30 + $0x10] sm:$0xff] (%p878_p10), %v4909_v26 }
 0xb1c   : >> { %v4910_v45 = vadd.f32 %v8149_v13, %v4900_v22  }
 0xb1e   : >> { %v8150_v4 = vmov %v4910_v45  ;;  %4914 = vst [vmem:[%s6652_s30 + $0x18] sm:$0xff] (%p878_p10), %v4910_v45 }
 0xb1f   : > { %5907 = shalt.err (!%p5904_p8)
}
 0xb20   : > { %s5908_s25 = scalar_lea.hbm %s7757_s18, 512  ;;  %s5912_s15 = scalar_lea.hbm %s8155_s11, 1024 }
 0xb21   : > { %p5909_p11 = scmp.ne.s32.totalorder %s7757_s18, %s5908_s25  ;;  %p5913_p13 = scmp.lt.s32.totalorder %s7757_s18, %s8155_s11 }
 0xb22   : > { %p5914_p5 = scmp.lt.s32.totalorder %s5912_s15, %s5908_s25 }
 0xb23   : > { %p5910_p3 = pnand %p5909_p11, %p8156_p6 }
 0xb24   : > { %p5915_p10 = por %p5914_p5, %p5913_p13 }
 0xb25   : > { %p5911_p9 = pneg %p5910_p3 }
 0xb27   : > { %p5916_p1 = pnand %p5915_p10, %p5911_p9 }
 0xb29   : > { %5919 = shalt.err (!%p5916_p1)
}
 0xb2a   : > { %s6038_s2 = smov 128   ;;  %s6039_s5 = smov 8  }
 0xb2b   : > { %5487 = dma.vmem_to_hbm [thread:$0]  (%p8156_p6), %s7760_s9, 512, %s7757_s18, %s4916_s26, %s6038_s2, %s6038_s2, %s6039_s5  }
 0xb2c PF: > { %s8157_s20 = sld [smem:[#allocation20_spill]]  ;;  %p8160_p4 = scmp.ge.s32.totalorder %s5994_s21, 2 }
 0xb2d   : > { %s8158_s27 = sld [smem:[#allocation22_spill]] }
 0xb32   : > { %s4945_s24 = sand.u32 1, %s8157_s20  }
 0xb33   : > { %p8159_p12 = scmp.ne.s32.totalorder %s8158_s27, 0  ;;  %s4946_s17 = scalar_lea.sflag [#allocation4], %s4945_s24 }
 0xb35   : > { %p5510_p0 = pnand %p8160_p4, %p8159_p12 }
 0xb37   : > { %p5511_p7 = pneg %p5510_p0 }
 0xb39   : > { %5977 = dma.done.wait (%p5511_p7), %s4946_s17, 512  }
 0xb3a   : > { %5979 = vsyncadd (%p5511_p7), %s4946_s17, 4294966784  ;;  %s8161_s21 = sld [smem:[#allocation23_spill]]  ;;  %s8164_s18 = smov %s5986_s19 }
 0xb3b   : > { %s8162_s22 = sld [smem:[#allocation21_spill]] }
 0xb3c   : > { %s8163_s20 = sld [smem:[#allocation25_spill]] }
 0xb40   : > { %p33_p2 = scmp.ge.s32.totalorder %s8161_s21, 4  }
 0xb41   : > { %s8165_s19 = smov %s8162_s22 }
 0xb42   :  { %35 = sbr.rel (!%p33_p2) target bundleno = 16 (0x10), region = 172 }
 0xb47   :  { %4951 = vsyncpa [#allocation3], 1 }
 0xb48   :  { %4953 = vsyncpa [#allocation3 + $0x1], 1 }
 0xb49   :  { %4954 = vsyncpa [#allocation6], 1 }
 0xb4a   :  { %4956 = vsyncpa [#allocation6 + $0x1], 1 }
 0xb4b   :  { %4957 = vsyncpa [#allocation9], 1 }
 0xb4c   :  { %4958 = vsyncpa [#allocation12], 1 }
 0xb4d   :  { %4959 = vsyncpa [#allocation4], 1 }
 0xb4e   :  { %4961 = vsyncpa [#allocation4 + $0x1], 1 }

</bundles_post_ra>
